<compile_context>
chip_gen: v5e
topology: v5e:2x2
jax: 0.10.0
libtpu: 0.0.40
codegen_flags: <defaults>
</compile_context>

<pallas_src>
import math
import functools

import numpy as np
import jax
import jax.numpy as jnp
from jax import lax
from jax.experimental import pallas as pl
from jax.experimental.pallas import tpu as pltpu

BN_EPS = 1e-3          # BatchNorm3d eps from the module
_BF16 = jnp.bfloat16   # MXU operand dtype (accumulation stays f32)


# --------------------------------------------------------------------------
# In-kernel helpers
# --------------------------------------------------------------------------
def _mm(a, w, b=None):
    """bf16-operand matmul with f32 accumulation (+ optional bias row)."""
    out = jnp.dot(a.astype(_BF16), w.astype(_BF16),
                  preferred_element_type=jnp.float32)
    if b is not None:
        out = out + b
    return out


def _mish(y):
    # Mish(y) = y * tanh(softplus(y)); stable softplus.
    sp = jnp.maximum(y, 0.0) + jnp.log1p(jnp.exp(-jnp.abs(y)))
    return y * jnp.tanh(sp)


def _bn_mish(y, scale, shift):
    # eval-mode BatchNorm folded to per-channel affine, then Mish (all f32).
    return _mish(y * scale + shift)


# --------------------------------------------------------------------------
# Spectral branch kernel: 5 band convs + BN/Mish + CAM + mul + global pool
# --------------------------------------------------------------------------
def _spectral_kernel(x_ref,
                     w11, b11, s11, h11,
                     w12, b12, s12, h12,
                     w13, b13, s13, h13,
                     w14, b14, s14, h14,
                     w15, b15, gamma,
                     o_ref, dense_ref):
    hw = dense_ref.shape[0]
    band = x_ref.shape[-1]
    x = x_ref[0].reshape(hw, band)                       # (HW, band)

    # densenet chain; activations flattened channel-major (col = c*D + d)
    x11 = _mm(x, w11[...], b11[...])                     # (HW, 24*5)
    dense_ref[:, 0:120] = x11
    a = _bn_mish(x11, s11[...], h11[...])
    x12 = _mm(a, w12[...], b12[...])                     # (HW, 12*5)
    dense_ref[:, 120:180] = x12
    a = _bn_mish(dense_ref[:, 0:180], s12[...], h12[...])
    x13 = _mm(a, w13[...], b13[...])
    dense_ref[:, 180:240] = x13
    a = _bn_mish(dense_ref[:, 0:240], s13[...], h13[...])
    x14 = _mm(a, w14[...], b14[...])
    dense_ref[:, 240:300] = x14
    a = _bn_mish(dense_ref[...], s14[...], h14[...])
    x16 = _mm(a, w15[...], b15[...])                     # (HW, 60) == (N, C)

    # CAM in Gram-matrix form, fused with torch.mul(x1, x16) + global avg pool:
    #   pooled[c] = gamma/N * sum_c' attn[c,c'] G[c',c] + (1/N) * sum_n x[n,c]^2
    xb = x16.astype(_BF16)
    g = lax.dot_general(xb, xb, (((0,), (0,)), ((), ())),
                        preferred_element_type=jnp.float32)     # (C, C) symmetric
    m = jnp.max(g, axis=0, keepdims=True)                       # row max == col max
    en = m - g                                                  # en[c',c] = energy_new[c,c']
    en = en - jnp.max(en, axis=0, keepdims=True)
    p = jnp.exp(en)
    attn_t = p / jnp.sum(p, axis=0, keepdims=True)              # attn_t[c',c] = attn[c,c']
    term1 = jnp.sum(attn_t * g, axis=0, keepdims=True)          # (1, C)
    diag = jnp.sum(x16 * x16, axis=0, keepdims=True)            # (1, C)
    inv_n = 1.0 / hw
    o_ref[0] = (gamma[...] * term1 + diag) * inv_n


def spectral_branch(x_bhwc, kp):
    B, H, W, band = x_bhwc.shape
    hw = H * W
    args = (kp['w11t'], kp['b11r'], kp['s11'], kp['h11'],
            kp['w12t'], kp['b12r'], kp['s12'], kp['h12'],
            kp['w13t'], kp['b13r'], kp['s13'], kp['h13'],
            kp['w14t'], kp['b14r'], kp['s14'], kp['h14'],
            kp['w15t'], kp['b15r'], kp['gamma_c'])
    in_specs = ([pl.BlockSpec((1, H, W, band), lambda b: (b, 0, 0, 0))]
                + _const_specs(args))
    out = pl.pallas_call(
        _spectral_kernel,
        out_shape=jax.ShapeDtypeStruct((B, 1, 60), jnp.float32),
        grid=(B,),
        in_specs=in_specs,
        out_specs=pl.BlockSpec((1, 1, 60), lambda b: (b, 0, 0)),
        scratch_shapes=[pltpu.VMEM((hw, 300), jnp.float32)],
        compiler_params=pltpu.CompilerParams(dimension_semantics=("parallel",)),
    )(x_bhwc, *args)
    return out.reshape(B, 60)


# --------------------------------------------------------------------------
# Spatial branch kernel: 4 convs + BN/Mish + PAM + mul + global pool
# --------------------------------------------------------------------------
def _conv3x3_acc(a_flat, cin, w_ref, b_ref, pad_ref, hh, ww):
    """3x3/pad-1 conv via zero-halo scratch + 9 shifted-window matmuls."""
    cout = w_ref.shape[-1]
    pad_ref[1:hh + 1, 1:ww + 1, 0:cin] = a_flat.reshape(hh, ww, cin)
    acc = jnp.zeros((hh * ww, cout), jnp.float32) + b_ref[...]
    for t in range(9):
        dh, dw = t // 3, t % 3
        win = pad_ref[dh:dh + hh, dw:dw + ww, 0:cin].reshape(hh * ww, cin)
        acc = acc + jnp.dot(win.astype(_BF16), w_ref[t],
                            preferred_element_type=jnp.float32)
    return acc


def _spatial_kernel(x_ref,
                    w21, b21, s21, h21,
                    w22, b22, s22, h22,
                    w23, b23, s23, h23,
                    w24, b24,
                    wq, bq, wk, bk, wv, bv, gamma,
                    o_ref, dense_ref, pad_ref):
    hh = pad_ref.shape[0] - 2
    ww = pad_ref.shape[1] - 2
    hw = hh * ww
    band = x_ref.shape[-1]
    pad_ref[...] = jnp.zeros(pad_ref.shape, jnp.float32)   # zero halo once

    x = x_ref[0].reshape(hw, band)
    x21 = _mm(x, w21[...], b21[...])                       # (HW, 24)
    dense_ref[:, 0:24] = x21
    a = _bn_mish(x21, s21[...], h21[...])
    x22 = _conv3x3_acc(a, 24, w22, b22, pad_ref, hh, ww)   # (HW, 12)
    dense_ref[:, 24:36] = x22
    a = _bn_mish(dense_ref[:, 0:36], s22[...], h22[...])
    x23 = _conv3x3_acc(a, 36, w23, b23, pad_ref, hh, ww)
    dense_ref[:, 36:48] = x23
    a = _bn_mish(dense_ref[:, 0:48], s23[...], h23[...])
    x24 = _conv3x3_acc(a, 48, w24, b24, pad_ref, hh, ww)
    dense_ref[:, 48:60] = x24
    x25 = dense_ref[...]                                    # (HW, 60)

    # PAM + torch.mul(x2, x25) + global average pool.
    # TODO(synk): flash-tile the (N, N) softmax for large H*W (v7x 64 MiB VMEM).
    xb = x25.astype(_BF16)
    q = _mm(xb, wq[...], bq[...])                           # (N, 8)  (7 padded to 8)
    k = _mm(xb, wk[...], bk[...])
    v = _mm(xb, wv[...], bv[...])                           # (N, 60)
    energy = lax.dot_general(q.astype(_BF16), k.astype(_BF16),
                             (((1,), (1,)), ((), ())),
                             preferred_element_type=jnp.float32)   # (N, N)
    e = jnp.exp(energy - jnp.max(energy, axis=-1, keepdims=True))
    attn = e / jnp.sum(e, axis=-1, keepdims=True)
    out = jnp.dot(attn.astype(_BF16), v.astype(_BF16),
                  preferred_element_type=jnp.float32)              # (N, 60)
    res = gamma[...] * out + x25
    o_ref[0] = jnp.mean(res * x25, axis=0, keepdims=True)          # (1, 60)


def spatial_branch(x_bhwc, kp):
    B, H, W, band = x_bhwc.shape
    hw = H * W
    args = (kp['w21'], kp['b21'], kp['s21'], kp['h21'],
            kp['w22'], kp['b22'], kp['s22'], kp['h22'],
            kp['w23'], kp['b23'], kp['s23'], kp['h23'],
            kp['w24'], kp['b24'],
            kp['wq'], kp['bq'], kp['wk'], kp['bk'], kp['wv'], kp['bv'],
            kp['gamma_p'])
    in_specs = ([pl.BlockSpec((1, H, W, band), lambda b: (b, 0, 0, 0))]
                + _const_specs(args))
    out = pl.pallas_call(
        _spatial_kernel,
        out_shape=jax.ShapeDtypeStruct((B, 1, 60), jnp.float32),
        grid=(B,),
        in_specs=in_specs,
        out_specs=pl.BlockSpec((1, 1, 60), lambda b: (b, 0, 0)),
        scratch_shapes=[pltpu.VMEM((hw, 60), jnp.float32),
                        pltpu.VMEM((H + 2, W + 2, 48), jnp.float32)],
        compiler_params=pltpu.CompilerParams(dimension_semantics=("parallel",)),
    )(x_bhwc, *args)
    return out.reshape(B, 60)


# --------------------------------------------------------------------------
# Head kernel: seq-len-1 cross attention + LayerNorm(120) + Linear(120,classes)
# --------------------------------------------------------------------------
def _head_kernel(x1_ref, x2_ref,
                 wv1, bv1, wo1, bo1,
                 wv2, bv2, wo2, bo2,
                 lng1, lng2, lnb1, lnb2,
                 wc1, wc2, bc, o_ref):
    x1 = x1_ref[...]
    x2 = x2_ref[...]
    # MultiheadAttention with q/k/v sequence length 1: softmax over a single
    # key is exactly 1, so the output is out_proj(value_proj(kv)).
    v1 = jnp.dot(x2, wv1[...], preferred_element_type=jnp.float32) + bv1[...]
    a1 = jnp.dot(v1, wo1[...], preferred_element_type=jnp.float32) + bo1[...]
    v2 = jnp.dot(x1, wv2[...], preferred_element_type=jnp.float32) + bv2[...]
    a2 = jnp.dot(v2, wo2[...], preferred_element_type=jnp.float32) + bo2[...]
    # LayerNorm over concat [a1, a2] (width 120), computed split-wise.
    d = a1.shape[-1] + a2.shape[-1]
    s = jnp.sum(a1, axis=-1, keepdims=True) + jnp.sum(a2, axis=-1, keepdims=True)
    mu = s / d
    ss = (jnp.sum((a1 - mu) ** 2, axis=-1, keepdims=True)
          + jnp.sum((a2 - mu) ** 2, axis=-1, keepdims=True))
    inv = lax.rsqrt(ss / d + 1e-5)
    y1 = (a1 - mu) * inv * lng1[...] + lnb1[...]
    y2 = (a2 - mu) * inv * lng2[...] + lnb2[...]
    # Dropout(0.5) is identity in eval mode.
    o_ref[...] = (jnp.dot(y1, wc1[...], preferred_element_type=jnp.float32)
                  + jnp.dot(y2, wc2[...], preferred_element_type=jnp.float32)
                  + bc[...])


def head(x1, x2, kp, classes):
    B, _ = x1.shape
    all_args = (x1, x2,
                kp['wv1'], kp['bv1'], kp['wo1'], kp['bo1'],
                kp['wv2'], kp['bv2'], kp['wo2'], kp['bo2'],
                kp['lng1'], kp['lng2'], kp['lnb1'], kp['lnb2'],
                kp['wc1'], kp['wc2'], kp['bc'])
    return pl.pallas_call(
        _head_kernel,
        out_shape=jax.ShapeDtypeStruct((B, classes), jnp.float32),
        grid=(1,),
        in_specs=_const_specs(all_args),
        out_specs=pl.BlockSpec((B, classes), lambda i: (0, 0)),
    )(*all_args)


# --------------------------------------------------------------------------
# BlockSpec helper
# --------------------------------------------------------------------------
def _const_specs(args):
    specs = []
    for a in args:
        n = a.ndim
        specs.append(pl.BlockSpec(a.shape, lambda *_, n=n: (0,) * n))
    return specs


# --------------------------------------------------------------------------
# Host-side parameter preparation
# --------------------------------------------------------------------------
def _band_toeplitz(w_taps, d_in, stride, pad):
    """(K,Cin,Cout) band-conv taps -> dense (Cin*Din, Cout*Dout) matmul weight
    in channel-major/depth-minor flattened layout (padding baked in as zeros)."""
    w_np = np.asarray(w_taps, np.float32)
    K, cin, cout = w_np.shape
    d_out = (d_in + 2 * pad - K) // stride + 1
    wt = np.zeros((cin * d_in, cout * d_out), np.float32)
    rows = np.arange(cin) * d_in
    cols = np.arange(cout) * d_out
    for d in range(d_out):
        for k in range(K):
            src = d * stride + k - pad
            if 0 <= src < d_in:
                wt[np.ix_(rows + src, cols + d)] += w_np[k]
    return wt, d_out


def _rep(v, d):
    """Per-channel vector -> (1, C*d) row matching the channel-major layout."""
    return jnp.asarray(np.repeat(np.asarray(v, np.float32), d)[None, :])


def bn_scale_shift(c):
    # eval-mode BatchNorm with default stats: gamma=1, beta=0, mean=0, var=1.
    scale = np.full((c,), 1.0 / math.sqrt(1.0 + BN_EPS), np.float32)
    shift = np.zeros((c,), np.float32)
    return scale, shift


def init_params(key, band, classes):
    ks = iter(jax.random.split(key, 64))

    def w(shape, scale=0.05):
        return (scale * jax.random.normal(next(ks), shape)).astype(jnp.float32)

    d1 = (band - 7) // 2 + 1                  # depth after conv11
    kernel_3d = math.floor((band - 6) / 2)
    d5 = d1 - kernel_3d + 1                   # depth after conv15
    # TODO(synk): generalize the CAM flattening for d5 > 1 (odd band counts).
    assert d5 == 1, "spectral kernel assumes conv15 collapses the band axis"

    p = {}

    # ---- spectral branch: conv taps -> Toeplitz matmul weights (bf16) ------
    def band_layer(cin, cout, K, stride, pad, d_in):
        taps = w((K, cin, cout))
        bias = w((cout,))
        wt, d_out = _band_toeplitz(taps, d_in, stride, pad)
        return jnp.asarray(wt, _BF16), _rep(bias, d_out)

    p['w11t'], p['b11r'] = band_layer(1, 24, 7, 2, 0, band)
    p['w12t'], p['b12r'] = band_layer(24, 12, 7, 1, 3, d1)
    p['w13t'], p['b13r'] = band_layer(36, 12, 7, 1, 3, d1)
    p['w14t'], p['b14r'] = band_layer(48, 12, 7, 1, 3, d1)
    p['w15t'], p['b15r'] = band_layer(60, 60, kernel_3d, 1, 0, d1)
    for name, c in (('11', 24), ('12', 36), ('13', 48), ('14', 60)):
        sc, sh = bn_scale_shift(c)
        p['s' + name] = _rep(sc, d1)
        p['h' + name] = _rep(sh, d1)

    # ---- spatial branch ----------------------------------------------------
    p['w21'] = w((band, 24)).astype(_BF16)
    p['b21'] = w((24,)).reshape(1, 24)
    p['w22'] = w((9, 24, 12)).astype(_BF16); p['b22'] = w((12,)).reshape(1, 12)
    p['w23'] = w((9, 36, 12)).astype(_BF16); p['b23'] = w((12,)).reshape(1, 12)
    p['w24'] = w((9, 48, 12)).astype(_BF16); p['b24'] = w((12,)).reshape(1, 12)
    for name, c in (('21', 24), ('22', 36), ('23', 48)):
        sc, sh = bn_scale_shift(c)
        p['s' + name] = jnp.asarray(sc[None, :])
        p['h' + name] = jnp.asarray(sh[None, :])

    # ---- PAM projections (q/k width 60//8=7, zero-padded to 8 lanes) -------
    cq = 60 // 8

    def qk_proj():
        wt = np.zeros((60, 8), np.float32)
        wt[:, :cq] = np.asarray(w((60, cq)))
        bt = np.zeros((8,), np.float32)
        bt[:cq] = np.asarray(w((cq,)))
        return jnp.asarray(wt, _BF16), jnp.asarray(bt)[None, :]

    p['wq'], p['bq'] = qk_proj()
    p['wk'], p['bk'] = qk_proj()
    p['wv'] = w((60, 60)).astype(_BF16)
    p['bv'] = w((60,)).reshape(1, 60)
    # module __init__ zeros the gammas; 0.1 keeps the attention paths active
    # in this synthetic run (parameterize before comparing to a checkpoint).
    p['gamma_c'] = jnp.full((1, 1), 0.1, jnp.float32)
    p['gamma_p'] = jnp.full((1, 1), 0.1, jnp.float32)

    # ---- cross attention (seq len 1) + LayerNorm + Linear classifier -------
    p['wv1'] = w((60, 60)); p['bv1'] = w((60,)).reshape(1, 60)
    p['wo1'] = w((60, 60)); p['bo1'] = w((60,)).reshape(1, 60)
    p['wv2'] = w((60, 60)); p['bv2'] = w((60,)).reshape(1, 60)
    p['wo2'] = w((60, 60)); p['bo2'] = w((60,)).reshape(1, 60)
    ln_g = jnp.ones((120,), jnp.float32)
    ln_b = jnp.zeros((120,), jnp.float32)
    p['lng1'] = ln_g[:60].reshape(1, 60); p['lng2'] = ln_g[60:].reshape(1, 60)
    p['lnb1'] = ln_b[:60].reshape(1, 60); p['lnb2'] = ln_b[60:].reshape(1, 60)
    wc = w((120, classes))
    p['wc1'] = wc[:60]; p['wc2'] = wc[60:]
    p['bc'] = w((classes,)).reshape(1, classes)
    return p


# --------------------------------------------------------------------------
# Forward pass (mirrors DbdaWithCrossAttention.forward, eval mode)
# --------------------------------------------------------------------------
def dbda_forward(X, kp, band, classes):
    # X: (B, band, H, W) — same NCHW convention as the PyTorch input.
    x = jnp.transpose(X, (0, 2, 3, 1))      # (B, H, W, band) == torch permute
    x1 = spectral_branch(x, kp)             # (B, 60)  dense band convs + CAM
    x2 = spatial_branch(x, kp)              # (B, 60)  dense 3x3 convs + PAM
    return head(x1, x2, kp, classes)        # (B, classes)


# --------------------------------------------------------------------------
if __name__ == "__main__":
    band, classes = 16, 5
    B, H, W = 2, 8, 8
    key = jax.random.PRNGKey(0)
    kx, kparam = jax.random.split(key)
    X = jax.random.normal(kx, (B, band, H, W), jnp.float32)
    params = init_params(kparam, band, classes)

    fwd = jax.jit(functools.partial(dbda_forward, band=band, classes=classes))
    out = fwd(X, params)
    jax.block_until_ready(out)
    assert out.shape == (B, classes) and out.dtype == jnp.float32
    print("KERNEL_OK")
</pallas_src>

<mosaic_0001>
module attributes {stable_mosaic.version = 11 : i64} {
  func.func @_spatial_kernel(%arg0: i32, %arg1: memref<1x8x8x16xf32, #tpu.memory_space<vmem>>, %arg2: memref<16x24xbf16, #tpu.memory_space<vmem>>, %arg3: memref<1x24xf32, #tpu.memory_space<vmem>>, %arg4: memref<1x24xf32, #tpu.memory_space<vmem>>, %arg5: memref<1x24xf32, #tpu.memory_space<vmem>>, %arg6: memref<9x24x12xbf16, #tpu.memory_space<vmem>>, %arg7: memref<1x12xf32, #tpu.memory_space<vmem>>, %arg8: memref<1x36xf32, #tpu.memory_space<vmem>>, %arg9: memref<1x36xf32, #tpu.memory_space<vmem>>, %arg10: memref<9x36x12xbf16, #tpu.memory_space<vmem>>, %arg11: memref<1x12xf32, #tpu.memory_space<vmem>>, %arg12: memref<1x48xf32, #tpu.memory_space<vmem>>, %arg13: memref<1x48xf32, #tpu.memory_space<vmem>>, %arg14: memref<9x48x12xbf16, #tpu.memory_space<vmem>>, %arg15: memref<1x12xf32, #tpu.memory_space<vmem>>, %arg16: memref<60x8xbf16, #tpu.memory_space<vmem>>, %arg17: memref<1x8xf32, #tpu.memory_space<vmem>>, %arg18: memref<60x8xbf16, #tpu.memory_space<vmem>>, %arg19: memref<1x8xf32, #tpu.memory_space<vmem>>, %arg20: memref<60x60xbf16, #tpu.memory_space<vmem>>, %arg21: memref<1x60xf32, #tpu.memory_space<vmem>>, %arg22: memref<1x1xf32, #tpu.memory_space<vmem>>, %arg23: memref<1x1x60xf32, #tpu.memory_space<vmem>>, %arg24: memref<64x60xf32, #tpu.memory_space<vmem>>, %arg25: memref<10x10x48xf32, #tpu.memory_space<vmem>>) attributes {dimension_semantics = [#tpu.dimension_semantics<parallel>], iteration_bounds = array<i64: 2>, scalar_prefetch = 0 : i64, scratch_operands = 2 : i64, tpu.core_type = #tpu.core_type<tc>, window_params = [{transform_indices = @transform_0, window_bounds = array<i64: 1, 8, 8, 16>}, {pipeline_mode = #tpu.pipeline_mode<synchronous>, transform_indices = @transform_1, window_bounds = array<i64: 16, 24>}, {pipeline_mode = #tpu.pipeline_mode<synchronous>, transform_indices = @transform_2, window_bounds = array<i64: 1, 24>}, {pipeline_mode = #tpu.pipeline_mode<synchronous>, transform_indices = @transform_3, window_bounds = array<i64: 1, 24>}, {pipeline_mode = #tpu.pipeline_mode<synchronous>, transform_indices = @transform_4, window_bounds = array<i64: 1, 24>}, {pipeline_mode = #tpu.pipeline_mode<synchronous>, transform_indices = @transform_5, window_bounds = array<i64: 9, 24, 12>}, {pipeline_mode = #tpu.pipeline_mode<synchronous>, transform_indices = @transform_6, window_bounds = array<i64: 1, 12>}, {pipeline_mode = #tpu.pipeline_mode<synchronous>, transform_indices = @transform_7, window_bounds = array<i64: 1, 36>}, {pipeline_mode = #tpu.pipeline_mode<synchronous>, transform_indices = @transform_8, window_bounds = array<i64: 1, 36>}, {pipeline_mode = #tpu.pipeline_mode<synchronous>, transform_indices = @transform_9, window_bounds = array<i64: 9, 36, 12>}, {pipeline_mode = #tpu.pipeline_mode<synchronous>, transform_indices = @transform_10, window_bounds = array<i64: 1, 12>}, {pipeline_mode = #tpu.pipeline_mode<synchronous>, transform_indices = @transform_11, window_bounds = array<i64: 1, 48>}, {pipeline_mode = #tpu.pipeline_mode<synchronous>, transform_indices = @transform_12, window_bounds = array<i64: 1, 48>}, {pipeline_mode = #tpu.pipeline_mode<synchronous>, transform_indices = @transform_13, window_bounds = array<i64: 9, 48, 12>}, {pipeline_mode = #tpu.pipeline_mode<synchronous>, transform_indices = @transform_14, window_bounds = array<i64: 1, 12>}, {pipeline_mode = #tpu.pipeline_mode<synchronous>, transform_indices = @transform_15, window_bounds = array<i64: 60, 8>}, {pipeline_mode = #tpu.pipeline_mode<synchronous>, transform_indices = @transform_16, window_bounds = array<i64: 1, 8>}, {pipeline_mode = #tpu.pipeline_mode<synchronous>, transform_indices = @transform_17, window_bounds = array<i64: 60, 8>}, {pipeline_mode = #tpu.pipeline_mode<synchronous>, transform_indices = @transform_18, window_bounds = array<i64: 1, 8>}, {pipeline_mode = #tpu.pipeline_mode<synchronous>, transform_indices = @transform_19, window_bounds = array<i64: 60, 60>}, {pipeline_mode = #tpu.pipeline_mode<synchronous>, transform_indices = @transform_20, window_bounds = array<i64: 1, 60>}, {pipeline_mode = #tpu.pipeline_mode<synchronous>, transform_indices = @transform_21, window_bounds = array<i64: 1, 1>}, {transform_indices = @transform_22, window_bounds = array<i64: 1, 1, 60>}]} {
    %cst = arith.constant 0.000000e+00 : f32
    %0 = vector.broadcast %cst : f32 to vector<10x10x48xf32>
    %c0 = arith.constant 0 : index
    %c0_0 = arith.constant 0 : index
    %c0_1 = arith.constant 0 : index
    %1 = vector.load %arg25[%c0, %c0_0, %c0_1] : memref<10x10x48xf32, #tpu.memory_space<vmem>>, vector<10x10x48xf32>
    tpu.vector_store %arg25[%c0, %c0_0, %c0_1], %0 {strides = array<i32>} : memref<10x10x48xf32, #tpu.memory_space<vmem>>, vector<10x10x48xf32>,
    %c0_2 = arith.constant 0 : index
    %c0_3 = arith.constant 0 : index
    %c0_4 = arith.constant 0 : index
    %c0_5 = arith.constant 0 : index
    %2 = vector.load %arg1[%c0_2, %c0_3, %c0_4, %c0_5] : memref<1x8x8x16xf32, #tpu.memory_space<vmem>>, vector<1x8x8x16xf32>
    %3 = vector.shape_cast %2 : vector<1x8x8x16xf32> to vector<8x8x16xf32>
    %4 = vector.shape_cast %3 : vector<8x8x16xf32> to vector<64x16xf32>
    %c0_6 = arith.constant 0 : index
    %c0_7 = arith.constant 0 : index
    %5 = vector.load %arg2[%c0_6, %c0_7] : memref<16x24xbf16, #tpu.memory_space<vmem>>, vector<16x24xbf16>
    %c0_8 = arith.constant 0 : index
    %c0_9 = arith.constant 0 : index
    %6 = vector.load %arg3[%c0_8, %c0_9] : memref<1x24xf32, #tpu.memory_space<vmem>>, vector<1x24xf32>
    %7 = arith.truncf %4 : vector<64x16xf32> to vector<64x16xbf16>
    %cst_10 = arith.constant dense<0.000000e+00> : vector<64x24xf32>
    %8 = tpu.matmul %7, %5, %cst_10 {dimension_numbers = #tpu.dot_dimension_numbers<[1], [0], [0], [1], [0, 0, 1, 1], [], []>} : vector<64x16xbf16>, vector<16x24xbf16>, vector<64x24xf32> -> vector<64x24xf32>
    %9 = vector.broadcast %6 : vector<1x24xf32> to vector<64x24xf32>
    %10 = arith.addf %8, %9 : vector<64x24xf32>
    %c0_11 = arith.constant 0 : index
    %c0_12 = arith.constant 0 : index
    %11 = vector.load %arg24[%c0_11, %c0_12] : memref<64x60xf32, #tpu.memory_space<vmem>>, vector<64x24xf32>
    tpu.vector_store %arg24[%c0_11, %c0_12], %10 {strides = array<i32>} : memref<64x60xf32, #tpu.memory_space<vmem>>, vector<64x24xf32>,
    %c0_13 = arith.constant 0 : index
    %c0_14 = arith.constant 0 : index
    %12 = vector.load %arg4[%c0_13, %c0_14] : memref<1x24xf32, #tpu.memory_space<vmem>>, vector<1x24xf32>
    %c0_15 = arith.constant 0 : index
    %c0_16 = arith.constant 0 : index
    %13 = vector.load %arg5[%c0_15, %c0_16] : memref<1x24xf32, #tpu.memory_space<vmem>>, vector<1x24xf32>
    %14 = vector.broadcast %12 : vector<1x24xf32> to vector<64x24xf32>
    %15 = arith.mulf %10, %14 : vector<64x24xf32>
    %16 = vector.broadcast %13 : vector<1x24xf32> to vector<64x24xf32>
    %17 = arith.addf %15, %16 : vector<64x24xf32>
    %cst_17 = arith.constant 0.000000e+00 : f32
    %18 = vector.broadcast %cst_17 : f32 to vector<64x24xf32>
    %19 = arith.maximumf %17, %18 : vector<64x24xf32>
    %20 = math.absf %17 : vector<64x24xf32>
    %cst_18 = arith.constant 0.000000e+00 : f32
    %21 = vector.broadcast %cst_18 : f32 to vector<64x24xf32>
    %22 = arith.subf %21, %20 : vector<64x24xf32>
    %23 = math.exp %22 : vector<64x24xf32>
    %24 = math.log1p %23 : vector<64x24xf32>
    %25 = arith.addf %19, %24 : vector<64x24xf32>
    %26 = math.tanh %25 : vector<64x24xf32>
    %27 = arith.mulf %17, %26 : vector<64x24xf32>
    %28 = vector.shape_cast %27 : vector<64x24xf32> to vector<8x8x24xf32>
    %c1 = arith.constant 1 : index
    %c1_19 = arith.constant 1 : index
    %c0_20 = arith.constant 0 : index
    %29 = vector.load %arg25[%c1, %c1_19, %c0_20] : memref<10x10x48xf32, #tpu.memory_space<vmem>>, vector<8x8x24xf32>
    tpu.vector_store %arg25[%c1, %c1_19, %c0_20], %28 {strides = array<i32>} : memref<10x10x48xf32, #tpu.memory_space<vmem>>, vector<8x8x24xf32>,
    %cst_21 = arith.constant 0.000000e+00 : f32
    %30 = vector.broadcast %cst_21 : f32 to vector<64x12xf32>
    %c0_22 = arith.constant 0 : index
    %c0_23 = arith.constant 0 : index
    %31 = vector.load %arg7[%c0_22, %c0_23] : memref<1x12xf32, #tpu.memory_space<vmem>>, vector<1x12xf32>
    %32 = vector.broadcast %31 : vector<1x12xf32> to vector<64x12xf32>
    %33 = arith.addf %30, %32 : vector<64x12xf32>
    %c0_24 = arith.constant 0 : index
    %c0_25 = arith.constant 0 : index
    %c0_26 = arith.constant 0 : index
    %34 = vector.load %arg25[%c0_24, %c0_25, %c0_26] : memref<10x10x48xf32, #tpu.memory_space<vmem>>, vector<8x8x24xf32>
    %35 = vector.shape_cast %34 : vector<8x8x24xf32> to vector<64x24xf32>
    %36 = arith.truncf %35 : vector<64x24xf32> to vector<64x24xbf16>
    %c0_27 = arith.constant 0 : index
    %c0_28 = arith.constant 0 : index
    %c0_29 = arith.constant 0 : index
    %37 = vector.load %arg6[%c0_27, %c0_28, %c0_29] : memref<9x24x12xbf16, #tpu.memory_space<vmem>>, vector<1x24x12xbf16>
    %38 = vector.shape_cast %37 : vector<1x24x12xbf16> to vector<24x12xbf16>
    %cst_30 = arith.constant dense<0.000000e+00> : vector<64x12xf32>
    %39 = tpu.matmul %36, %38, %cst_30 {dimension_numbers = #tpu.dot_dimension_numbers<[1], [0], [0], [1], [0, 0, 1, 1], [], []>} : vector<64x24xbf16>, vector<24x12xbf16>, vector<64x12xf32> -> vector<64x12xf32>
    %40 = arith.addf %33, %39 : vector<64x12xf32>
    %c0_31 = arith.constant 0 : index
    %c1_32 = arith.constant 1 : index
    %c0_33 = arith.constant 0 : index
    %41 = vector.load %arg25[%c0_31, %c1_32, %c0_33] : memref<10x10x48xf32, #tpu.memory_space<vmem>>, vector<8x8x24xf32>
    %42 = vector.shape_cast %41 : vector<8x8x24xf32> to vector<64x24xf32>
    %43 = arith.truncf %42 : vector<64x24xf32> to vector<64x24xbf16>
    %c1_34 = arith.constant 1 : index
    %c0_35 = arith.constant 0 : index
    %c0_36 = arith.constant 0 : index
    %44 = vector.load %arg6[%c1_34, %c0_35, %c0_36] : memref<9x24x12xbf16, #tpu.memory_space<vmem>>, vector<1x24x12xbf16>
    %45 = vector.shape_cast %44 : vector<1x24x12xbf16> to vector<24x12xbf16>
    %cst_37 = arith.constant dense<0.000000e+00> : vector<64x12xf32>
    %46 = tpu.matmul %43, %45, %cst_37 {dimension_numbers = #tpu.dot_dimension_numbers<[1], [0], [0], [1], [0, 0, 1, 1], [], []>} : vector<64x24xbf16>, vector<24x12xbf16>, vector<64x12xf32> -> vector<64x12xf32>
    %47 = arith.addf %40, %46 : vector<64x12xf32>
    %c0_38 = arith.constant 0 : index
    %c2 = arith.constant 2 : index
    %c0_39 = arith.constant 0 : index
    %48 = vector.load %arg25[%c0_38, %c2, %c0_39] : memref<10x10x48xf32, #tpu.memory_space<vmem>>, vector<8x8x24xf32>
    %49 = vector.shape_cast %48 : vector<8x8x24xf32> to vector<64x24xf32>
    %50 = arith.truncf %49 : vector<64x24xf32> to vector<64x24xbf16>
    %c2_40 = arith.constant 2 : index
    %c0_41 = arith.constant 0 : index
    %c0_42 = arith.constant 0 : index
    %51 = vector.load %arg6[%c2_40, %c0_41, %c0_42] : memref<9x24x12xbf16, #tpu.memory_space<vmem>>, vector<1x24x12xbf16>
    %52 = vector.shape_cast %51 : vector<1x24x12xbf16> to vector<24x12xbf16>
    %cst_43 = arith.constant dense<0.000000e+00> : vector<64x12xf32>
    %53 = tpu.matmul %50, %52, %cst_43 {dimension_numbers = #tpu.dot_dimension_numbers<[1], [0], [0], [1], [0, 0, 1, 1], [], []>} : vector<64x24xbf16>, vector<24x12xbf16>, vector<64x12xf32> -> vector<64x12xf32>
    %54 = arith.addf %47, %53 : vector<64x12xf32>
    %c1_44 = arith.constant 1 : index
    %c0_45 = arith.constant 0 : index
    %c0_46 = arith.constant 0 : index
    %55 = vector.load %arg25[%c1_44, %c0_45, %c0_46] : memref<10x10x48xf32, #tpu.memory_space<vmem>>, vector<8x8x24xf32>
    %56 = vector.shape_cast %55 : vector<8x8x24xf32> to vector<64x24xf32>
    %57 = arith.truncf %56 : vector<64x24xf32> to vector<64x24xbf16>
    %c3 = arith.constant 3 : index
    %c0_47 = arith.constant 0 : index
    %c0_48 = arith.constant 0 : index
    %58 = vector.load %arg6[%c3, %c0_47, %c0_48] : memref<9x24x12xbf16, #tpu.memory_space<vmem>>, vector<1x24x12xbf16>
    %59 = vector.shape_cast %58 : vector<1x24x12xbf16> to vector<24x12xbf16>
    %cst_49 = arith.constant dense<0.000000e+00> : vector<64x12xf32>
    %60 = tpu.matmul %57, %59, %cst_49 {dimension_numbers = #tpu.dot_dimension_numbers<[1], [0], [0], [1], [0, 0, 1, 1], [], []>} : vector<64x24xbf16>, vector<24x12xbf16>, vector<64x12xf32> -> vector<64x12xf32>
    %61 = arith.addf %54, %60 : vector<64x12xf32>
    %c1_50 = arith.constant 1 : index
    %c1_51 = arith.constant 1 : index
    %c0_52 = arith.constant 0 : index
    %62 = vector.load %arg25[%c1_50, %c1_51, %c0_52] : memref<10x10x48xf32, #tpu.memory_space<vmem>>, vector<8x8x24xf32>
    %63 = vector.shape_cast %62 : vector<8x8x24xf32> to vector<64x24xf32>
    %64 = arith.truncf %63 : vector<64x24xf32> to vector<64x24xbf16>
    %c4 = arith.constant 4 : index
    %c0_53 = arith.constant 0 : index
    %c0_54 = arith.constant 0 : index
    %65 = vector.load %arg6[%c4, %c0_53, %c0_54] : memref<9x24x12xbf16, #tpu.memory_space<vmem>>, vector<1x24x12xbf16>
    %66 = vector.shape_cast %65 : vector<1x24x12xbf16> to vector<24x12xbf16>
    %cst_55 = arith.constant dense<0.000000e+00> : vector<64x12xf32>
    %67 = tpu.matmul %64, %66, %cst_55 {dimension_numbers = #tpu.dot_dimension_numbers<[1], [0], [0], [1], [0, 0, 1, 1], [], []>} : vector<64x24xbf16>, vector<24x12xbf16>, vector<64x12xf32> -> vector<64x12xf32>
    %68 = arith.addf %61, %67 : vector<64x12xf32>
    %c1_56 = arith.constant 1 : index
    %c2_57 = arith.constant 2 : index
    %c0_58 = arith.constant 0 : index
    %69 = vector.load %arg25[%c1_56, %c2_57, %c0_58] : memref<10x10x48xf32, #tpu.memory_space<vmem>>, vector<8x8x24xf32>
    %70 = vector.shape_cast %69 : vector<8x8x24xf32> to vector<64x24xf32>
    %71 = arith.truncf %70 : vector<64x24xf32> to vector<64x24xbf16>
    %c5 = arith.constant 5 : index
    %c0_59 = arith.constant 0 : index
    %c0_60 = arith.constant 0 : index
    %72 = vector.load %arg6[%c5, %c0_59, %c0_60] : memref<9x24x12xbf16, #tpu.memory_space<vmem>>, vector<1x24x12xbf16>
    %73 = vector.shape_cast %72 : vector<1x24x12xbf16> to vector<24x12xbf16>
    %cst_61 = arith.constant dense<0.000000e+00> : vector<64x12xf32>
    %74 = tpu.matmul %71, %73, %cst_61 {dimension_numbers = #tpu.dot_dimension_numbers<[1], [0], [0], [1], [0, 0, 1, 1], [], []>} : vector<64x24xbf16>, vector<24x12xbf16>, vector<64x12xf32> -> vector<64x12xf32>
    %75 = arith.addf %68, %74 : vector<64x12xf32>
    %c2_62 = arith.constant 2 : index
    %c0_63 = arith.constant 0 : index
    %c0_64 = arith.constant 0 : index
    %76 = vector.load %arg25[%c2_62, %c0_63, %c0_64] : memref<10x10x48xf32, #tpu.memory_space<vmem>>, vector<8x8x24xf32>
    %77 = vector.shape_cast %76 : vector<8x8x24xf32> to vector<64x24xf32>
    %78 = arith.truncf %77 : vector<64x24xf32> to vector<64x24xbf16>
    %c6 = arith.constant 6 : index
    %c0_65 = arith.constant 0 : index
    %c0_66 = arith.constant 0 : index
    %79 = vector.load %arg6[%c6, %c0_65, %c0_66] : memref<9x24x12xbf16, #tpu.memory_space<vmem>>, vector<1x24x12xbf16>
    %80 = vector.shape_cast %79 : vector<1x24x12xbf16> to vector<24x12xbf16>
    %cst_67 = arith.constant dense<0.000000e+00> : vector<64x12xf32>
    %81 = tpu.matmul %78, %80, %cst_67 {dimension_numbers = #tpu.dot_dimension_numbers<[1], [0], [0], [1], [0, 0, 1, 1], [], []>} : vector<64x24xbf16>, vector<24x12xbf16>, vector<64x12xf32> -> vector<64x12xf32>
    %82 = arith.addf %75, %81 : vector<64x12xf32>
    %c2_68 = arith.constant 2 : index
    %c1_69 = arith.constant 1 : index
    %c0_70 = arith.constant 0 : index
    %83 = vector.load %arg25[%c2_68, %c1_69, %c0_70] : memref<10x10x48xf32, #tpu.memory_space<vmem>>, vector<8x8x24xf32>
    %84 = vector.shape_cast %83 : vector<8x8x24xf32> to vector<64x24xf32>
    %85 = arith.truncf %84 : vector<64x24xf32> to vector<64x24xbf16>
    %c7 = arith.constant 7 : index
    %c0_71 = arith.constant 0 : index
    %c0_72 = arith.constant 0 : index
    %86 = vector.load %arg6[%c7, %c0_71, %c0_72] : memref<9x24x12xbf16, #tpu.memory_space<vmem>>, vector<1x24x12xbf16>
    %87 = vector.shape_cast %86 : vector<1x24x12xbf16> to vector<24x12xbf16>
    %cst_73 = arith.constant dense<0.000000e+00> : vector<64x12xf32>
    %88 = tpu.matmul %85, %87, %cst_73 {dimension_numbers = #tpu.dot_dimension_numbers<[1], [0], [0], [1], [0, 0, 1, 1], [], []>} : vector<64x24xbf16>, vector<24x12xbf16>, vector<64x12xf32> -> vector<64x12xf32>
    %89 = arith.addf %82, %88 : vector<64x12xf32>
    %c2_74 = arith.constant 2 : index
    %c2_75 = arith.constant 2 : index
    %c0_76 = arith.constant 0 : index
    %90 = vector.load %arg25[%c2_74, %c2_75, %c0_76] : memref<10x10x48xf32, #tpu.memory_space<vmem>>, vector<8x8x24xf32>
    %91 = vector.shape_cast %90 : vector<8x8x24xf32> to vector<64x24xf32>
    %92 = arith.truncf %91 : vector<64x24xf32> to vector<64x24xbf16>
    %c8 = arith.constant 8 : index
    %c0_77 = arith.constant 0 : index
    %c0_78 = arith.constant 0 : index
    %93 = vector.load %arg6[%c8, %c0_77, %c0_78] : memref<9x24x12xbf16, #tpu.memory_space<vmem>>, vector<1x24x12xbf16>
    %94 = vector.shape_cast %93 : vector<1x24x12xbf16> to vector<24x12xbf16>
    %cst_79 = arith.constant dense<0.000000e+00> : vector<64x12xf32>
    %95 = tpu.matmul %92, %94, %cst_79 {dimension_numbers = #tpu.dot_dimension_numbers<[1], [0], [0], [1], [0, 0, 1, 1], [], []>} : vector<64x24xbf16>, vector<24x12xbf16>, vector<64x12xf32> -> vector<64x12xf32>
    %96 = arith.addf %89, %95 : vector<64x12xf32>
    %c0_80 = arith.constant 0 : index
    %c24 = arith.constant 24 : index
    %97 = vector.load %arg24[%c0_80, %c24] : memref<64x60xf32, #tpu.memory_space<vmem>>, vector<64x12xf32>
    tpu.vector_store %arg24[%c0_80, %c24], %96 {strides = array<i32>} : memref<64x60xf32, #tpu.memory_space<vmem>>, vector<64x12xf32>,
    %c0_81 = arith.constant 0 : index
    %c0_82 = arith.constant 0 : index
    %98 = vector.load %arg24[%c0_81, %c0_82] : memref<64x60xf32, #tpu.memory_space<vmem>>, vector<64x36xf32>
    %c0_83 = arith.constant 0 : index
    %c0_84 = arith.constant 0 : index
    %99 = vector.load %arg8[%c0_83, %c0_84] : memref<1x36xf32, #tpu.memory_space<vmem>>, vector<1x36xf32>
    %c0_85 = arith.constant 0 : index
    %c0_86 = arith.constant 0 : index
    %100 = vector.load %arg9[%c0_85, %c0_86] : memref<1x36xf32, #tpu.memory_space<vmem>>, vector<1x36xf32>
    %101 = vector.broadcast %99 : vector<1x36xf32> to vector<64x36xf32>
    %102 = arith.mulf %98, %101 : vector<64x36xf32>
    %103 = vector.broadcast %100 : vector<1x36xf32> to vector<64x36xf32>
    %104 = arith.addf %102, %103 : vector<64x36xf32>
    %cst_87 = arith.constant 0.000000e+00 : f32
    %105 = vector.broadcast %cst_87 : f32 to vector<64x36xf32>
    %106 = arith.maximumf %104, %105 : vector<64x36xf32>
    %107 = math.absf %104 : vector<64x36xf32>
    %cst_88 = arith.constant 0.000000e+00 : f32
    %108 = vector.broadcast %cst_88 : f32 to vector<64x36xf32>
    %109 = arith.subf %108, %107 : vector<64x36xf32>
    %110 = math.exp %109 : vector<64x36xf32>
    %111 = math.log1p %110 : vector<64x36xf32>
    %112 = arith.addf %106, %111 : vector<64x36xf32>
    %113 = math.tanh %112 : vector<64x36xf32>
    %114 = arith.mulf %104, %113 : vector<64x36xf32>
    %115 = vector.shape_cast %114 : vector<64x36xf32> to vector<8x8x36xf32>
    %c1_89 = arith.constant 1 : index
    %c1_90 = arith.constant 1 : index
    %c0_91 = arith.constant 0 : index
    %116 = vector.load %arg25[%c1_89, %c1_90, %c0_91] : memref<10x10x48xf32, #tpu.memory_space<vmem>>, vector<8x8x36xf32>
    tpu.vector_store %arg25[%c1_89, %c1_90, %c0_91], %115 {strides = array<i32>} : memref<10x10x48xf32, #tpu.memory_space<vmem>>, vector<8x8x36xf32>,
    %cst_92 = arith.constant 0.000000e+00 : f32
    %117 = vector.broadcast %cst_92 : f32 to vector<64x12xf32>
    %c0_93 = arith.constant 0 : index
    %c0_94 = arith.constant 0 : index
    %118 = vector.load %arg11[%c0_93, %c0_94] : memref<1x12xf32, #tpu.memory_space<vmem>>, vector<1x12xf32>
    %119 = vector.broadcast %118 : vector<1x12xf32> to vector<64x12xf32>
    %120 = arith.addf %117, %119 : vector<64x12xf32>
    %c0_95 = arith.constant 0 : index
    %c0_96 = arith.constant 0 : index
    %c0_97 = arith.constant 0 : index
    %121 = vector.load %arg25[%c0_95, %c0_96, %c0_97] : memref<10x10x48xf32, #tpu.memory_space<vmem>>, vector<8x8x36xf32>
    %122 = vector.shape_cast %121 : vector<8x8x36xf32> to vector<64x36xf32>
    %123 = arith.truncf %122 : vector<64x36xf32> to vector<64x36xbf16>
    %c0_98 = arith.constant 0 : index
    %c0_99 = arith.constant 0 : index
    %c0_100 = arith.constant 0 : index
    %124 = vector.load %arg10[%c0_98, %c0_99, %c0_100] : memref<9x36x12xbf16, #tpu.memory_space<vmem>>, vector<1x36x12xbf16>
    %125 = vector.shape_cast %124 : vector<1x36x12xbf16> to vector<36x12xbf16>
    %cst_101 = arith.constant dense<0.000000e+00> : vector<64x12xf32>
    %126 = tpu.matmul %123, %125, %cst_101 {dimension_numbers = #tpu.dot_dimension_numbers<[1], [0], [0], [1], [0, 0, 1, 1], [], []>} : vector<64x36xbf16>, vector<36x12xbf16>, vector<64x12xf32> -> vector<64x12xf32>
    %127 = arith.addf %120, %126 : vector<64x12xf32>
    %c0_102 = arith.constant 0 : index
    %c1_103 = arith.constant 1 : index
    %c0_104 = arith.constant 0 : index
    %128 = vector.load %arg25[%c0_102, %c1_103, %c0_104] : memref<10x10x48xf32, #tpu.memory_space<vmem>>, vector<8x8x36xf32>
    %129 = vector.shape_cast %128 : vector<8x8x36xf32> to vector<64x36xf32>
    %130 = arith.truncf %129 : vector<64x36xf32> to vector<64x36xbf16>
    %c1_105 = arith.constant 1 : index
    %c0_106 = arith.constant 0 : index
    %c0_107 = arith.constant 0 : index
    %131 = vector.load %arg10[%c1_105, %c0_106, %c0_107] : memref<9x36x12xbf16, #tpu.memory_space<vmem>>, vector<1x36x12xbf16>
    %132 = vector.shape_cast %131 : vector<1x36x12xbf16> to vector<36x12xbf16>
    %cst_108 = arith.constant dense<0.000000e+00> : vector<64x12xf32>
    %133 = tpu.matmul %130, %132, %cst_108 {dimension_numbers = #tpu.dot_dimension_numbers<[1], [0], [0], [1], [0, 0, 1, 1], [], []>} : vector<64x36xbf16>, vector<36x12xbf16>, vector<64x12xf32> -> vector<64x12xf32>
    %134 = arith.addf %127, %133 : vector<64x12xf32>
    %c0_109 = arith.constant 0 : index
    %c2_110 = arith.constant 2 : index
    %c0_111 = arith.constant 0 : index
    %135 = vector.load %arg25[%c0_109, %c2_110, %c0_111] : memref<10x10x48xf32, #tpu.memory_space<vmem>>, vector<8x8x36xf32>
    %136 = vector.shape_cast %135 : vector<8x8x36xf32> to vector<64x36xf32>
    %137 = arith.truncf %136 : vector<64x36xf32> to vector<64x36xbf16>
    %c2_112 = arith.constant 2 : index
    %c0_113 = arith.constant 0 : index
    %c0_114 = arith.constant 0 : index
    %138 = vector.load %arg10[%c2_112, %c0_113, %c0_114] : memref<9x36x12xbf16, #tpu.memory_space<vmem>>, vector<1x36x12xbf16>
    %139 = vector.shape_cast %138 : vector<1x36x12xbf16> to vector<36x12xbf16>
    %cst_115 = arith.constant dense<0.000000e+00> : vector<64x12xf32>
    %140 = tpu.matmul %137, %139, %cst_115 {dimension_numbers = #tpu.dot_dimension_numbers<[1], [0], [0], [1], [0, 0, 1, 1], [], []>} : vector<64x36xbf16>, vector<36x12xbf16>, vector<64x12xf32> -> vector<64x12xf32>
    %141 = arith.addf %134, %140 : vector<64x12xf32>
    %c1_116 = arith.constant 1 : index
    %c0_117 = arith.constant 0 : index
    %c0_118 = arith.constant 0 : index
    %142 = vector.load %arg25[%c1_116, %c0_117, %c0_118] : memref<10x10x48xf32, #tpu.memory_space<vmem>>, vector<8x8x36xf32>
    %143 = vector.shape_cast %142 : vector<8x8x36xf32> to vector<64x36xf32>
    %144 = arith.truncf %143 : vector<64x36xf32> to vector<64x36xbf16>
    %c3_119 = arith.constant 3 : index
    %c0_120 = arith.constant 0 : index
    %c0_121 = arith.constant 0 : index
    %145 = vector.load %arg10[%c3_119, %c0_120, %c0_121] : memref<9x36x12xbf16, #tpu.memory_space<vmem>>, vector<1x36x12xbf16>
    %146 = vector.shape_cast %145 : vector<1x36x12xbf16> to vector<36x12xbf16>
    %cst_122 = arith.constant dense<0.000000e+00> : vector<64x12xf32>
    %147 = tpu.matmul %144, %146, %cst_122 {dimension_numbers = #tpu.dot_dimension_numbers<[1], [0], [0], [1], [0, 0, 1, 1], [], []>} : vector<64x36xbf16>, vector<36x12xbf16>, vector<64x12xf32> -> vector<64x12xf32>
    %148 = arith.addf %141, %147 : vector<64x12xf32>
    %c1_123 = arith.constant 1 : index
    %c1_124 = arith.constant 1 : index
    %c0_125 = arith.constant 0 : index
    %149 = vector.load %arg25[%c1_123, %c1_124, %c0_125] : memref<10x10x48xf32, #tpu.memory_space<vmem>>, vector<8x8x36xf32>
    %150 = vector.shape_cast %149 : vector<8x8x36xf32> to vector<64x36xf32>
    %151 = arith.truncf %150 : vector<64x36xf32> to vector<64x36xbf16>
    %c4_126 = arith.constant 4 : index
    %c0_127 = arith.constant 0 : index
    %c0_128 = arith.constant 0 : index
    %152 = vector.load %arg10[%c4_126, %c0_127, %c0_128] : memref<9x36x12xbf16, #tpu.memory_space<vmem>>, vector<1x36x12xbf16>
    %153 = vector.shape_cast %152 : vector<1x36x12xbf16> to vector<36x12xbf16>
    %cst_129 = arith.constant dense<0.000000e+00> : vector<64x12xf32>
    %154 = tpu.matmul %151, %153, %cst_129 {dimension_numbers = #tpu.dot_dimension_numbers<[1], [0], [0], [1], [0, 0, 1, 1], [], []>} : vector<64x36xbf16>, vector<36x12xbf16>, vector<64x12xf32> -> vector<64x12xf32>
    %155 = arith.addf %148, %154 : vector<64x12xf32>
    %c1_130 = arith.constant 1 : index
    %c2_131 = arith.constant 2 : index
    %c0_132 = arith.constant 0 : index
    %156 = vector.load %arg25[%c1_130, %c2_131, %c0_132] : memref<10x10x48xf32, #tpu.memory_space<vmem>>, vector<8x8x36xf32>
    %157 = vector.shape_cast %156 : vector<8x8x36xf32> to vector<64x36xf32>
    %158 = arith.truncf %157 : vector<64x36xf32> to vector<64x36xbf16>
    %c5_133 = arith.constant 5 : index
    %c0_134 = arith.constant 0 : index
    %c0_135 = arith.constant 0 : index
    %159 = vector.load %arg10[%c5_133, %c0_134, %c0_135] : memref<9x36x12xbf16, #tpu.memory_space<vmem>>, vector<1x36x12xbf16>
    %160 = vector.shape_cast %159 : vector<1x36x12xbf16> to vector<36x12xbf16>
    %cst_136 = arith.constant dense<0.000000e+00> : vector<64x12xf32>
    %161 = tpu.matmul %158, %160, %cst_136 {dimension_numbers = #tpu.dot_dimension_numbers<[1], [0], [0], [1], [0, 0, 1, 1], [], []>} : vector<64x36xbf16>, vector<36x12xbf16>, vector<64x12xf32> -> vector<64x12xf32>
    %162 = arith.addf %155, %161 : vector<64x12xf32>
    %c2_137 = arith.constant 2 : index
    %c0_138 = arith.constant 0 : index
    %c0_139 = arith.constant 0 : index
    %163 = vector.load %arg25[%c2_137, %c0_138, %c0_139] : memref<10x10x48xf32, #tpu.memory_space<vmem>>, vector<8x8x36xf32>
    %164 = vector.shape_cast %163 : vector<8x8x36xf32> to vector<64x36xf32>
    %165 = arith.truncf %164 : vector<64x36xf32> to vector<64x36xbf16>
    %c6_140 = arith.constant 6 : index
    %c0_141 = arith.constant 0 : index
    %c0_142 = arith.constant 0 : index
    %166 = vector.load %arg10[%c6_140, %c0_141, %c0_142] : memref<9x36x12xbf16, #tpu.memory_space<vmem>>, vector<1x36x12xbf16>
    %167 = vector.shape_cast %166 : vector<1x36x12xbf16> to vector<36x12xbf16>
    %cst_143 = arith.constant dense<0.000000e+00> : vector<64x12xf32>
    %168 = tpu.matmul %165, %167, %cst_143 {dimension_numbers = #tpu.dot_dimension_numbers<[1], [0], [0], [1], [0, 0, 1, 1], [], []>} : vector<64x36xbf16>, vector<36x12xbf16>, vector<64x12xf32> -> vector<64x12xf32>
    %169 = arith.addf %162, %168 : vector<64x12xf32>
    %c2_144 = arith.constant 2 : index
    %c1_145 = arith.constant 1 : index
    %c0_146 = arith.constant 0 : index
    %170 = vector.load %arg25[%c2_144, %c1_145, %c0_146] : memref<10x10x48xf32, #tpu.memory_space<vmem>>, vector<8x8x36xf32>
    %171 = vector.shape_cast %170 : vector<8x8x36xf32> to vector<64x36xf32>
    %172 = arith.truncf %171 : vector<64x36xf32> to vector<64x36xbf16>
    %c7_147 = arith.constant 7 : index
    %c0_148 = arith.constant 0 : index
    %c0_149 = arith.constant 0 : index
    %173 = vector.load %arg10[%c7_147, %c0_148, %c0_149] : memref<9x36x12xbf16, #tpu.memory_space<vmem>>, vector<1x36x12xbf16>
    %174 = vector.shape_cast %173 : vector<1x36x12xbf16> to vector<36x12xbf16>
    %cst_150 = arith.constant dense<0.000000e+00> : vector<64x12xf32>
    %175 = tpu.matmul %172, %174, %cst_150 {dimension_numbers = #tpu.dot_dimension_numbers<[1], [0], [0], [1], [0, 0, 1, 1], [], []>} : vector<64x36xbf16>, vector<36x12xbf16>, vector<64x12xf32> -> vector<64x12xf32>
    %176 = arith.addf %169, %175 : vector<64x12xf32>
    %c2_151 = arith.constant 2 : index
    %c2_152 = arith.constant 2 : index
    %c0_153 = arith.constant 0 : index
    %177 = vector.load %arg25[%c2_151, %c2_152, %c0_153] : memref<10x10x48xf32, #tpu.memory_space<vmem>>, vector<8x8x36xf32>
    %178 = vector.shape_cast %177 : vector<8x8x36xf32> to vector<64x36xf32>
    %179 = arith.truncf %178 : vector<64x36xf32> to vector<64x36xbf16>
    %c8_154 = arith.constant 8 : index
    %c0_155 = arith.constant 0 : index
    %c0_156 = arith.constant 0 : index
    %180 = vector.load %arg10[%c8_154, %c0_155, %c0_156] : memref<9x36x12xbf16, #tpu.memory_space<vmem>>, vector<1x36x12xbf16>
    %181 = vector.shape_cast %180 : vector<1x36x12xbf16> to vector<36x12xbf16>
    %cst_157 = arith.constant dense<0.000000e+00> : vector<64x12xf32>
    %182 = tpu.matmul %179, %181, %cst_157 {dimension_numbers = #tpu.dot_dimension_numbers<[1], [0], [0], [1], [0, 0, 1, 1], [], []>} : vector<64x36xbf16>, vector<36x12xbf16>, vector<64x12xf32> -> vector<64x12xf32>
    %183 = arith.addf %176, %182 : vector<64x12xf32>
    %c0_158 = arith.constant 0 : index
    %c36 = arith.constant 36 : index
    %184 = vector.load %arg24[%c0_158, %c36] : memref<64x60xf32, #tpu.memory_space<vmem>>, vector<64x12xf32>
    tpu.vector_store %arg24[%c0_158, %c36], %183 {strides = array<i32>} : memref<64x60xf32, #tpu.memory_space<vmem>>, vector<64x12xf32>,
    %c0_159 = arith.constant 0 : index
    %c0_160 = arith.constant 0 : index
    %185 = vector.load %arg24[%c0_159, %c0_160] : memref<64x60xf32, #tpu.memory_space<vmem>>, vector<64x48xf32>
    %c0_161 = arith.constant 0 : index
    %c0_162 = arith.constant 0 : index
    %186 = vector.load %arg12[%c0_161, %c0_162] : memref<1x48xf32, #tpu.memory_space<vmem>>, vector<1x48xf32>
    %c0_163 = arith.constant 0 : index
    %c0_164 = arith.constant 0 : index
    %187 = vector.load %arg13[%c0_163, %c0_164] : memref<1x48xf32, #tpu.memory_space<vmem>>, vector<1x48xf32>
    %188 = vector.broadcast %186 : vector<1x48xf32> to vector<64x48xf32>
    %189 = arith.mulf %185, %188 : vector<64x48xf32>
    %190 = vector.broadcast %187 : vector<1x48xf32> to vector<64x48xf32>
    %191 = arith.addf %189, %190 : vector<64x48xf32>
    %cst_165 = arith.constant 0.000000e+00 : f32
    %192 = vector.broadcast %cst_165 : f32 to vector<64x48xf32>
    %193 = arith.maximumf %191, %192 : vector<64x48xf32>
    %194 = math.absf %191 : vector<64x48xf32>
    %cst_166 = arith.constant 0.000000e+00 : f32
    %195 = vector.broadcast %cst_166 : f32 to vector<64x48xf32>
    %196 = arith.subf %195, %194 : vector<64x48xf32>
    %197 = math.exp %196 : vector<64x48xf32>
    %198 = math.log1p %197 : vector<64x48xf32>
    %199 = arith.addf %193, %198 : vector<64x48xf32>
    %200 = math.tanh %199 : vector<64x48xf32>
    %201 = arith.mulf %191, %200 : vector<64x48xf32>
    %202 = vector.shape_cast %201 : vector<64x48xf32> to vector<8x8x48xf32>
    %c1_167 = arith.constant 1 : index
    %c1_168 = arith.constant 1 : index
    %c0_169 = arith.constant 0 : index
    %203 = vector.load %arg25[%c1_167, %c1_168, %c0_169] : memref<10x10x48xf32, #tpu.memory_space<vmem>>, vector<8x8x48xf32>
    tpu.vector_store %arg25[%c1_167, %c1_168, %c0_169], %202 {strides = array<i32>} : memref<10x10x48xf32, #tpu.memory_space<vmem>>, vector<8x8x48xf32>,
    %cst_170 = arith.constant 0.000000e+00 : f32
    %204 = vector.broadcast %cst_170 : f32 to vector<64x12xf32>
    %c0_171 = arith.constant 0 : index
    %c0_172 = arith.constant 0 : index
    %205 = vector.load %arg15[%c0_171, %c0_172] : memref<1x12xf32, #tpu.memory_space<vmem>>, vector<1x12xf32>
    %206 = vector.broadcast %205 : vector<1x12xf32> to vector<64x12xf32>
    %207 = arith.addf %204, %206 : vector<64x12xf32>
    %c0_173 = arith.constant 0 : index
    %c0_174 = arith.constant 0 : index
    %c0_175 = arith.constant 0 : index
    %208 = vector.load %arg25[%c0_173, %c0_174, %c0_175] : memref<10x10x48xf32, #tpu.memory_space<vmem>>, vector<8x8x48xf32>
    %209 = vector.shape_cast %208 : vector<8x8x48xf32> to vector<64x48xf32>
    %210 = arith.truncf %209 : vector<64x48xf32> to vector<64x48xbf16>
    %c0_176 = arith.constant 0 : index
    %c0_177 = arith.constant 0 : index
    %c0_178 = arith.constant 0 : index
    %211 = vector.load %arg14[%c0_176, %c0_177, %c0_178] : memref<9x48x12xbf16, #tpu.memory_space<vmem>>, vector<1x48x12xbf16>
    %212 = vector.shape_cast %211 : vector<1x48x12xbf16> to vector<48x12xbf16>
    %cst_179 = arith.constant dense<0.000000e+00> : vector<64x12xf32>
    %213 = tpu.matmul %210, %212, %cst_179 {dimension_numbers = #tpu.dot_dimension_numbers<[1], [0], [0], [1], [0, 0, 1, 1], [], []>} : vector<64x48xbf16>, vector<48x12xbf16>, vector<64x12xf32> -> vector<64x12xf32>
    %214 = arith.addf %207, %213 : vector<64x12xf32>
    %c0_180 = arith.constant 0 : index
    %c1_181 = arith.constant 1 : index
    %c0_182 = arith.constant 0 : index
    %215 = vector.load %arg25[%c0_180, %c1_181, %c0_182] : memref<10x10x48xf32, #tpu.memory_space<vmem>>, vector<8x8x48xf32>
    %216 = vector.shape_cast %215 : vector<8x8x48xf32> to vector<64x48xf32>
    %217 = arith.truncf %216 : vector<64x48xf32> to vector<64x48xbf16>
    %c1_183 = arith.constant 1 : index
    %c0_184 = arith.constant 0 : index
    %c0_185 = arith.constant 0 : index
    %218 = vector.load %arg14[%c1_183, %c0_184, %c0_185] : memref<9x48x12xbf16, #tpu.memory_space<vmem>>, vector<1x48x12xbf16>
    %219 = vector.shape_cast %218 : vector<1x48x12xbf16> to vector<48x12xbf16>
    %cst_186 = arith.constant dense<0.000000e+00> : vector<64x12xf32>
    %220 = tpu.matmul %217, %219, %cst_186 {dimension_numbers = #tpu.dot_dimension_numbers<[1], [0], [0], [1], [0, 0, 1, 1], [], []>} : vector<64x48xbf16>, vector<48x12xbf16>, vector<64x12xf32> -> vector<64x12xf32>
    %221 = arith.addf %214, %220 : vector<64x12xf32>
    %c0_187 = arith.constant 0 : index
    %c2_188 = arith.constant 2 : index
    %c0_189 = arith.constant 0 : index
    %222 = vector.load %arg25[%c0_187, %c2_188, %c0_189] : memref<10x10x48xf32, #tpu.memory_space<vmem>>, vector<8x8x48xf32>
    %223 = vector.shape_cast %222 : vector<8x8x48xf32> to vector<64x48xf32>
    %224 = arith.truncf %223 : vector<64x48xf32> to vector<64x48xbf16>
    %c2_190 = arith.constant 2 : index
    %c0_191 = arith.constant 0 : index
    %c0_192 = arith.constant 0 : index
    %225 = vector.load %arg14[%c2_190, %c0_191, %c0_192] : memref<9x48x12xbf16, #tpu.memory_space<vmem>>, vector<1x48x12xbf16>
    %226 = vector.shape_cast %225 : vector<1x48x12xbf16> to vector<48x12xbf16>
    %cst_193 = arith.constant dense<0.000000e+00> : vector<64x12xf32>
    %227 = tpu.matmul %224, %226, %cst_193 {dimension_numbers = #tpu.dot_dimension_numbers<[1], [0], [0], [1], [0, 0, 1, 1], [], []>} : vector<64x48xbf16>, vector<48x12xbf16>, vector<64x12xf32> -> vector<64x12xf32>
    %228 = arith.addf %221, %227 : vector<64x12xf32>
    %c1_194 = arith.constant 1 : index
    %c0_195 = arith.constant 0 : index
    %c0_196 = arith.constant 0 : index
    %229 = vector.load %arg25[%c1_194, %c0_195, %c0_196] : memref<10x10x48xf32, #tpu.memory_space<vmem>>, vector<8x8x48xf32>
    %230 = vector.shape_cast %229 : vector<8x8x48xf32> to vector<64x48xf32>
    %231 = arith.truncf %230 : vector<64x48xf32> to vector<64x48xbf16>
    %c3_197 = arith.constant 3 : index
    %c0_198 = arith.constant 0 : index
    %c0_199 = arith.constant 0 : index
    %232 = vector.load %arg14[%c3_197, %c0_198, %c0_199] : memref<9x48x12xbf16, #tpu.memory_space<vmem>>, vector<1x48x12xbf16>
    %233 = vector.shape_cast %232 : vector<1x48x12xbf16> to vector<48x12xbf16>
    %cst_200 = arith.constant dense<0.000000e+00> : vector<64x12xf32>
    %234 = tpu.matmul %231, %233, %cst_200 {dimension_numbers = #tpu.dot_dimension_numbers<[1], [0], [0], [1], [0, 0, 1, 1], [], []>} : vector<64x48xbf16>, vector<48x12xbf16>, vector<64x12xf32> -> vector<64x12xf32>
    %235 = arith.addf %228, %234 : vector<64x12xf32>
    %c1_201 = arith.constant 1 : index
    %c1_202 = arith.constant 1 : index
    %c0_203 = arith.constant 0 : index
    %236 = vector.load %arg25[%c1_201, %c1_202, %c0_203] : memref<10x10x48xf32, #tpu.memory_space<vmem>>, vector<8x8x48xf32>
    %237 = vector.shape_cast %236 : vector<8x8x48xf32> to vector<64x48xf32>
    %238 = arith.truncf %237 : vector<64x48xf32> to vector<64x48xbf16>
    %c4_204 = arith.constant 4 : index
    %c0_205 = arith.constant 0 : index
    %c0_206 = arith.constant 0 : index
    %239 = vector.load %arg14[%c4_204, %c0_205, %c0_206] : memref<9x48x12xbf16, #tpu.memory_space<vmem>>, vector<1x48x12xbf16>
    %240 = vector.shape_cast %239 : vector<1x48x12xbf16> to vector<48x12xbf16>
    %cst_207 = arith.constant dense<0.000000e+00> : vector<64x12xf32>
    %241 = tpu.matmul %238, %240, %cst_207 {dimension_numbers = #tpu.dot_dimension_numbers<[1], [0], [0], [1], [0, 0, 1, 1], [], []>} : vector<64x48xbf16>, vector<48x12xbf16>, vector<64x12xf32> -> vector<64x12xf32>
    %242 = arith.addf %235, %241 : vector<64x12xf32>
    %c1_208 = arith.constant 1 : index
    %c2_209 = arith.constant 2 : index
    %c0_210 = arith.constant 0 : index
    %243 = vector.load %arg25[%c1_208, %c2_209, %c0_210] : memref<10x10x48xf32, #tpu.memory_space<vmem>>, vector<8x8x48xf32>
    %244 = vector.shape_cast %243 : vector<8x8x48xf32> to vector<64x48xf32>
    %245 = arith.truncf %244 : vector<64x48xf32> to vector<64x48xbf16>
    %c5_211 = arith.constant 5 : index
    %c0_212 = arith.constant 0 : index
    %c0_213 = arith.constant 0 : index
    %246 = vector.load %arg14[%c5_211, %c0_212, %c0_213] : memref<9x48x12xbf16, #tpu.memory_space<vmem>>, vector<1x48x12xbf16>
    %247 = vector.shape_cast %246 : vector<1x48x12xbf16> to vector<48x12xbf16>
    %cst_214 = arith.constant dense<0.000000e+00> : vector<64x12xf32>
    %248 = tpu.matmul %245, %247, %cst_214 {dimension_numbers = #tpu.dot_dimension_numbers<[1], [0], [0], [1], [0, 0, 1, 1], [], []>} : vector<64x48xbf16>, vector<48x12xbf16>, vector<64x12xf32> -> vector<64x12xf32>
    %249 = arith.addf %242, %248 : vector<64x12xf32>
    %c2_215 = arith.constant 2 : index
    %c0_216 = arith.constant 0 : index
    %c0_217 = arith.constant 0 : index
    %250 = vector.load %arg25[%c2_215, %c0_216, %c0_217] : memref<10x10x48xf32, #tpu.memory_space<vmem>>, vector<8x8x48xf32>
    %251 = vector.shape_cast %250 : vector<8x8x48xf32> to vector<64x48xf32>
    %252 = arith.truncf %251 : vector<64x48xf32> to vector<64x48xbf16>
    %c6_218 = arith.constant 6 : index
    %c0_219 = arith.constant 0 : index
    %c0_220 = arith.constant 0 : index
    %253 = vector.load %arg14[%c6_218, %c0_219, %c0_220] : memref<9x48x12xbf16, #tpu.memory_space<vmem>>, vector<1x48x12xbf16>
    %254 = vector.shape_cast %253 : vector<1x48x12xbf16> to vector<48x12xbf16>
    %cst_221 = arith.constant dense<0.000000e+00> : vector<64x12xf32>
    %255 = tpu.matmul %252, %254, %cst_221 {dimension_numbers = #tpu.dot_dimension_numbers<[1], [0], [0], [1], [0, 0, 1, 1], [], []>} : vector<64x48xbf16>, vector<48x12xbf16>, vector<64x12xf32> -> vector<64x12xf32>
    %256 = arith.addf %249, %255 : vector<64x12xf32>
    %c2_222 = arith.constant 2 : index
    %c1_223 = arith.constant 1 : index
    %c0_224 = arith.constant 0 : index
    %257 = vector.load %arg25[%c2_222, %c1_223, %c0_224] : memref<10x10x48xf32, #tpu.memory_space<vmem>>, vector<8x8x48xf32>
    %258 = vector.shape_cast %257 : vector<8x8x48xf32> to vector<64x48xf32>
    %259 = arith.truncf %258 : vector<64x48xf32> to vector<64x48xbf16>
    %c7_225 = arith.constant 7 : index
    %c0_226 = arith.constant 0 : index
    %c0_227 = arith.constant 0 : index
    %260 = vector.load %arg14[%c7_225, %c0_226, %c0_227] : memref<9x48x12xbf16, #tpu.memory_space<vmem>>, vector<1x48x12xbf16>
    %261 = vector.shape_cast %260 : vector<1x48x12xbf16> to vector<48x12xbf16>
    %cst_228 = arith.constant dense<0.000000e+00> : vector<64x12xf32>
    %262 = tpu.matmul %259, %261, %cst_228 {dimension_numbers = #tpu.dot_dimension_numbers<[1], [0], [0], [1], [0, 0, 1, 1], [], []>} : vector<64x48xbf16>, vector<48x12xbf16>, vector<64x12xf32> -> vector<64x12xf32>
    %263 = arith.addf %256, %262 : vector<64x12xf32>
    %c2_229 = arith.constant 2 : index
    %c2_230 = arith.constant 2 : index
    %c0_231 = arith.constant 0 : index
    %264 = vector.load %arg25[%c2_229, %c2_230, %c0_231] : memref<10x10x48xf32, #tpu.memory_space<vmem>>, vector<8x8x48xf32>
    %265 = vector.shape_cast %264 : vector<8x8x48xf32> to vector<64x48xf32>
    %266 = arith.truncf %265 : vector<64x48xf32> to vector<64x48xbf16>
    %c8_232 = arith.constant 8 : index
    %c0_233 = arith.constant 0 : index
    %c0_234 = arith.constant 0 : index
    %267 = vector.load %arg14[%c8_232, %c0_233, %c0_234] : memref<9x48x12xbf16, #tpu.memory_space<vmem>>, vector<1x48x12xbf16>
    %268 = vector.shape_cast %267 : vector<1x48x12xbf16> to vector<48x12xbf16>
    %cst_235 = arith.constant dense<0.000000e+00> : vector<64x12xf32>
    %269 = tpu.matmul %266, %268, %cst_235 {dimension_numbers = #tpu.dot_dimension_numbers<[1], [0], [0], [1], [0, 0, 1, 1], [], []>} : vector<64x48xbf16>, vector<48x12xbf16>, vector<64x12xf32> -> vector<64x12xf32>
    %270 = arith.addf %263, %269 : vector<64x12xf32>
    %c0_236 = arith.constant 0 : index
    %c48 = arith.constant 48 : index
    %271 = vector.load %arg24[%c0_236, %c48] : memref<64x60xf32, #tpu.memory_space<vmem>>, vector<64x12xf32>
    tpu.vector_store %arg24[%c0_236, %c48], %270 {strides = array<i32>} : memref<64x60xf32, #tpu.memory_space<vmem>>, vector<64x12xf32>,
    %c0_237 = arith.constant 0 : index
    %c0_238 = arith.constant 0 : index
    %272 = vector.load %arg24[%c0_237, %c0_238] : memref<64x60xf32, #tpu.memory_space<vmem>>, vector<64x60xf32>
    %273 = arith.truncf %272 : vector<64x60xf32> to vector<64x60xbf16>
    %c0_239 = arith.constant 0 : index
    %c0_240 = arith.constant 0 : index
    %274 = vector.load %arg16[%c0_239, %c0_240] : memref<60x8xbf16, #tpu.memory_space<vmem>>, vector<60x8xbf16>
    %c0_241 = arith.constant 0 : index
    %c0_242 = arith.constant 0 : index
    %275 = vector.load %arg17[%c0_241, %c0_242] : memref<1x8xf32, #tpu.memory_space<vmem>>, vector<1x8xf32>
    %cst_243 = arith.constant dense<0.000000e+00> : vector<64x8xf32>
    %276 = tpu.matmul %273, %274, %cst_243 {dimension_numbers = #tpu.dot_dimension_numbers<[1], [0], [0], [1], [0, 0, 1, 1], [], []>} : vector<64x60xbf16>, vector<60x8xbf16>, vector<64x8xf32> -> vector<64x8xf32>
    %277 = vector.broadcast %275 : vector<1x8xf32> to vector<64x8xf32>
    %278 = arith.addf %276, %277 : vector<64x8xf32>
    %c0_244 = arith.constant 0 : index
    %c0_245 = arith.constant 0 : index
    %279 = vector.load %arg18[%c0_244, %c0_245] : memref<60x8xbf16, #tpu.memory_space<vmem>>, vector<60x8xbf16>
    %c0_246 = arith.constant 0 : index
    %c0_247 = arith.constant 0 : index
    %280 = vector.load %arg19[%c0_246, %c0_247] : memref<1x8xf32, #tpu.memory_space<vmem>>, vector<1x8xf32>
    %cst_248 = arith.constant dense<0.000000e+00> : vector<64x8xf32>
    %281 = tpu.matmul %273, %279, %cst_248 {dimension_numbers = #tpu.dot_dimension_numbers<[1], [0], [0], [1], [0, 0, 1, 1], [], []>} : vector<64x60xbf16>, vector<60x8xbf16>, vector<64x8xf32> -> vector<64x8xf32>
    %282 = vector.broadcast %280 : vector<1x8xf32> to vector<64x8xf32>
    %283 = arith.addf %281, %282 : vector<64x8xf32>
    %c0_249 = arith.constant 0 : index
    %c0_250 = arith.constant 0 : index
    %284 = vector.load %arg20[%c0_249, %c0_250] : memref<60x60xbf16, #tpu.memory_space<vmem>>, vector<60x60xbf16>
    %c0_251 = arith.constant 0 : index
    %c0_252 = arith.constant 0 : index
    %285 = vector.load %arg21[%c0_251, %c0_252] : memref<1x60xf32, #tpu.memory_space<vmem>>, vector<1x60xf32>
    %cst_253 = arith.constant dense<0.000000e+00> : vector<64x60xf32>
    %286 = tpu.matmul %273, %284, %cst_253 {dimension_numbers = #tpu.dot_dimension_numbers<[1], [0], [0], [1], [0, 0, 1, 1], [], []>} : vector<64x60xbf16>, vector<60x60xbf16>, vector<64x60xf32> -> vector<64x60xf32>
    %287 = vector.broadcast %285 : vector<1x60xf32> to vector<64x60xf32>
    %288 = arith.addf %286, %287 : vector<64x60xf32>
    %289 = arith.truncf %278 : vector<64x8xf32> to vector<64x8xbf16>
    %290 = arith.truncf %283 : vector<64x8xf32> to vector<64x8xbf16>
    %cst_254 = arith.constant dense<0.000000e+00> : vector<64x64xf32>
    %291 = tpu.matmul %289, %290, %cst_254 {dimension_numbers = #tpu.dot_dimension_numbers<[1], [1], [0], [0], [0, 0, 1, 0], [], []>} : vector<64x8xbf16>, vector<64x8xbf16>, vector<64x64xf32> -> vector<64x64xf32>
    %cst_255 = arith.constant dense<0xFF800000> : vector<64xf32>
    %292 = vector.multi_reduction <maximumf>, %291, %cst_255 [1] : vector<64x64xf32> to vector<64xf32>
    %293 = vector.shape_cast %292 : vector<64xf32> to vector<64x1xf32>
    %294 = vector.broadcast %293 : vector<64x1xf32> to vector<64x64xf32>
    %295 = arith.subf %291, %294 : vector<64x64xf32>
    %296 = math.exp %295 : vector<64x64xf32>
    %cst_256 = arith.constant dense<0.000000e+00> : vector<64xf32>
    %297 = vector.multi_reduction <add>, %296, %cst_256 [1] : vector<64x64xf32> to vector<64xf32>
    %298 = vector.shape_cast %297 : vector<64xf32> to vector<64x1xf32>
    %299 = vector.broadcast %298 : vector<64x1xf32> to vector<64x64xf32>
    %300 = arith.divf %296, %299 : vector<64x64xf32>
    %301 = arith.truncf %300 : vector<64x64xf32> to vector<64x64xbf16>
    %302 = arith.truncf %288 : vector<64x60xf32> to vector<64x60xbf16>
    %cst_257 = arith.constant dense<0.000000e+00> : vector<64x60xf32>
    %303 = tpu.matmul %301, %302, %cst_257 {dimension_numbers = #tpu.dot_dimension_numbers<[1], [0], [0], [1], [0, 0, 1, 1], [], []>} : vector<64x64xbf16>, vector<64x60xbf16>, vector<64x60xf32> -> vector<64x60xf32>
    %c0_258 = arith.constant 0 : index
    %c0_259 = arith.constant 0 : index
    %304 = vector.load %arg22[%c0_258, %c0_259] : memref<1x1xf32, #tpu.memory_space<vmem>>, vector<1x1xf32>
    %305 = vector.broadcast %304 : vector<1x1xf32> to vector<64x60xf32>
    %306 = arith.mulf %305, %303 : vector<64x60xf32>
    %307 = arith.addf %306, %272 : vector<64x60xf32>
    %308 = arith.mulf %307, %272 : vector<64x60xf32>
    %cst_260 = arith.constant dense<0.000000e+00> : vector<60xf32>
    %309 = vector.multi_reduction <add>, %308, %cst_260 [0] : vector<64x60xf32> to vector<60xf32>
    %310 = vector.shape_cast %309 : vector<60xf32> to vector<1x60xf32>
    %cst_261 = arith.constant 6.400000e+01 : f32
    %311 = vector.broadcast %cst_261 : f32 to vector<1x60xf32>
    %312 = arith.divf %310, %311 : vector<1x60xf32>
    %c0_262 = arith.constant 0 : index
    %c0_263 = arith.constant 0 : index
    %c0_264 = arith.constant 0 : index
    %313 = vector.load %arg23[%c0_262, %c0_263, %c0_264] : memref<1x1x60xf32, #tpu.memory_space<vmem>>, vector<1x1x60xf32>
    %314 = vector.shape_cast %313 : vector<1x1x60xf32> to vector<1x60xf32>
    %315 = vector.shape_cast %312 : vector<1x60xf32> to vector<1x1x60xf32>
    tpu.vector_store %arg23[%c0_262, %c0_263, %c0_264], %315 {strides = array<i32>} : memref<1x1x60xf32, #tpu.memory_space<vmem>>, vector<1x1x60xf32>,
    return
  }
  func.func @transform_0(%arg0: i32) -> (i32, i32, i32, i32) {
    %c0_i32 = arith.constant 0 : i32
    %c0_i32_0 = arith.constant 0 : i32
    %c0_i32_1 = arith.constant 0 : i32
    %c0_i32_2 = arith.constant 0 : i32
    return %arg0, %c0_i32, %c0_i32_0, %c0_i32_1 : i32, i32, i32, i32
  }
  func.func @transform_1(%arg0: i32) -> (i32, i32) {
    %c0_i32 = arith.constant 0 : i32
    %c0_i32_0 = arith.constant 0 : i32
    %c0_i32_1 = arith.constant 0 : i32
    return %c0_i32, %c0_i32_0 : i32, i32
  }
  func.func @transform_2(%arg0: i32) -> (i32, i32) {
    %c0_i32 = arith.constant 0 : i32
    %c0_i32_0 = arith.constant 0 : i32
    %c0_i32_1 = arith.constant 0 : i32
    return %c0_i32, %c0_i32_0 : i32, i32
  }
  func.func @transform_3(%arg0: i32) -> (i32, i32) {
    %c0_i32 = arith.constant 0 : i32
    %c0_i32_0 = arith.constant 0 : i32
    %c0_i32_1 = arith.constant 0 : i32
    return %c0_i32, %c0_i32_0 : i32, i32
  }
  func.func @transform_4(%arg0: i32) -> (i32, i32) {
    %c0_i32 = arith.constant 0 : i32
    %c0_i32_0 = arith.constant 0 : i32
    %c0_i32_1 = arith.constant 0 : i32
    return %c0_i32, %c0_i32_0 : i32, i32
  }
  func.func @transform_5(%arg0: i32) -> (i32, i32, i32) {
    %c0_i32 = arith.constant 0 : i32
    %c0_i32_0 = arith.constant 0 : i32
    %c0_i32_1 = arith.constant 0 : i32
    %c0_i32_2 = arith.constant 0 : i32
    return %c0_i32, %c0_i32_0, %c0_i32_1 : i32, i32, i32
  }
  func.func @transform_6(%arg0: i32) -> (i32, i32) {
    %c0_i32 = arith.constant 0 : i32
    %c0_i32_0 = arith.constant 0 : i32
    %c0_i32_1 = arith.constant 0 : i32
    return %c0_i32, %c0_i32_0 : i32, i32
  }
  func.func @transform_7(%arg0: i32) -> (i32, i32) {
    %c0_i32 = arith.constant 0 : i32
    %c0_i32_0 = arith.constant 0 : i32
    %c0_i32_1 = arith.constant 0 : i32
    return %c0_i32, %c0_i32_0 : i32, i32
  }
  func.func @transform_8(%arg0: i32) -> (i32, i32) {
    %c0_i32 = arith.constant 0 : i32
    %c0_i32_0 = arith.constant 0 : i32
    %c0_i32_1 = arith.constant 0 : i32
    return %c0_i32, %c0_i32_0 : i32, i32
  }
  func.func @transform_9(%arg0: i32) -> (i32, i32, i32) {
    %c0_i32 = arith.constant 0 : i32
    %c0_i32_0 = arith.constant 0 : i32
    %c0_i32_1 = arith.constant 0 : i32
    %c0_i32_2 = arith.constant 0 : i32
    return %c0_i32, %c0_i32_0, %c0_i32_1 : i32, i32, i32
  }
  func.func @transform_10(%arg0: i32) -> (i32, i32) {
    %c0_i32 = arith.constant 0 : i32
    %c0_i32_0 = arith.constant 0 : i32
    %c0_i32_1 = arith.constant 0 : i32
    return %c0_i32, %c0_i32_0 : i32, i32
  }
  func.func @transform_11(%arg0: i32) -> (i32, i32) {
    %c0_i32 = arith.constant 0 : i32
    %c0_i32_0 = arith.constant 0 : i32
    %c0_i32_1 = arith.constant 0 : i32
    return %c0_i32, %c0_i32_0 : i32, i32
  }
  func.func @transform_12(%arg0: i32) -> (i32, i32) {
    %c0_i32 = arith.constant 0 : i32
    %c0_i32_0 = arith.constant 0 : i32
    %c0_i32_1 = arith.constant 0 : i32
    return %c0_i32, %c0_i32_0 : i32, i32
  }
  func.func @transform_13(%arg0: i32) -> (i32, i32, i32) {
    %c0_i32 = arith.constant 0 : i32
    %c0_i32_0 = arith.constant 0 : i32
    %c0_i32_1 = arith.constant 0 : i32
    %c0_i32_2 = arith.constant 0 : i32
    return %c0_i32, %c0_i32_0, %c0_i32_1 : i32, i32, i32
  }
  func.func @transform_14(%arg0: i32) -> (i32, i32) {
    %c0_i32 = arith.constant 0 : i32
    %c0_i32_0 = arith.constant 0 : i32
    %c0_i32_1 = arith.constant 0 : i32
    return %c0_i32, %c0_i32_0 : i32, i32
  }
  func.func @transform_15(%arg0: i32) -> (i32, i32) {
    %c0_i32 = arith.constant 0 : i32
    %c0_i32_0 = arith.constant 0 : i32
    %c0_i32_1 = arith.constant 0 : i32
    return %c0_i32, %c0_i32_0 : i32, i32
  }
  func.func @transform_16(%arg0: i32) -> (i32, i32) {
    %c0_i32 = arith.constant 0 : i32
    %c0_i32_0 = arith.constant 0 : i32
    %c0_i32_1 = arith.constant 0 : i32
    return %c0_i32, %c0_i32_0 : i32, i32
  }
  func.func @transform_17(%arg0: i32) -> (i32, i32) {
    %c0_i32 = arith.constant 0 : i32
    %c0_i32_0 = arith.constant 0 : i32
    %c0_i32_1 = arith.constant 0 : i32
    return %c0_i32, %c0_i32_0 : i32, i32
  }
  func.func @transform_18(%arg0: i32) -> (i32, i32) {
    %c0_i32 = arith.constant 0 : i32
    %c0_i32_0 = arith.constant 0 : i32
    %c0_i32_1 = arith.constant 0 : i32
    return %c0_i32, %c0_i32_0 : i32, i32
  }
  func.func @transform_19(%arg0: i32) -> (i32, i32) {
    %c0_i32 = arith.constant 0 : i32
    %c0_i32_0 = arith.constant 0 : i32
    %c0_i32_1 = arith.constant 0 : i32
    return %c0_i32, %c0_i32_0 : i32, i32
  }
  func.func @transform_20(%arg0: i32) -> (i32, i32) {
    %c0_i32 = arith.constant 0 : i32
    %c0_i32_0 = arith.constant 0 : i32
    %c0_i32_1 = arith.constant 0 : i32
    return %c0_i32, %c0_i32_0 : i32, i32
  }
  func.func @transform_21(%arg0: i32) -> (i32, i32) {
    %c0_i32 = arith.constant 0 : i32
    %c0_i32_0 = arith.constant 0 : i32
    %c0_i32_1 = arith.constant 0 : i32
    return %c0_i32, %c0_i32_0 : i32, i32
  }
  func.func @transform_22(%arg0: i32) -> (i32, i32, i32) {
    %c0_i32 = arith.constant 0 : i32
    %c0_i32_0 = arith.constant 0 : i32
    %c0_i32_1 = arith.constant 0 : i32
    return %arg0, %c0_i32, %c0_i32_0 : i32, i32, i32
  }
}

module attributes {stable_mosaic.version = 11 : i64} {
  func.func @_spectral_kernel(%arg0: i32, %arg1: memref<1x8x8x16xf32, #tpu.memory_space<vmem>>, %arg2: memref<16x120xbf16, #tpu.memory_space<vmem>>, %arg3: memref<1x120xf32, #tpu.memory_space<vmem>>, %arg4: memref<1x120xf32, #tpu.memory_space<vmem>>, %arg5: memref<1x120xf32, #tpu.memory_space<vmem>>, %arg6: memref<120x60xbf16, #tpu.memory_space<vmem>>, %arg7: memref<1x60xf32, #tpu.memory_space<vmem>>, %arg8: memref<1x180xf32, #tpu.memory_space<vmem>>, %arg9: memref<1x180xf32, #tpu.memory_space<vmem>>, %arg10: memref<180x60xbf16, #tpu.memory_space<vmem>>, %arg11: memref<1x60xf32, #tpu.memory_space<vmem>>, %arg12: memref<1x240xf32, #tpu.memory_space<vmem>>, %arg13: memref<1x240xf32, #tpu.memory_space<vmem>>, %arg14: memref<240x60xbf16, #tpu.memory_space<vmem>>, %arg15: memref<1x60xf32, #tpu.memory_space<vmem>>, %arg16: memref<1x300xf32, #tpu.memory_space<vmem>>, %arg17: memref<1x300xf32, #tpu.memory_space<vmem>>, %arg18: memref<300x60xbf16, #tpu.memory_space<vmem>>, %arg19: memref<1x60xf32, #tpu.memory_space<vmem>>, %arg20: memref<1x1xf32, #tpu.memory_space<vmem>>, %arg21: memref<1x1x60xf32, #tpu.memory_space<vmem>>, %arg22: memref<64x300xf32, #tpu.memory_space<vmem>>) attributes {dimension_semantics = [#tpu.dimension_semantics<parallel>], iteration_bounds = array<i64: 2>, scalar_prefetch = 0 : i64, scratch_operands = 1 : i64, tpu.core_type = #tpu.core_type<tc>, window_params = [{transform_indices = @transform_0, window_bounds = array<i64: 1, 8, 8, 16>}, {pipeline_mode = #tpu.pipeline_mode<synchronous>, transform_indices = @transform_1, window_bounds = array<i64: 16, 120>}, {pipeline_mode = #tpu.pipeline_mode<synchronous>, transform_indices = @transform_2, window_bounds = array<i64: 1, 120>}, {pipeline_mode = #tpu.pipeline_mode<synchronous>, transform_indices = @transform_3, window_bounds = array<i64: 1, 120>}, {pipeline_mode = #tpu.pipeline_mode<synchronous>, transform_indices = @transform_4, window_bounds = array<i64: 1, 120>}, {pipeline_mode = #tpu.pipeline_mode<synchronous>, transform_indices = @transform_5, window_bounds = array<i64: 120, 60>}, {pipeline_mode = #tpu.pipeline_mode<synchronous>, transform_indices = @transform_6, window_bounds = array<i64: 1, 60>}, {pipeline_mode = #tpu.pipeline_mode<synchronous>, transform_indices = @transform_7, window_bounds = array<i64: 1, 180>}, {pipeline_mode = #tpu.pipeline_mode<synchronous>, transform_indices = @transform_8, window_bounds = array<i64: 1, 180>}, {pipeline_mode = #tpu.pipeline_mode<synchronous>, transform_indices = @transform_9, window_bounds = array<i64: 180, 60>}, {pipeline_mode = #tpu.pipeline_mode<synchronous>, transform_indices = @transform_10, window_bounds = array<i64: 1, 60>}, {pipeline_mode = #tpu.pipeline_mode<synchronous>, transform_indices = @transform_11, window_bounds = array<i64: 1, 240>}, {pipeline_mode = #tpu.pipeline_mode<synchronous>, transform_indices = @transform_12, window_bounds = array<i64: 1, 240>}, {pipeline_mode = #tpu.pipeline_mode<synchronous>, transform_indices = @transform_13, window_bounds = array<i64: 240, 60>}, {pipeline_mode = #tpu.pipeline_mode<synchronous>, transform_indices = @transform_14, window_bounds = array<i64: 1, 60>}, {pipeline_mode = #tpu.pipeline_mode<synchronous>, transform_indices = @transform_15, window_bounds = array<i64: 1, 300>}, {pipeline_mode = #tpu.pipeline_mode<synchronous>, transform_indices = @transform_16, window_bounds = array<i64: 1, 300>}, {pipeline_mode = #tpu.pipeline_mode<synchronous>, transform_indices = @transform_17, window_bounds = array<i64: 300, 60>}, {pipeline_mode = #tpu.pipeline_mode<synchronous>, transform_indices = @transform_18, window_bounds = array<i64: 1, 60>}, {pipeline_mode = #tpu.pipeline_mode<synchronous>, transform_indices = @transform_19, window_bounds = array<i64: 1, 1>}, {transform_indices = @transform_20, window_bounds = array<i64: 1, 1, 60>}]} {
    %c0 = arith.constant 0 : index
    %c0_0 = arith.constant 0 : index
    %c0_1 = arith.constant 0 : index
    %c0_2 = arith.constant 0 : index
    %0 = vector.load %arg1[%c0, %c0_0, %c0_1, %c0_2] : memref<1x8x8x16xf32, #tpu.memory_space<vmem>>, vector<1x8x8x16xf32>
    %1 = vector.shape_cast %0 : vector<1x8x8x16xf32> to vector<8x8x16xf32>
    %2 = vector.shape_cast %1 : vector<8x8x16xf32> to vector<64x16xf32>
    %c0_3 = arith.constant 0 : index
    %c0_4 = arith.constant 0 : index
    %3 = vector.load %arg2[%c0_3, %c0_4] : memref<16x120xbf16, #tpu.memory_space<vmem>>, vector<16x120xbf16>
    %c0_5 = arith.constant 0 : index
    %c0_6 = arith.constant 0 : index
    %4 = vector.load %arg3[%c0_5, %c0_6] : memref<1x120xf32, #tpu.memory_space<vmem>>, vector<1x120xf32>
    %5 = arith.truncf %2 : vector<64x16xf32> to vector<64x16xbf16>
    %cst = arith.constant dense<0.000000e+00> : vector<64x120xf32>
    %6 = tpu.matmul %5, %3, %cst {dimension_numbers = #tpu.dot_dimension_numbers<[1], [0], [0], [1], [0, 0, 1, 1], [], []>} : vector<64x16xbf16>, vector<16x120xbf16>, vector<64x120xf32> -> vector<64x120xf32>
    %7 = vector.broadcast %4 : vector<1x120xf32> to vector<64x120xf32>
    %8 = arith.addf %6, %7 : vector<64x120xf32>
    %c0_7 = arith.constant 0 : index
    %c0_8 = arith.constant 0 : index
    %9 = vector.load %arg22[%c0_7, %c0_8] : memref<64x300xf32, #tpu.memory_space<vmem>>, vector<64x120xf32>
    tpu.vector_store %arg22[%c0_7, %c0_8], %8 {strides = array<i32>} : memref<64x300xf32, #tpu.memory_space<vmem>>, vector<64x120xf32>,
    %c0_9 = arith.constant 0 : index
    %c0_10 = arith.constant 0 : index
    %10 = vector.load %arg4[%c0_9, %c0_10] : memref<1x120xf32, #tpu.memory_space<vmem>>, vector<1x120xf32>
    %c0_11 = arith.constant 0 : index
    %c0_12 = arith.constant 0 : index
    %11 = vector.load %arg5[%c0_11, %c0_12] : memref<1x120xf32, #tpu.memory_space<vmem>>, vector<1x120xf32>
    %12 = vector.broadcast %10 : vector<1x120xf32> to vector<64x120xf32>
    %13 = arith.mulf %8, %12 : vector<64x120xf32>
    %14 = vector.broadcast %11 : vector<1x120xf32> to vector<64x120xf32>
    %15 = arith.addf %13, %14 : vector<64x120xf32>
    %cst_13 = arith.constant 0.000000e+00 : f32
    %16 = vector.broadcast %cst_13 : f32 to vector<64x120xf32>
    %17 = arith.maximumf %15, %16 : vector<64x120xf32>
    %18 = math.absf %15 : vector<64x120xf32>
    %cst_14 = arith.constant 0.000000e+00 : f32
    %19 = vector.broadcast %cst_14 : f32 to vector<64x120xf32>
    %20 = arith.subf %19, %18 : vector<64x120xf32>
    %21 = math.exp %20 : vector<64x120xf32>
    %22 = math.log1p %21 : vector<64x120xf32>
    %23 = arith.addf %17, %22 : vector<64x120xf32>
    %24 = math.tanh %23 : vector<64x120xf32>
    %25 = arith.mulf %15, %24 : vector<64x120xf32>
    %c0_15 = arith.constant 0 : index
    %c0_16 = arith.constant 0 : index
    %26 = vector.load %arg6[%c0_15, %c0_16] : memref<120x60xbf16, #tpu.memory_space<vmem>>, vector<120x60xbf16>
    %c0_17 = arith.constant 0 : index
    %c0_18 = arith.constant 0 : index
    %27 = vector.load %arg7[%c0_17, %c0_18] : memref<1x60xf32, #tpu.memory_space<vmem>>, vector<1x60xf32>
    %28 = arith.truncf %25 : vector<64x120xf32> to vector<64x120xbf16>
    %cst_19 = arith.constant dense<0.000000e+00> : vector<64x60xf32>
    %29 = tpu.matmul %28, %26, %cst_19 {dimension_numbers = #tpu.dot_dimension_numbers<[1], [0], [0], [1], [0, 0, 1, 1], [], []>} : vector<64x120xbf16>, vector<120x60xbf16>, vector<64x60xf32> -> vector<64x60xf32>
    %30 = vector.broadcast %27 : vector<1x60xf32> to vector<64x60xf32>
    %31 = arith.addf %29, %30 : vector<64x60xf32>
    %c0_20 = arith.constant 0 : index
    %c120 = arith.constant 120 : index
    %32 = vector.load %arg22[%c0_20, %c120] : memref<64x300xf32, #tpu.memory_space<vmem>>, vector<64x60xf32>
    tpu.vector_store %arg22[%c0_20, %c120], %31 {strides = array<i32>} : memref<64x300xf32, #tpu.memory_space<vmem>>, vector<64x60xf32>,
    %c0_21 = arith.constant 0 : index
    %c0_22 = arith.constant 0 : index
    %33 = vector.load %arg22[%c0_21, %c0_22] : memref<64x300xf32, #tpu.memory_space<vmem>>, vector<64x180xf32>
    %c0_23 = arith.constant 0 : index
    %c0_24 = arith.constant 0 : index
    %34 = vector.load %arg8[%c0_23, %c0_24] : memref<1x180xf32, #tpu.memory_space<vmem>>, vector<1x180xf32>
    %c0_25 = arith.constant 0 : index
    %c0_26 = arith.constant 0 : index
    %35 = vector.load %arg9[%c0_25, %c0_26] : memref<1x180xf32, #tpu.memory_space<vmem>>, vector<1x180xf32>
    %36 = vector.broadcast %34 : vector<1x180xf32> to vector<64x180xf32>
    %37 = arith.mulf %33, %36 : vector<64x180xf32>
    %38 = vector.broadcast %35 : vector<1x180xf32> to vector<64x180xf32>
    %39 = arith.addf %37, %38 : vector<64x180xf32>
    %cst_27 = arith.constant 0.000000e+00 : f32
    %40 = vector.broadcast %cst_27 : f32 to vector<64x180xf32>
    %41 = arith.maximumf %39, %40 : vector<64x180xf32>
    %42 = math.absf %39 : vector<64x180xf32>
    %cst_28 = arith.constant 0.000000e+00 : f32
    %43 = vector.broadcast %cst_28 : f32 to vector<64x180xf32>
    %44 = arith.subf %43, %42 : vector<64x180xf32>
    %45 = math.exp %44 : vector<64x180xf32>
    %46 = math.log1p %45 : vector<64x180xf32>
    %47 = arith.addf %41, %46 : vector<64x180xf32>
    %48 = math.tanh %47 : vector<64x180xf32>
    %49 = arith.mulf %39, %48 : vector<64x180xf32>
    %c0_29 = arith.constant 0 : index
    %c0_30 = arith.constant 0 : index
    %50 = vector.load %arg10[%c0_29, %c0_30] : memref<180x60xbf16, #tpu.memory_space<vmem>>, vector<180x60xbf16>
    %c0_31 = arith.constant 0 : index
    %c0_32 = arith.constant 0 : index
    %51 = vector.load %arg11[%c0_31, %c0_32] : memref<1x60xf32, #tpu.memory_space<vmem>>, vector<1x60xf32>
    %52 = arith.truncf %49 : vector<64x180xf32> to vector<64x180xbf16>
    %cst_33 = arith.constant dense<0.000000e+00> : vector<64x60xf32>
    %53 = tpu.matmul %52, %50, %cst_33 {dimension_numbers = #tpu.dot_dimension_numbers<[1], [0], [0], [1], [0, 0, 1, 1], [], []>} : vector<64x180xbf16>, vector<180x60xbf16>, vector<64x60xf32> -> vector<64x60xf32>
    %54 = vector.broadcast %51 : vector<1x60xf32> to vector<64x60xf32>
    %55 = arith.addf %53, %54 : vector<64x60xf32>
    %c0_34 = arith.constant 0 : index
    %c180 = arith.constant 180 : index
    %56 = vector.load %arg22[%c0_34, %c180] : memref<64x300xf32, #tpu.memory_space<vmem>>, vector<64x60xf32>
    tpu.vector_store %arg22[%c0_34, %c180], %55 {strides = array<i32>} : memref<64x300xf32, #tpu.memory_space<vmem>>, vector<64x60xf32>,
    %c0_35 = arith.constant 0 : index
    %c0_36 = arith.constant 0 : index
    %57 = vector.load %arg22[%c0_35, %c0_36] : memref<64x300xf32, #tpu.memory_space<vmem>>, vector<64x240xf32>
    %c0_37 = arith.constant 0 : index
    %c0_38 = arith.constant 0 : index
    %58 = vector.load %arg12[%c0_37, %c0_38] : memref<1x240xf32, #tpu.memory_space<vmem>>, vector<1x240xf32>
    %c0_39 = arith.constant 0 : index
    %c0_40 = arith.constant 0 : index
    %59 = vector.load %arg13[%c0_39, %c0_40] : memref<1x240xf32, #tpu.memory_space<vmem>>, vector<1x240xf32>
    %60 = vector.broadcast %58 : vector<1x240xf32> to vector<64x240xf32>
    %61 = arith.mulf %57, %60 : vector<64x240xf32>
    %62 = vector.broadcast %59 : vector<1x240xf32> to vector<64x240xf32>
    %63 = arith.addf %61, %62 : vector<64x240xf32>
    %cst_41 = arith.constant 0.000000e+00 : f32
    %64 = vector.broadcast %cst_41 : f32 to vector<64x240xf32>
    %65 = arith.maximumf %63, %64 : vector<64x240xf32>
    %66 = math.absf %63 : vector<64x240xf32>
    %cst_42 = arith.constant 0.000000e+00 : f32
    %67 = vector.broadcast %cst_42 : f32 to vector<64x240xf32>
    %68 = arith.subf %67, %66 : vector<64x240xf32>
    %69 = math.exp %68 : vector<64x240xf32>
    %70 = math.log1p %69 : vector<64x240xf32>
    %71 = arith.addf %65, %70 : vector<64x240xf32>
    %72 = math.tanh %71 : vector<64x240xf32>
    %73 = arith.mulf %63, %72 : vector<64x240xf32>
    %c0_43 = arith.constant 0 : index
    %c0_44 = arith.constant 0 : index
    %74 = vector.load %arg14[%c0_43, %c0_44] : memref<240x60xbf16, #tpu.memory_space<vmem>>, vector<240x60xbf16>
    %c0_45 = arith.constant 0 : index
    %c0_46 = arith.constant 0 : index
    %75 = vector.load %arg15[%c0_45, %c0_46] : memref<1x60xf32, #tpu.memory_space<vmem>>, vector<1x60xf32>
    %76 = arith.truncf %73 : vector<64x240xf32> to vector<64x240xbf16>
    %cst_47 = arith.constant dense<0.000000e+00> : vector<64x60xf32>
    %77 = tpu.matmul %76, %74, %cst_47 {dimension_numbers = #tpu.dot_dimension_numbers<[1], [0], [0], [1], [0, 0, 1, 1], [], []>} : vector<64x240xbf16>, vector<240x60xbf16>, vector<64x60xf32> -> vector<64x60xf32>
    %78 = vector.broadcast %75 : vector<1x60xf32> to vector<64x60xf32>
    %79 = arith.addf %77, %78 : vector<64x60xf32>
    %c0_48 = arith.constant 0 : index
    %c240 = arith.constant 240 : index
    %80 = vector.load %arg22[%c0_48, %c240] : memref<64x300xf32, #tpu.memory_space<vmem>>, vector<64x60xf32>
    tpu.vector_store %arg22[%c0_48, %c240], %79 {strides = array<i32>} : memref<64x300xf32, #tpu.memory_space<vmem>>, vector<64x60xf32>,
    %c0_49 = arith.constant 0 : index
    %c0_50 = arith.constant 0 : index
    %81 = vector.load %arg22[%c0_49, %c0_50] : memref<64x300xf32, #tpu.memory_space<vmem>>, vector<64x300xf32>
    %c0_51 = arith.constant 0 : index
    %c0_52 = arith.constant 0 : index
    %82 = vector.load %arg16[%c0_51, %c0_52] : memref<1x300xf32, #tpu.memory_space<vmem>>, vector<1x300xf32>
    %c0_53 = arith.constant 0 : index
    %c0_54 = arith.constant 0 : index
    %83 = vector.load %arg17[%c0_53, %c0_54] : memref<1x300xf32, #tpu.memory_space<vmem>>, vector<1x300xf32>
    %84 = vector.broadcast %82 : vector<1x300xf32> to vector<64x300xf32>
    %85 = arith.mulf %81, %84 : vector<64x300xf32>
    %86 = vector.broadcast %83 : vector<1x300xf32> to vector<64x300xf32>
    %87 = arith.addf %85, %86 : vector<64x300xf32>
    %cst_55 = arith.constant 0.000000e+00 : f32
    %88 = vector.broadcast %cst_55 : f32 to vector<64x300xf32>
    %89 = arith.maximumf %87, %88 : vector<64x300xf32>
    %90 = math.absf %87 : vector<64x300xf32>
    %cst_56 = arith.constant 0.000000e+00 : f32
    %91 = vector.broadcast %cst_56 : f32 to vector<64x300xf32>
    %92 = arith.subf %91, %90 : vector<64x300xf32>
    %93 = math.exp %92 : vector<64x300xf32>
    %94 = math.log1p %93 : vector<64x300xf32>
    %95 = arith.addf %89, %94 : vector<64x300xf32>
    %96 = math.tanh %95 : vector<64x300xf32>
    %97 = arith.mulf %87, %96 : vector<64x300xf32>
    %c0_57 = arith.constant 0 : index
    %c0_58 = arith.constant 0 : index
    %98 = vector.load %arg18[%c0_57, %c0_58] : memref<300x60xbf16, #tpu.memory_space<vmem>>, vector<300x60xbf16>
    %c0_59 = arith.constant 0 : index
    %c0_60 = arith.constant 0 : index
    %99 = vector.load %arg19[%c0_59, %c0_60] : memref<1x60xf32, #tpu.memory_space<vmem>>, vector<1x60xf32>
    %100 = arith.truncf %97 : vector<64x300xf32> to vector<64x300xbf16>
    %cst_61 = arith.constant dense<0.000000e+00> : vector<64x60xf32>
    %101 = tpu.matmul %100, %98, %cst_61 {dimension_numbers = #tpu.dot_dimension_numbers<[1], [0], [0], [1], [0, 0, 1, 1], [], []>} : vector<64x300xbf16>, vector<300x60xbf16>, vector<64x60xf32> -> vector<64x60xf32>
    %102 = vector.broadcast %99 : vector<1x60xf32> to vector<64x60xf32>
    %103 = arith.addf %101, %102 : vector<64x60xf32>
    %104 = arith.truncf %103 : vector<64x60xf32> to vector<64x60xbf16>
    %cst_62 = arith.constant dense<0.000000e+00> : vector<60x60xf32>
    %105 = tpu.matmul %104, %104, %cst_62 {dimension_numbers = #tpu.dot_dimension_numbers<[0], [0], [1], [1], [0, 1, 1, 1], [], []>} : vector<64x60xbf16>, vector<64x60xbf16>, vector<60x60xf32> -> vector<60x60xf32>
    %cst_63 = arith.constant dense<0xFF800000> : vector<60xf32>
    %106 = vector.multi_reduction <maximumf>, %105, %cst_63 [0] : vector<60x60xf32> to vector<60xf32>
    %107 = vector.shape_cast %106 : vector<60xf32> to vector<1x60xf32>
    %108 = vector.broadcast %107 : vector<1x60xf32> to vector<60x60xf32>
    %109 = arith.subf %108, %105 : vector<60x60xf32>
    %cst_64 = arith.constant dense<0xFF800000> : vector<60xf32>
    %110 = vector.multi_reduction <maximumf>, %109, %cst_64 [0] : vector<60x60xf32> to vector<60xf32>
    %111 = vector.shape_cast %110 : vector<60xf32> to vector<1x60xf32>
    %112 = vector.broadcast %111 : vector<1x60xf32> to vector<60x60xf32>
    %113 = arith.subf %109, %112 : vector<60x60xf32>
    %114 = math.exp %113 : vector<60x60xf32>
    %cst_65 = arith.constant dense<0.000000e+00> : vector<60xf32>
    %115 = vector.multi_reduction <add>, %114, %cst_65 [0] : vector<60x60xf32> to vector<60xf32>
    %116 = vector.shape_cast %115 : vector<60xf32> to vector<1x60xf32>
    %117 = vector.broadcast %116 : vector<1x60xf32> to vector<60x60xf32>
    %118 = arith.divf %114, %117 : vector<60x60xf32>
    %119 = arith.mulf %118, %105 : vector<60x60xf32>
    %cst_66 = arith.constant dense<0.000000e+00> : vector<60xf32>
    %120 = vector.multi_reduction <add>, %119, %cst_66 [0] : vector<60x60xf32> to vector<60xf32>
    %121 = vector.shape_cast %120 : vector<60xf32> to vector<1x60xf32>
    %122 = arith.mulf %103, %103 : vector<64x60xf32>
    %cst_67 = arith.constant dense<0.000000e+00> : vector<60xf32>
    %123 = vector.multi_reduction <add>, %122, %cst_67 [0] : vector<64x60xf32> to vector<60xf32>
    %124 = vector.shape_cast %123 : vector<60xf32> to vector<1x60xf32>
    %c0_68 = arith.constant 0 : index
    %c0_69 = arith.constant 0 : index
    %125 = vector.load %arg20[%c0_68, %c0_69] : memref<1x1xf32, #tpu.memory_space<vmem>>, vector<1x1xf32>
    %126 = vector.broadcast %125 : vector<1x1xf32> to vector<1x60xf32>
    %127 = arith.mulf %126, %121 : vector<1x60xf32>
    %128 = arith.addf %127, %124 : vector<1x60xf32>
    %cst_70 = arith.constant 1.562500e-02 : f32
    %129 = vector.broadcast %cst_70 : f32 to vector<1x60xf32>
    %130 = arith.mulf %128, %129 : vector<1x60xf32>
    %c0_71 = arith.constant 0 : index
    %c0_72 = arith.constant 0 : index
    %c0_73 = arith.constant 0 : index
    %131 = vector.load %arg21[%c0_71, %c0_72, %c0_73] : memref<1x1x60xf32, #tpu.memory_space<vmem>>, vector<1x1x60xf32>
    %132 = vector.shape_cast %131 : vector<1x1x60xf32> to vector<1x60xf32>
    %133 = vector.shape_cast %130 : vector<1x60xf32> to vector<1x1x60xf32>
    tpu.vector_store %arg21[%c0_71, %c0_72, %c0_73], %133 {strides = array<i32>} : memref<1x1x60xf32, #tpu.memory_space<vmem>>, vector<1x1x60xf32>,
    return
  }
  func.func @transform_0(%arg0: i32) -> (i32, i32, i32, i32) {
    %c0_i32 = arith.constant 0 : i32
    %c0_i32_0 = arith.constant 0 : i32
    %c0_i32_1 = arith.constant 0 : i32
    %c0_i32_2 = arith.constant 0 : i32
    return %arg0, %c0_i32, %c0_i32_0, %c0_i32_1 : i32, i32, i32, i32
  }
  func.func @transform_1(%arg0: i32) -> (i32, i32) {
    %c0_i32 = arith.constant 0 : i32
    %c0_i32_0 = arith.constant 0 : i32
    %c0_i32_1 = arith.constant 0 : i32
    return %c0_i32, %c0_i32_0 : i32, i32
  }
  func.func @transform_2(%arg0: i32) -> (i32, i32) {
    %c0_i32 = arith.constant 0 : i32
    %c0_i32_0 = arith.constant 0 : i32
    %c0_i32_1 = arith.constant 0 : i32
    return %c0_i32, %c0_i32_0 : i32, i32
  }
  func.func @transform_3(%arg0: i32) -> (i32, i32) {
    %c0_i32 = arith.constant 0 : i32
    %c0_i32_0 = arith.constant 0 : i32
    %c0_i32_1 = arith.constant 0 : i32
    return %c0_i32, %c0_i32_0 : i32, i32
  }
  func.func @transform_4(%arg0: i32) -> (i32, i32) {
    %c0_i32 = arith.constant 0 : i32
    %c0_i32_0 = arith.constant 0 : i32
    %c0_i32_1 = arith.constant 0 : i32
    return %c0_i32, %c0_i32_0 : i32, i32
  }
  func.func @transform_5(%arg0: i32) -> (i32, i32) {
    %c0_i32 = arith.constant 0 : i32
    %c0_i32_0 = arith.constant 0 : i32
    %c0_i32_1 = arith.constant 0 : i32
    return %c0_i32, %c0_i32_0 : i32, i32
  }
  func.func @transform_6(%arg0: i32) -> (i32, i32) {
    %c0_i32 = arith.constant 0 : i32
    %c0_i32_0 = arith.constant 0 : i32
    %c0_i32_1 = arith.constant 0 : i32
    return %c0_i32, %c0_i32_0 : i32, i32
  }
  func.func @transform_7(%arg0: i32) -> (i32, i32) {
    %c0_i32 = arith.constant 0 : i32
    %c0_i32_0 = arith.constant 0 : i32
    %c0_i32_1 = arith.constant 0 : i32
    return %c0_i32, %c0_i32_0 : i32, i32
  }
  func.func @transform_8(%arg0: i32) -> (i32, i32) {
    %c0_i32 = arith.constant 0 : i32
    %c0_i32_0 = arith.constant 0 : i32
    %c0_i32_1 = arith.constant 0 : i32
    return %c0_i32, %c0_i32_0 : i32, i32
  }
  func.func @transform_9(%arg0: i32) -> (i32, i32) {
    %c0_i32 = arith.constant 0 : i32
    %c0_i32_0 = arith.constant 0 : i32
    %c0_i32_1 = arith.constant 0 : i32
    return %c0_i32, %c0_i32_0 : i32, i32
  }
  func.func @transform_10(%arg0: i32) -> (i32, i32) {
    %c0_i32 = arith.constant 0 : i32
    %c0_i32_0 = arith.constant 0 : i32
    %c0_i32_1 = arith.constant 0 : i32
    return %c0_i32, %c0_i32_0 : i32, i32
  }
  func.func @transform_11(%arg0: i32) -> (i32, i32) {
    %c0_i32 = arith.constant 0 : i32
    %c0_i32_0 = arith.constant 0 : i32
    %c0_i32_1 = arith.constant 0 : i32
    return %c0_i32, %c0_i32_0 : i32, i32
  }
  func.func @transform_12(%arg0: i32) -> (i32, i32) {
    %c0_i32 = arith.constant 0 : i32
    %c0_i32_0 = arith.constant 0 : i32
    %c0_i32_1 = arith.constant 0 : i32
    return %c0_i32, %c0_i32_0 : i32, i32
  }
  func.func @transform_13(%arg0: i32) -> (i32, i32) {
    %c0_i32 = arith.constant 0 : i32
    %c0_i32_0 = arith.constant 0 : i32
    %c0_i32_1 = arith.constant 0 : i32
    return %c0_i32, %c0_i32_0 : i32, i32
  }
  func.func @transform_14(%arg0: i32) -> (i32, i32) {
    %c0_i32 = arith.constant 0 : i32
    %c0_i32_0 = arith.constant 0 : i32
    %c0_i32_1 = arith.constant 0 : i32
    return %c0_i32, %c0_i32_0 : i32, i32
  }
  func.func @transform_15(%arg0: i32) -> (i32, i32) {
    %c0_i32 = arith.constant 0 : i32
    %c0_i32_0 = arith.constant 0 : i32
    %c0_i32_1 = arith.constant 0 : i32
    return %c0_i32, %c0_i32_0 : i32, i32
  }
  func.func @transform_16(%arg0: i32) -> (i32, i32) {
    %c0_i32 = arith.constant 0 : i32
    %c0_i32_0 = arith.constant 0 : i32
    %c0_i32_1 = arith.constant 0 : i32
    return %c0_i32, %c0_i32_0 : i32, i32
  }
  func.func @transform_17(%arg0: i32) -> (i32, i32) {
    %c0_i32 = arith.constant 0 : i32
    %c0_i32_0 = arith.constant 0 : i32
    %c0_i32_1 = arith.constant 0 : i32
    return %c0_i32, %c0_i32_0 : i32, i32
  }
  func.func @transform_18(%arg0: i32) -> (i32, i32) {
    %c0_i32 = arith.constant 0 : i32
    %c0_i32_0 = arith.constant 0 : i32
    %c0_i32_1 = arith.constant 0 : i32
    return %c0_i32, %c0_i32_0 : i32, i32
  }
  func.func @transform_19(%arg0: i32) -> (i32, i32) {
    %c0_i32 = arith.constant 0 : i32
    %c0_i32_0 = arith.constant 0 : i32
    %c0_i32_1 = arith.constant 0 : i32
    return %c0_i32, %c0_i32_0 : i32, i32
  }
  func.func @transform_20(%arg0: i32) -> (i32, i32, i32) {
    %c0_i32 = arith.constant 0 : i32
    %c0_i32_0 = arith.constant 0 : i32
    %c0_i32_1 = arith.constant 0 : i32
    return %arg0, %c0_i32, %c0_i32_0 : i32, i32, i32
  }
}

module attributes {stable_mosaic.version = 11 : i64} {
  func.func @_head_kernel(%arg0: i32, %arg1: memref<2x60xf32, #tpu.memory_space<vmem>>, %arg2: memref<2x60xf32, #tpu.memory_space<vmem>>, %arg3: memref<60x60xf32, #tpu.memory_space<vmem>>, %arg4: memref<1x60xf32, #tpu.memory_space<vmem>>, %arg5: memref<60x60xf32, #tpu.memory_space<vmem>>, %arg6: memref<1x60xf32, #tpu.memory_space<vmem>>, %arg7: memref<60x60xf32, #tpu.memory_space<vmem>>, %arg8: memref<1x60xf32, #tpu.memory_space<vmem>>, %arg9: memref<60x60xf32, #tpu.memory_space<vmem>>, %arg10: memref<1x60xf32, #tpu.memory_space<vmem>>, %arg11: memref<1x60xf32, #tpu.memory_space<vmem>>, %arg12: memref<1x60xf32, #tpu.memory_space<vmem>>, %arg13: memref<1x60xf32, #tpu.memory_space<vmem>>, %arg14: memref<1x60xf32, #tpu.memory_space<vmem>>, %arg15: memref<60x5xf32, #tpu.memory_space<vmem>>, %arg16: memref<60x5xf32, #tpu.memory_space<vmem>>, %arg17: memref<1x5xf32, #tpu.memory_space<vmem>>, %arg18: memref<2x5xf32, #tpu.memory_space<vmem>>) attributes {dimension_semantics = [#tpu.dimension_semantics<arbitrary>], iteration_bounds = array<i64: 1>, scalar_prefetch = 0 : i64, scratch_operands = 0 : i64, tpu.core_type = #tpu.core_type<tc>, window_params = [{pipeline_mode = #tpu.pipeline_mode<synchronous>, transform_indices = @transform_0, window_bounds = array<i64: 2, 60>}, {pipeline_mode = #tpu.pipeline_mode<synchronous>, transform_indices = @transform_1, window_bounds = array<i64: 2, 60>}, {pipeline_mode = #tpu.pipeline_mode<synchronous>, transform_indices = @transform_2, window_bounds = array<i64: 60, 60>}, {pipeline_mode = #tpu.pipeline_mode<synchronous>, transform_indices = @transform_3, window_bounds = array<i64: 1, 60>}, {pipeline_mode = #tpu.pipeline_mode<synchronous>, transform_indices = @transform_4, window_bounds = array<i64: 60, 60>}, {pipeline_mode = #tpu.pipeline_mode<synchronous>, transform_indices = @transform_5, window_bounds = array<i64: 1, 60>}, {pipeline_mode = #tpu.pipeline_mode<synchronous>, transform_indices = @transform_6, window_bounds = array<i64: 60, 60>}, {pipeline_mode = #tpu.pipeline_mode<synchronous>, transform_indices = @transform_7, window_bounds = array<i64: 1, 60>}, {pipeline_mode = #tpu.pipeline_mode<synchronous>, transform_indices = @transform_8, window_bounds = array<i64: 60, 60>}, {pipeline_mode = #tpu.pipeline_mode<synchronous>, transform_indices = @transform_9, window_bounds = array<i64: 1, 60>}, {pipeline_mode = #tpu.pipeline_mode<synchronous>, transform_indices = @transform_10, window_bounds = array<i64: 1, 60>}, {pipeline_mode = #tpu.pipeline_mode<synchronous>, transform_indices = @transform_11, window_bounds = array<i64: 1, 60>}, {pipeline_mode = #tpu.pipeline_mode<synchronous>, transform_indices = @transform_12, window_bounds = array<i64: 1, 60>}, {pipeline_mode = #tpu.pipeline_mode<synchronous>, transform_indices = @transform_13, window_bounds = array<i64: 1, 60>}, {pipeline_mode = #tpu.pipeline_mode<synchronous>, transform_indices = @transform_14, window_bounds = array<i64: 60, 5>}, {pipeline_mode = #tpu.pipeline_mode<synchronous>, transform_indices = @transform_15, window_bounds = array<i64: 60, 5>}, {pipeline_mode = #tpu.pipeline_mode<synchronous>, transform_indices = @transform_16, window_bounds = array<i64: 1, 5>}, {pipeline_mode = #tpu.pipeline_mode<synchronous>, transform_indices = @transform_17, window_bounds = array<i64: 2, 5>}]} {
    %c0 = arith.constant 0 : index
    %c0_0 = arith.constant 0 : index
    %0 = vector.load %arg1[%c0, %c0_0] : memref<2x60xf32, #tpu.memory_space<vmem>>, vector<2x60xf32>
    %c0_1 = arith.constant 0 : index
    %c0_2 = arith.constant 0 : index
    %1 = vector.load %arg2[%c0_1, %c0_2] : memref<2x60xf32, #tpu.memory_space<vmem>>, vector<2x60xf32>
    %c0_3 = arith.constant 0 : index
    %c0_4 = arith.constant 0 : index
    %2 = vector.load %arg3[%c0_3, %c0_4] : memref<60x60xf32, #tpu.memory_space<vmem>>, vector<60x60xf32>
    %cst = arith.constant dense<0.000000e+00> : vector<2x60xf32>
    %3 = tpu.matmul %1, %2, %cst {dimension_numbers = #tpu.dot_dimension_numbers<[1], [0], [0], [1], [0, 0, 1, 1], [], []>} : vector<2x60xf32>, vector<60x60xf32>, vector<2x60xf32> -> vector<2x60xf32>
    %c0_5 = arith.constant 0 : index
    %c0_6 = arith.constant 0 : index
    %4 = vector.load %arg4[%c0_5, %c0_6] : memref<1x60xf32, #tpu.memory_space<vmem>>, vector<1x60xf32>
    %5 = vector.broadcast %4 : vector<1x60xf32> to vector<2x60xf32>
    %6 = arith.addf %3, %5 : vector<2x60xf32>
    %c0_7 = arith.constant 0 : index
    %c0_8 = arith.constant 0 : index
    %7 = vector.load %arg5[%c0_7, %c0_8] : memref<60x60xf32, #tpu.memory_space<vmem>>, vector<60x60xf32>
    %cst_9 = arith.constant dense<0.000000e+00> : vector<2x60xf32>
    %8 = tpu.matmul %6, %7, %cst_9 {dimension_numbers = #tpu.dot_dimension_numbers<[1], [0], [0], [1], [0, 0, 1, 1], [], []>} : vector<2x60xf32>, vector<60x60xf32>, vector<2x60xf32> -> vector<2x60xf32>
    %c0_10 = arith.constant 0 : index
    %c0_11 = arith.constant 0 : index
    %9 = vector.load %arg6[%c0_10, %c0_11] : memref<1x60xf32, #tpu.memory_space<vmem>>, vector<1x60xf32>
    %10 = vector.broadcast %9 : vector<1x60xf32> to vector<2x60xf32>
    %11 = arith.addf %8, %10 : vector<2x60xf32>
    %c0_12 = arith.constant 0 : index
    %c0_13 = arith.constant 0 : index
    %12 = vector.load %arg7[%c0_12, %c0_13] : memref<60x60xf32, #tpu.memory_space<vmem>>, vector<60x60xf32>
    %cst_14 = arith.constant dense<0.000000e+00> : vector<2x60xf32>
    %13 = tpu.matmul %0, %12, %cst_14 {dimension_numbers = #tpu.dot_dimension_numbers<[1], [0], [0], [1], [0, 0, 1, 1], [], []>} : vector<2x60xf32>, vector<60x60xf32>, vector<2x60xf32> -> vector<2x60xf32>
    %c0_15 = arith.constant 0 : index
    %c0_16 = arith.constant 0 : index
    %14 = vector.load %arg8[%c0_15, %c0_16] : memref<1x60xf32, #tpu.memory_space<vmem>>, vector<1x60xf32>
    %15 = vector.broadcast %14 : vector<1x60xf32> to vector<2x60xf32>
    %16 = arith.addf %13, %15 : vector<2x60xf32>
    %c0_17 = arith.constant 0 : index
    %c0_18 = arith.constant 0 : index
    %17 = vector.load %arg9[%c0_17, %c0_18] : memref<60x60xf32, #tpu.memory_space<vmem>>, vector<60x60xf32>
    %cst_19 = arith.constant dense<0.000000e+00> : vector<2x60xf32>
    %18 = tpu.matmul %16, %17, %cst_19 {dimension_numbers = #tpu.dot_dimension_numbers<[1], [0], [0], [1], [0, 0, 1, 1], [], []>} : vector<2x60xf32>, vector<60x60xf32>, vector<2x60xf32> -> vector<2x60xf32>
    %c0_20 = arith.constant 0 : index
    %c0_21 = arith.constant 0 : index
    %19 = vector.load %arg10[%c0_20, %c0_21] : memref<1x60xf32, #tpu.memory_space<vmem>>, vector<1x60xf32>
    %20 = vector.broadcast %19 : vector<1x60xf32> to vector<2x60xf32>
    %21 = arith.addf %18, %20 : vector<2x60xf32>
    %cst_22 = arith.constant dense<0.000000e+00> : vector<2xf32>
    %22 = vector.multi_reduction <add>, %11, %cst_22 [1] : vector<2x60xf32> to vector<2xf32>
    %23 = vector.shape_cast %22 : vector<2xf32> to vector<2x1xf32>
    %cst_23 = arith.constant dense<0.000000e+00> : vector<2xf32>
    %24 = vector.multi_reduction <add>, %21, %cst_23 [1] : vector<2x60xf32> to vector<2xf32>
    %25 = vector.shape_cast %24 : vector<2xf32> to vector<2x1xf32>
    %26 = arith.addf %23, %25 : vector<2x1xf32>
    %cst_24 = arith.constant 1.200000e+02 : f32
    %27 = vector.broadcast %cst_24 : f32 to vector<2x1xf32>
    %28 = arith.divf %26, %27 : vector<2x1xf32>
    %29 = vector.broadcast %28 : vector<2x1xf32> to vector<2x60xf32>
    %30 = arith.subf %11, %29 : vector<2x60xf32>
    %31 = arith.mulf %30, %30 : vector<2x60xf32>
    %cst_25 = arith.constant dense<0.000000e+00> : vector<2xf32>
    %32 = vector.multi_reduction <add>, %31, %cst_25 [1] : vector<2x60xf32> to vector<2xf32>
    %33 = vector.shape_cast %32 : vector<2xf32> to vector<2x1xf32>
    %34 = vector.broadcast %28 : vector<2x1xf32> to vector<2x60xf32>
    %35 = arith.subf %21, %34 : vector<2x60xf32>
    %36 = arith.mulf %35, %35 : vector<2x60xf32>
    %cst_26 = arith.constant dense<0.000000e+00> : vector<2xf32>
    %37 = vector.multi_reduction <add>, %36, %cst_26 [1] : vector<2x60xf32> to vector<2xf32>
    %38 = vector.shape_cast %37 : vector<2xf32> to vector<2x1xf32>
    %39 = arith.addf %33, %38 : vector<2x1xf32>
    %cst_27 = arith.constant 1.200000e+02 : f32
    %40 = vector.broadcast %cst_27 : f32 to vector<2x1xf32>
    %41 = arith.divf %39, %40 : vector<2x1xf32>
    %cst_28 = arith.constant 9.99999974E-6 : f32
    %42 = vector.broadcast %cst_28 : f32 to vector<2x1xf32>
    %43 = arith.addf %41, %42 : vector<2x1xf32>
    %44 = math.rsqrt %43 : vector<2x1xf32>
    %45 = vector.broadcast %28 : vector<2x1xf32> to vector<2x60xf32>
    %46 = arith.subf %11, %45 : vector<2x60xf32>
    %47 = vector.broadcast %44 : vector<2x1xf32> to vector<2x60xf32>
    %48 = arith.mulf %46, %47 : vector<2x60xf32>
    %c0_29 = arith.constant 0 : index
    %c0_30 = arith.constant 0 : index
    %49 = vector.load %arg11[%c0_29, %c0_30] : memref<1x60xf32, #tpu.memory_space<vmem>>, vector<1x60xf32>
    %50 = vector.broadcast %49 : vector<1x60xf32> to vector<2x60xf32>
    %51 = arith.mulf %48, %50 : vector<2x60xf32>
    %c0_31 = arith.constant 0 : index
    %c0_32 = arith.constant 0 : index
    %52 = vector.load %arg13[%c0_31, %c0_32] : memref<1x60xf32, #tpu.memory_space<vmem>>, vector<1x60xf32>
    %53 = vector.broadcast %52 : vector<1x60xf32> to vector<2x60xf32>
    %54 = arith.addf %51, %53 : vector<2x60xf32>
    %55 = vector.broadcast %28 : vector<2x1xf32> to vector<2x60xf32>
    %56 = arith.subf %21, %55 : vector<2x60xf32>
    %57 = vector.broadcast %44 : vector<2x1xf32> to vector<2x60xf32>
    %58 = arith.mulf %56, %57 : vector<2x60xf32>
    %c0_33 = arith.constant 0 : index
    %c0_34 = arith.constant 0 : index
    %59 = vector.load %arg12[%c0_33, %c0_34] : memref<1x60xf32, #tpu.memory_space<vmem>>, vector<1x60xf32>
    %60 = vector.broadcast %59 : vector<1x60xf32> to vector<2x60xf32>
    %61 = arith.mulf %58, %60 : vector<2x60xf32>
    %c0_35 = arith.constant 0 : index
    %c0_36 = arith.constant 0 : index
    %62 = vector.load %arg14[%c0_35, %c0_36] : memref<1x60xf32, #tpu.memory_space<vmem>>, vector<1x60xf32>
    %63 = vector.broadcast %62 : vector<1x60xf32> to vector<2x60xf32>
    %64 = arith.addf %61, %63 : vector<2x60xf32>
    %c0_37 = arith.constant 0 : index
    %c0_38 = arith.constant 0 : index
    %65 = vector.load %arg15[%c0_37, %c0_38] : memref<60x5xf32, #tpu.memory_space<vmem>>, vector<60x5xf32>
    %cst_39 = arith.constant dense<0.000000e+00> : vector<2x5xf32>
    %66 = tpu.matmul %54, %65, %cst_39 {dimension_numbers = #tpu.dot_dimension_numbers<[1], [0], [0], [1], [0, 0, 1, 1], [], []>} : vector<2x60xf32>, vector<60x5xf32>, vector<2x5xf32> -> vector<2x5xf32>
    %c0_40 = arith.constant 0 : index
    %c0_41 = arith.constant 0 : index
    %67 = vector.load %arg16[%c0_40, %c0_41] : memref<60x5xf32, #tpu.memory_space<vmem>>, vector<60x5xf32>
    %cst_42 = arith.constant dense<0.000000e+00> : vector<2x5xf32>
    %68 = tpu.matmul %64, %67, %cst_42 {dimension_numbers = #tpu.dot_dimension_numbers<[1], [0], [0], [1], [0, 0, 1, 1], [], []>} : vector<2x60xf32>, vector<60x5xf32>, vector<2x5xf32> -> vector<2x5xf32>
    %69 = arith.addf %66, %68 : vector<2x5xf32>
    %c0_43 = arith.constant 0 : index
    %c0_44 = arith.constant 0 : index
    %70 = vector.load %arg17[%c0_43, %c0_44] : memref<1x5xf32, #tpu.memory_space<vmem>>, vector<1x5xf32>
    %71 = vector.broadcast %70 : vector<1x5xf32> to vector<2x5xf32>
    %72 = arith.addf %69, %71 : vector<2x5xf32>
    %c0_45 = arith.constant 0 : index
    %c0_46 = arith.constant 0 : index
    %73 = vector.load %arg18[%c0_45, %c0_46] : memref<2x5xf32, #tpu.memory_space<vmem>>, vector<2x5xf32>
    tpu.vector_store %arg18[%c0_45, %c0_46], %72 {strides = array<i32>} : memref<2x5xf32, #tpu.memory_space<vmem>>, vector<2x5xf32>,
    return
  }
  func.func @transform_0(%arg0: i32) -> (i32, i32) {
    %c0_i32 = arith.constant 0 : i32
    %c0_i32_0 = arith.constant 0 : i32
    %c0_i32_1 = arith.constant 0 : i32
    return %c0_i32, %c0_i32_0 : i32, i32
  }
  func.func @transform_1(%arg0: i32) -> (i32, i32) {
    %c0_i32 = arith.constant 0 : i32
    %c0_i32_0 = arith.constant 0 : i32
    %c0_i32_1 = arith.constant 0 : i32
    return %c0_i32, %c0_i32_0 : i32, i32
  }
  func.func @transform_2(%arg0: i32) -> (i32, i32) {
    %c0_i32 = arith.constant 0 : i32
    %c0_i32_0 = arith.constant 0 : i32
    %c0_i32_1 = arith.constant 0 : i32
    return %c0_i32, %c0_i32_0 : i32, i32
  }
  func.func @transform_3(%arg0: i32) -> (i32, i32) {
    %c0_i32 = arith.constant 0 : i32
    %c0_i32_0 = arith.constant 0 : i32
    %c0_i32_1 = arith.constant 0 : i32
    return %c0_i32, %c0_i32_0 : i32, i32
  }
  func.func @transform_4(%arg0: i32) -> (i32, i32) {
    %c0_i32 = arith.constant 0 : i32
    %c0_i32_0 = arith.constant 0 : i32
    %c0_i32_1 = arith.constant 0 : i32
    return %c0_i32, %c0_i32_0 : i32, i32
  }
  func.func @transform_5(%arg0: i32) -> (i32, i32) {
    %c0_i32 = arith.constant 0 : i32
    %c0_i32_0 = arith.constant 0 : i32
    %c0_i32_1 = arith.constant 0 : i32
    return %c0_i32, %c0_i32_0 : i32, i32
  }
  func.func @transform_6(%arg0: i32) -> (i32, i32) {
    %c0_i32 = arith.constant 0 : i32
    %c0_i32_0 = arith.constant 0 : i32
    %c0_i32_1 = arith.constant 0 : i32
    return %c0_i32, %c0_i32_0 : i32, i32
  }
  func.func @transform_7(%arg0: i32) -> (i32, i32) {
    %c0_i32 = arith.constant 0 : i32
    %c0_i32_0 = arith.constant 0 : i32
    %c0_i32_1 = arith.constant 0 : i32
    return %c0_i32, %c0_i32_0 : i32, i32
  }
  func.func @transform_8(%arg0: i32) -> (i32, i32) {
    %c0_i32 = arith.constant 0 : i32
    %c0_i32_0 = arith.constant 0 : i32
    %c0_i32_1 = arith.constant 0 : i32
    return %c0_i32, %c0_i32_0 : i32, i32
  }
  func.func @transform_9(%arg0: i32) -> (i32, i32) {
    %c0_i32 = arith.constant 0 : i32
    %c0_i32_0 = arith.constant 0 : i32
    %c0_i32_1 = arith.constant 0 : i32
    return %c0_i32, %c0_i32_0 : i32, i32
  }
  func.func @transform_10(%arg0: i32) -> (i32, i32) {
    %c0_i32 = arith.constant 0 : i32
    %c0_i32_0 = arith.constant 0 : i32
    %c0_i32_1 = arith.constant 0 : i32
    return %c0_i32, %c0_i32_0 : i32, i32
  }
  func.func @transform_11(%arg0: i32) -> (i32, i32) {
    %c0_i32 = arith.constant 0 : i32
    %c0_i32_0 = arith.constant 0 : i32
    %c0_i32_1 = arith.constant 0 : i32
    return %c0_i32, %c0_i32_0 : i32, i32
  }
  func.func @transform_12(%arg0: i32) -> (i32, i32) {
    %c0_i32 = arith.constant 0 : i32
    %c0_i32_0 = arith.constant 0 : i32
    %c0_i32_1 = arith.constant 0 : i32
    return %c0_i32, %c0_i32_0 : i32, i32
  }
  func.func @transform_13(%arg0: i32) -> (i32, i32) {
    %c0_i32 = arith.constant 0 : i32
    %c0_i32_0 = arith.constant 0 : i32
    %c0_i32_1 = arith.constant 0 : i32
    return %c0_i32, %c0_i32_0 : i32, i32
  }
  func.func @transform_14(%arg0: i32) -> (i32, i32) {
    %c0_i32 = arith.constant 0 : i32
    %c0_i32_0 = arith.constant 0 : i32
    %c0_i32_1 = arith.constant 0 : i32
    return %c0_i32, %c0_i32_0 : i32, i32
  }
  func.func @transform_15(%arg0: i32) -> (i32, i32) {
    %c0_i32 = arith.constant 0 : i32
    %c0_i32_0 = arith.constant 0 : i32
    %c0_i32_1 = arith.constant 0 : i32
    return %c0_i32, %c0_i32_0 : i32, i32
  }
  func.func @transform_16(%arg0: i32) -> (i32, i32) {
    %c0_i32 = arith.constant 0 : i32
    %c0_i32_0 = arith.constant 0 : i32
    %c0_i32_1 = arith.constant 0 : i32
    return %c0_i32, %c0_i32_0 : i32, i32
  }
  func.func @transform_17(%arg0: i32) -> (i32, i32) {
    %c0_i32 = arith.constant 0 : i32
    %c0_i32_0 = arith.constant 0 : i32
    %c0_i32_1 = arith.constant 0 : i32
    return %c0_i32, %c0_i32_0 : i32, i32
  }
}

</mosaic_0001>

<bundles_post_ra>
// kernel: dbda_forward.5
= control target key start
LH: loop header
LB: loop body
LE: loop exit
PB: predicated region body
PF: predicated region fallthrough
CT: control target
= control target key end

     0   :  { %s706_s0 = inlined_call_operand.vmem [shape: f32[2,60], index: 0, kind: input, shape index: {}]   ;;  %s707_s1 = inlined_call_operand.vmem [shape: f32[2,60], index: 1, kind: input, shape index: {}]   ;;  %s708_s2 = inlined_call_operand.vmem [shape: f32[60,60], index: 2, kind: input, shape index: {}]   ;;  %s709_s3 = inlined_call_operand.vmem [shape: f32[1,60], index: 3, kind: input, shape index: {}]   ;;  %s710_s4 = inlined_call_operand.vmem [shape: f32[60,60], index: 4, kind: input, shape index: {}]   ;;  %s711_s5 = inlined_call_operand.vmem [shape: f32[1,60], index: 5, kind: input, shape index: {}]   ;;  %s712_s6 = inlined_call_operand.vmem [shape: f32[60,60], index: 6, kind: input, shape index: {}]   ;;  %s713_s7 = inlined_call_operand.vmem [shape: f32[1,60], index: 7, kind: input, shape index: {}]   ;;  %s714_s8 = inlined_call_operand.vmem [shape: f32[60,60], index: 8, kind: input, shape index: {}]   ;;  %s715_s9 = inlined_call_operand.vmem [shape: f32[1,60], index: 9, kind: input, shape index: {}]   ;;  %s716_s10 = inlined_call_operand.vmem [shape: f32[1,60], index: 10, kind: input, shape index: {}]   ;;  %s717_s11 = inlined_call_operand.vmem [shape: f32[1,60], index: 11, kind: input, shape index: {}]   ;;  %s718_s12 = inlined_call_operand.vmem [shape: f32[1,60], index: 12, kind: input, shape index: {}]   ;;  %s719_s13 = inlined_call_operand.vmem [shape: f32[1,60], index: 13, kind: input, shape index: {}]   ;;  %s720_s14 = inlined_call_operand.vmem [shape: f32[60,5], index: 14, kind: input, shape index: {}]   ;;  %s721_s15 = inlined_call_operand.vmem [shape: f32[60,5], index: 15, kind: input, shape index: {}]   ;;  %s722_s16 = inlined_call_operand.vmem [shape: f32[1,5], index: 16, kind: input, shape index: {}]   ;;  %s723_s17 = inlined_call_operand.hbm [shape: f32[2,5], index: 17, kind: output, shape index: {}]  }
   0x1   :  { %724 = sst [smem:[#allocation5_spill]] %s706_s0 }
   0x2   :  { %725 = sst [smem:[#allocation6_spill]] %s707_s1 }
   0x3   :  { %vm75_vm0 = vcmask 1043456   ;;  %v144_v0 = vld [vmem:[%s712_s6 + $0x38] sm:$0xf]  ;;  %v143_v1 = vld [vmem:[%s712_s6 + $0x30] sm:$0xff]  ;;  %v142_v4 = vld [vmem:[%s712_s6 + $0x28] sm:$0xff]  ;;  %vm71_vm1 = vcmask 490496  }
   0x4   :  { %v66_v2 = vld [vmem:[%s708_s2 + $0x38] sm:$0xf]  ;;  %369 = vmatpush.msk.msra.mxu2 %vm75_vm0, %v144_v0  ;;  %v65_v3 = vld [vmem:[%s708_s2 + $0x30] sm:$0xff]  ;;  %v64_v5 = vld [vmem:[%s708_s2 + $0x28] sm:$0xff]  ;;  %s726_s29 = sld [smem:[#allocation5_spill]] }
   0x5   :  { %365 = vmatpush.msk.msra.mxu0 %vm75_vm0, %v66_v2  ;;  %v141_v6 = vld [vmem:[%s712_s6 + $0x20] sm:$0xff]  ;;  %v140_v8 = vld [vmem:[%s712_s6 + $0x18] sm:$0xff]  ;;  %v139_v12 = vld [vmem:[%s712_s6 + $0x10] sm:$0xff]  ;;  %s727_s30 = sld [smem:[#allocation6_spill]] }
   0x6   :  { %164 = vmatpush.msra.mxu2 %v143_v1  ;;  %v63_v7 = vld [vmem:[%s708_s2 + $0x20] sm:$0xff]  ;;  %v62_v9 = vld [vmem:[%s708_s2 + $0x18] sm:$0xff]  ;;  %v105_v13 = vld [vmem:[%s710_s4 + $0x30] sm:$0xff] }
   0x7   :  { %88 = vmatpush.msra.mxu0 %v65_v3  ;;  %v106_v10 = vld [vmem:[%s710_s4 + $0x38] sm:$0xf]  ;;  %v181_v14 = vld [vmem:[%s714_s8 + $0x30] sm:$0xff]  ;;  %v138_v15 = vld [vmem:[%s712_s6 + $0x8] sm:$0xff] }
   0x8   :  { %165 = vmatpush.msra.mxu2 %v142_v4  ;;  %v182_v11 = vld [vmem:[%s714_s8 + $0x38] sm:$0xf]  ;;  %v61_v16 = vld [vmem:[%s708_s2 + $0x10] sm:$0xff]  ;;  %v60_v17 = vld [vmem:[%s708_s2 + $0x8] sm:$0xff]  ;;  %367 = vmatpush.msk.msra.mxu1 %vm75_vm0, %v106_v10 }
   0x9   :  { %89 = vmatpush.msra.mxu0 %v64_v5  ;;  %371 = vmatpush.msk.msra.mxu3 %vm75_vm0, %v182_v11  ;;  %v104_v18 = vld [vmem:[%s710_s4 + $0x28] sm:$0xff]  ;;  %v103_v19 = vld [vmem:[%s710_s4 + $0x20] sm:$0xff] }
   0xa   :  { %166 = vmatpush.msra.mxu2 %v141_v6  ;;  %v180_v20 = vld [vmem:[%s714_s8 + $0x28] sm:$0xff]  ;;  %v137_v21 = vld [vmem:[%s712_s6] sm:$0xff]  ;;  %126 = vmatpush.msra.mxu1 %v105_v13 }
   0xb   :  { %90 = vmatpush.msra.mxu0 %v63_v7  ;;  %v59_v22 = vld [vmem:[%s708_s2] sm:$0xff]  ;;  %202 = vmatpush.msra.mxu3 %v181_v14 }
   0xc   :  { %167 = vmatpush.msra.mxu2 %v140_v8  ;;  %v179_v23 = vld [vmem:[%s714_s8 + $0x20] sm:$0xff]  ;;  %127 = vmatpush.msra.mxu1 %v104_v18 }
   0xd   :  { %91 = vmatpush.msra.mxu0 %v62_v9  ;;  %203 = vmatpush.msra.mxu3 %v180_v20  ;;  %v57_v24 = vld [vmem:[%s726_s29] sm:$0x3] }
   0xe   :  { %168 = vmatpush.msra.mxu2 %v139_v12  ;;  %v58_v25 = vld [vmem:[%s727_s30] sm:$0x3] }
   0xf   :  { %92 = vmatpush.msra.mxu0 %v61_v16 }
  0x10   :  { %169 = vmatpush.msra.mxu2 %v138_v15 }
  0x11   :  { %93 = vmatpush.msra.mxu0 %v60_v17 }
  0x12   :  { %22 = vsyncpa [#allocation3], 0  ;;  %128 = vmatpush.msra.mxu1 %v103_v19  ;;  %v102_v26 = vld [vmem:[%s710_s4 + $0x18] sm:$0xff]  ;;  %204 = vmatpush.msra.mxu3 %v179_v23  ;;  %v101_v28 = vld [vmem:[%s710_s4 + $0x10] sm:$0xff]  ;;  %vm213_vm2 = vcmask 484352   ;;  %v418_v48 = vmov 120.0  }
  0x13   :  { %v178_v27 = vld [vmem:[%s714_s8 + $0x18] sm:$0xff]  ;;  %170 = vmatpush.msra.mxu2 %v137_v21  ;;  %94 = vmatpush.msra.mxu0 %v59_v22  ;;  %v100_v29 = vld [vmem:[%s710_s4 + $0x8] sm:$0xff]  ;;  %v177_v30 = vld [vmem:[%s714_s8 + $0x10] sm:$0xff]  ;;  %388 = vrcp.f32 %v418_v48  ;;  %vm347_vm7 = vcmask 33792  }
  0x14   :  { %370 = vmatmul.msk.f32.vlgmr.msra.gmra.mxu2 %vm71_vm1, %v57_v24  ;;  %366 = vmatmul.msk.f32.vlgmr.msra.gmra.mxu0 %vm71_vm1, %v58_v25  ;;  %v99_v31 = vld [vmem:[%s710_s4] sm:$0xff]  ;;  %v176_v32 = vld [vmem:[%s714_s8 + $0x8] sm:$0xff]  ;;  %v289_v1 = vld [vmem:[%s721_s15 + $0x38] sm:$0xf] }
  0x15   :  { %129 = vmatpush.msra.mxu1 %v102_v26  ;;  %205 = vmatpush.msra.mxu3 %v178_v27  ;;  %v175_v33 = vld [vmem:[%s714_s8] sm:$0xff]  ;;  %v281_v2 = vld [vmem:[%s720_s14 + $0x38] sm:$0xf]  ;;  %v288_v3 = vld [vmem:[%s721_s15 + $0x30] sm:$0xff] }
  0x16   :  { %v379_v34 = vld [vmem:[%s709_s3] ss:$0 sm:$0xff]  ;;  %373 = vmatpush.msk.msrb.mxu0 %vm75_vm0, %v289_v1  ;;  %v280_v4 = vld [vmem:[%s720_s14 + $0x30] sm:$0xff]  ;;  %v287_v5 = vld [vmem:[%s721_s15 + $0x28] sm:$0xff] }
  0x17   :  { %130 = vmatpush.msra.mxu1 %v101_v28  ;;  %206 = vmatpush.msra.mxu3 %v177_v30  ;;  %v380_v37 = vld [vmem:[%s713_s7] ss:$0 sm:$0xff]  ;;  %v279_v6 = vld [vmem:[%s720_s14 + $0x28] sm:$0xff]  ;;  %v285_v9 = vld [vmem:[%s721_s15 + $0x18] sm:$0xff] }
  0x18   :  { %v381_v40 = vld [vmem:[%s711_s5] ss:$0 sm:$0xff]  ;;  %305 = vmatpush.msrb.mxu0 %v288_v3  ;;  %v277_v10 = vld [vmem:[%s720_s14 + $0x18] sm:$0xff]  ;;  %v284_v12 = vld [vmem:[%s721_s15 + $0x10] sm:$0xff] }
  0x19   :  { %131 = vmatpush.msra.mxu1 %v100_v29  ;;  %207 = vmatpush.msra.mxu3 %v176_v32  ;;  %v382_v44 = vld [vmem:[%s715_s9] ss:$0 sm:$0xff]  ;;  %v389_v49 = vpop.eup %388  ;;  %v276_v13 = vld [vmem:[%s720_s14 + $0x10] sm:$0xff]  ;;  %v283_v14 = vld [vmem:[%s721_s15 + $0x8] sm:$0xff] }
  0x1a   :  { %v222_v50 = vmul.f32 120.0, %v389_v49  ;;  %vm226_vm3 = vweird.f32 %v389_v49  ;;  %306 = vmatpush.msrb.mxu0 %v287_v5  ;;  %v286_v7 = vld [vmem:[%s721_s15 + $0x20] sm:$0xff]  ;;  %v275_v15 = vld [vmem:[%s720_s14 + $0x8] sm:$0xff] }
  0x1b   :  { %132 = vmatpush.msra.mxu1 %v99_v31  ;;  %208 = vmatpush.msra.mxu3 %v175_v33  ;;  %v278_v8 = vld [vmem:[%s720_s14 + $0x20] sm:$0xff] }
  0x1c   :  { %v223_v51 = vsub.f32 1.0, %v222_v50  ;;  %307 = vmatpush.msrb.mxu0 %v286_v7  ;;  %v282_v16 = vld [vmem:[%s721_s15] sm:$0xff] }
  0x1d   :  { %375 = vmatpush.msk.msrb.mxu1 %vm75_vm0, %v281_v2  ;;  %v274_v17 = vld [vmem:[%s720_s14] sm:$0xff] }
  0x1e   :  { %v224_v53 = vmul.f32 %v389_v49, %v223_v51  ;;  %308 = vmatpush.msrb.mxu0 %v285_v9  ;;  %v383_v28 = vld [vmem:[%s717_s11] ss:$0 sm:$0xff] }
  0x1f   :  { %331 = vmatpush.msrb.mxu1 %v280_v4  ;;  %v385_v29 = vld [vmem:[%s716_s10] ss:$0 sm:$0xff] }
  0x20   :  { %v225_v54 = vadd.f32 %v389_v49, %v224_v53  ;;  %309 = vmatpush.msrb.mxu0 %v284_v12  ;;  %v384_v32 = vld [vmem:[%s719_s13] ss:$0 sm:$0xff]  ;;  %s419_s13 = smov [#allocation2]  }
  0x21   :  { %332 = vmatpush.msrb.mxu1 %v279_v6  ;;  %s354_s30 = sshll.u32 %s419_s13, 4  ;;  %s355_s30 = int_to_ptr.vmem [resolvable:$true] %s354_s30 }
  0x22   :  { %v227_v55 = vsel %vm226_vm3, %v389_v49, %v225_v54  ;;  %310 = vmatpush.msrb.mxu0 %v283_v14 }
  0x23   :  { %333 = vmatpush.msrb.mxu1 %v278_v8 }
  0x24   :  { %311 = vmatpush.msrb.mxu0 %v282_v16 }
  0x25   :  { %334 = vmatpush.msrb.mxu1 %v277_v10 }
  0x27   :  { %335 = vmatpush.msrb.mxu1 %v276_v13 }
  0x29   :  { %336 = vmatpush.msrb.mxu1 %v275_v15 }
  0x2b   :  { %337 = vmatpush.msrb.mxu1 %v274_v17 }
  0x91   :  { %v96_v35 = vpop.f32.mrf.mxu0 }
  0x92   :  { %v97_v36 = vadd.f32 %v379_v34, %v96_v35  ;;  %v386_v34 = vld [vmem:[%s718_s12] ss:$0 sm:$0xff]  ;;  %s356_s12 = sshll.u32 %s723_s17, 4  ;;  %s357_s12 = int_to_ptr.hbm [resolvable:$true] %s356_s12 }
  0x94   :  { %368 = vmatmul.msk.f32.vlgmr.msra.gmra.mxu1 %vm71_vm1, %v97_v36 }
  0x97   :  { %v172_v38 = vpop.f32.mrf.mxu2 }
  0x98   :  { %v173_v39 = vadd.f32 %v380_v37, %v172_v38 }
  0x9a   :  { %372 = vmatmul.msk.f32.vlgmr.msra.gmra.mxu3 %vm71_vm1, %v173_v39  ;;  %v387_v39 = vld [vmem:[%s722_s16] ss:$0 sm:$0xff] }
 0x111   :  { %v134_v41 = vpop.f32.mrf.mxu1 }
 0x112   :  { %v135_v42 = vadd.f32 %v381_v40, %v134_v41 }
 0x114   :  { %v214_v43 = vsel %vm213_vm2, %v135_v42, 0.0 }
 0x115   :  { %215 = vadd.xlane.f32.xlu0 %v214_v43 }
 0x11d   :  { %v210_v45 = vpop.f32.mrf.mxu3 }
 0x11e   :  { %v211_v46 = vadd.f32 %v382_v44, %v210_v45 }
 0x120   :  { %v217_v47 = vsel %vm213_vm2, %v211_v46, 0.0 }
 0x121   :  { %218 = vadd.xlane.f32.xlu0 %v217_v47 }
 0x188   :  { %v216_v52 = vpop.xlane.xlu0 %215 }
 0x194   :  { %v219_v56 = vpop.xlane.xlu0 %218 }
 0x195   :  { %v220_v57 = vadd.f32 %v219_v56, %v216_v52 }
 0x197   :  { %v228_v58 = vmul.f32 %v227_v55, %v220_v57 }
 0x199   :  { %v229_v59 = vsub.f32 %v135_v42, %v228_v58  ;;  %v234_v62 = vsub.f32 %v211_v46, %v228_v58 }
 0x19b   :  { %v230_v60 = vmul.f32 %v229_v59, %v229_v59  ;;  %v235_v63 = vmul.f32 %v234_v62, %v234_v62 }
 0x19d   :  { %v231_v61 = vsel %vm213_vm2, %v230_v60, 0.0  ;;  %v236_v0 = vsel %vm213_vm2, %v235_v63, 0.0 }
 0x19e   :  { %232 = vadd.xlane.f32.xlu1 %v231_v61 }
 0x1a6   :  { %237 = vadd.xlane.f32.xlu1 %v236_v0 }
 0x211   :  { %v233_v11 = vpop.xlane.xlu1 %232 }
 0x219   :  { %v238_v18 = vpop.xlane.xlu1 %237 }
 0x21a   :  { %v239_v19 = vadd.f32 %v238_v18, %v233_v11 }
 0x21c   :  { %v240_v20 = vmul.f32 %v239_v19, %v227_v55 }
 0x21e   :  { %v241_v21 = vadd.f32 1e-05, %v240_v20 }
 0x220   :  { %390 = vrsqrt.f32 %v241_v21  ;;  %vm248_vm5 = vweird.f32 %v241_v21 }
 0x226   :  { %v391_v22 = vpop.eup %390 }
 0x227   :  { %v243_v23 = vmul.f32 %v391_v22, %v241_v21  ;;  %vm249_vm4 = vweird.f32 %v391_v22 }
 0x228   :  { %vm250_vm6 = vmor %vm248_vm5, %vm249_vm4 }
 0x229   :  { %v244_v24 = vmul.f32 %v391_v22, %v243_v23 }
 0x22b   :  { %v245_v25 = vmul.f32 0.5, %v244_v24 }
 0x22d   :  { %v246_v26 = vsub.f32 1.5, %v245_v25 }
 0x22f   :  { %v247_v27 = vmul.f32 %v391_v22, %v246_v26 }
 0x231   :  { %v251_v30 = vsel %vm250_vm6, %v391_v22, %v247_v27 }
 0x232   :  { %v263_v31 = vmul.f32 %v251_v30, %v234_v62  ;;  %v252_v33 = vmul.f32 %v251_v30, %v229_v59 }
 0x234   :  { %v268_v35 = vmul.f32 %v383_v28, %v263_v31  ;;  %v257_v36 = vmul.f32 %v385_v29, %v252_v33 }
 0x236   :  { %v273_v37 = vadd.f32 %v384_v32, %v268_v35  ;;  %v262_v38 = vadd.f32 %v386_v34, %v257_v36 }
 0x238   :  { %374 = vmatmul.msk.f32.vlgmr.msrb.gmra.mxu0 %vm71_vm1, %v273_v37  ;;  %376 = vmatmul.msk.f32.vlgmr.msrb.gmra.mxu1 %vm71_vm1, %v262_v38 }
 0x2b5   :  { %v313_v40 = vpop.f32.mrf.mxu0  ;;  %v339_v41 = vpop.f32.mrf.mxu1 }
 0x2b6   :  { %v340_v42 = vadd.f32 %v339_v41, %v313_v40 }
 0x2b8   :  { %v346_v43 = vadd.f32 %v387_v39, %v340_v42 }
 0x2ba   :  { %348 = vst.msk [vmem:[#allocation2] sm:$0x3] %vm347_vm7, %v346_v43 }
 0x2bb   :  { %359 = dma.vmem_to_hbm [thread:$0]  %s355_s30, 32, %s357_s12, [#allocation3]  }
 0x2bc   :  { %416 = dma.done.wait [#allocation3], 32  }
 0x2bd   :  { %417 = vsyncadd [#allocation3], 4294967264 }
 0x2be   :  { %364 = vsyncpa [#allocation3], 1 }

// kernel: dbda_forward.3
= control target key start
LH: loop header
LB: loop body
LE: loop exit
PB: predicated region body
PF: predicated region fallthrough
CT: control target
= control target key end

     0   :  { %s4086_s23 = smov 0   ;;  %s5250_s0 = inlined_call_operand.vmem [shape: f32[2,8,8,16], index: 0, kind: input, shape index: {}]   ;;  %s5251_s1 = inlined_call_operand.vmem [shape: bf16[16,120], index: 1, kind: input, shape index: {}]   ;;  %s5252_s2 = inlined_call_operand.vmem [shape: f32[1,120], index: 2, kind: input, shape index: {}]   ;;  %s5253_s3 = inlined_call_operand.vmem [shape: f32[1,120], index: 3, kind: input, shape index: {}]   ;;  %s5254_s4 = inlined_call_operand.vmem [shape: f32[1,120], index: 4, kind: input, shape index: {}]   ;;  %s5255_s5 = inlined_call_operand.vmem [shape: bf16[120,60], index: 5, kind: input, shape index: {}]   ;;  %s5256_s6 = inlined_call_operand.vmem [shape: f32[1,60], index: 6, kind: input, shape index: {}]   ;;  %s5257_s7 = inlined_call_operand.vmem [shape: f32[1,180], index: 7, kind: input, shape index: {}]   ;;  %s5258_s8 = inlined_call_operand.vmem [shape: f32[1,180], index: 8, kind: input, shape index: {}]   ;;  %s5259_s9 = inlined_call_operand.vmem [shape: bf16[180,60], index: 9, kind: input, shape index: {}]   ;;  %s5260_s10 = inlined_call_operand.vmem [shape: f32[1,60], index: 10, kind: input, shape index: {}]   ;;  %s5261_s11 = inlined_call_operand.vmem [shape: f32[1,240], index: 11, kind: input, shape index: {}]   ;;  %s5262_s12 = inlined_call_operand.vmem [shape: f32[1,240], index: 12, kind: input, shape index: {}]   ;;  %s5263_s13 = inlined_call_operand.vmem [shape: bf16[240,60], index: 13, kind: input, shape index: {}]   ;;  %s5264_s14 = inlined_call_operand.vmem [shape: f32[1,60], index: 14, kind: input, shape index: {}]   ;;  %s5265_s15 = inlined_call_operand.vmem [shape: f32[1,300], index: 15, kind: input, shape index: {}]   ;;  %s5266_s16 = inlined_call_operand.vmem [shape: f32[1,300], index: 16, kind: input, shape index: {}]   ;;  %s5267_s17 = inlined_call_operand.vmem [shape: bf16[300,60], index: 17, kind: input, shape index: {}]   ;;  %s5268_s18 = inlined_call_operand.vmem [shape: f32[1,60], index: 18, kind: input, shape index: {}]   ;;  %s5269_s19 = inlined_call_operand.<no memory space> [shape: f32[1,1], index: 19, kind: input, shape index: {}]   ;;  %s5270_s20 = inlined_call_operand.vmem [shape: f32[2,1,60], index: 20, kind: output, shape index: {}]  }
   0x1   :  { %5271 = sst [smem:[#allocation4_spill]] %s5250_s0  ;;  %v25_v0 = vstv %s5269_s19 }
   0x2   :  { %5272 = sst [smem:[#allocation5_spill]] %s5251_s1  ;;  %26 = vst [vmem:[#allocation3] sm:$0x1] %v25_v0 }
   0x3   :  { %5273 = sst [smem:[#allocation6_spill]] %s5252_s2 }
   0x4   :  { %5274 = sst [smem:[#allocation7_spill]] %s5253_s3 }
   0x5   :  { %5275 = sst [smem:[#allocation8_spill]] %s5254_s4 }
   0x6 LB: > { %s3227_s24 = sadd.s32 4294967295, %s3972_s23   ;;  %p3231_p0 = scmp.ge.s32.totalorder %s3972_s23, 1  ;;  %s3972_s23 = sphi %s4086_s23, %s32_s23  }
   0x7   : > { %p564_p1 = scmp.lt.s32.totalorder %s3972_s23, 3 }
   0x9   : > { %p565_p2 = pnand %p3231_p0, %p564_p1 }
   0xa   : > { %s5276_s3 = sld [smem:[#allocation5_spill]] (!%p565_p2)  ;;  %p620_p3 = scmp.lt.s32.totalorder (!%p565_p2), %s3227_s24, 1 }
   0xb   : > { %568 = sbr.rel (%p565_p2) target bundleno = 1826 (0x722), region = 100  ;;  %s5277_s28 = sld [smem:[#allocation4_spill]] (!%p565_p2) }
   0xc   : > { %s5278_s1 = sld [smem:[#allocation6_spill]] (!%p565_p2)  ;;  %s3975_s29 = smov (!%p565_p2), 52  }
   0xd   : > { %s5279_s25 = sld [smem:[#allocation7_spill]] (!%p565_p2) }
   0xe   : > { %s5280_s26 = sld [smem:[#allocation8_spill]] (!%p565_p2) }
  0x10   : > { %v3473_v1 = vld [vmem:[%s5276_s3] sm:$0xff]  ;;  %s5330_s24 = smov (!%p620_p3, %s3227_s24), 1  ;;  %vm653_vm0 = vcmask 130048   ;;  %v878_v14 = vld [vmem:[%s5255_s5 + $0x38] sm:$0xf]  ;;  %vm944_vm1 = vcmask 1043456  }
  0x11   : > { %673 = vmatpush.bf16.msra.mxu0 %v3473_v1  ;;  %3526 = vmatpush.bf16.msra.mxu2 %v3473_v1  ;;  %s3472_s19 = sshll.u32 %s5330_s24, 6  ;;  %v916_v15 = vunpack.c.l.b16 %v878_v14  ;;  %vm695_vm2 = vcmask 982016   ;;  %v3480_v23 = vld [vmem:[%s5255_s5 + $0x30] sm:$0xff]  ;;  %v3479_v26 = vld [vmem:[%s5255_s5 + $0x28] sm:$0xff]  ;;  %v3478_v33 = vld [vmem:[%s5255_s5 + $0x20] sm:$0xff]  ;;  %vm1475_vm11 = vcmask 1041408  }
  0x12   : > { %s624_s4 = scalar_lea.vmem %s5277_s28, %s3472_s19  ;;  %v4109_v17 = vld [vmem:[%s5278_s1] ss:$0 sm:$0xff]  ;;  %v3477_v37 = vld [vmem:[%s5255_s5 + $0x18] sm:$0xff]  ;;  %v3476_v44 = vld [vmem:[%s5255_s5 + $0x10] sm:$0xff]  ;;  %vm1009_vm12 = vcmask 1048512   ;;  %vm1011_vm13 = vcmask 424960   ;;  %s627_s28 = scalar_lea.vmem %s5270_s20, %s5330_s24 }
  0x13   : > { %v629_v2 = vld [vmem:[%s624_s4] sm:$0xff]  ;;  %v630_v3 = vld [vmem:[%s624_s4 + $0x8] sm:$0xff]  ;;  %v631_v8 = vld [vmem:[%s624_s4 + $0x10] sm:$0xff]  ;;  %v924_v16 = vpack.c.b16 %v916_v15, %v916_v15 }
  0x14   : > { %v633_v4 = vld [vmem:[%s624_s4 + $0x20] sm:$0xff]  ;;  %v640_v5 = vpack.c.bf16 %v630_v3, %v629_v2  ;;  %v634_v6 = vld [vmem:[%s624_s4 + $0x28] sm:$0xff]  ;;  %v632_v9 = vld [vmem:[%s624_s4 + $0x18] sm:$0xff] }
  0x15   : > { %v642_v7 = vpack.c.bf16 %v634_v6, %v633_v4  ;;  %v635_v10 = vld [vmem:[%s624_s4 + $0x30] sm:$0xff]  ;;  %v636_v11 = vld [vmem:[%s624_s4 + $0x38] sm:$0xff]  ;;  %v641_v12 = vpack.c.bf16 %v632_v9, %v631_v8  ;;  %v946_v18 = vsel %vm944_vm1, %v924_v16, 0  ;;  %v4114_v19 = vld [vmem:[%s5279_s25] ss:$0 sm:$0xff]  ;;  %s3974_s4 = smov 120  }
  0x16   : > { %3238 = vmatmul.msk.bf16.vlgmr.msra.gmra.mxu0 %vm653_vm0, %v640_v5  ;;  %v643_v13 = vpack.c.bf16 %v636_v11, %v635_v10  ;;  %948 = vmatpush.bf16.msra.mxu1 %v946_v18  ;;  %v4120_v22 = vld [vmem:[%s5280_s26] ss:$0 sm:$0xff]  ;;  %v3475_v50 = vld [vmem:[%s5255_s5 + $0x8] sm:$0xff]  ;;  %s3976_s25 = smov 112  }
  0x17   : > { %3240 = vmatmul.msk.bf16.vlgmr.msra.gmra.mxu2 %vm653_vm0, %v642_v7  ;;  %v3474_v59 = vld [vmem:[%s5255_s5] sm:$0xff] }
  0x1a   : > { %949 = vmatpush.bf16.msra.mxu1 %v3480_v23 }
  0x1e   : > { %950 = vmatpush.bf16.msra.mxu1 %v3479_v26 }
  0x22   : > { %951 = vmatpush.bf16.msra.mxu1 %v3478_v33 }
  0x26   : > { %3239 = vmatmul.msk.bf16.gmra.mxu0 %vm653_vm0, %v641_v12  ;;  %952 = vmatpush.bf16.msra.mxu1 %v3477_v37 }
  0x27   : > { %3241 = vmatmul.msk.bf16.gmra.mxu2 %vm653_vm0, %v643_v13 }
  0x2a   : > { %953 = vmatpush.bf16.msra.mxu1 %v3476_v44 }
  0x2e   : > { %954 = vmatpush.bf16.msra.mxu1 %v3475_v50 }
  0x32   : > { %955 = vmatpush.bf16.msra.mxu1 %v3474_v59 }
  0x93   : > { %v675_v20 = vpop.f32.mrf.mxu0 }
  0x94   : > { %v676_v21 = vadd.f32 %v4109_v17, %v675_v20 }
  0x96   : > { %696 = vst.msk [vmem:[#allocation2] sm:$0xff] %vm695_vm2, %v676_v21  ;;  %v709_v24 = vmul.f32 %v4114_v19, %v676_v21 }
  0x98   : > { %v4128_v25 = vadd.f32 %v4120_v22, %v709_v24 }
  0x9a   : > { %v736_v27 = vand.u32 2147483647, %v4128_v25  ;;  %v685_v28 = vpop.f32.mrf.mxu2  ;;  %v728_v15 = vmax.f32 %v4128_v25, 0.0 }
  0x9b   : > { %v686_v29 = vadd.f32 %v4109_v17, %v685_v28  ;;  %v677_v30 = vpop.f32.mrf.mxu0 }
  0x9c   : > { %v744_v31 = vsub.f32 0.0, %v736_v27  ;;  %v678_v32 = vadd.f32 %v4109_v17, %v677_v30 }
  0x9d   : > { %700 = vst.msk [vmem:[#allocation2 + $0x60] sm:$0xff] %vm695_vm2, %v686_v29  ;;  %v713_v62 = vmul.f32 %v4114_v19, %v686_v29 }
  0x9e   : > { %v752_v34 = vmul.f32 1.442695, %v744_v31  ;;  %697 = vst.msk [vmem:[#allocation2 + $0x18] sm:$0xff] %vm695_vm2, %v678_v32  ;;  %v710_v35 = vmul.f32 %v4114_v19, %v678_v32 }
  0x9f   : > { %v4177_v7 = vadd.f32 %v4120_v22, %v713_v62 }
  0xa0   : > { %3560 = vpow2.f32 %v752_v34  ;;  %v4143_v36 = vadd.f32 %v4120_v22, %v710_v35 }
  0xa1   : > { %v740_v18 = vand.u32 2147483647, %v4177_v7 }
  0xa2   : > { %v737_v38 = vand.u32 2147483647, %v4143_v36  ;;  %v687_v39 = vpop.f32.mrf.mxu2  ;;  %v729_v30 = vmax.f32 %v4143_v36, 0.0 }
  0xa3   : > { %v688_v40 = vadd.f32 %v4109_v17, %v687_v39  ;;  %v680_v41 = vpop.f32.mrf.mxu0 }
  0xa4   : > { %v745_v42 = vsub.f32 0.0, %v737_v38  ;;  %v681_v43 = vadd.f32 %v4109_v17, %v680_v41 }
  0xa5   : > { %701 = vst.msk [vmem:[#allocation2 + $0x78] sm:$0xff] %vm695_vm2, %v688_v40  ;;  %v714_v52 = vmul.f32 %v4114_v19, %v688_v40 }
  0xa6   : > { %v3561_v45 = vpop.eup %3560  ;;  %v754_v46 = vmul.f32 1.442695, %v745_v42  ;;  %698 = vst.msk [vmem:[#allocation2 + $0x30] sm:$0xff] %vm695_vm2, %v681_v43  ;;  %v711_v47 = vmul.f32 %v4114_v19, %v681_v43 }
  0xa7   : > { %v768_v48 = vadd.f32 1.0, %v3561_v45  ;;  %v771_v51 = vmul.f32 -0.5, %v3561_v45  ;;  %v4173_v63 = vadd.f32 %v4120_v22, %v714_v52  ;;  %v774_v1 = vand.u32 2147483647, %v3561_v45 }
  0xa8   : > { %3562 = vpow2.f32 %v754_v46  ;;  %v4158_v49 = vadd.f32 %v4120_v22, %v711_v47 }
  0xa9   : > { %3564 = vlog2.f32 %v768_v48  ;;  %v772_v61 = vadd.f32 1.0, %v771_v51  ;;  %v741_v8 = vand.u32 2147483647, %v4173_v63  ;;  %vm775_vm3 = vcmp.lt.f32.partialorder %v774_v1, 0.0004427343 }
  0xaa   : > { %v738_v53 = vand.u32 2147483647, %v4158_v49  ;;  %v690_v54 = vpop.f32.mrf.mxu2  ;;  %v730_v1 = vmax.f32 %v4158_v49, 0.0 }
  0xab   : > { %v691_v55 = vadd.f32 %v4109_v17, %v690_v54  ;;  %v682_v56 = vpop.f32.mrf.mxu0  ;;  %v773_v6 = vmul.f32 %v3561_v45, %v772_v61  ;;  %v749_v20 = vsub.f32 0.0, %v741_v8 }
  0xac   : > { %v746_v57 = vsub.f32 0.0, %v738_v53  ;;  %v683_v58 = vadd.f32 %v4109_v17, %v682_v56 }
  0xad   : > { %702 = vst.msk [vmem:[#allocation2 + $0x90] sm:$0xff] %vm695_vm2, %v691_v55  ;;  %v762_v32 = vmul.f32 1.442695, %v749_v20  ;;  %v715_v39 = vmul.f32 %v4114_v19, %v691_v55 }
  0xae   : > { %v3563_v60 = vpop.eup %3562  ;;  %v756_v3 = vmul.f32 1.442695, %v746_v57  ;;  %699 = vst.msk [vmem:[#allocation2 + $0x48] sm:$0xff] %vm695_vm2, %v683_v58  ;;  %v712_v9 = vmul.f32 %v4114_v19, %v683_v58 }
  0xaf   : > { %v3565_v0 = vpop.eup %3564  ;;  %v777_v2 = vadd.f32 1.0, %v3563_v60  ;;  %v780_v5 = vmul.f32 -0.5, %v3563_v60  ;;  %v783_v16 = vand.u32 2147483647, %v3563_v60  ;;  %v4196_v43 = vadd.f32 %v4120_v22, %v715_v39 }
  0xb0   : > { %v770_v4 = vmul.f32 0.6931472, %v3565_v0  ;;  %v4182_v13 = vadd.f32 %v4120_v22, %v712_v9 }
  0xb1   : > { %3566 = vlog2.f32 %v777_v2  ;;  %v781_v12 = vadd.f32 1.0, %v780_v5  ;;  %vm784_vm4 = vcmp.lt.f32.partialorder %v783_v16, 0.0004427343  ;;  %v742_v52 = vand.u32 2147483647, %v4196_v43 }
  0xb2   : > { %v692_v10 = vpop.f32.mrf.mxu2  ;;  %3568 = vpow2.f32 %v756_v3  ;;  %v776_v11 = vsel %vm775_vm3, %v773_v6, %v770_v4  ;;  %v739_v21 = vand.u32 2147483647, %v4182_v13 }
  0xb3   : > { %v693_v14 = vadd.f32 %v4109_v17, %v692_v10  ;;  %v840_v24 = vadd.f32 %v776_v11, %v728_v15  ;;  %v782_v27 = vmul.f32 %v3563_v60, %v781_v12  ;;  %v748_v17 = vsub.f32 0.0, %v740_v18 }
  0xb4   : > { %v747_v28 = vsub.f32 0.0, %v739_v21  ;;  %v731_v11 = vmax.f32 %v4182_v13, 0.0 }
  0xb5   : > { %703 = vst.msk [vmem:[#allocation2 + $0xa8] sm:$0xff] %vm695_vm2, %v693_v14  ;;  %3570 = vtanh.f32 %v840_v24  ;;  %v716_v37 = vmul.f32 %v4114_v19, %v693_v14  ;;  %v760_v38 = vmul.f32 1.442695, %v748_v17 }
  0xb6   : > { %v758_v35 = vmul.f32 1.442695, %v747_v28 }
  0xb7   : > { %v3567_v23 = vpop.eup %3566  ;;  %v4193_v40 = vadd.f32 %v4120_v22, %v716_v37 }
  0xb8   : > { %v779_v26 = vmul.f32 0.6931472, %v3567_v23  ;;  %v3569_v29 = vpop.eup %3568 }
  0xb9   : > { %v786_v34 = vadd.f32 1.0, %v3569_v29  ;;  %v789_v42 = vmul.f32 -0.5, %v3569_v29  ;;  %v743_v46 = vand.u32 2147483647, %v4193_v40  ;;  %v792_v54 = vand.u32 2147483647, %v3569_v29 }
  0xba   : > { %v785_v31 = vsel %vm784_vm4, %v782_v27, %v779_v26 }
  0xbb   : > { %v841_v33 = vadd.f32 %v785_v31, %v729_v30  ;;  %v3571_v41 = vpop.eup %3570  ;;  %v790_v51 = vadd.f32 1.0, %v789_v42  ;;  %v751_v58 = vsub.f32 0.0, %v743_v46  ;;  %vm793_vm5 = vcmp.lt.f32.partialorder %v792_v54, 0.0004427343 }
  0xbc   : > { %v856_v47 = vmul.f32 %v3571_v41, %v4128_v25  ;;  %v750_v25 = vsub.f32 0.0, %v742_v52  ;;  %v733_v31 = vmax.f32 %v4173_v63, 0.0 }
  0xbd   : > { %3572 = vtanh.f32 %v841_v33  ;;  %v791_v60 = vmul.f32 %v3569_v29, %v790_v51  ;;  %v766_v0 = vmul.f32 1.442695, %v751_v58 }
  0xbe   : > { %3574 = vpow2.f32 %v762_v32  ;;  %v764_v4 = vmul.f32 1.442695, %v750_v25 }
  0xbf   : > { %3576 = vlog2.f32 %v786_v34 }
  0xc0   : > { %3578 = vpow2.f32 %v758_v35  ;;  %v732_v35 = vmax.f32 %v4177_v7, 0.0 }
  0xc1   : > { %3580 = vpow2.f32 %v760_v38 }
  0xc3   : > { %v3573_v44 = vpop.eup %3572 }
  0xc4   : > { %v3575_v45 = vpop.eup %3574  ;;  %v857_v48 = vmul.f32 %v3573_v44, %v4143_v36 }
  0xc5   : > { %v3577_v19 = vpop.eup %3576  ;;  %v813_v59 = vadd.f32 1.0, %v3575_v45  ;;  %v816_v3 = vmul.f32 -0.5, %v3575_v45  ;;  %v819_v16 = vand.u32 2147483647, %v3575_v45 }
  0xc6   : > { %v3579_v50 = vpop.eup %3578  ;;  %v880_v53 = vpack.c.bf16 %v857_v48, %v856_v47  ;;  %v788_v57 = vmul.f32 0.6931472, %v3577_v19 }
  0xc7   : > { %v795_v55 = vadd.f32 1.0, %v3579_v50  ;;  %v3581_v56 = vpop.eup %3580  ;;  %v798_v22 = vmul.f32 -0.5, %v3579_v50  ;;  %v801_v2 = vand.u32 2147483647, %v3579_v50  ;;  %v817_v12 = vadd.f32 1.0, %v816_v3 }
  0xc8   : > { %3270 = vmatmul.msk.bf16.vlgmr.msra.gmra.mxu1 %vm695_vm2, %v880_v53  ;;  %v804_v61 = vadd.f32 1.0, %v3581_v56  ;;  %v794_v36 = vsel %vm793_vm5, %v791_v60, %v788_v57  ;;  %v807_v8 = vmul.f32 -0.5, %v3581_v56  ;;  %v810_v23 = vand.u32 2147483647, %v3581_v56 }
  0xc9   : > { %3582 = vlog2.f32 %v795_v55  ;;  %v799_v62 = vadd.f32 1.0, %v798_v22  ;;  %v842_v6 = vadd.f32 %v794_v36, %v730_v1  ;;  %vm802_vm6 = vcmp.lt.f32.partialorder %v801_v2, 0.0004427343 }
  0xca   : > { %3584 = vlog2.f32 %v813_v59  ;;  %v808_v20 = vadd.f32 1.0, %v807_v8  ;;  %v818_v27 = vmul.f32 %v3575_v45, %v817_v12  ;;  %vm820_vm7 = vcmp.lt.f32.partialorder %v819_v16, 0.0004427343 }
  0xcb   : > { %3586 = vlog2.f32 %v804_v61  ;;  %v800_v10 = vmul.f32 %v3579_v50, %v799_v62  ;;  %vm811_vm8 = vcmp.lt.f32.partialorder %v810_v23, 0.0004427343  ;;  %v735_v22 = vmax.f32 %v4193_v40, 0.0 }
  0xcc   : > { %3588 = vpow2.f32 %v766_v0  ;;  %v809_v30 = vmul.f32 %v3581_v56, %v808_v20  ;;  %v734_v60 = vmax.f32 %v4196_v43, 0.0 }
  0xcd   : > { %3590 = vpow2.f32 %v764_v4 }
  0xce   : > { %3592 = vtanh.f32 %v842_v6 }
  0xcf   : > { %v3583_v5 = vpop.eup %3582 }
  0xd0   : > { %v797_v9 = vmul.f32 0.6931472, %v3583_v5  ;;  %v3585_v15 = vpop.eup %3584 }
  0xd1   : > { %v3587_v21 = vpop.eup %3586  ;;  %v815_v26 = vmul.f32 0.6931472, %v3585_v15 }
  0xd2   : > { %v803_v14 = vsel %vm802_vm6, %v800_v10, %v797_v9  ;;  %v3589_v24 = vpop.eup %3588  ;;  %v806_v29 = vmul.f32 0.6931472, %v3587_v21 }
  0xd3   : > { %v843_v18 = vadd.f32 %v803_v14, %v731_v11  ;;  %v3591_v28 = vpop.eup %3590  ;;  %v831_v32 = vadd.f32 1.0, %v3589_v24  ;;  %v821_v33 = vsel %vm820_vm7, %v818_v27, %v815_v26  ;;  %v834_v44 = vmul.f32 -0.5, %v3589_v24 }
  0xd4   : > { %v3593_v17 = vpop.eup %3592  ;;  %v822_v37 = vadd.f32 1.0, %v3591_v28  ;;  %v812_v38 = vsel %vm811_vm8, %v809_v30, %v806_v29  ;;  %v845_v42 = vadd.f32 %v821_v33, %v733_v31  ;;  %v825_v47 = vmul.f32 -0.5, %v3591_v28  ;;  %v3491_v29 = vld [vmem:[%s5259_s9 + $0x50] sm:$0xff]  ;;  %v3488_v31 = vld [vmem:[%s5259_s9 + $0x38] sm:$0xff]  ;;  %v1594_v33 = vld [vmem:[%s5261_s11] sm:$0x3] }
  0xd5   : > { %3594 = vtanh.f32 %v843_v18  ;;  %v858_v39 = vmul.f32 %v3593_v17, %v4158_v49  ;;  %v844_v46 = vadd.f32 %v812_v38, %v732_v35  ;;  %v835_v48 = vadd.f32 1.0, %v834_v44  ;;  %v1043_v17 = vld [vmem:[%s5257_s7] sm:$0x3]  ;;  %1479 = vmatpush.bf16.msrb.mxu2 %v3488_v31  ;;  %v3498_v38 = vld [vmem:[%s5263_s13 + $0x30] sm:$0xff] }
  0xd6   : > { %3596 = vlog2.f32 %v831_v32  ;;  %v837_v50 = vand.u32 2147483647, %v3589_v24  ;;  %v826_v51 = vadd.f32 1.0, %v825_v47  ;;  %v828_v53 = vand.u32 2147483647, %v3591_v28  ;;  %v3499_v32 = vld [vmem:[%s5263_s13 + $0x38] sm:$0xff] }
  0xd7   : > { %3598 = vlog2.f32 %v822_v37  ;;  %v836_v54 = vmul.f32 %v3589_v24, %v835_v48  ;;  %v1381_v24 = vld [vmem:[%s5259_s9 + $0x58] sm:$0x3]  ;;  %v1044_v35 = vld [vmem:[%s5258_s8] sm:$0x3]  ;;  %2055 = vmatpush.bf16.msrb.mxu0 %v3499_v32  ;;  %v3487_v37 = vld [vmem:[%s5259_s9 + $0x30] sm:$0xff]  ;;  %v4260_v44 = vperm.slane %v1043_v17, 1 }
  0xd8   : > { %3600 = vtanh.f32 %v845_v42  ;;  %vm838_vm9 = vcmp.lt.f32.partialorder %v837_v50, 0.0004427343  ;;  %v827_v56 = vmul.f32 %v3591_v28, %v826_v51  ;;  %vm829_vm10 = vcmp.lt.f32.partialorder %v828_v53, 0.0004427343  ;;  %v3486_v48 = vld [vmem:[%s5259_s9 + $0x28] sm:$0xff] }
  0xd9   : > { %3602 = vtanh.f32 %v844_v46  ;;  %v1439_v26 = vunpack.c.l.b16 %v1381_v24  ;;  %v4258_v42 = vperm.slane %v1594_v33, 0  ;;  %1480 = vmatpush.bf16.msrb.mxu2 %v3487_v37  ;;  %v4272_v51 = vperm.slane %v1044_v35, 1  ;;  %v3481_v37 = vld [vmem:[%s5259_s9] sm:$0xff] }
  0xdb   : > { %v3595_v34 = vpop.eup %3594  ;;  %v1451_v27 = vpack.c.b16 %v1439_v26, %v1439_v26  ;;  %2056 = vmatpush.bf16.msrb.mxu0 %v3498_v38 }
  0xdc   : > { %v859_v41 = vmul.f32 %v3595_v34, %v4182_v13  ;;  %v3597_v19 = vpop.eup %3596  ;;  %v3490_v34 = vld [vmem:[%s5259_s9 + $0x48] sm:$0xff] }
  0xdd   : > { %v3599_v52 = vpop.eup %3598  ;;  %v833_v49 = vmul.f32 0.6931472, %v3597_v19  ;;  %v1477_v28 = vsel %vm1475_vm11, %v1451_v27, 0  ;;  %v3497_v19 = vld [vmem:[%s5263_s13 + $0x28] sm:$0xff]  ;;  %1481 = vmatpush.bf16.msrb.mxu2 %v3486_v48  ;;  %v3492_v48 = vld [vmem:[%s5263_s13] sm:$0xff] }
  0xde   : > { %v881_v45 = vpack.c.bf16 %v859_v41, %v858_v39  ;;  %v3601_v13 = vpop.eup %3600  ;;  %v824_v55 = vmul.f32 0.6931472, %v3599_v52  ;;  %1512 = vmatpush.bf16.msrb.mxu1 %v1477_v28  ;;  %3527 = vmatpush.bf16.msra.mxu3 %v1477_v28  ;;  %v1595_v39 = vld [vmem:[%s5262_s12] sm:$0x3]  ;;  %v4256_v41 = vperm.slane %v1043_v17, 0  ;;  %v3482_v28 = vld [vmem:[%s5259_s9 + $0x8] sm:$0xff] }
  0xdf   : > { %v3603_v57 = vpop.eup %3602  ;;  %v839_v58 = vsel %vm838_vm9, %v836_v54, %v833_v49  ;;  %v861_v59 = vmul.f32 %v3601_v13, %v4173_v63  ;;  %v3556_v63 = vld [vmem:[%s5256_s6] ss:$0 sm:$0xff]  ;;  %v4264_v46 = vperm.slane %v1595_v39, 0  ;;  %2057 = vmatpush.bf16.msrb.mxu0 %v3497_v19 }
  0xe0   : > { %3271 = vmatmul.msk.bf16.gmra.mxu1 %vm695_vm2, %v881_v45  ;;  %v830_v25 = vsel %vm829_vm10, %v827_v56, %v824_v55  ;;  %v860_v61 = vmul.f32 %v3603_v57, %v4177_v7  ;;  %v847_v36 = vadd.f32 %v839_v58, %v735_v22  ;;  %v4262_v45 = vperm.slane %v1044_v35, 0  ;;  %v3485_v56 = vld [vmem:[%s5259_s9 + $0x20] sm:$0xff] }
  0xe1   : > { %v846_v0 = vadd.f32 %v830_v25, %v734_v60  ;;  %v3496_v57 = vld [vmem:[%s5263_s13 + $0x20] sm:$0xff]  ;;  %1482 = vmatpush.bf16.msrb.mxu2 %v3485_v56 }
  0xe2   : > { %v882_v62 = vpack.c.bf16 %v861_v59, %v860_v61  ;;  %3604 = vtanh.f32 %v847_v36  ;;  %1513 = vmatpush.bf16.msrb.mxu1 %v3491_v29  ;;  %3528 = vmatpush.bf16.msra.mxu3 %v3491_v29  ;;  %v3489_v29 = vld [vmem:[%s5259_s9 + $0x40] sm:$0xff] }
  0xe3   : > { %3606 = vtanh.f32 %v846_v0  ;;  %2058 = vmatpush.bf16.msrb.mxu0 %v3496_v57  ;;  %v3495_v0 = vld [vmem:[%s5263_s13 + $0x18] sm:$0xff] }
  0xe6   : > { %1514 = vmatpush.bf16.msrb.mxu1 %v3490_v34  ;;  %3529 = vmatpush.bf16.msra.mxu3 %v3490_v34 }
  0xe7   : > { %2059 = vmatpush.bf16.msrb.mxu0 %v3495_v0 }
  0xe8   : > { %v3605_v1 = vpop.eup %3604 }
  0xe9   : > { %v3607_v2 = vpop.eup %3606  ;;  %v863_v3 = vmul.f32 %v3605_v1, %v4193_v40 }
  0xea   : > { %v862_v4 = vmul.f32 %v3607_v2, %v4196_v43  ;;  %1515 = vmatpush.bf16.msrb.mxu1 %v3489_v29  ;;  %3530 = vmatpush.bf16.msra.mxu3 %v3489_v29  ;;  %v3513_v29 = vld [vmem:[%s5267_s17 + $0x30] sm:$0xff] }
  0xec   : > { %v883_v5 = vpack.c.bf16 %v863_v3, %v862_v4 }
  0xf0   : > { %3272 = vmatmul.msk.bf16.gmra.mxu1 %vm695_vm2, %v882_v62  ;;  %v3484_v62 = vld [vmem:[%s5259_s9 + $0x18] sm:$0xff] }
  0xf1   : > { %1483 = vmatpush.bf16.msrb.mxu2 %v3484_v62 }
 0x100   : > { %3273 = vmatmul.msk.bf16.gmra.mxu1 %vm695_vm2, %v883_v5 }
 0x145   : > { %v957_v7 = vpop.f32.mrf.mxu1 }
 0x146   : > { %v958_v6 = vadd.f32 %v3556_v63, %v957_v7 }
 0x148   : > { %985 = vrot.lane.b32.xlu0 %v958_v6, %s3974_s4 }
 0x14d   : > { %v959_v8 = vpop.f32.mrf.mxu1 }
 0x14e   : > { %v960_v9 = vadd.f32 %v3556_v63, %v959_v8 }
 0x150   : > { %987 = vrot.lane.b32.xlu0 %v960_v9, %s3974_s4 }
 0x15d   : > { %v962_v10 = vpop.f32.mrf.mxu1 }
 0x15e   : > { %v963_v11 = vadd.f32 %v3556_v63, %v962_v10 }
 0x160   : > { %989 = vrot.lane.b32.xlu1 %v963_v11, %s3974_s4  ;;  %v3483_v11 = vld [vmem:[%s5259_s9 + $0x10] sm:$0xff] }
 0x161   : > { %1484 = vmatpush.bf16.msrb.mxu2 %v3483_v11 }
 0x165   : > { %v964_v40 = vpop.f32.mrf.mxu1  ;;  %1485 = vmatpush.bf16.msrb.mxu2 %v3482_v28 }
 0x166   : > { %v965_v12 = vadd.f32 %v3556_v63, %v964_v40  ;;  %v3494_v40 = vld [vmem:[%s5263_s13 + $0x10] sm:$0xff] }
 0x167   : > { %2060 = vmatpush.bf16.msrb.mxu0 %v3494_v40 }
 0x168   : > { %991 = vrot.lane.b32.xlu1 %v965_v12, %s3974_s4 }
 0x169   : > { %1486 = vmatpush.bf16.msrb.mxu2 %v3481_v37  ;;  %v3512_v37 = vld [vmem:[%s5267_s17 + $0x28] sm:$0xff] }
 0x16d   : > { %v967_v43 = vpop.f32.mrf.mxu1 }
 0x16e   : > { %v968_v14 = vadd.f32 %v3556_v63, %v967_v43 }
 0x170   : > { %993 = vrot.lane.b32.xlu2 %v968_v14, %s3974_s4 }
 0x175   : > { %v969_v15 = vpop.f32.mrf.mxu1 }
 0x176   : > { %v970_v16 = vadd.f32 %v3556_v63, %v969_v15 }
 0x178   : > { %995 = vrot.lane.b32.xlu2 %v970_v16, %s3974_s4 }
 0x17d   : > { %v972_v18 = vpop.f32.mrf.mxu1 }
 0x17e   : > { %v973_v20 = vadd.f32 %v3556_v63, %v972_v18 }
 0x180   : > { %997 = vrot.lane.b32.xlu0 %v973_v20, %s3974_s4 }
 0x185   : > { %v974_v21 = vpop.f32.mrf.mxu1 }
 0x186   : > { %v975_v23 = vadd.f32 %v3556_v63, %v974_v21 }
 0x188   : > { %999 = vrot.lane.b32.xlu1 %v975_v23, %s3974_s4 }
 0x1ba   : > { %v986_v30 = vpop.permute.xlu0 %985 }
 0x1bb   : > { %1010 = vst.msk [vmem:[#allocation2] sm:$0xff] %vm1009_vm12, %v986_v30 }
 0x1bc   : > { %1012 = vst.msk [vmem:[#allocation2 + $0x8] sm:$0xff] %vm1011_vm13, %v986_v30  ;;  %v3493_v30 = vld [vmem:[%s5263_s13 + $0x8] sm:$0xff] }
 0x1bd   : > { %2061 = vmatpush.bf16.msrb.mxu0 %v3493_v30 }
 0x1c1   : > { %2062 = vmatpush.bf16.msrb.mxu0 %v3492_v48 }
 0x1c2   : > { %v988_v47 = vpop.permute.xlu0 %987  ;;  %v1027_v50 = vld [vmem:[#allocation2] sm:$0xff] }
 0x1c3   : > { %1013 = vst.msk [vmem:[#allocation2 + $0x18] sm:$0xff] %vm1009_vm12, %v988_v47  ;;  %v1050_v52 = vmul.f32 %v4256_v41, %v1027_v50  ;;  %v1028_v53 = vld [vmem:[#allocation2 + $0x8] sm:$0xff]  ;;  %v1601_v49 = vmul.f32 %v4258_v42, %v1027_v50 }
 0x1c4   : > { %1014 = vst.msk [vmem:[#allocation2 + $0x20] sm:$0xff] %vm1011_vm13, %v988_v47  ;;  %v1051_v54 = vmul.f32 %v4260_v44, %v1028_v53 }
 0x1c5   : > { %v4280_v13 = vadd.f32 %v4262_v45, %v1050_v52  ;;  %v4283_v55 = vadd.f32 %v4264_v46, %v1601_v49 }
 0x1c6   : > { %v4292_v22 = vadd.f32 %v4272_v51, %v1051_v54 }
 0x1c7   : > { %v1103_v58 = vand.u32 2147483647, %v4280_v13  ;;  %v1654_v59 = vand.u32 2147483647, %v4283_v55  ;;  %v1087_v32 = vmax.f32 %v4280_v13, 0.0  ;;  %v1638_v54 = vmax.f32 %v4283_v55, 0.0 }
 0x1c8   : > { %v1104_v60 = vand.u32 2147483647, %v4292_v22  ;;  %v1088_v49 = vmax.f32 %v4292_v22, 0.0 }
 0x1c9   : > { %v1119_v25 = vsub.f32 0.0, %v1103_v58  ;;  %v1670_v61 = vsub.f32 0.0, %v1654_v59 }
 0x1ca   : > { %v994_v36 = vpop.permute.xlu2 %993  ;;  %v1029_v1 = vld [vmem:[#allocation2 + $0x18] sm:$0xff]  ;;  %v1120_v2 = vsub.f32 0.0, %v1104_v60 }
 0x1cb   : > { %1019 = vst.msk [vmem:[#allocation2 + $0x60] sm:$0xff] %vm1009_vm12, %v994_v36  ;;  %v1052_v3 = vmul.f32 %v4256_v41, %v1029_v1  ;;  %v1135_v4 = vmul.f32 1.442695, %v1119_v25  ;;  %v1030_v5 = vld [vmem:[#allocation2 + $0x20] sm:$0xff]  ;;  %v1603_v63 = vmul.f32 %v4258_v42, %v1029_v1  ;;  %v1686_v8 = vmul.f32 1.442695, %v1670_v61 }
 0x1cc   : > { %1020 = vst.msk [vmem:[#allocation2 + $0x68] sm:$0xff] %vm1011_vm13, %v994_v36  ;;  %v1053_v7 = vmul.f32 %v4260_v44, %v1030_v5  ;;  %v1137_v6 = vmul.f32 1.442695, %v1120_v2 }
 0x1cd   : > { %v4309_v9 = vadd.f32 %v4262_v45, %v1052_v3  ;;  %3608 = vpow2.f32 %v1135_v4  ;;  %v4312_v10 = vadd.f32 %v4264_v46, %v1603_v63 }
 0x1ce   : > { %v4321_v12 = vadd.f32 %v4272_v51, %v1053_v7  ;;  %3610 = vpow2.f32 %v1137_v6 }
 0x1cf   : > { %v1105_v43 = vand.u32 2147483647, %v4309_v9  ;;  %v1656_v14 = vand.u32 2147483647, %v4312_v10  ;;  %3612 = vpow2.f32 %v1686_v8  ;;  %v1089_v57 = vmax.f32 %v4309_v9, 0.0 }
 0x1d0   : > { %v1106_v15 = vand.u32 2147483647, %v4321_v12  ;;  %v1090_v25 = vmax.f32 %v4321_v12, 0.0  ;;  %v1640_v61 = vmax.f32 %v4312_v10, 0.0 }
 0x1d1   : > { %v1121_v16 = vsub.f32 0.0, %v1105_v43  ;;  %v1672_v18 = vsub.f32 0.0, %v1656_v14  ;;  %v3514_v14 = vld [vmem:[%s5267_s17 + $0x38] sm:$0xff] }
 0x1d2   : > { %v996_v20 = vpop.permute.xlu2 %995  ;;  %v990_v21 = vpop.permute.xlu1 %989  ;;  %v1122_v23 = vsub.f32 0.0, %v1106_v15  ;;  %v4351_v56 = vld [vmem:[#allocation2 + $0x60] sm:$0xff]  ;;  %3531 = vmatpush.bf16.msra.mxu1 %v3514_v14  ;;  %2842 = vmatpush.bf16.msra.mxu0 %v3514_v14 }
 0x1d3   : > { %v3609_v24 = vpop.eup %3608  ;;  %1021 = vst.msk [vmem:[#allocation2 + $0x78] sm:$0xff] %vm1009_vm12, %v996_v20  ;;  %v1139_v26 = vmul.f32 1.442695, %v1121_v16  ;;  %v1690_v34 = vmul.f32 1.442695, %v1672_v18  ;;  %v1036_v47 = vld [vmem:[#allocation2 + $0x68] sm:$0xff]  ;;  %v4369_v3 = vmul.f32 %v4256_v41, %v4351_v56 }
 0x1d4   : > { %v3611_v27 = vpop.eup %3610  ;;  %1022 = vst.msk [vmem:[#allocation2 + $0x80] sm:$0xff] %vm1011_vm13, %v996_v20  ;;  %v1167_v17 = vadd.f32 1.0, %v3609_v24  ;;  %v1170_v31 = vmul.f32 -0.5, %v3609_v24  ;;  %v1141_v38 = vmul.f32 1.442695, %v1122_v23  ;;  %v1059_v59 = vmul.f32 %v4260_v44, %v1036_v47 }
 0x1d5   : > { %1015 = vst.msk [vmem:[#allocation2 + $0x30] sm:$0xff] %vm1009_vm12, %v990_v21  ;;  %3614 = vpow2.f32 %v1139_v26  ;;  %v1176_v33 = vadd.f32 1.0, %v3611_v27  ;;  %v4339_v35 = vpop.eup %3612  ;;  %v1179_v39 = vmul.f32 -0.5, %v3611_v27  ;;  %v1173_v19 = vand.u32 2147483647, %v3609_v24 }
 0x1d6   : > { %1016 = vst.msk [vmem:[#allocation2 + $0x38] sm:$0xff] %vm1011_vm13, %v990_v21  ;;  %3616 = vlog2.f32 %v1167_v17  ;;  %v1182_v50 = vand.u32 2147483647, %v3611_v27  ;;  %v1718_v52 = vadd.f32 1.0, %v4339_v35  ;;  %v1171_v53 = vadd.f32 1.0, %v1170_v31  ;;  %3532 = vmatpush.bf16.msra.mxu1 %v3513_v29  ;;  %2843 = vmatpush.bf16.msra.mxu0 %v3513_v29 }
 0x1d7   : > { %3618 = vlog2.f32 %v1176_v33  ;;  %v1180_v58 = vadd.f32 1.0, %v1179_v39  ;;  %v1721_v36 = vmul.f32 -0.5, %v4339_v35  ;;  %vm4359_vm14 = vcmp.lt.f32.partialorder %v1173_v19, 0.0004427343 }
 0x1d8   : > { %3620 = vpow2.f32 %v1141_v38  ;;  %vm4363_vm15 = vcmp.lt.f32.partialorder %v1182_v50, 0.0004427343  ;;  %v1172_v5 = vmul.f32 %v3609_v24, %v1171_v53  ;;  %v1724_v6 = vand.u32 2147483647, %v4339_v35 }
 0x1d9   : > { %3622 = vpow2.f32 %v1690_v34  ;;  %v1181_v43 = vmul.f32 %v3611_v27, %v1180_v58  ;;  %v4377_v15 = vadd.f32 %v4272_v51, %v1059_v59  ;;  %v1722_v20 = vadd.f32 1.0, %v1721_v36 }
 0x1da   : > { %v992_v60 = vpop.permute.xlu1 %991  ;;  %3624 = vlog2.f32 %v1718_v52  ;;  %vm4391_vm0 = vcmp.lt.f32.partialorder %v1724_v6, 0.0004427343  ;;  %3533 = vmatpush.bf16.msra.mxu1 %v3512_v37  ;;  %2844 = vmatpush.bf16.msra.mxu0 %v3512_v37 }
 0x1db   : > { %v3615_v62 = vpop.eup %3614  ;;  %1017 = vst.msk [vmem:[#allocation2 + $0x48] sm:$0xff] %vm1009_vm12, %v992_v60  ;;  %v1038_v2 = vld [vmem:[#allocation2 + $0x80] sm:$0xff]  ;;  %v1112_v53 = vand.u32 2147483647, %v4377_v15 }
 0x1dc   : > { %v3617_v4 = vpop.eup %3616  ;;  %1018 = vst.msk [vmem:[#allocation2 + $0x50] sm:$0xff] %vm1011_vm13, %v992_v60  ;;  %v1185_v63 = vadd.f32 1.0, %v3615_v62  ;;  %v1188_v7 = vmul.f32 -0.5, %v3615_v62  ;;  %v1191_v40 = vand.u32 2147483647, %v3615_v62  ;;  %v1061_v21 = vmul.f32 %v4260_v44, %v1038_v2  ;;  %v4406_v58 = vld [vmem:[#allocation2 + $0x30] sm:$0xff] }
 0x1dd   : > { %v3619_v8 = vpop.eup %3618  ;;  %v1169_v11 = vmul.f32 0.6931472, %v3617_v4 }
 0x1de   : > { %v3621_v16 = vpop.eup %3620  ;;  %3626 = vlog2.f32 %v1185_v63  ;;  %v1178_v18 = vmul.f32 0.6931472, %v3619_v8  ;;  %v1189_v26 = vadd.f32 1.0, %v1188_v7  ;;  %vm4396_vm1 = vcmp.lt.f32.partialorder %v1191_v40, 0.0004427343 }
 0x1df   : > { %v4380_v23 = vpop.eup %3622  ;;  %v1175_v24 = vsel %vm4359_vm14, %v1172_v5, %v1169_v11  ;;  %v1194_v27 = vadd.f32 1.0, %v3621_v16  ;;  %v1197_v28 = vmul.f32 -0.5, %v3621_v16  ;;  %v1200_v47 = vand.u32 2147483647, %v3621_v16 }
 0x1e0   : > { %v3625_v30 = vpop.eup %3624  ;;  %v1311_v17 = vadd.f32 %v1175_v24, %v1087_v32  ;;  %v1184_v31 = vsel %vm4363_vm15, %v1181_v43, %v1178_v18  ;;  %v1736_v34 = vadd.f32 1.0, %v4380_v23  ;;  %v1723_v32 = vmul.f32 %v4339_v35, %v1722_v20 }
 0x1e1   : > { %3628 = vlog2.f32 %v1194_v27  ;;  %v1198_v38 = vadd.f32 1.0, %v1197_v28  ;;  %v1312_v39 = vadd.f32 %v1184_v31, %v1088_v49  ;;  %v1720_v48 = vmul.f32 0.6931472, %v3625_v30  ;;  %v4437_v30 = vld [vmem:[#allocation2 + $0x78] sm:$0xff] }
 0x1e2   : > { %v1739_v19 = vmul.f32 -0.5, %v4380_v23  ;;  %v1190_v50 = vmul.f32 %v3615_v62, %v1189_v26  ;;  %3630 = vtanh.f32 %v1311_v17  ;;  %v4403_v52 = vadd.f32 %v4272_v51, %v1061_v21  ;;  %v4408_v59 = vld [vmem:[#allocation2 + $0x48] sm:$0xff]  ;;  %v1032_v62 = vld [vmem:[#allocation2 + $0x38] sm:$0xff] }
 0x1e3   : > { %v1199_v60 = vmul.f32 %v3621_v16, %v1198_v38  ;;  %v1726_v35 = vsel %vm4391_vm0, %v1723_v32, %v1720_v48  ;;  %3632 = vlog2.f32 %v1736_v34  ;;  %v1742_v36 = vand.u32 2147483647, %v4380_v23  ;;  %v1034_v6 = vld [vmem:[#allocation2 + $0x50] sm:$0xff] }
 0x1e4   : > { %v3627_v49 = vpop.eup %3626  ;;  %3634 = vtanh.f32 %v1312_v39  ;;  %v1862_v1 = vadd.f32 %v1726_v35, %v1638_v54  ;;  %v1114_v2 = vand.u32 2147483647, %v4403_v52  ;;  %v1740_v4 = vadd.f32 1.0, %v1739_v19 }
 0x1e5   : > { %v1187_v0 = vmul.f32 0.6931472, %v3627_v49  ;;  %v1128_v5 = vsub.f32 0.0, %v1112_v53  ;;  %v1054_v63 = vmul.f32 %v4256_v41, %v4406_v58  ;;  %v1056_v7 = vmul.f32 %v4256_v41, %v4408_v59  ;;  %v3511_v53 = vld [vmem:[%s5267_s17 + $0x20] sm:$0xff] }
 0x1e6   : > { %3636 = vtanh.f32 %v1862_v1  ;;  %v1130_v40 = vsub.f32 0.0, %v1114_v2  ;;  %v1055_v43 = vmul.f32 %v4260_v44, %v1032_v62  ;;  %vm1201_vm2 = vcmp.lt.f32.partialorder %v1200_v47, 0.0004427343  ;;  %3534 = vmatpush.bf16.msra.mxu1 %v3511_v53  ;;  %2845 = vmatpush.bf16.msra.mxu0 %v3511_v53 }
 0x1e7   : > { %v3629_v8 = vpop.eup %3628  ;;  %v1193_v11 = vsel %vm4396_vm1, %v1190_v50, %v1187_v0  ;;  %v1153_v16 = vmul.f32 1.442695, %v1128_v5  ;;  %v4426_v18 = vadd.f32 %v4262_v45, %v1054_v63  ;;  %v4429_v24 = vadd.f32 %v4262_v45, %v1056_v7 }
 0x1e8   : > { %v1313_v54 = vadd.f32 %v1193_v11, %v1089_v57  ;;  %v1196_v14 = vmul.f32 0.6931472, %v3629_v8  ;;  %v3631_v20 = vpop.eup %3630  ;;  %v1157_v21 = vmul.f32 1.442695, %v1130_v40  ;;  %v1057_v26 = vmul.f32 %v4260_v44, %v1034_v6 }
 0x1e9   : > { %v3633_v27 = vpop.eup %3632  ;;  %vm4432_vm3 = vcmp.lt.f32.partialorder %v1742_v36, 0.0004427343  ;;  %v1096_v57 = vmax.f32 %v4377_v15, 0.0  ;;  %v1741_v34 = vmul.f32 %v4380_v23, %v1740_v4  ;;  %v1107_v38 = vand.u32 2147483647, %v4426_v18 }
 0x1ea   : > { %3638 = vtanh.f32 %v1313_v54  ;;  %v1202_v28 = vsel %vm1201_vm2, %v1199_v60, %v1196_v14  ;;  %v3635_v17 = vpop.eup %3634  ;;  %v1738_v33 = vmul.f32 0.6931472, %v3633_v27  ;;  %v1109_v39 = vand.u32 2147483647, %v4429_v24 }
 0x1eb   : > { %v1314_v31 = vadd.f32 %v1202_v28, %v1090_v25  ;;  %3640 = vpow2.f32 %v1153_v16  ;;  %v4448_v47 = vadd.f32 %v4272_v51, %v1055_v43  ;;  %v4453_v23 = vadd.f32 %v4272_v51, %v1057_v26 }
 0x1ec   : > { %3642 = vpow2.f32 %v1157_v21  ;;  %v3637_v48 = vpop.eup %3636  ;;  %v1744_v25 = vsel %vm4432_vm3, %v1741_v34, %v1738_v33  ;;  %v4457_v32 = vmul.f32 %v4256_v41, %v4437_v30  ;;  %v1098_v50 = vmax.f32 %v4403_v52, 0.0 }
 0x1ed   : > { %3644 = vtanh.f32 %v1314_v31  ;;  %v1864_v19 = vadd.f32 %v1744_v25, %v1640_v61  ;;  %v1123_v49 = vsub.f32 0.0, %v1107_v38  ;;  %v1125_v60 = vsub.f32 0.0, %v1109_v39 }
 0x1ee   : > { %v1343_v35 = vmul.f32 %v3631_v20, %v4280_v13  ;;  %v1344_v36 = vmul.f32 %v3635_v17, %v4292_v22  ;;  %v1108_v62 = vand.u32 2147483647, %v4448_v47  ;;  %v1110_v0 = vand.u32 2147483647, %v4453_v23 }
 0x1ef   : > { %3646 = vtanh.f32 %v1864_v19  ;;  %v1091_v61 = vmax.f32 %v4426_v18, 0.0  ;;  %v1143_v2 = vmul.f32 1.442695, %v1123_v49  ;;  %v1605_v4 = vmul.f32 %v4258_v42, %v4406_v58 }
 0x1f0   : > { %v3639_v1 = vpop.eup %3638  ;;  %v1894_v7 = vmul.f32 %v3637_v48, %v4283_v55  ;;  %v1093_v13 = vmax.f32 %v4429_v24, 0.0  ;;  %v1124_v22 = vsub.f32 0.0, %v1108_v62  ;;  %v1147_v40 = vmul.f32 1.442695, %v1125_v60 }
 0x1f1   : > { %v3641_v5 = vpop.eup %3640  ;;  %v1345_v63 = vmul.f32 %v3639_v1, %v4309_v9  ;;  %3648 = vpow2.f32 %v1143_v2  ;;  %v1126_v43 = vsub.f32 0.0, %v1110_v0  ;;  %v1607_v55 = vmul.f32 %v4258_v42, %v4408_v59 }
 0x1f2   : > { %v3643_v6 = vpop.eup %3642  ;;  %v998_v8 = vpop.permute.xlu0 %997  ;;  %v1248_v11 = vadd.f32 1.0, %v3641_v5  ;;  %v1251_v16 = vmul.f32 -0.5, %v3641_v5  ;;  %v4481_v26 = vadd.f32 %v4264_v46, %v1605_v4  ;;  %v1254_v27 = vand.u32 2147483647, %v3641_v5 }
 0x1f3   : > { %v3645_v54 = vpop.eup %3644  ;;  %1023 = vst.msk [vmem:[#allocation2 + $0x90] sm:$0xff] %vm1009_vm12, %v998_v8  ;;  %v1383_v14 = vpack.c.bf16 %v1345_v63, %v1343_v35  ;;  %v1266_v20 = vadd.f32 1.0, %v3643_v6  ;;  %v1269_v21 = vmul.f32 -0.5, %v3643_v6  ;;  %v1092_v28 = vmax.f32 %v4448_v47, 0.0 }
 0x1f4   : > { %1024 = vst.msk [vmem:[#allocation2 + $0x98] sm:$0xff] %vm1011_vm13, %v998_v8  ;;  %v1346_v9 = vmul.f32 %v3645_v54, %v4321_v12  ;;  %3650 = vlog2.f32 %v1248_v11  ;;  %v1145_v29 = vmul.f32 1.442695, %v1124_v22  ;;  %v1272_v33 = vand.u32 2147483647, %v3643_v6 }
 0x1f5   : > { %1487 = vmatmul.bf16.vlgmr.msrb.gmra.mxu2 %v1383_v14  ;;  %3652 = vlog2.f32 %v1266_v20  ;;  %v3647_v17 = vpop.eup %3646  ;;  %v1149_v34 = vmul.f32 1.442695, %v1126_v43  ;;  %v1252_v38 = vadd.f32 1.0, %v1251_v16  ;;  %v4486_v12 = vadd.f32 %v4264_v46, %v1607_v55 }
 0x1f6   : > { %v1384_v31 = vpack.c.bf16 %v1346_v9, %v1344_v36  ;;  %3654 = vpow2.f32 %v1147_v40  ;;  %v1896_v37 = vmul.f32 %v3647_v17, %v4312_v10  ;;  %v1270_v48 = vadd.f32 1.0, %v1269_v21 }
 0x1f7   : > { %3656 = vpow2.f32 %v1145_v29  ;;  %v3649_v39 = vpop.eup %3648  ;;  %v1094_v25 = vmax.f32 %v4453_v23, 0.0  ;;  %v1658_v19 = vand.u32 2147483647, %v4481_v26  ;;  %vm4491_vm4 = vcmp.lt.f32.partialorder %v1254_v27, 0.0004427343 }
 0x1f8   : > { %3318 = vmatmul.msk.bf16.vlgmr.msrb.gmra.mxu1 %vm1011_vm13, %v1384_v31  ;;  %3658 = vpow2.f32 %v1149_v34  ;;  %v1941_v53 = vpack.c.bf16 %v1896_v37, %v1894_v7  ;;  %v1203_v49 = vadd.f32 1.0, %v3649_v39  ;;  %v1206_v60 = vmul.f32 -0.5, %v3649_v39 }
 0x1f9   : > { %v1209_v35 = vand.u32 2147483647, %v3649_v39  ;;  %vm4495_vm5 = vcmp.lt.f32.partialorder %v1272_v33, 0.0004427343  ;;  %v1660_v1 = vand.u32 2147483647, %v4486_v12  ;;  %v4502_v2 = vadd.f32 %v4262_v45, %v4369_v3 }
 0x1fa   : > { %v3651_v36 = vpop.eup %3650  ;;  %v1000_v10 = vpop.permute.xlu1 %999  ;;  %2063 = vmatmul.bf16.vlgmr.msrb.gmra.mxu0 %v1941_v53  ;;  %v1253_v7 = vmul.f32 %v3641_v5, %v1252_v38  ;;  %3660 = vlog2.f32 %v1203_v49  ;;  %v1674_v22 = vsub.f32 0.0, %v1658_v19  ;;  %v1271_v40 = vmul.f32 %v3643_v6, %v1270_v48 }
 0x1fb   : > { %v3653_v4 = vpop.eup %3652  ;;  %1025 = vst.msk [vmem:[#allocation2 + $0xa8] sm:$0xff] %vm1009_vm12, %v1000_v10  ;;  %v1250_v63 = vmul.f32 0.6931472, %v3651_v36  ;;  %v1207_v43 = vadd.f32 1.0, %v1206_v60  ;;  %v4508_v54 = vadd.f32 %v4262_v45, %v4457_v32  ;;  %vm4512_vm6 = vcmp.lt.f32.partialorder %v1209_v35, 0.0004427343 }
 0x1fc   : > { %v3655_v8 = vpop.eup %3654  ;;  %1026 = vst.msk [vmem:[#allocation2 + $0xb0] sm:$0xff] %vm1011_vm13, %v1000_v10  ;;  %v1268_v11 = vmul.f32 0.6931472, %v3653_v4  ;;  %v1676_v32 = vsub.f32 0.0, %v1660_v1  ;;  %v1694_v17 = vmul.f32 1.442695, %v1674_v22  ;;  %v1609_v34 = vmul.f32 %v4258_v42, %v4351_v56 }
 0x1fd   : > { %v3657_v3 = vpop.eup %3656  ;;  %v1256_v14 = vsel %vm4491_vm4, %v1253_v7, %v1250_v63  ;;  %v1221_v5 = vadd.f32 1.0, %v3655_v8  ;;  %v1224_v20 = vmul.f32 -0.5, %v3655_v8  ;;  %v1227_v31 = vand.u32 2147483647, %v3655_v8 }
 0x1fe   : > { %v3659_v55 = vpop.eup %3658  ;;  %v1274_v9 = vsel %vm4495_vm5, %v1271_v40, %v1268_v11  ;;  %v1320_v6 = vadd.f32 %v1256_v14, %v1096_v57  ;;  %v1212_v21 = vadd.f32 1.0, %v3657_v3  ;;  %v1215_v29 = vmul.f32 -0.5, %v3657_v3 }
 0x1ff   : > { %v1322_v27 = vadd.f32 %v1274_v9, %v1098_v50  ;;  %3662 = vlog2.f32 %v1221_v5  ;;  %v1230_v33 = vadd.f32 1.0, %v3659_v55  ;;  %v1208_v38 = vmul.f32 %v3649_v39, %v1207_v43 }
 0x200   : > { %3664 = vtanh.f32 %v1320_v6  ;;  %v3661_v37 = vpop.eup %3660  ;;  %v1225_v48 = vadd.f32 1.0, %v1224_v20  ;;  %v1233_v19 = vmul.f32 -0.5, %v3659_v55  ;;  %v1216_v53 = vadd.f32 1.0, %v1215_v29 }
 0x201   : > { %3666 = vtanh.f32 %v1322_v27  ;;  %v1205_v57 = vmul.f32 0.6931472, %v3661_v37  ;;  %v1218_v49 = vand.u32 2147483647, %v3657_v3  ;;  %v1236_v60 = vand.u32 2147483647, %v3659_v55 }
 0x202   : > { %3668 = vlog2.f32 %v1212_v21  ;;  %v1234_v50 = vadd.f32 1.0, %v1233_v19  ;;  %v1698_v35 = vmul.f32 1.442695, %v1676_v32  ;;  %vm4526_vm7 = vcmp.lt.f32.partialorder %v1227_v31, 0.0004427343  ;;  %v3509_v27 = vld [vmem:[%s5267_s17 + $0x10] sm:$0xff] }
 0x203   : > { %3670 = vlog2.f32 %v1230_v33  ;;  %v1211_v36 = vsel %vm4512_vm6, %v1208_v38, %v1205_v57  ;;  %v1111_v39 = vand.u32 2147483647, %v4502_v2  ;;  %v1226_v0 = vmul.f32 %v3655_v8, %v1225_v48 }
 0x204   : > { %3672 = vpow2.f32 %v1694_v17  ;;  %v1315_v1 = vadd.f32 %v1211_v36, %v1091_v61  ;;  %v1113_v4 = vand.u32 2147483647, %v4508_v54  ;;  %vm4534_vm8 = vcmp.lt.f32.partialorder %v1218_v49, 0.0004427343  ;;  %v3510_v61 = vld [vmem:[%s5267_s17 + $0x18] sm:$0xff]  ;;  %v3508_v36 = vld [vmem:[%s5267_s17 + $0x8] sm:$0xff] }
 0x205   : > { %v3663_v62 = vpop.eup %3662  ;;  %3674 = vpow2.f32 %v1698_v35  ;;  %v1127_v11 = vsub.f32 0.0, %v1111_v39  ;;  %v1611_v40 = vmul.f32 %v4258_v42, %v4437_v30  ;;  %v1217_v14 = vmul.f32 %v3657_v3, %v1216_v53  ;;  %3535 = vmatpush.bf16.msra.mxu1 %v3510_v61  ;;  %2846 = vmatpush.bf16.msra.mxu0 %v3510_v61 }
 0x206   : > { %v3665_v63 = vpop.eup %3664  ;;  %v1223_v7 = vmul.f32 0.6931472, %v3663_v62  ;;  %3676 = vtanh.f32 %v1315_v1  ;;  %v1235_v8 = vmul.f32 %v3659_v55, %v1234_v50  ;;  %vm4540_vm9 = vcmp.lt.f32.partialorder %v1236_v60, 0.0004427343 }
 0x207   : > { %v3667_v43 = vpop.eup %3666  ;;  %v1352_v20 = vmul.f32 %v3665_v63, %v4377_v15  ;;  %v1151_v21 = vmul.f32 1.442695, %v1127_v11  ;;  %v1129_v29 = vsub.f32 0.0, %v1113_v4  ;;  %v4557_v17 = vadd.f32 %v4264_v46, %v1609_v34  ;;  %v2187_v34 = vld [vmem:[%s5265_s15] sm:$0x7] }
 0x208   : > { %v3669_v5 = vpop.eup %3668  ;;  %v1354_v9 = vmul.f32 %v3667_v43, %v4403_v52  ;;  %v1229_v6 = vsel %vm4526_vm7, %v1226_v0, %v1223_v7  ;;  %v4560_v33 = vadd.f32 %v4264_v46, %v1611_v40  ;;  %v1644_v39 = vmax.f32 %v4486_v12, 0.0  ;;  %v2188_v4 = vld [vmem:[%s5266_s16] sm:$0x7] }
 0x209   : > { %v3671_v32 = vpop.eup %3670  ;;  %v1317_v3 = vadd.f32 %v1229_v6, %v1093_v13  ;;  %v1214_v55 = vmul.f32 0.6931472, %v3669_v5  ;;  %3678 = vpow2.f32 %v1151_v21  ;;  %3536 = vmatpush.bf16.msra.mxu1 %v3509_v27  ;;  %v1155_v10 = vmul.f32 1.442695, %v1129_v29  ;;  %2847 = vmatpush.bf16.msra.mxu0 %v3509_v27 }
 0x20a   : > { %v3673_v15 = vpop.eup %3672  ;;  %v1388_v52 = vpack.c.bf16 %v1354_v9, %v1352_v20  ;;  %v1232_v31 = vmul.f32 0.6931472, %v3671_v32  ;;  %v4583_v62 = vperm.slane %v2187_v34, 0  ;;  %v1662_v1 = vand.u32 2147483647, %v4557_v17 }
 0x20b   : > { %v4562_v37 = vpop.eup %3674  ;;  %3680 = vtanh.f32 %v1317_v3  ;;  %v1220_v13 = vsel %vm4534_vm8, %v1217_v14, %v1214_v55  ;;  %v1754_v38 = vadd.f32 1.0, %v3673_v15  ;;  %v1757_v48 = vmul.f32 -0.5, %v3673_v15 }
 0x20c   : > { %3320 = vmatmul.msk.bf16.vlgmr.msra.gmra.mxu3 %vm1011_vm13, %v1388_v52  ;;  %v1238_v19 = vsel %vm4540_vm9, %v1235_v8, %v1232_v31  ;;  %v1316_v57 = vadd.f32 %v1220_v13, %v1092_v28  ;;  %v1760_v53 = vand.u32 2147483647, %v3673_v15  ;;  %v1772_v49 = vadd.f32 1.0, %v4562_v37  ;;  %v3677_v50 = vpop.eup %3676 }
 0x20d   : > { %v1318_v60 = vadd.f32 %v1238_v19, %v1094_v25  ;;  %3682 = vlog2.f32 %v1754_v38  ;;  %v1775_v35 = vmul.f32 -0.5, %v4562_v37  ;;  %v1642_v28 = vmax.f32 %v4481_v26, 0.0  ;;  %3537 = vmatpush.bf16.msra.mxu1 %v3508_v36  ;;  %2848 = vmatpush.bf16.msra.mxu0 %v3508_v36 }
 0x20e   : > { %3684 = vtanh.f32 %v1316_v57  ;;  %v1347_v0 = vmul.f32 %v3677_v50, %v4426_v18  ;;  %v1758_v25 = vadd.f32 1.0, %v1757_v48  ;;  %vm4590_vm10 = vcmp.lt.f32.partialorder %v1760_v53, 0.0004427343  ;;  %v3507_v18 = vld [vmem:[%s5267_s17] sm:$0xff] }
 0x20f   : > { %3686 = vtanh.f32 %v1318_v60  ;;  %v3679_v63 = vpop.eup %3678  ;;  %v1776_v22 = vadd.f32 1.0, %v1775_v35  ;;  %v1664_v11 = vand.u32 2147483647, %v4560_v33  ;;  %v2202_v8 = vmul.f32 %v4583_v62, %v4406_v58 }
 0x210   : > { %3688 = vlog2.f32 %v1772_v49  ;;  %v1239_v43 = vadd.f32 1.0, %v3679_v63  ;;  %v1242_v14 = vmul.f32 -0.5, %v3679_v63  ;;  %v1778_v61 = vand.u32 2147483647, %v4562_v37 }
 0x211   : > { %v3681_v40 = vpop.eup %3680  ;;  %3690 = vpow2.f32 %v1155_v10  ;;  %v1678_v5 = vsub.f32 0.0, %v1662_v1  ;;  %v1680_v20 = vsub.f32 0.0, %v1664_v11  ;;  %v1759_v6 = vmul.f32 %v3673_v15, %v1758_v25  ;;  %3538 = vmatpush.bf16.msra.mxu1 %v3507_v18  ;;  %2849 = vmatpush.bf16.msra.mxu0 %v3507_v18 }
 0x212   : > { %v1349_v16 = vmul.f32 %v3681_v40, %v4429_v24  ;;  %3692 = vlog2.f32 %v1239_v43  ;;  %v2205_v21 = vmul.f32 %v4583_v62, %v4408_v59  ;;  %v4604_v32 = vperm.slane %v2188_v4, 0 }
 0x213   : > { %v3683_v9 = vpop.eup %3682  ;;  %v1777_v58 = vmul.f32 %v4562_v37, %v1776_v22  ;;  %v1702_v29 = vmul.f32 1.442695, %v1678_v5  ;;  %v1243_v24 = vadd.f32 1.0, %v1242_v14  ;;  %v1245_v31 = vand.u32 2147483647, %v3679_v63 }
 0x214   : > { %v3685_v3 = vpop.eup %3684  ;;  %v1385_v55 = vpack.c.bf16 %v1349_v16, %v1347_v0  ;;  %v1756_v27 = vmul.f32 0.6931472, %v3683_v9  ;;  %v1706_v13 = vmul.f32 1.442695, %v1680_v20  ;;  %v4608_v38 = vadd.f32 %v4604_v32, %v2202_v8 }
 0x215   : > { %v3687_v52 = vpop.eup %3686  ;;  %v1348_v59 = vmul.f32 %v3685_v3, %v4448_v47  ;;  %3694 = vpow2.f32 %v1702_v29  ;;  %v4615_v53 = vadd.f32 %v4604_v32, %v2205_v21  ;;  %vm1779_vm11 = vcmp.lt.f32.partialorder %v1778_v61, 0.0004427343 }
 0x216   : > { %v3689_v15 = vpop.eup %3688  ;;  %1492 = vmatmul.bf16.gmra.mxu2 %v1385_v55  ;;  %v1350_v48 = vmul.f32 %v3687_v52, %v4453_v23  ;;  %v1762_v34 = vsel %vm4590_vm10, %v1759_v6, %v1756_v27  ;;  %3696 = vpow2.f32 %v1706_v13  ;;  %vm4617_vm12 = vcmp.lt.f32.partialorder %v1245_v31, 0.0004427343 }
 0x217   : > { %v3691_v37 = vpop.eup %3690  ;;  %v1774_v19 = vmul.f32 0.6931472, %v3689_v15  ;;  %v1866_v57 = vadd.f32 %v1762_v34, %v1642_v28  ;;  %v2281_v23 = vand.u32 2147483647, %v4608_v38  ;;  %v1244_v0 = vmul.f32 %v3679_v63, %v1243_v24  ;;  %v1040_v34 = vld [vmem:[#allocation2 + $0x98] sm:$0xff] }
 0x218   : > { %v1386_v49 = vpack.c.bf16 %v1350_v48, %v1348_v59  ;;  %v1257_v50 = vadd.f32 1.0, %v3691_v37  ;;  %v1260_v60 = vmul.f32 -0.5, %v3691_v37  ;;  %v3693_v35 = vpop.eup %3692  ;;  %v1095_v25 = vmax.f32 %v4502_v2, 0.0  ;;  %v4637_v48 = vld [vmem:[#allocation2 + $0x90] sm:$0xff] }
 0x219   : > { %v1780_v36 = vsel %vm1779_vm11, %v1777_v58, %v1774_v19  ;;  %3698 = vtanh.f32 %v1866_v57  ;;  %v1241_v28 = vmul.f32 0.6931472, %v3693_v35  ;;  %v1263_v1 = vand.u32 2147483647, %v3691_v37 }
 0x21a   : > { %3319 = vmatmul.msk.bf16.gmra.mxu1 %vm1011_vm13, %v1386_v49  ;;  %v1868_v10 = vadd.f32 %v1780_v36, %v1644_v39  ;;  %3700 = vlog2.f32 %v1257_v50  ;;  %v2284_v4 = vand.u32 2147483647, %v4615_v53  ;;  %v2305_v7 = vsub.f32 0.0, %v2281_v23 }
 0x21b   : > { %v3695_v22 = vpop.eup %3694  ;;  %v1247_v11 = vsel %vm4617_vm12, %v1244_v0, %v1241_v28  ;;  %v1261_v40 = vadd.f32 1.0, %v1260_v60  ;;  %v1097_v43 = vmax.f32 %v4508_v54, 0.0  ;;  %v1646_v39 = vmax.f32 %v4557_v17, 0.0 }
 0x21c   : > { %3702 = vtanh.f32 %v1868_v10  ;;  %v3697_v18 = vpop.eup %3696  ;;  %v1319_v14 = vadd.f32 %v1247_v11, %v1095_v25  ;;  %v1790_v63 = vadd.f32 1.0, %v3695_v22  ;;  %v1793_v8 = vmul.f32 -0.5, %v3695_v22 }
 0x21d   : > { %v1808_v16 = vadd.f32 1.0, %v3697_v18  ;;  %v1811_v61 = vmul.f32 -0.5, %v3697_v18  ;;  %v2308_v5 = vsub.f32 0.0, %v2284_v4  ;;  %vm4629_vm14 = vcmp.lt.f32.partialorder %v1263_v1, 0.0004427343 }
 0x21e   : > { %3704 = vtanh.f32 %v1319_v14  ;;  %v1648_v6 = vmax.f32 %v4560_v33, 0.0  ;;  %v2335_v21 = vmul.f32 1.442695, %v2305_v7  ;;  %v1262_v55 = vmul.f32 %v3691_v37, %v1261_v40 }
 0x21f   : > { %v3699_v20 = vpop.eup %3698  ;;  %3706 = vlog2.f32 %v1790_v63  ;;  %v1796_v27 = vand.u32 2147483647, %v3695_v22  ;;  %v2208_v58 = vmul.f32 %v4583_v62, %v4351_v56  ;;  %v1814_v52 = vand.u32 2147483647, %v3697_v18 }
 0x220   : > { %v3701_v3 = vpop.eup %3700  ;;  %3708 = vlog2.f32 %v1808_v16  ;;  %v2341_v24 = vmul.f32 1.442695, %v2308_v5  ;;  %v1898_v13 = vmul.f32 %v3699_v20, %v4481_v26  ;;  %v1794_v15 = vadd.f32 1.0, %v1793_v8 }
 0x221   : > { %v1259_v29 = vmul.f32 0.6931472, %v3701_v3  ;;  %v1812_v59 = vadd.f32 1.0, %v1811_v61  ;;  %3710 = vpow2.f32 %v2335_v21  ;;  %v1062_v56 = vmul.f32 %v4256_v41, %v4637_v48 }
 0x222   : > { %v3703_v31 = vpop.eup %3702  ;;  %3712 = vpow2.f32 %v2341_v24  ;;  %v2257_v49 = vmax.f32 %v4608_v38, 0.0  ;;  %v2260_v26 = vmax.f32 %v4615_v53, 0.0  ;;  %v1063_v50 = vmul.f32 %v4260_v44, %v1040_v34 }
 0x223   : > { %v1900_v37 = vmul.f32 %v3703_v31, %v4486_v12  ;;  %v1265_v19 = vsel %vm4629_vm14, %v1262_v55, %v1259_v29  ;;  %vm4647_vm15 = vcmp.lt.f32.partialorder %v1796_v27, 0.0004427343  ;;  %v4651_v12 = vld [vmem:[#allocation2 + $0xa8] sm:$0xff]  ;;  %v4654_v47 = vadd.f32 %v4262_v45, %v1062_v56  ;;  %v1042_v29 = vld [vmem:[#allocation2 + $0xb0] sm:$0xff] }
 0x224   : > { %v1321_v57 = vadd.f32 %v1265_v19, %v1097_v43  ;;  %v3705_v60 = vpop.eup %3704  ;;  %v2211_v23 = vmul.f32 %v4583_v62, %v4437_v30  ;;  %v1795_v28 = vmul.f32 %v3695_v22, %v1794_v15  ;;  %vm4658_vm0 = vcmp.lt.f32.partialorder %v1814_v52, 0.0004427343 }
 0x225   : > { %v1943_v35 = vpack.c.bf16 %v1900_v37, %v1898_v13  ;;  %v3707_v10 = vpop.eup %3706  ;;  %v1064_v25 = vmul.f32 %v4256_v41, %v4651_v12  ;;  %v1813_v7 = vmul.f32 %v3697_v18, %v1812_v59  ;;  %v4665_v11 = vadd.f32 %v4272_v51, %v1063_v50 }
 0x226   : > { %3714 = vtanh.f32 %v1321_v57  ;;  %v3709_v1 = vpop.eup %3708  ;;  %v1792_v4 = vmul.f32 0.6931472, %v3707_v10  ;;  %v4668_v40 = vadd.f32 %v4604_v32, %v2208_v58  ;;  %v1115_v14 = vand.u32 2147483647, %v4654_v47 }
 0x227   : > { %2068 = vmatmul.bf16.gmra.mxu0 %v1943_v35  ;;  %v3711_v30 = vpop.eup %3710  ;;  %v1810_v43 = vmul.f32 0.6931472, %v3709_v1  ;;  %v4671_v22 = vadd.f32 %v4262_v45, %v1064_v25  ;;  %v1613_v41 = vmul.f32 %v4258_v42, %v4637_v48  ;;  %v1116_v3 = vand.u32 2147483647, %v4665_v11 }
 0x228   : > { %v3713_v63 = vpop.eup %3712  ;;  %v1798_v18 = vsel %vm4647_vm15, %v1795_v28, %v1792_v4  ;;  %v2425_v8 = vadd.f32 1.0, %v3711_v30  ;;  %v2428_v16 = vmul.f32 -0.5, %v3711_v30  ;;  %v2431_v61 = vand.u32 2147483647, %v3711_v30 }
 0x229   : > { %v1816_v5 = vsel %vm4658_vm0, %v1813_v7, %v1810_v43  ;;  %v1870_v20 = vadd.f32 %v1798_v18, %v1646_v39  ;;  %v2452_v45 = vadd.f32 1.0, %v3713_v63  ;;  %v2455_v9 = vmul.f32 -0.5, %v3713_v63 }
 0x22a   : > { %v1872_v21 = vadd.f32 %v1816_v5, %v1648_v6  ;;  %3716 = vlog2.f32 %v2425_v8  ;;  %v4684_v55 = vadd.f32 %v4604_v32, %v2211_v23  ;;  %v1351_v58 = vmul.f32 %v3705_v60, %v4502_v2 }
 0x22b   : > { %3718 = vtanh.f32 %v1870_v20  ;;  %v4688_v52 = vadd.f32 %v4264_v46, %v1613_v41  ;;  %v2287_v24 = vand.u32 2147483647, %v4668_v40  ;;  %v2429_v6 = vadd.f32 1.0, %v2428_v16 }
 0x22c   : > { %v3715_v27 = vpop.eup %3714  ;;  %3720 = vtanh.f32 %v1872_v21  ;;  %v1117_v31 = vand.u32 2147483647, %v4671_v22  ;;  %vm4693_vm1 = vcmp.lt.f32.partialorder %v2431_v61, 0.0004427343  ;;  %v2456_v15 = vadd.f32 1.0, %v2455_v9 }
 0x22d   : > { %v1353_v39 = vmul.f32 %v3715_v27, %v4508_v54  ;;  %3722 = vlog2.f32 %v2452_v45  ;;  %v1131_v2 = vsub.f32 0.0, %v1115_v14  ;;  %v1065_v37 = vmul.f32 %v4260_v44, %v1042_v29 }
 0x22e   : > { %v1133_v34 = vsub.f32 0.0, %v1117_v31  ;;  %v1132_v19 = vsub.f32 0.0, %v1116_v3  ;;  %v2458_v56 = vand.u32 2147483647, %v3713_v63  ;;  %v1615_v54 = vmul.f32 %v4258_v42, %v4651_v12 }
 0x22f   : > { %v1387_v59 = vpack.c.bf16 %v1353_v39, %v1351_v58  ;;  %v1159_v57 = vmul.f32 1.442695, %v1131_v2  ;;  %v1666_v50 = vand.u32 2147483647, %v4688_v52  ;;  %v2430_v35 = vmul.f32 %v3711_v30, %v2429_v6 }
 0x230   : > { %v3717_v60 = vpop.eup %3716  ;;  %v1163_v36 = vmul.f32 1.442695, %v1133_v34  ;;  %v4702_v23 = vadd.f32 %v4272_v51, %v1065_v37  ;;  %v1161_v10 = vmul.f32 1.442695, %v1132_v19  ;;  %v4705_v44 = vadd.f32 %v4264_v46, %v1615_v54 }
 0x231   : > { %1497 = vmatmul.bf16.gmra.mxu2 %v1387_v59  ;;  %v3719_v28 = vpop.eup %3718  ;;  %v2427_v0 = vmul.f32 0.6931472, %v3717_v60  ;;  %3724 = vpow2.f32 %v1159_v57  ;;  %v1682_v25 = vsub.f32 0.0, %v1666_v50  ;;  %v2457_v4 = vmul.f32 %v3713_v63, %v2456_v15 }
 0x232   : > { %v3721_v1 = vpop.eup %3720  ;;  %3726 = vpow2.f32 %v1163_v36  ;;  %v1118_v42 = vand.u32 2147483647, %v4702_v23  ;;  %v2290_v7 = vand.u32 2147483647, %v4684_v55  ;;  %v1902_v43 = vmul.f32 %v3719_v28, %v4557_v17 }
 0x233   : > { %v3723_v30 = vpop.eup %3722  ;;  %v1904_v51 = vmul.f32 %v3721_v1, %v4560_v33  ;;  %v2433_v14 = vsel %vm4693_vm1, %v2430_v35, %v2427_v0  ;;  %3728 = vpow2.f32 %v1161_v10  ;;  %v1668_v63 = vand.u32 2147483647, %v4705_v44 }
 0x234   : > { %v2454_v41 = vmul.f32 0.6931472, %v3723_v30  ;;  %v2593_v46 = vadd.f32 %v2433_v14, %v2257_v49  ;;  %v1134_v18 = vsub.f32 0.0, %v1118_v42  ;;  %vm2459_vm2 = vcmp.lt.f32.partialorder %v2458_v56, 0.0004427343 }
 0x235   : > { %v1945_v8 = vpack.c.bf16 %v1904_v51, %v1902_v43  ;;  %v1710_v16 = vmul.f32 1.442695, %v1682_v25  ;;  %v2311_v61 = vsub.f32 0.0, %v2287_v24  ;;  %v1684_v49 = vsub.f32 0.0, %v1668_v63 }
 0x236   : > { %v2460_v5 = vsel %vm2459_vm2, %v2457_v4, %v2454_v41  ;;  %3730 = vtanh.f32 %v2593_v46  ;;  %v1165_v17 = vmul.f32 1.442695, %v1134_v18  ;;  %v2314_v21 = vsub.f32 0.0, %v2290_v7 }
 0x237   : > { %v3725_v20 = vpop.eup %3724  ;;  %2073 = vmatmul.bf16.gmra.mxu0 %v1945_v8  ;;  %v2596_v33 = vadd.f32 %v2460_v5, %v2260_v26  ;;  %3732 = vpow2.f32 %v1710_v16  ;;  %v2347_v29 = vmul.f32 1.442695, %v2311_v61  ;;  %v1099_v26 = vmax.f32 %v4654_v47, 0.0 }
 0x238   : > { %v3727_v45 = vpop.eup %3726  ;;  %v1275_v9 = vadd.f32 1.0, %v3725_v20  ;;  %3734 = vpow2.f32 %v1165_v17  ;;  %v1278_v27 = vmul.f32 -0.5, %v3725_v20  ;;  %v1281_v6 = vand.u32 2147483647, %v3725_v20 }
 0x239   : > { %v3729_v3 = vpop.eup %3728  ;;  %3736 = vtanh.f32 %v2596_v33  ;;  %v1293_v58 = vadd.f32 1.0, %v3727_v45  ;;  %v1296_v24 = vmul.f32 -0.5, %v3727_v45  ;;  %v1299_v31 = vand.u32 2147483647, %v3727_v45 }
 0x23a   : > { %3738 = vlog2.f32 %v1275_v9  ;;  %v1284_v39 = vadd.f32 1.0, %v3729_v3  ;;  %v1287_v13 = vmul.f32 -0.5, %v3729_v3  ;;  %v1100_v2 = vmax.f32 %v4665_v11, 0.0 }
 0x23b   : > { %3740 = vlog2.f32 %v1293_v58  ;;  %v1714_v59 = vmul.f32 1.442695, %v1684_v49  ;;  %v1101_v37 = vmax.f32 %v4671_v22, 0.0  ;;  %v1279_v19 = vadd.f32 1.0, %v1278_v27 }
 0x23c   : > { %v3731_v15 = vpop.eup %3730  ;;  %3742 = vlog2.f32 %v1284_v39  ;;  %v2353_v56 = vmul.f32 1.442695, %v2314_v21  ;;  %v1297_v54 = vadd.f32 1.0, %v1296_v24  ;;  %v1290_v50 = vand.u32 2147483647, %v3729_v3 }
 0x23d   : > { %v4720_v34 = vpop.eup %3732  ;;  %3744 = vpow2.f32 %v2347_v29  ;;  %vm4724_vm3 = vcmp.lt.f32.partialorder %v1281_v6, 0.0004427343  ;;  %vm4728_vm4 = vcmp.lt.f32.partialorder %v1299_v31, 0.0004427343  ;;  %v1288_v28 = vadd.f32 1.0, %v1287_v13 }
 0x23e   : > { %v3735_v57 = vpop.eup %3734  ;;  %3746 = vpow2.f32 %v1714_v59  ;;  %v1826_v60 = vadd.f32 1.0, %v4720_v34  ;;  %v2641_v1 = vmul.f32 %v3731_v15, %v4608_v38  ;;  %v1280_v43 = vmul.f32 %v3725_v20, %v1279_v19  ;;  %v2163_v59 = vld [vmem:[#allocation2] sm:$0xff] }
 0x23f   : > { %v3737_v35 = vpop.eup %3736  ;;  %v1302_v0 = vadd.f32 1.0, %v3735_v57  ;;  %v1305_v42 = vmul.f32 -0.5, %v3735_v57  ;;  %v1829_v51 = vmul.f32 -0.5, %v4720_v34  ;;  %v1298_v18 = vmul.f32 %v3727_v45, %v1297_v54  ;;  %v2166_v54 = vld [vmem:[#allocation2 + $0x18] sm:$0xff] }
 0x240   : > { %v3739_v25 = vpop.eup %3738  ;;  %v2644_v4 = vmul.f32 %v3737_v35, %v4615_v53  ;;  %3748 = vlog2.f32 %v1826_v60  ;;  %vm4735_vm5 = vcmp.lt.f32.partialorder %v1290_v50, 0.0004427343  ;;  %v1289_v16 = vmul.f32 %v3729_v3, %v1288_v28 }
 0x241   : > { %v3741_v7 = vpop.eup %3740  ;;  %v1277_v30 = vmul.f32 0.6931472, %v3739_v25  ;;  %3750 = vlog2.f32 %v1302_v0  ;;  %v1306_v20 = vadd.f32 1.0, %v1305_v42  ;;  %v1308_v33 = vand.u32 2147483647, %v3735_v57 }
 0x242   : > { %v3743_v14 = vpop.eup %3742  ;;  %v2701_v41 = vpack.c.bf16 %v2644_v4, %v2641_v1  ;;  %v1295_v46 = vmul.f32 0.6931472, %v3741_v7  ;;  %3752 = vpow2.f32 %v2353_v56  ;;  %v1830_v49 = vadd.f32 1.0, %v1829_v51 }
 0x243   : > { %v4739_v8 = vpop.eup %3744  ;;  %v1283_v38 = vsel %vm4724_vm3, %v1280_v43, %v1277_v30  ;;  %v1286_v53 = vmul.f32 0.6931472, %v3743_v14  ;;  %v1832_v58 = vand.u32 2147483647, %v4720_v34  ;;  %v1102_v24 = vmax.f32 %v4702_v23, 0.0 }
 0x244   : > { %v3747_v61 = vpop.eup %3746  ;;  %2855 = vmatmul.bf16.vlgmr.msra.gmra.mxu1 %v2701_v41  ;;  %v1301_v5 = vsel %vm4728_vm4, %v1298_v18, %v1295_v46  ;;  %v1323_v17 = vadd.f32 %v1283_v38, %v1099_v26  ;;  %v2479_v3 = vadd.f32 1.0, %v4739_v8  ;;  %v1650_v6 = vmax.f32 %v4688_v52, 0.0 }
 0x245   : > { %v1325_v45 = vadd.f32 %v1301_v5, %v1101_v37  ;;  %v1292_v9 = vsel %vm4735_vm5, %v1289_v16, %v1286_v53  ;;  %v1844_v21 = vadd.f32 1.0, %v3747_v61  ;;  %v1307_v13 = vmul.f32 %v3735_v57, %v1306_v20 }
 0x246   : > { %v3749_v27 = vpop.eup %3748  ;;  %3754 = vtanh.f32 %v1323_v17  ;;  %v1324_v39 = vadd.f32 %v1292_v9, %v1100_v2  ;;  %v1847_v26 = vmul.f32 -0.5, %v3747_v61  ;;  %vm1309_vm6 = vcmp.lt.f32.partialorder %v1308_v33, 0.0004427343 }
 0x247   : > { %v3751_v29 = vpop.eup %3750  ;;  %3756 = vtanh.f32 %v1325_v45  ;;  %v1828_v15 = vmul.f32 0.6931472, %v3749_v27  ;;  %v1831_v19 = vmul.f32 %v4720_v34, %v1830_v49  ;;  %v2482_v56 = vmul.f32 -0.5, %v4739_v8 }
 0x248   : > { %v1304_v31 = vmul.f32 0.6931472, %v3751_v29  ;;  %v4751_v37 = vpop.eup %3752  ;;  %3758 = vlog2.f32 %v1844_v21  ;;  %vm4755_vm7 = vcmp.lt.f32.partialorder %v1832_v58, 0.0004427343  ;;  %v1850_v35 = vand.u32 2147483647, %v3747_v61 }
 0x249   : > { %3760 = vlog2.f32 %v2479_v3  ;;  %v2506_v2 = vadd.f32 1.0, %v4751_v37  ;;  %v2196_v36 = vmul.f32 %v4583_v62, %v2163_v59  ;;  %v1834_v34 = vsel %vm4755_vm7, %v1831_v19, %v1828_v15 }
 0x24a   : > { %v1310_v50 = vsel %vm1309_vm6, %v1307_v13, %v1304_v31  ;;  %3762 = vtanh.f32 %v1324_v39  ;;  %v1848_v28 = vadd.f32 1.0, %v1847_v26  ;;  %v2509_v0 = vmul.f32 -0.5, %v4751_v37 }
 0x24b   : > { %v1326_v57 = vadd.f32 %v1310_v50, %v1102_v24  ;;  %v2199_v25 = vmul.f32 %v4583_v62, %v2166_v54  ;;  %v2483_v42 = vadd.f32 1.0, %v2482_v56  ;;  %v2485_v7 = vand.u32 2147483647, %v4739_v8 }
 0x24c   : > { %v3755_v10 = vpop.eup %3754  ;;  %v4769_v43 = vadd.f32 %v4604_v32, %v2196_v36  ;;  %v1652_v41 = vmax.f32 %v4705_v44, 0.0  ;;  %vm4775_vm8 = vcmp.lt.f32.partialorder %v1850_v35, 0.0004427343  ;;  %v2263_v18 = vmax.f32 %v4668_v40, 0.0 }
 0x24d   : > { %v3757_v1 = vpop.eup %3756  ;;  %v1355_v4 = vmul.f32 %v3755_v10, %v4654_v47  ;;  %3764 = vtanh.f32 %v1326_v57  ;;  %v4772_v51 = vadd.f32 %v4604_v32, %v2199_v25  ;;  %v1874_v47 = vadd.f32 %v1834_v34, %v1650_v6 }
 0x24e   : > { %v1357_v30 = vmul.f32 %v3757_v1, %v4671_v22  ;;  %3766 = vlog2.f32 %v2506_v2  ;;  %v3759_v14 = vpop.eup %3758  ;;  %v1849_v53 = vmul.f32 %v3747_v61, %v1848_v28  ;;  %v2510_v16 = vadd.f32 1.0, %v2509_v0 }
 0x24f   : > { %v3761_v63 = vpop.eup %3760  ;;  %v1846_v22 = vmul.f32 0.6931472, %v3759_v14  ;;  %v2484_v20 = vmul.f32 %v4739_v8, %v2483_v42  ;;  %v2275_v33 = vand.u32 2147483647, %v4769_v43  ;;  %v2278_v45 = vand.u32 2147483647, %v4772_v51 }
 0x250   : > { %v1389_v38 = vpack.c.bf16 %v1357_v30, %v1355_v4  ;;  %v3763_v5 = vpop.eup %3762  ;;  %v2481_v17 = vmul.f32 0.6931472, %v3761_v63  ;;  %v2266_v49 = vmax.f32 %v4684_v55, 0.0  ;;  %vm2486_vm9 = vcmp.lt.f32.partialorder %v2485_v7, 0.0004427343 }
 0x251   : > { %v1852_v9 = vsel %vm4775_vm8, %v1849_v53, %v1846_v22  ;;  %v2512_v21 = vand.u32 2147483647, %v4751_v37  ;;  %3768 = vtanh.f32 %v1874_v47  ;;  %v2299_v3 = vsub.f32 0.0, %v2275_v33 }
 0x252   : > { %1502 = vmatmul.bf16.gmra.mxu2 %v1389_v38  ;;  %v1876_v61 = vadd.f32 %v1852_v9, %v1652_v41  ;;  %v2487_v58 = vsel %vm2486_vm9, %v2484_v20, %v2481_v17  ;;  %v1356_v8 = vmul.f32 %v3763_v5, %v4665_v11  ;;  %v2302_v6 = vsub.f32 0.0, %v2278_v45 }
 0x253   : > { %v3765_v27 = vpop.eup %3764  ;;  %v2599_v39 = vadd.f32 %v2487_v58, %v2263_v18  ;;  %v2511_v13 = vmul.f32 %v4751_v37, %v2510_v16  ;;  %v2323_v15 = vmul.f32 1.442695, %v2299_v3  ;;  %vm2513_vm10 = vcmp.lt.f32.partialorder %v2512_v21, 0.0004427343 }
 0x254   : > { %v3767_v29 = vpop.eup %3766  ;;  %v1358_v24 = vmul.f32 %v3765_v27, %v4702_v23  ;;  %3770 = vtanh.f32 %v1876_v61  ;;  %v2329_v59 = vmul.f32 1.442695, %v2302_v6  ;;  %v2214_v11 = vmul.f32 %v4583_v62, %v4637_v48 }
 0x255   : > { %v2508_v31 = vmul.f32 0.6931472, %v3767_v29  ;;  %3772 = vtanh.f32 %v2599_v39  ;;  %v2217_v23 = vmul.f32 %v4583_v62, %v4651_v12  ;;  %v2251_v53 = vmax.f32 %v4769_v43, 0.0 }
 0x256   : > { %v1390_v26 = vpack.c.bf16 %v1358_v24, %v1356_v8  ;;  %3774 = vpow2.f32 %v2323_v15  ;;  %v4796_v37 = vadd.f32 %v4604_v32, %v2214_v11  ;;  %v2254_v16 = vmax.f32 %v4772_v51, 0.0  ;;  %v3558_v15 = vld [vmem:[%s5260_s10] ss:$0 sm:$0xff] }
 0x257   : > { %v2514_v19 = vsel %vm2513_vm10, %v2511_v13, %v2508_v31  ;;  %3776 = vpow2.f32 %v2329_v59  ;;  %v3769_v54 = vpop.eup %3768  ;;  %v4799_v50 = vadd.f32 %v4604_v32, %v2217_v23  ;;  %vm1569_vm15 = vcmask 916896  }
 0x258   : > { %3321 = vmatmul.msk.bf16.gmra.mxu3 %vm1011_vm13, %v1390_v26  ;;  %v2602_v56 = vadd.f32 %v2514_v19, %v2266_v49  ;;  %v1906_v57 = vmul.f32 %v3769_v54, %v4688_v52  ;;  %v2293_v36 = vand.u32 2147483647, %v4796_v37  ;;  %v2269_v59 = vmax.f32 %v4796_v37, 0.0 }
 0x259   : > { %v2296_v10 = vand.u32 2147483647, %v4799_v50  ;;  %vm2042_vm2 = vcmask 916480   ;;  %vm2145_vm9 = vcmask 1048448   ;;  %vm2147_vm10 = vcmask 359424  }
 0x25a   : > { %3778 = vtanh.f32 %v2602_v56  ;;  %v3771_v60 = vpop.eup %3770  ;;  %v2317_v25 = vsub.f32 0.0, %v2293_v36 }
 0x25b   : > { %v3773_v2 = vpop.eup %3772  ;;  %v1908_v35 = vmul.f32 %v3771_v60, %v4705_v44  ;;  %v2320_v4 = vsub.f32 0.0, %v2296_v10  ;;  %v2272_v60 = vmax.f32 %v4799_v50, 0.0 }
 0x25c   : > { %v3775_v48 = vpop.eup %3774  ;;  %v2647_v52 = vmul.f32 %v3773_v2, %v4668_v40  ;;  %v2359_v42 = vmul.f32 1.442695, %v2317_v25 }
 0x25d   : > { %v3777_v62 = vpop.eup %3776  ;;  %v1947_v12 = vpack.c.bf16 %v1908_v35, %v1906_v57  ;;  %v2371_v34 = vadd.f32 1.0, %v3775_v48  ;;  %v2374_v28 = vmul.f32 -0.5, %v3775_v48  ;;  %v2365_v7 = vmul.f32 1.442695, %v2320_v4 }
 0x25e   : > { %v2398_v0 = vadd.f32 1.0, %v3777_v62  ;;  %v2401_v32 = vmul.f32 -0.5, %v3777_v62  ;;  %v2377_v41 = vand.u32 2147483647, %v3775_v48  ;;  %v2404_v47 = vand.u32 2147483647, %v3777_v62 }
 0x25f   : > { %2078 = vmatmul.bf16.gmra.mxu0 %v1947_v12  ;;  %3780 = vlog2.f32 %v2371_v34  ;;  %v2375_v14 = vadd.f32 1.0, %v2374_v28 }
 0x260   : > { %v3779_v1 = vpop.eup %3778  ;;  %3782 = vlog2.f32 %v2398_v0  ;;  %v2402_v46 = vadd.f32 1.0, %v2401_v32  ;;  %vm2378_vm13 = vcmp.lt.f32.partialorder %v2377_v41, 0.0004427343  ;;  %vm2405_vm11 = vcmp.lt.f32.partialorder %v2404_v47, 0.0004427343 }
 0x261   : > { %v2650_v44 = vmul.f32 %v3779_v1, %v4684_v55  ;;  %3784 = vpow2.f32 %v2359_v42  ;;  %v2376_v22 = vmul.f32 %v3775_v48, %v2375_v14 }
 0x262   : > { %3786 = vpow2.f32 %v2365_v7  ;;  %v2403_v55 = vmul.f32 %v3777_v62, %v2402_v46 }
 0x263   : > { %v2704_v30 = vpack.c.bf16 %v2650_v44, %v2647_v52 }
 0x265   : > { %2860 = vmatmul.bf16.gmra.mxu1 %v2704_v30  ;;  %v3781_v18 = vpop.eup %3780 }
 0x266   : > { %v3783_v63 = vpop.eup %3782  ;;  %v2373_v38 = vmul.f32 0.6931472, %v3781_v18 }
 0x267   : > { %v2400_v40 = vmul.f32 0.6931472, %v3783_v63  ;;  %v3785_v17 = vpop.eup %3784 }
 0x268   : > { %v2379_v5 = vsel %vm2378_vm13, %v2376_v22, %v2373_v38  ;;  %v3787_v45 = vpop.eup %3786  ;;  %v2533_v49 = vadd.f32 1.0, %v3785_v17  ;;  %v2536_v27 = vmul.f32 -0.5, %v3785_v17  ;;  %v2539_v29 = vand.u32 2147483647, %v3785_v17 }
 0x269   : > { %v2406_v20 = vsel %vm2405_vm11, %v2403_v55, %v2400_v40  ;;  %v2587_v33 = vadd.f32 %v2379_v5, %v2251_v53  ;;  %v2560_v21 = vadd.f32 1.0, %v3787_v45  ;;  %v2563_v61 = vmul.f32 -0.5, %v3787_v45 }
 0x26a   : > { %v2590_v9 = vadd.f32 %v2406_v20, %v2254_v16  ;;  %v2537_v58 = vadd.f32 1.0, %v2536_v27  ;;  %v2566_v39 = vand.u32 2147483647, %v3787_v45  ;;  %vm2540_vm12 = vcmp.lt.f32.partialorder %v2539_v29, 0.0004427343  ;;  %v3503_v29 = vld [vmem:[%s5263_s13 + $0x58] sm:$0xff] }
 0x26b   : > { %3788 = vtanh.f32 %v2587_v33  ;;  %v2564_v8 = vadd.f32 1.0, %v2563_v61  ;;  %v3506_v61 = vld [vmem:[%s5263_s13 + $0x70] sm:$0xff]  ;;  %vm2838_vm13 = vcmask 1045504  }
 0x26c   : > { %3790 = vtanh.f32 %v2590_v9  ;;  %v2538_v56 = vmul.f32 %v3785_v17, %v2537_v58  ;;  %vm2567_vm14 = vcmp.lt.f32.partialorder %v2566_v39, 0.0004427343  ;;  %2085 = vmatpush.bf16.msrb.mxu3 %v3506_v61  ;;  %v3505_v58 = vld [vmem:[%s5263_s13 + $0x68] sm:$0xff] }
 0x26d   : > { %3792 = vlog2.f32 %v2533_v49  ;;  %v2565_v54 = vmul.f32 %v3787_v45, %v2564_v8  ;;  %v3502_v8 = vld [vmem:[%s5263_s13 + $0x50] sm:$0xff]  ;;  %v3501_v39 = vld [vmem:[%s5263_s13 + $0x48] sm:$0xff] }
 0x26e   : > { %3794 = vlog2.f32 %v2560_v21 }
 0x270   : > { %2086 = vmatpush.bf16.msrb.mxu3 %v3505_v58 }
 0x271   : > { %v3789_v3 = vpop.eup %3788 }
 0x272   : > { %v3791_v24 = vpop.eup %3790  ;;  %v2635_v31 = vmul.f32 %v3789_v3, %v4769_v43  ;;  %v3504_v3 = vld [vmem:[%s5263_s13 + $0x60] sm:$0xff] }
 0x273   : > { %v3793_v6 = vpop.eup %3792  ;;  %v2638_v13 = vmul.f32 %v3791_v24, %v4772_v51 }
 0x274   : > { %v3795_v26 = vpop.eup %3794  ;;  %v2535_v19 = vmul.f32 0.6931472, %v3793_v6  ;;  %2087 = vmatpush.bf16.msrb.mxu3 %v3504_v3  ;;  %v3500_v6 = vld [vmem:[%s5263_s13 + $0x40] sm:$0xff] }
 0x275   : > { %v2698_v11 = vpack.c.bf16 %v2638_v13, %v2635_v31  ;;  %v2562_v23 = vmul.f32 0.6931472, %v3795_v26  ;;  %v1517_v43 = vpop.f32.mrf.mxu1  ;;  %v3962_v13 = vld [vmem:[%s5261_s11] sm:$0x3] }
 0x276   : > { %v2541_v2 = vsel %vm2540_vm12, %v2538_v56, %v2535_v19  ;;  %v3963_v26 = vld [vmem:[%s5262_s12] sm:$0x3] }
 0x277   : > { %2850 = vmatmul.bf16.vlgmr.msra.gmra.mxu0 %v2698_v11  ;;  %v2568_v51 = vsel %vm2567_vm14, %v2565_v54, %v2562_v23  ;;  %v2605_v35 = vadd.f32 %v2541_v2, %v2269_v59  ;;  %v4861_v59 = vperm.slane %v3963_v26, 1 }
 0x278   : > { %v1488_v57 = vpop.f32.mrf.mxu2  ;;  %v2608_v48 = vadd.f32 %v2568_v51, %v2272_v60  ;;  %2088 = vmatpush.bf16.msrb.mxu3 %v3503_v29 }
 0x279   : > { %v1489_v36 = vadd.f32 %v3558_v15, %v1488_v57  ;;  %3796 = vtanh.f32 %v2605_v35 }
 0x27a   : > { %3798 = vtanh.f32 %v2608_v48 }
 0x27b   : > { %v1518_v10 = vadd.f32 %v1517_v43, %v1489_v36 }
 0x27c   : > { %2089 = vmatpush.bf16.msrb.mxu3 %v3502_v8 }
 0x27d   : > { %1545 = vrot.lane.b32.xlu2 %v1518_v10, %s3975_s29  ;;  %v1519_v0 = vpop.f32.mrf.mxu1 }
 0x27f   : > { %v3797_v12 = vpop.eup %3796 }
 0x280   : > { %v1490_v62 = vpop.f32.mrf.mxu2  ;;  %v3799_v28 = vpop.eup %3798  ;;  %v2653_v25 = vmul.f32 %v3797_v12, %v4796_v37  ;;  %2090 = vmatpush.bf16.msrb.mxu3 %v3501_v39 }
 0x281   : > { %v1491_v34 = vadd.f32 %v3558_v15, %v1490_v62  ;;  %v2656_v1 = vmul.f32 %v3799_v28, %v4799_v50 }
 0x283   : > { %v1520_v32 = vadd.f32 %v1519_v0, %v1491_v34  ;;  %v2707_v4 = vpack.c.bf16 %v2656_v1, %v2653_v25 }
 0x284   : > { %2091 = vmatpush.bf16.msrb.mxu3 %v3500_v6 }
 0x285   : > { %1547 = vrot.lane.b32.xlu0 %v1520_v32, %s3975_s29  ;;  %2865 = vmatmul.bf16.gmra.mxu1 %v2707_v4 }
 0x28f   : > { %v1527_v37 = vpop.f32.mrf.mxu3 }
 0x297   : > { %v1522_v52 = vpop.f32.mrf.mxu1  ;;  %v1529_v22 = vpop.f32.mrf.mxu3 }
 0x299   : > { %v1493_v44 = vpop.f32.mrf.mxu2 }
 0x29a   : > { %v1494_v42 = vadd.f32 %v3558_v15, %v1493_v44 }
 0x29c   : > { %v1523_v7 = vadd.f32 %v1522_v52, %v1494_v42 }
 0x29e   : > { %1549 = vrot.lane.b32.xlu1 %v1523_v7, %s3975_s29 }
 0x29f   : > { %v1524_v41 = vpop.f32.mrf.mxu1 }
 0x2a1   : > { %v1495_v30 = vpop.f32.mrf.mxu2 }
 0x2a2   : > { %v1496_v14 = vadd.f32 %v3558_v15, %v1495_v30 }
 0x2a4   : > { %v1525_v46 = vadd.f32 %v1524_v41, %v1496_v14 }
 0x2a6   : > { %1551 = vrot.lane.b32.xlu2 %v1525_v46, %s3975_s29 }
 0x2b4   : > { %v1498_v47 = vpop.f32.mrf.mxu2 }
 0x2b5   : > { %v1499_v50 = vadd.f32 %v3558_v15, %v1498_v47 }
 0x2b7   : > { %v1528_v18 = vadd.f32 %v1527_v37, %v1499_v50 }
 0x2b9   : > { %1553 = vrot.lane.b32.xlu0 %v1528_v18, %s3975_s29 }
 0x2bc   : > { %v1500_v63 = vpop.f32.mrf.mxu2 }
 0x2bd   : > { %v1501_v38 = vadd.f32 %v3558_v15, %v1500_v63 }
 0x2bf   : > { %v1530_v53 = vadd.f32 %v1529_v22, %v1501_v38 }
 0x2c1   : > { %1555 = vrot.lane.b32.xlu1 %v1530_v53, %s3975_s29 }
 0x2d5   : > { %v1503_v40 = vpop.f32.mrf.mxu2 }
 0x2d6   : > { %v1504_v55 = vadd.f32 %v3558_v15, %v1503_v40 }
 0x2d7   : > { %v1546_v9 = vpop.permute.xlu2 %1545 }
 0x2d8   : > { %1570 = vst.msk [vmem:[#allocation2 + $0x8] sm:$0xff] %vm1569_vm15, %v1546_v9 }
 0x2db   : > { %v1532_v16 = vpop.f32.mrf.mxu3 }
 0x2dc   : > { %v1533_v5 = vadd.f32 %v1532_v16, %v1504_v55 }
 0x2dd   : > { %v1505_v17 = vpop.f32.mrf.mxu2 }
 0x2de   : > { %1557 = vrot.lane.b32.xlu2 %v1533_v5, %s3975_s29  ;;  %v1506_v20 = vadd.f32 %v3558_v15, %v1505_v17  ;;  %v4856_v15 = vperm.slane %v3962_v13, 1 }
 0x2df   : > { %v1579_v56 = vld [vmem:[#allocation2 + $0x8] sm:$0xff] }
 0x2e0   : > { %v1602_v23 = vmul.f32 %v4856_v15, %v1579_v56 }
 0x2e2   : > { %v4867_v60 = vadd.f32 %v4861_v59, %v1602_v23 }
 0x2e3   : > { %v1534_v33 = vpop.f32.mrf.mxu3 }
 0x2e4   : > { %v1535_v45 = vadd.f32 %v1534_v33, %v1506_v20  ;;  %v1655_v43 = vand.u32 2147483647, %v4867_v60  ;;  %v1639_v22 = vmax.f32 %v4867_v60, 0.0 }
 0x2e6   : > { %1559 = vrot.lane.b32.xlu0 %v1535_v45, %s3975_s29  ;;  %v1671_v51 = vsub.f32 0.0, %v1655_v43 }
 0x2e8   : > { %v1688_v36 = vmul.f32 1.442695, %v1671_v51 }
 0x2ea   : > { %3800 = vpow2.f32 %v1688_v36 }
 0x2f0   : > { %v3801_v25 = vpop.eup %3800 }
 0x2f1   : > { %v1727_v52 = vadd.f32 1.0, %v3801_v25  ;;  %v1730_v44 = vmul.f32 -0.5, %v3801_v25  ;;  %v1733_v47 = vand.u32 2147483647, %v3801_v25 }
 0x2f3   : > { %v1731_v37 = vadd.f32 1.0, %v1730_v44  ;;  %vm1734_vm0 = vcmp.lt.f32.partialorder %v1733_v47, 0.0004427343 }
 0x2f5   : > { %v1732_v55 = vmul.f32 %v3801_v25, %v1731_v37 }
 0x2f7   : > { %v1548_v49 = vpop.permute.xlu0 %1547 }
 0x2f8   : > { %1571 = vst.msk [vmem:[#allocation2 + $0x20] sm:$0xff] %vm1569_vm15, %v1548_v49 }
 0x2ff   : > { %v1581_v11 = vld [vmem:[#allocation2 + $0x20] sm:$0xff] }
 0x300   : > { %v1552_v21 = vpop.permute.xlu2 %1551  ;;  %v1604_v54 = vmul.f32 %v4856_v15, %v1581_v11 }
 0x301   : > { %1573 = vst.msk [vmem:[#allocation2 + $0x50] sm:$0xff] %vm1569_vm15, %v1552_v21 }
 0x302   : > { %v4870_v2 = vadd.f32 %v4861_v59, %v1604_v54 }
 0x304   : > { %v1657_v57 = vand.u32 2147483647, %v4870_v2  ;;  %v1641_v53 = vmax.f32 %v4870_v2, 0.0 }
 0x306   : > { %v1673_v35 = vsub.f32 0.0, %v1657_v57 }
 0x308   : > { %v1692_v48 = vmul.f32 1.442695, %v1673_v35  ;;  %v1585_v62 = vld [vmem:[#allocation2 + $0x50] sm:$0xff] }
 0x309   : > { %v1608_v34 = vmul.f32 %v4856_v15, %v1585_v62 }
 0x30a   : > { %3802 = vpow2.f32 %v1692_v48 }
 0x30b   : > { %v4880_v0 = vadd.f32 %v4861_v59, %v1608_v34  ;;  %3804 = vlog2.f32 %v1727_v52 }
 0x30d   : > { %v1661_v32 = vand.u32 2147483647, %v4880_v0  ;;  %v1645_v44 = vmax.f32 %v4880_v0, 0.0 }
 0x30f   : > { %v1677_v14 = vsub.f32 0.0, %v1661_v32 }
 0x310   : > { %v1550_v27 = vpop.permute.xlu1 %1549  ;;  %v3803_v4 = vpop.eup %3802 }
 0x311   : > { %1572 = vst.msk [vmem:[#allocation2 + $0x38] sm:$0xff] %vm1569_vm15, %v1550_v27  ;;  %v1745_v42 = vadd.f32 1.0, %v3803_v4  ;;  %v1748_v30 = vmul.f32 -0.5, %v3803_v4  ;;  %v1700_v46 = vmul.f32 1.442695, %v1677_v14  ;;  %v3805_v63 = vpop.eup %3804 }
 0x312   : > { %v1751_v18 = vand.u32 2147483647, %v3803_v4  ;;  %v1729_v40 = vmul.f32 0.6931472, %v3805_v63 }
 0x313   : > { %3806 = vlog2.f32 %v1745_v42  ;;  %v1749_v50 = vadd.f32 1.0, %v1748_v30 }
 0x314   : > { %v1735_v45 = vsel %vm1734_vm0, %v1732_v55, %v1729_v40  ;;  %vm1752_vm1 = vcmp.lt.f32.partialorder %v1751_v18, 0.0004427343 }
 0x315   : > { %v1750_v5 = vmul.f32 %v3803_v4, %v1749_v50  ;;  %v1863_v61 = vadd.f32 %v1735_v45, %v1639_v22 }
 0x318   : > { %v1583_v10 = vld [vmem:[#allocation2 + $0x38] sm:$0xff] }
 0x319   : > { %v1606_v12 = vmul.f32 %v4856_v15, %v1583_v10  ;;  %v3807_v38 = vpop.eup %3806 }
 0x31a   : > { %v1747_v16 = vmul.f32 0.6931472, %v3807_v38 }
 0x31b   : > { %v4877_v28 = vadd.f32 %v4861_v59, %v1606_v12 }
 0x31c   : > { %v1753_v27 = vsel %vm1752_vm1, %v1750_v5, %v1747_v16 }
 0x31d   : > { %v1659_v1 = vand.u32 2147483647, %v4877_v28  ;;  %v1865_v29 = vadd.f32 %v1753_v27, %v1641_v53  ;;  %v1643_v62 = vmax.f32 %v4877_v28, 0.0 }
 0x31f   : > { %v1675_v7 = vsub.f32 0.0, %v1659_v1 }
 0x321   : > { %v1696_v41 = vmul.f32 1.442695, %v1675_v7 }
 0x323   : > { %3808 = vpow2.f32 %v1696_v41 }
 0x324   : > { %3810 = vpow2.f32 %v1700_v46 }
 0x325   : > { %3812 = vtanh.f32 %v1863_v61 }
 0x326   : > { %3814 = vtanh.f32 %v1865_v29 }
 0x329   : > { %v3809_v33 = vpop.eup %3808 }
 0x32a   : > { %v3811_v21 = vpop.eup %3810  ;;  %v1763_v58 = vadd.f32 1.0, %v3809_v33  ;;  %v1766_v39 = vmul.f32 -0.5, %v3809_v33  ;;  %v1769_v56 = vand.u32 2147483647, %v3809_v33 }
 0x32b   : > { %v1554_v24 = vpop.permute.xlu0 %1553  ;;  %v1781_v8 = vadd.f32 1.0, %v3811_v21  ;;  %v3813_v23 = vpop.eup %3812  ;;  %v1787_v51 = vand.u32 2147483647, %v3811_v21 }
 0x32c   : > { %1574 = vst.msk [vmem:[#allocation2 + $0x68] sm:$0xff] %vm1569_vm15, %v1554_v24  ;;  %3816 = vlog2.f32 %v1763_v58  ;;  %v3815_v57 = vpop.eup %3814  ;;  %v1895_v48 = vmul.f32 %v3813_v23, %v4867_v60  ;;  %vm1770_vm3 = vcmp.lt.f32.partialorder %v1769_v56, 0.0004427343 }
 0x32d   : > { %3818 = vlog2.f32 %v1781_v8  ;;  %v1897_v10 = vmul.f32 %v3815_v57, %v4870_v2  ;;  %vm1788_vm4 = vcmp.lt.f32.partialorder %v1787_v51, 0.0004427343 }
 0x32f   : > { %v1942_v32 = vpack.c.bf16 %v1897_v10, %v1895_v48 }
 0x331   : > { %3382 = vmatmul.msk.bf16.vlgmr.msrb.gmra.mxu3 %vm2042_vm2, %v1942_v32 }
 0x332   : > { %v3817_v36 = vpop.eup %3816 }
 0x333   : > { %v1556_v31 = vpop.permute.xlu1 %1555  ;;  %v1587_v17 = vld [vmem:[#allocation2 + $0x68] sm:$0xff]  ;;  %v3819_v34 = vpop.eup %3818  ;;  %v1765_v25 = vmul.f32 0.6931472, %v3817_v36 }
 0x334   : > { %1575 = vst.msk [vmem:[#allocation2 + $0x80] sm:$0xff] %vm1569_vm15, %v1556_v31  ;;  %v1610_v9 = vmul.f32 %v4856_v15, %v1587_v17  ;;  %v1784_v31 = vmul.f32 -0.5, %v3811_v21  ;;  %v1783_v4 = vmul.f32 0.6931472, %v3819_v34 }
 0x336   : > { %v4890_v24 = vadd.f32 %v4861_v59, %v1610_v9  ;;  %v1785_v54 = vadd.f32 1.0, %v1784_v31 }
 0x338   : > { %v1558_v19 = vpop.permute.xlu2 %1557  ;;  %v1663_v13 = vand.u32 2147483647, %v4890_v24  ;;  %v1786_v52 = vmul.f32 %v3811_v21, %v1785_v54  ;;  %v1647_v29 = vmax.f32 %v4890_v24, 0.0 }
 0x339   : > { %1576 = vst.msk [vmem:[#allocation2 + $0x98] sm:$0xff] %vm1569_vm15, %v1558_v19  ;;  %v1767_v19 = vadd.f32 1.0, %v1766_v39 }
 0x33a   : > { %v1679_v11 = vsub.f32 0.0, %v1663_v13  ;;  %v1789_v60 = vsel %vm1788_vm4, %v1786_v52, %v1783_v4 }
 0x33b   : > { %v1589_v20 = vld [vmem:[#allocation2 + $0x80] sm:$0xff]  ;;  %v1768_v1 = vmul.f32 %v3809_v33, %v1767_v19  ;;  %v1869_v14 = vadd.f32 %v1789_v60, %v1645_v44 }
 0x33c   : > { %v1612_v49 = vmul.f32 %v4856_v15, %v1589_v20  ;;  %v1704_v35 = vmul.f32 1.442695, %v1679_v11 }
 0x33d   : > { %v1771_v42 = vsel %vm1770_vm3, %v1768_v1, %v1765_v25 }
 0x33e   : > { %v4893_v6 = vadd.f32 %v4861_v59, %v1612_v49  ;;  %3820 = vpow2.f32 %v1704_v35  ;;  %v1867_v2 = vadd.f32 %v1771_v42, %v1643_v62 }
 0x340   : > { %v1665_v26 = vand.u32 2147483647, %v4893_v6  ;;  %v1591_v7 = vld [vmem:[#allocation2 + $0x98] sm:$0xff] }
 0x341   : > { %v1614_v41 = vmul.f32 %v4856_v15, %v1591_v7 }
 0x342   : > { %v1681_v43 = vsub.f32 0.0, %v1665_v26 }
 0x343   : > { %v4905_v47 = vadd.f32 %v4861_v59, %v1614_v41 }
 0x344   : > { %v1708_v12 = vmul.f32 1.442695, %v1681_v43  ;;  %v3821_v37 = vpop.eup %3820 }
 0x345   : > { %v1799_v63 = vadd.f32 1.0, %v3821_v37  ;;  %v1802_v38 = vmul.f32 -0.5, %v3821_v37  ;;  %v1667_v40 = vand.u32 2147483647, %v4905_v47  ;;  %v1805_v33 = vand.u32 2147483647, %v3821_v37 }
 0x346   : > { %3822 = vpow2.f32 %v1708_v12  ;;  %v1651_v42 = vmax.f32 %v4905_v47, 0.0 }
 0x347   : > { %3824 = vtanh.f32 %v1867_v2  ;;  %v1803_v17 = vadd.f32 1.0, %v1802_v38  ;;  %v1683_v20 = vsub.f32 0.0, %v1667_v40  ;;  %vm1806_vm5 = vcmp.lt.f32.partialorder %v1805_v33, 0.0004427343  ;;  %v2064_v38 = vpop.f32.mrf.mxu0 }
 0x348   : > { %3826 = vtanh.f32 %v1869_v14 }
 0x349   : > { %3828 = vlog2.f32 %v1799_v63  ;;  %v1712_v21 = vmul.f32 1.442695, %v1683_v20  ;;  %v1804_v39 = vmul.f32 %v3821_v37, %v1803_v17 }
 0x34c   : > { %v3823_v18 = vpop.eup %3822 }
 0x34d   : > { %v1817_v22 = vadd.f32 1.0, %v3823_v18  ;;  %v1820_v53 = vmul.f32 -0.5, %v3823_v18  ;;  %v3825_v55 = vpop.eup %3824  ;;  %v1823_v49 = vand.u32 2147483647, %v3823_v18 }
 0x34e   : > { %v3827_v16 = vpop.eup %3826  ;;  %v1899_v5 = vmul.f32 %v3825_v55, %v4877_v28 }
 0x34f   : > { %3830 = vlog2.f32 %v1817_v22  ;;  %v1821_v45 = vadd.f32 1.0, %v1820_v53  ;;  %v3829_v27 = vpop.eup %3828  ;;  %vm1824_vm6 = vcmp.lt.f32.partialorder %v1823_v49, 0.0004427343  ;;  %v2066_v22 = vpop.f32.mrf.mxu0  ;;  %v3557_v53 = vld [vmem:[%s5264_s14] ss:$0 sm:$0xff] }
 0x350   : > { %v1801_v8 = vmul.f32 0.6931472, %v3829_v27  ;;  %3832 = vpow2.f32 %v1712_v21  ;;  %v2065_v40 = vadd.f32 %v3557_v53, %v2064_v38 }
 0x351   : > { %v1822_v31 = vmul.f32 %v3823_v18, %v1821_v45 }
 0x352   : > { %v1807_v13 = vsel %vm1806_vm5, %v1804_v39, %v1801_v8 }
 0x353   : > { %v1871_v19 = vadd.f32 %v1807_v13, %v1647_v29 }
 0x358   : > { %v1560_v3 = vpop.permute.xlu0 %1559 }
 0x359   : > { %1577 = vst.msk [vmem:[#allocation2 + $0xb0] sm:$0xff] %vm1569_vm15, %v1560_v3  ;;  %v3831_v3 = vpop.eup %3830 }
 0x35a   : > { %v1819_v28 = vmul.f32 0.6931472, %v3831_v3  ;;  %v3833_v11 = vpop.eup %3832 }
 0x35b   : > { %v1835_v54 = vadd.f32 1.0, %v3833_v11  ;;  %v1838_v43 = vmul.f32 -0.5, %v3833_v11  ;;  %v1841_v12 = vand.u32 2147483647, %v3833_v11 }
 0x35c   : > { %v1825_v26 = vsel %vm1824_vm6, %v1822_v31, %v1819_v28 }
 0x35d   : > { %v1839_v48 = vadd.f32 1.0, %v1838_v43  ;;  %vm1842_vm7 = vcmp.lt.f32.partialorder %v1841_v12, 0.0004427343  ;;  %v3520_v43 = vld [vmem:[%s5267_s17 + $0x68] sm:$0xff] }
 0x35f   : > { %v1840_v44 = vmul.f32 %v3833_v11, %v1839_v48  ;;  %v3517_v48 = vld [vmem:[%s5267_s17 + $0x50] sm:$0xff] }
 0x360   : > { %v1593_v30 = vld [vmem:[#allocation2 + $0xb0] sm:$0xff] }
 0x361   : > { %v1616_v46 = vmul.f32 %v4856_v15, %v1593_v30 }
 0x363   : > { %v4908_v50 = vadd.f32 %v4861_v59, %v1616_v46  ;;  %v1901_v59 = vmul.f32 %v3827_v16, %v4880_v0  ;;  %v1649_v0 = vmax.f32 %v4893_v6, 0.0  ;;  %v2069_v16 = vpop.f32.mrf.mxu0 }
 0x364   : > { %v2070_v20 = vadd.f32 %v3557_v53, %v2069_v16 }
 0x365   : > { %v1669_v15 = vand.u32 2147483647, %v4908_v50  ;;  %v1944_v61 = vpack.c.bf16 %v1901_v59, %v1899_v5  ;;  %v1873_v56 = vadd.f32 %v1825_v26, %v1649_v0  ;;  %v1653_v7 = vmax.f32 %v4908_v50, 0.0 }
 0x366   : > { %v2067_v5 = vadd.f32 %v3557_v53, %v2066_v22 }
 0x367   : > { %v1685_v9 = vsub.f32 0.0, %v1669_v15  ;;  %3383 = vmatmul.msk.bf16.gmra.mxu3 %vm2042_vm2, %v1944_v61 }
 0x369   : > { %v1716_v58 = vmul.f32 1.442695, %v1685_v9 }
 0x36b   : > { %3834 = vpow2.f32 %v1716_v58 }
 0x36c   : > { %3836 = vtanh.f32 %v1871_v19 }
 0x36d   : > { %3838 = vtanh.f32 %v1873_v56 }
 0x36e   : > { %3840 = vlog2.f32 %v1835_v54  ;;  %v3521_v54 = vld [vmem:[%s5267_s17 + $0x70] sm:$0xff] }
 0x371   : > { %v3835_v23 = vpop.eup %3834 }
 0x372   : > { %v1853_v57 = vadd.f32 1.0, %v3835_v23  ;;  %v1856_v51 = vmul.f32 -0.5, %v3835_v23  ;;  %v3837_v35 = vpop.eup %3836  ;;  %v1859_v25 = vand.u32 2147483647, %v3835_v23 }
 0x373   : > { %v3839_v36 = vpop.eup %3838  ;;  %v1903_v10 = vmul.f32 %v3837_v35, %v4890_v24  ;;  %v3518_v35 = vld [vmem:[%s5267_s17 + $0x58] sm:$0xff] }
 0x374   : > { %3842 = vlog2.f32 %v1853_v57  ;;  %v1905_v62 = vmul.f32 %v3839_v36, %v4893_v6  ;;  %v1857_v34 = vadd.f32 1.0, %v1856_v51  ;;  %v3841_v1 = vpop.eup %3840  ;;  %vm1860_vm8 = vcmp.lt.f32.partialorder %v1859_v25, 0.0004427343  ;;  %v3519_v51 = vld [vmem:[%s5267_s17 + $0x60] sm:$0xff] }
 0x375   : > { %v1837_v52 = vmul.f32 0.6931472, %v3841_v1  ;;  %v3516_v1 = vld [vmem:[%s5267_s17 + $0x48] sm:$0xff] }
 0x376   : > { %v1946_v32 = vpack.c.bf16 %v1905_v62, %v1903_v10  ;;  %v1858_v2 = vmul.f32 %v3835_v23, %v1857_v34  ;;  %v3522_v23 = vld [vmem:[%s5267_s17 + $0x78] sm:$0xff]  ;;  %v3460_v10 = vld [vmem:[%s5267_s17 + $0x90] sm:$0xf]  ;;  %v3525_v62 = vld [vmem:[%s5267_s17 + $0x90] sm:$0x30] }
 0x377   : > { %v1843_v30 = vsel %vm1842_vm7, %v1840_v44, %v1837_v52  ;;  %2871 = vmatpush.bf16.msra.mxu2 %v3522_v23  ;;  %v3461_v12 = vor.u32 %v3525_v62, %v3460_v10  ;;  %v3523_v52 = vld [vmem:[%s5267_s17 + $0x80] sm:$0xff] }
 0x378   : > { %3384 = vmatmul.msk.bf16.gmra.mxu3 %vm2042_vm2, %v1946_v32  ;;  %v1875_v6 = vadd.f32 %v1843_v30, %v1651_v42  ;;  %v3524_v32 = vld [vmem:[%s5267_s17 + $0x88] sm:$0xff]  ;;  %v3965_v30 = vld [vmem:[%s5266_s16] sm:$0x7] }
 0x379   : > { %v2840_v34 = vsel %vm2838_vm13, %v3461_v12, 0 }
 0x37a   : > { %v3843_v4 = vpop.eup %3842  ;;  %3844 = vtanh.f32 %v1875_v6  ;;  %2905 = vmatpush.bf16.msrb.mxu0 %v2840_v34 }
 0x37b   : > { %v1855_v60 = vmul.f32 0.6931472, %v3843_v4  ;;  %2872 = vmatpush.bf16.msra.mxu2 %v3521_v54  ;;  %v3515_v4 = vld [vmem:[%s5267_s17 + $0x40] sm:$0xff] }
 0x37d   : > { %v1861_v24 = vsel %vm1860_vm8, %v1858_v2, %v1855_v60  ;;  %v3964_v2 = vld [vmem:[%s5265_s15] sm:$0x7] }
 0x37e   : > { %v1877_v14 = vadd.f32 %v1861_v24, %v1653_v7  ;;  %2906 = vmatpush.bf16.msrb.mxu0 %v3524_v32  ;;  %v4983_v7 = vperm.slane %v3964_v2, 1  ;;  %v4988_v24 = vperm.slane %v3965_v30, 1  ;;  %v5002_v16 = vperm.slane %v3964_v2, 2 }
 0x37f   : > { %2873 = vmatpush.bf16.msra.mxu2 %v3520_v43 }
 0x380   : > { %3846 = vtanh.f32 %v1877_v14  ;;  %v3845_v41 = vpop.eup %3844 }
 0x381   : > { %v1907_v37 = vmul.f32 %v3845_v41, %v4905_v47 }
 0x382   : > { %2907 = vmatpush.bf16.msrb.mxu0 %v3523_v52 }
 0x383   : > { %2874 = vmatpush.bf16.msra.mxu2 %v3519_v51 }
 0x386   : > { %v3847_v46 = vpop.eup %3846 }
 0x387   : > { %v1909_v18 = vmul.f32 %v3847_v46, %v4908_v50  ;;  %v2071_v50 = vpop.f32.mrf.mxu0  ;;  %2875 = vmatpush.bf16.msra.mxu2 %v3518_v35 }
 0x388   : > { %v2072_v9 = vadd.f32 %v3557_v53, %v2071_v50 }
 0x389   : > { %v1948_v63 = vpack.c.bf16 %v1909_v18, %v1907_v37 }
 0x38b   : > { %3385 = vmatmul.msk.bf16.gmra.mxu3 %vm2042_vm2, %v1948_v63  ;;  %2876 = vmatpush.bf16.msra.mxu2 %v3517_v48 }
 0x38f   : > { %v2074_v45 = vpop.f32.mrf.mxu0  ;;  %2877 = vmatpush.bf16.msra.mxu2 %v3516_v1 }
 0x390   : > { %v2075_v27 = vadd.f32 %v3557_v53, %v2074_v45 }
 0x393   : > { %2878 = vmatpush.bf16.msra.mxu2 %v3515_v4 }
 0x397   : > { %v2076_v61 = vpop.f32.mrf.mxu0 }
 0x398   : > { %v2077_v29 = vadd.f32 %v3557_v53, %v2076_v61 }
 0x39f   : > { %v2079_v28 = vpop.f32.mrf.mxu0 }
 0x3a0   : > { %v2080_v31 = vadd.f32 %v3557_v53, %v2079_v28 }
 0x3a7   : > { %v2081_v26 = vpop.f32.mrf.mxu0 }
 0x3a8   : > { %v2082_v19 = vadd.f32 %v3557_v53, %v2081_v26 }
 0x3b4   : > { %v2093_v55 = vpop.f32.mrf.mxu3 }
 0x3b5   : > { %v2094_v15 = vadd.f32 %v2093_v55, %v2065_v40 }
 0x3b7   : > { %2121 = vrot.lane.b32.xlu1 %v2094_v15, %s3976_s25 }
 0x3bc   : > { %v2095_v47 = vpop.f32.mrf.mxu3 }
 0x3bd   : > { %v2096_v17 = vadd.f32 %v2095_v47, %v2067_v5  ;;  %v5004_v47 = vperm.slane %v3965_v30, 2 }
 0x3bf   : > { %2123 = vrot.lane.b32.xlu2 %v2096_v17, %s3976_s25 }
 0x3ea   : > { %v2098_v59 = vpop.f32.mrf.mxu3 }
 0x3eb   : > { %v2099_v33 = vadd.f32 %v2098_v59, %v2070_v20 }
 0x3ed   : > { %2125 = vrot.lane.b32.xlu0 %v2099_v33, %s3976_s25 }
 0x3f2   : > { %v2100_v49 = vpop.f32.mrf.mxu3 }
 0x3f3   : > { %v2101_v21 = vadd.f32 %v2100_v49, %v2072_v9 }
 0x3f5   : > { %2127 = vrot.lane.b32.xlu1 %v2101_v21, %s3976_s25 }
 0x3fb   : > { %v2103_v58 = vpop.f32.mrf.mxu3 }
 0x3fc   : > { %v2104_v3 = vadd.f32 %v2103_v58, %v2075_v27 }
 0x3fe   : > { %2129 = vrot.lane.b32.xlu2 %v2104_v3, %s3976_s25 }
 0x403   : > { %v2105_v8 = vpop.f32.mrf.mxu3 }
 0x404   : > { %v2106_v39 = vadd.f32 %v2105_v8, %v2077_v29 }
 0x406   : > { %2131 = vrot.lane.b32.xlu0 %v2106_v39, %s3976_s25 }
 0x40e   : > { %v2108_v0 = vpop.f32.mrf.mxu3 }
 0x40f   : > { %v2109_v13 = vadd.f32 %v2108_v0, %v2080_v31 }
 0x411   : > { %2133 = vrot.lane.b32.xlu1 %v2109_v13, %s3976_s25 }
 0x416   : > { %v2110_v56 = vpop.f32.mrf.mxu3 }
 0x417   : > { %v2111_v11 = vadd.f32 %v2110_v56, %v2082_v19 }
 0x419   : > { %2135 = vrot.lane.b32.xlu2 %v2111_v11, %s3976_s25  ;;  %v2124_v57 = vpop.permute.xlu2 %2123 }
 0x41a   : > { %2149 = vst.msk [vmem:[#allocation2 + $0x20] sm:$0xff] %vm2145_vm9, %v2124_v57 }
 0x41b   : > { %2150 = vst.msk [vmem:[#allocation2 + $0x28] sm:$0xff] %vm2147_vm10, %v2124_v57 }
 0x421   : > { %v2167_v60 = vld [vmem:[#allocation2 + $0x20] sm:$0xff] }
 0x422   : > { %v2200_v14 = vmul.f32 %v4983_v7, %v2167_v60  ;;  %v2168_v15 = vld [vmem:[#allocation2 + $0x28] sm:$0xff] }
 0x423   : > { %v2201_v50 = vmul.f32 %v5002_v16, %v2168_v15 }
 0x424   : > { %v4996_v46 = vadd.f32 %v4988_v24, %v2200_v14 }
 0x425   : > { %v5014_v33 = vadd.f32 %v5004_v47, %v2201_v50 }
 0x426   : > { %v2279_v63 = vand.u32 2147483647, %v4996_v46  ;;  %v2255_v62 = vmax.f32 %v4996_v46, 0.0 }
 0x427   : > { %v2280_v3 = vand.u32 2147483647, %v5014_v33 }
 0x428   : > { %v2303_v22 = vsub.f32 0.0, %v2279_v63 }
 0x429   : > { %v2122_v36 = vpop.permute.xlu1 %2121  ;;  %v2304_v28 = vsub.f32 0.0, %v2280_v3 }
 0x42a   : > { %2146 = vst.msk [vmem:[#allocation2 + $0x8] sm:$0xff] %vm2145_vm9, %v2122_v36  ;;  %v2331_v40 = vmul.f32 1.442695, %v2303_v22 }
 0x42b   : > { %2148 = vst.msk [vmem:[#allocation2 + $0x10] sm:$0xff] %vm2147_vm10, %v2122_v36  ;;  %v2333_v26 = vmul.f32 1.442695, %v2304_v28 }
 0x431   : > { %v2164_v42 = vld [vmem:[#allocation2 + $0x8] sm:$0xff] }
 0x432   : > { %v2197_v6 = vmul.f32 %v4983_v7, %v2164_v42  ;;  %v2165_v55 = vld [vmem:[#allocation2 + $0x10] sm:$0xff] }
 0x433   : > { %v2198_v17 = vmul.f32 %v5002_v16, %v2165_v55 }
 0x434   : > { %v4993_v41 = vadd.f32 %v4988_v24, %v2197_v6 }
 0x435   : > { %v5011_v20 = vadd.f32 %v5004_v47, %v2198_v17 }
 0x436   : > { %v2276_v18 = vand.u32 2147483647, %v4993_v41  ;;  %v2252_v56 = vmax.f32 %v4993_v41, 0.0 }
 0x437   : > { %v2277_v61 = vand.u32 2147483647, %v5011_v20 }
 0x438   : > { %v2300_v38 = vsub.f32 0.0, %v2276_v18 }
 0x439   : > { %v2301_v29 = vsub.f32 0.0, %v2277_v61 }
 0x43a   : > { %v2325_v53 = vmul.f32 1.442695, %v2300_v38 }
 0x43b   : > { %v2327_v0 = vmul.f32 1.442695, %v2301_v29 }
 0x43c   : > { %3848 = vpow2.f32 %v2325_v53 }
 0x43d   : > { %3850 = vpow2.f32 %v2331_v40 }
 0x442   : > { %v3849_v59 = vpop.eup %3848 }
 0x443   : > { %v3851_v45 = vpop.eup %3850  ;;  %v2380_v9 = vadd.f32 1.0, %v3849_v59  ;;  %v2383_v49 = vmul.f32 -0.5, %v3849_v59  ;;  %v2386_v39 = vand.u32 2147483647, %v3849_v59 }
 0x444   : > { %v2407_v21 = vadd.f32 1.0, %v3851_v45  ;;  %v2410_v27 = vmul.f32 -0.5, %v3851_v45  ;;  %v2413_v13 = vand.u32 2147483647, %v3851_v45 }
 0x445   : > { %3852 = vlog2.f32 %v2380_v9  ;;  %v2384_v8 = vadd.f32 1.0, %v2383_v49  ;;  %vm2387_vm11 = vcmp.lt.f32.partialorder %v2386_v39, 0.0004427343 }
 0x446   : > { %3854 = vlog2.f32 %v2407_v21  ;;  %v2411_v31 = vadd.f32 1.0, %v2410_v27  ;;  %vm2414_vm12 = vcmp.lt.f32.partialorder %v2413_v13, 0.0004427343 }
 0x447   : > { %3856 = vpow2.f32 %v2327_v0  ;;  %v2385_v54 = vmul.f32 %v3849_v59, %v2384_v8 }
 0x448   : > { %3858 = vpow2.f32 %v2333_v26  ;;  %v2412_v35 = vmul.f32 %v3851_v45, %v2411_v31 }
 0x44b   : > { %v3853_v19 = vpop.eup %3852 }
 0x44c   : > { %v3855_v11 = vpop.eup %3854  ;;  %v2382_v23 = vmul.f32 0.6931472, %v3853_v19 }
 0x44d   : > { %v2409_v51 = vmul.f32 0.6931472, %v3855_v11  ;;  %v3857_v52 = vpop.eup %3856 }
 0x44e   : > { %v2388_v12 = vsel %vm2387_vm11, %v2385_v54, %v2382_v23  ;;  %v3859_v42 = vpop.eup %3858  ;;  %v2389_v60 = vadd.f32 1.0, %v3857_v52  ;;  %v2392_v2 = vmul.f32 -0.5, %v3857_v52  ;;  %v2395_v15 = vand.u32 2147483647, %v3857_v52 }
 0x44f   : > { %v2415_v34 = vsel %vm2414_vm12, %v2412_v35, %v2409_v51  ;;  %v2416_v30 = vadd.f32 1.0, %v3859_v42  ;;  %v2419_v14 = vmul.f32 -0.5, %v3859_v42  ;;  %v2422_v50 = vand.u32 2147483647, %v3859_v42 }
 0x450   : > { %v2591_v4 = vadd.f32 %v2415_v34, %v2255_v62  ;;  %v2393_v63 = vadd.f32 1.0, %v2392_v2  ;;  %vm2396_vm14 = vcmp.lt.f32.partialorder %v2395_v15, 0.0004427343  ;;  %vm2949_vm12 = vcmask 523264  }
 0x451   : > { %vm2423_vm15 = vcmp.lt.f32.partialorder %v2422_v50, 0.0004427343 }
 0x452   : > { %v2394_v45 = vmul.f32 %v3857_v52, %v2393_v63 }
 0x458   : > { %v2130_v25 = vpop.permute.xlu2 %2129 }
 0x459   : > { %2155 = vst.msk [vmem:[#allocation2 + $0x68] sm:$0xff] %vm2145_vm9, %v2130_v25 }
 0x45a   : > { %2156 = vst.msk [vmem:[#allocation2 + $0x70] sm:$0xff] %vm2147_vm10, %v2130_v25  ;;  %v2588_v25 = vadd.f32 %v2388_v12, %v2252_v56 }
 0x45c   : > { %3860 = vtanh.f32 %v2588_v25 }
 0x45d   : > { %3862 = vtanh.f32 %v2591_v4 }
 0x45e   : > { %3864 = vlog2.f32 %v2389_v60 }
 0x45f   : > { %v2126_v44 = vpop.permute.xlu0 %2125  ;;  %3866 = vlog2.f32 %v2416_v30 }
 0x460   : > { %2151 = vst.msk [vmem:[#allocation2 + $0x38] sm:$0xff] %vm2145_vm9, %v2126_v44  ;;  %v2176_v28 = vld [vmem:[#allocation2 + $0x68] sm:$0xff] }
 0x461   : > { %2152 = vst.msk [vmem:[#allocation2 + $0x40] sm:$0xff] %vm2147_vm10, %v2126_v44  ;;  %v2177_v31 = vld [vmem:[#allocation2 + $0x70] sm:$0xff] }
 0x462   : > { %v3861_v22 = vpop.eup %3860  ;;  %v2210_v51 = vmul.f32 %v5002_v16, %v2177_v31 }
 0x463   : > { %v3863_v40 = vpop.eup %3862  ;;  %v2636_v55 = vmul.f32 %v3861_v22, %v4993_v41  ;;  %v2253_v41 = vmax.f32 %v5011_v20, 0.0 }
 0x464   : > { %v2639_v17 = vmul.f32 %v3863_v40, %v4996_v46  ;;  %v3865_v59 = vpop.eup %3864  ;;  %v2256_v46 = vmax.f32 %v5014_v33, 0.0  ;;  %v5054_v34 = vadd.f32 %v5004_v47, %v2210_v51 }
 0x465   : > { %v3867_v21 = vpop.eup %3866  ;;  %v2391_v61 = vmul.f32 0.6931472, %v3865_v59 }
 0x466   : > { %v2699_v27 = vpack.c.bf16 %v2639_v17, %v2636_v55  ;;  %v2418_v29 = vmul.f32 0.6931472, %v3867_v21  ;;  %v2289_v30 = vand.u32 2147483647, %v5054_v34 }
 0x467   : > { %v2128_v37 = vpop.permute.xlu1 %2127  ;;  %v2170_v43 = vld [vmem:[#allocation2 + $0x38] sm:$0xff]  ;;  %v2397_v39 = vsel %vm2396_vm14, %v2394_v45, %v2391_v61  ;;  %vm3002_vm14 = vcmask 486400  }
 0x468   : > { %2153 = vst.msk [vmem:[#allocation2 + $0x50] sm:$0xff] %vm2145_vm9, %v2128_v37  ;;  %v2203_v36 = vmul.f32 %v4983_v7, %v2170_v43  ;;  %v2171_v9 = vld [vmem:[#allocation2 + $0x40] sm:$0xff]  ;;  %2879 = vmatmul.bf16.vlgmr.msra.gmra.mxu2 %v2699_v27  ;;  %v2589_v26 = vadd.f32 %v2397_v39, %v2253_v41  ;;  %v2313_v55 = vsub.f32 0.0, %v2289_v30 }
 0x469   : > { %2154 = vst.msk [vmem:[#allocation2 + $0x58] sm:$0xff] %vm2147_vm10, %v2128_v37 }
 0x46a   : > { %v5026_v1 = vadd.f32 %v4988_v24, %v2203_v36 }
 0x46c   : > { %v2282_v44 = vand.u32 2147483647, %v5026_v1  ;;  %v2258_v60 = vmax.f32 %v5026_v1, 0.0 }
 0x46e   : > { %v2306_v37 = vsub.f32 0.0, %v2282_v44 }
 0x46f   : > { %v2173_v57 = vld [vmem:[#allocation2 + $0x50] sm:$0xff] }
 0x470   : > { %v2206_v48 = vmul.f32 %v4983_v7, %v2173_v57  ;;  %v2337_v38 = vmul.f32 1.442695, %v2306_v37  ;;  %v2174_v49 = vld [vmem:[#allocation2 + $0x58] sm:$0xff]  ;;  %v2209_v57 = vmul.f32 %v4983_v7, %v2176_v28 }
 0x471   : > { %v2207_v3 = vmul.f32 %v5002_v16, %v2174_v49 }
 0x472   : > { %v5029_v32 = vadd.f32 %v4988_v24, %v2206_v48  ;;  %3868 = vpow2.f32 %v2337_v38  ;;  %v5051_v12 = vadd.f32 %v4988_v24, %v2209_v57 }
 0x473   : > { %v2136_v5 = vpop.permute.xlu2 %2135  ;;  %v5044_v54 = vadd.f32 %v5004_v47, %v2207_v3 }
 0x474   : > { %2161 = vst.msk [vmem:[#allocation2 + $0xb0] sm:$0xff] %vm2145_vm9, %v2136_v5  ;;  %v2285_v6 = vand.u32 2147483647, %v5029_v32  ;;  %v2288_v2 = vand.u32 2147483647, %v5051_v12  ;;  %v2261_v49 = vmax.f32 %v5029_v32, 0.0 }
 0x475   : > { %2162 = vst.msk [vmem:[#allocation2 + $0xb8] sm:$0xff] %vm2147_vm10, %v2136_v5  ;;  %v2420_v5 = vadd.f32 1.0, %v2419_v14 }
 0x476   : > { %v2309_v18 = vsub.f32 0.0, %v2285_v6  ;;  %v2312_v40 = vsub.f32 0.0, %v2288_v2 }
 0x477   : > { %v2421_v8 = vmul.f32 %v3859_v42, %v2420_v5 }
 0x478   : > { %v2132_v58 = vpop.permute.xlu0 %2131  ;;  %v2343_v53 = vmul.f32 1.442695, %v2309_v18  ;;  %v3869_v0 = vpop.eup %3868 }
 0x479   : > { %2157 = vst.msk [vmem:[#allocation2 + $0x80] sm:$0xff] %vm2145_vm9, %v2132_v58  ;;  %v2424_v13 = vsel %vm2423_vm15, %v2421_v8, %v2418_v29  ;;  %v2434_v11 = vadd.f32 1.0, %v3869_v0  ;;  %v2437_v35 = vmul.f32 -0.5, %v3869_v0  ;;  %v2440_v62 = vand.u32 2147483647, %v3869_v0 }
 0x47a   : > { %2158 = vst.msk [vmem:[#allocation2 + $0x88] sm:$0xff] %vm2147_vm10, %v2132_v58  ;;  %3870 = vpow2.f32 %v2343_v53  ;;  %v2204_v58 = vmul.f32 %v5002_v16, %v2171_v9  ;;  %v2592_v56 = vadd.f32 %v2424_v13, %v2256_v46  ;;  %v2349_v9 = vmul.f32 1.442695, %v2312_v40 }
 0x47b   : > { %3872 = vtanh.f32 %v2589_v26  ;;  %v2438_v25 = vadd.f32 1.0, %v2437_v35  ;;  %vm5061_vm0 = vcmp.lt.f32.partialorder %v2440_v62, 0.0004427343  ;;  %v2185_v35 = vld [vmem:[#allocation2 + $0xb0] sm:$0xff] }
 0x47c   : > { %v5041_v23 = vadd.f32 %v5004_v47, %v2204_v58  ;;  %3874 = vtanh.f32 %v2592_v56  ;;  %v2351_v58 = vmul.f32 1.442695, %v2313_v55  ;;  %v2262_v55 = vmax.f32 %v5044_v54, 0.0 }
 0x47d   : > { %3876 = vlog2.f32 %v2434_v11  ;;  %v2439_v17 = vmul.f32 %v3869_v0, %v2438_v25  ;;  %v2186_v25 = vld [vmem:[#allocation2 + $0xb8] sm:$0xff] }
 0x47e   : > { %v2283_v48 = vand.u32 2147483647, %v5041_v23 }
 0x480   : > { %v3871_v19 = vpop.eup %3870  ;;  %v2307_v52 = vsub.f32 0.0, %v2283_v48 }
 0x481   : > { %v2461_v43 = vadd.f32 1.0, %v3871_v19  ;;  %v2464_v36 = vmul.f32 -0.5, %v3871_v19  ;;  %v3873_v42 = vpop.eup %3872  ;;  %v2467_v37 = vand.u32 2147483647, %v3871_v19 }
 0x482   : > { %v3875_v6 = vpop.eup %3874  ;;  %v2637_v14 = vmul.f32 %v3873_v42, %v5011_v20  ;;  %v2339_v18 = vmul.f32 1.442695, %v2307_v52  ;;  %v2179_v20 = vld [vmem:[#allocation2 + $0x80] sm:$0xff]  ;;  %v2218_v42 = vmul.f32 %v4983_v7, %v2185_v35 }
 0x483   : > { %v2134_v10 = vpop.permute.xlu1 %2133  ;;  %3878 = vlog2.f32 %v2461_v43  ;;  %v2465_v4 = vadd.f32 1.0, %v2464_v36  ;;  %v3877_v38 = vpop.eup %3876  ;;  %v2640_v22 = vmul.f32 %v3875_v6, %v5014_v33  ;;  %vm2468_vm1 = vcmp.lt.f32.partialorder %v2467_v37, 0.0004427343 }
 0x484   : > { %2159 = vst.msk [vmem:[#allocation2 + $0x98] sm:$0xff] %vm2145_vm9, %v2134_v10  ;;  %v2436_v5 = vmul.f32 0.6931472, %v3877_v38  ;;  %3880 = vpow2.f32 %v2339_v18  ;;  %v2212_v21 = vmul.f32 %v4983_v7, %v2179_v20 }
 0x485   : > { %2160 = vst.msk [vmem:[#allocation2 + $0xa0] sm:$0xff] %vm2147_vm10, %v2134_v10  ;;  %v2286_v10 = vand.u32 2147483647, %v5044_v54  ;;  %v2466_v50 = vmul.f32 %v3871_v19, %v2465_v4  ;;  %v2700_v59 = vpack.c.bf16 %v2640_v22, %v2637_v14  ;;  %v2259_v4 = vmax.f32 %v5041_v23, 0.0 }
 0x486   : > { %v2442_v33 = vsel %vm5061_vm0, %v2439_v17, %v2436_v5  ;;  %v5071_v41 = vadd.f32 %v4988_v24, %v2212_v21 }
 0x487   : > { %v2310_v44 = vsub.f32 0.0, %v2286_v10  ;;  %3462 = vmatmul.msk.bf16.vlgmr.msrb.gmra.mxu0 %vm2147_vm10, %v2700_v59  ;;  %v2594_v61 = vadd.f32 %v2442_v33, %v2258_v60 }
 0x488   : > { %v2291_v8 = vand.u32 2147483647, %v5071_v41 }
 0x489   : > { %v2345_v63 = vmul.f32 1.442695, %v2310_v44  ;;  %v3879_v15 = vpop.eup %3878  ;;  %v2180_v44 = vld [vmem:[#allocation2 + $0x88] sm:$0xff] }
 0x48a   : > { %v2463_v45 = vmul.f32 0.6931472, %v3879_v15  ;;  %v3881_v29 = vpop.eup %3880  ;;  %v2315_v0 = vsub.f32 0.0, %v2291_v8  ;;  %v2213_v14 = vmul.f32 %v5002_v16, %v2180_v44 }
 0x48b   : > { %3882 = vpow2.f32 %v2345_v63  ;;  %v2443_v39 = vadd.f32 1.0, %v3881_v29  ;;  %v2446_v28 = vmul.f32 -0.5, %v3881_v29  ;;  %v2449_v51 = vand.u32 2147483647, %v3881_v29 }
 0x48c   : > { %v2469_v27 = vsel %vm2468_vm1, %v2466_v50, %v2463_v45  ;;  %3884 = vpow2.f32 %v2349_v9  ;;  %v2355_v19 = vmul.f32 1.442695, %v2315_v0  ;;  %v2219_v63 = vmul.f32 %v5002_v16, %v2186_v25 }
 0x48d   : > { %v2597_v3 = vadd.f32 %v2469_v27, %v2261_v49  ;;  %3886 = vtanh.f32 %v2594_v61  ;;  %v2447_v11 = vadd.f32 1.0, %v2446_v28  ;;  %vm2450_vm2 = vcmp.lt.f32.partialorder %v2449_v51, 0.0004427343 }
 0x48e   : > { %v5087_v53 = vadd.f32 %v5004_v47, %v2213_v14  ;;  %v5092_v49 = vadd.f32 %v5004_v47, %v2219_v63 }
 0x48f   : > { %3888 = vtanh.f32 %v2597_v3  ;;  %v2448_v30 = vmul.f32 %v3881_v29, %v2447_v11  ;;  %v2264_v11 = vmax.f32 %v5051_v12, 0.0 }
 0x490   : > { %3890 = vpow2.f32 %v2351_v58  ;;  %v2292_v21 = vand.u32 2147483647, %v5087_v53 }
 0x491   : > { %v3883_v46 = vpop.eup %3882  ;;  %3892 = vlog2.f32 %v2443_v39 }
 0x492   : > { %v2470_v31 = vadd.f32 1.0, %v3883_v46  ;;  %v3885_v13 = vpop.eup %3884  ;;  %v2473_v26 = vmul.f32 -0.5, %v3883_v46  ;;  %v2476_v52 = vand.u32 2147483647, %v3883_v46  ;;  %v2316_v3 = vsub.f32 0.0, %v2292_v21 }
 0x493   : > { %v3887_v56 = vpop.eup %3886  ;;  %v2488_v43 = vadd.f32 1.0, %v3885_v13  ;;  %v2491_v6 = vmul.f32 -0.5, %v3885_v13  ;;  %v2494_v33 = vand.u32 2147483647, %v3885_v13 }
 0x494   : > { %3894 = vlog2.f32 %v2470_v31  ;;  %v2642_v48 = vmul.f32 %v3887_v56, %v5026_v1  ;;  %v2474_v62 = vadd.f32 1.0, %v2473_v26  ;;  %vm2477_vm3 = vcmp.lt.f32.partialorder %v2476_v52, 0.0004427343 }
 0x495   : > { %v3889_v57 = vpop.eup %3888  ;;  %3896 = vpow2.f32 %v2355_v19  ;;  %v2492_v9 = vadd.f32 1.0, %v2491_v6  ;;  %vm5096_vm4 = vcmp.lt.f32.partialorder %v2494_v33, 0.0004427343  ;;  %v2357_v28 = vmul.f32 1.442695, %v2316_v3 }
 0x496   : > { %v5074_v36 = vpop.eup %3890  ;;  %v2645_v10 = vmul.f32 %v3889_v57, %v5029_v32  ;;  %3898 = vlog2.f32 %v2488_v43  ;;  %v5083_v32 = vadd.f32 %v4988_v24, %v2218_v42  ;;  %v2475_v22 = vmul.f32 %v3883_v46, %v2474_v62  ;;  %v2182_v57 = vld [vmem:[#allocation2 + $0x98] sm:$0xff] }
 0x497   : > { %v3893_v60 = vpop.eup %3892  ;;  %v2497_v1 = vadd.f32 1.0, %v5074_v36  ;;  %v2493_v29 = vmul.f32 %v3885_v13, %v2492_v9  ;;  %v2298_v46 = vand.u32 2147483647, %v5092_v49  ;;  %v2500_v13 = vmul.f32 -0.5, %v5074_v36 }
 0x498   : > { %v2702_v2 = vpack.c.bf16 %v2645_v10, %v2642_v48  ;;  %v2445_v18 = vmul.f32 0.6931472, %v3893_v60  ;;  %v2297_v5 = vand.u32 2147483647, %v5083_v32  ;;  %v2215_v35 = vmul.f32 %v4983_v7, %v2182_v57  ;;  %v2183_v48 = vld [vmem:[#allocation2 + $0xa0] sm:$0xff] }
 0x499   : > { %3900 = vlog2.f32 %v2497_v1  ;;  %v2322_v19 = vsub.f32 0.0, %v2298_v46  ;;  %v2216_v44 = vmul.f32 %v5002_v16, %v2183_v48  ;;  %v2267_v6 = vmax.f32 %v5071_v41, 0.0 }
 0x49a   : > { %v3895_v37 = vpop.eup %3894  ;;  %2884 = vmatmul.bf16.gmra.mxu2 %v2702_v2  ;;  %v2451_v15 = vsel %vm2450_vm2, %v2448_v30, %v2445_v18  ;;  %v2321_v58 = vsub.f32 0.0, %v2297_v5  ;;  %v5109_v2 = vadd.f32 %v4988_v24, %v2215_v35  ;;  %v2501_v7 = vadd.f32 1.0, %v2500_v13 }
 0x49b   : > { %v2472_v38 = vmul.f32 0.6931472, %v3895_v37  ;;  %v3897_v40 = vpop.eup %3896  ;;  %v2595_v59 = vadd.f32 %v2451_v15, %v2259_v4  ;;  %v2369_v10 = vmul.f32 1.442695, %v2322_v19  ;;  %v5116_v63 = vadd.f32 %v5004_v47, %v2216_v44 }
 0x49c   : > { %v3899_v17 = vpop.eup %3898  ;;  %v2515_v45 = vadd.f32 1.0, %v3897_v40  ;;  %v2518_v61 = vmul.f32 -0.5, %v3897_v40  ;;  %v2367_v8 = vmul.f32 1.442695, %v2321_v58  ;;  %v2521_v43 = vand.u32 2147483647, %v3897_v40 }
 0x49d   : > { %v2478_v50 = vsel %vm2477_vm3, %v2475_v22, %v2472_v38  ;;  %3902 = vtanh.f32 %v2595_v59  ;;  %v2490_v27 = vmul.f32 0.6931472, %v3899_v17  ;;  %v2265_v59 = vmax.f32 %v5054_v34, 0.0 }
 0x49e   : > { %v2598_v20 = vadd.f32 %v2478_v50, %v2262_v55  ;;  %v2519_v26 = vadd.f32 1.0, %v2518_v61  ;;  %vm2522_vm5 = vcmp.lt.f32.partialorder %v2521_v43, 0.0004427343  ;;  %v2295_v50 = vand.u32 2147483647, %v5116_v63 }
 0x49f   : > { %v3901_v31 = vpop.eup %3900  ;;  %v2496_v0 = vsel %vm5096_vm4, %v2493_v29, %v2490_v27  ;;  %v2268_v46 = vmax.f32 %v5087_v53, 0.0  ;;  %v2273_v44 = vmax.f32 %v5083_v32, 0.0  ;;  %vm3178_vm3 = vcmask 483328  }
 0x4a0   : > { %3904 = vtanh.f32 %v2598_v20  ;;  %v2600_v52 = vadd.f32 %v2496_v0, %v2264_v11  ;;  %v2520_v60 = vmul.f32 %v3897_v40, %v2519_v26  ;;  %v2499_v18 = vmul.f32 0.6931472, %v3901_v31 }
 0x4a1   : > { %3906 = vlog2.f32 %v2515_v45  ;;  %v2502_v40 = vmul.f32 %v5074_v36, %v2501_v7  ;;  %v2319_v9 = vsub.f32 0.0, %v2295_v50  ;;  %v2270_v7 = vmax.f32 %v5109_v2, 0.0 }
 0x4a2   : > { %3908 = vpow2.f32 %v2367_v8 }
 0x4a3   : > { %v3903_v56 = vpop.eup %3902  ;;  %3910 = vpow2.f32 %v2357_v28  ;;  %v2363_v61 = vmul.f32 1.442695, %v2319_v9 }
 0x4a4   : > { %v2643_v25 = vmul.f32 %v3903_v56, %v5041_v23  ;;  %3912 = vpow2.f32 %v2369_v10  ;;  %v2503_v23 = vand.u32 2147483647, %v5074_v36 }
 0x4a5   : > { %3914 = vtanh.f32 %v2600_v52 }
 0x4a6   : > { %v3905_v51 = vpop.eup %3904  ;;  %vm2504_vm6 = vcmp.lt.f32.partialorder %v2503_v23, 0.0004427343 }
 0x4a7   : > { %v3907_v62 = vpop.eup %3906  ;;  %v2646_v4 = vmul.f32 %v3905_v51, %v5044_v54  ;;  %v2294_v54 = vand.u32 2147483647, %v5109_v2  ;;  %v2505_v17 = vsel %vm2504_vm6, %v2502_v40, %v2499_v18  ;;  %v2274_v40 = vmax.f32 %v5092_v49, 0.0 }
 0x4a8   : > { %v2517_v42 = vmul.f32 0.6931472, %v3907_v62  ;;  %v3909_v14 = vpop.eup %3908  ;;  %v2601_v36 = vadd.f32 %v2505_v17, %v2265_v59 }
 0x4a9   : > { %v2703_v30 = vpack.c.bf16 %v2646_v4, %v2643_v25  ;;  %v3911_v1 = vpop.eup %3910  ;;  %v2569_v24 = vadd.f32 1.0, %v3909_v14  ;;  %v2318_v22 = vsub.f32 0.0, %v2294_v54  ;;  %v2572_v21 = vmul.f32 -0.5, %v3909_v14 }
 0x4aa   : > { %v2523_v37 = vsel %vm2522_vm5, %v2520_v60, %v2517_v42  ;;  %v2524_v38 = vadd.f32 1.0, %v3911_v1  ;;  %v2527_v55 = vmul.f32 -0.5, %v3911_v1  ;;  %v5119_v15 = vpop.eup %3912  ;;  %v2530_v33 = vand.u32 2147483647, %v3911_v1 }
 0x4ab   : > { %3463 = vmatmul.msk.bf16.gmra.mxu0 %vm2147_vm10, %v2703_v30  ;;  %v2603_v16 = vadd.f32 %v2523_v37, %v2267_v6  ;;  %v2361_v5 = vmul.f32 1.442695, %v2318_v22  ;;  %v2578_v47 = vadd.f32 1.0, %v5119_v15  ;;  %v3915_v45 = vpop.eup %3914  ;;  %v2573_v26 = vadd.f32 1.0, %v2572_v21 }
 0x4ac   : > { %v2528_v20 = vadd.f32 1.0, %v2527_v55  ;;  %v2648_v3 = vmul.f32 %v3915_v45, %v5051_v12  ;;  %vm2531_vm7 = vcmp.lt.f32.partialorder %v2530_v33, 0.0004427343  ;;  %v2575_v11 = vand.u32 2147483647, %v3909_v14 }
 0x4ad   : > { %3916 = vtanh.f32 %v2603_v16  ;;  %v2581_v43 = vmul.f32 -0.5, %v5119_v15  ;;  %v2574_v51 = vmul.f32 %v3909_v14, %v2573_v26  ;;  %v2584_v52 = vand.u32 2147483647, %v5119_v15 }
 0x4ae   : > { %3918 = vlog2.f32 %v2524_v38  ;;  %v2529_v28 = vmul.f32 %v3911_v1, %v2528_v20  ;;  %vm2576_vm8 = vcmp.lt.f32.partialorder %v2575_v11, 0.0004427343 }
 0x4af   : > { %3920 = vlog2.f32 %v2569_v24  ;;  %v2582_v48 = vadd.f32 1.0, %v2581_v43  ;;  %vm2585_vm9 = vcmp.lt.f32.partialorder %v2584_v52, 0.0004427343 }
 0x4b0   : > { %3922 = vpow2.f32 %v2361_v5 }
 0x4b1   : > { %3924 = vlog2.f32 %v2578_v47  ;;  %v2583_v14 = vmul.f32 %v5119_v15, %v2582_v48  ;;  %v2271_v47 = vmax.f32 %v5116_v63, 0.0 }
 0x4b2   : > { %3926 = vpow2.f32 %v2363_v61 }
 0x4b3   : > { %v3917_v27 = vpop.eup %3916  ;;  %3928 = vtanh.f32 %v2601_v36 }
 0x4b4   : > { %v3919_v58 = vpop.eup %3918  ;;  %v2651_v29 = vmul.f32 %v3917_v27, %v5071_v41 }
 0x4b5   : > { %v3921_v8 = vpop.eup %3920  ;;  %v2526_v39 = vmul.f32 0.6931472, %v3919_v58 }
 0x4b6   : > { %v3923_v31 = vpop.eup %3922  ;;  %v2705_v0 = vpack.c.bf16 %v2651_v29, %v2648_v3  ;;  %v2571_v13 = vmul.f32 0.6931472, %v3921_v8  ;;  %v2851_v8 = vpop.f32.mrf.mxu0 }
 0x4b7   : > { %v2532_v19 = vsel %vm2531_vm7, %v2529_v28, %v2526_v39  ;;  %v2542_v56 = vadd.f32 1.0, %v3923_v31  ;;  %v2545_v41 = vmul.f32 -0.5, %v3923_v31  ;;  %v3925_v57 = vpop.eup %3924  ;;  %v2548_v42 = vand.u32 2147483647, %v3923_v31 }
 0x4b8   : > { %2889 = vmatmul.bf16.gmra.mxu2 %v2705_v0  ;;  %v2604_v12 = vadd.f32 %v2532_v19, %v2268_v46  ;;  %v3927_v35 = vpop.eup %3926  ;;  %v2577_v25 = vsel %vm2576_vm8, %v2574_v51, %v2571_v13  ;;  %v2580_v30 = vmul.f32 0.6931472, %v3925_v57  ;;  %v2856_v51 = vpop.f32.mrf.mxu1 }
 0x4b9   : > { %3930 = vlog2.f32 %v2542_v56  ;;  %v3929_v10 = vpop.eup %3928  ;;  %v2546_v62 = vadd.f32 1.0, %v2545_v41  ;;  %v2551_v4 = vadd.f32 1.0, %v3927_v35  ;;  %v2554_v60 = vmul.f32 -0.5, %v3927_v35 }
 0x4ba   : > { %3932 = vtanh.f32 %v2604_v12  ;;  %v2609_v37 = vadd.f32 %v2577_v25, %v2273_v44  ;;  %v2649_v23 = vmul.f32 %v3929_v10, %v5054_v34  ;;  %vm2549_vm13 = vcmp.lt.f32.partialorder %v2548_v42, 0.0004427343 }
 0x4bb   : > { %3934 = vlog2.f32 %v2551_v4  ;;  %v2547_v1 = vmul.f32 %v3923_v31, %v2546_v62  ;;  %v2555_v24 = vadd.f32 1.0, %v2554_v60  ;;  %v2586_v38 = vsel %vm2585_vm9, %v2583_v14, %v2580_v30 }
 0x4bc   : > { %v2557_v55 = vand.u32 2147483647, %v3927_v35  ;;  %3936 = vtanh.f32 %v2609_v37  ;;  %v2610_v15 = vadd.f32 %v2586_v38, %v2274_v40 }
 0x4bd   : > { %v2556_v59 = vmul.f32 %v3927_v35, %v2555_v24 }
 0x4be   : > { %vm2558_vm11 = vcmp.lt.f32.partialorder %v2557_v55, 0.0004427343  ;;  %v2853_v46 = vpop.f32.mrf.mxu0 }
 0x4bf   : > { %v3931_v6 = vpop.eup %3930 }
 0x4c0   : > { %v3933_v18 = vpop.eup %3932  ;;  %v2544_v54 = vmul.f32 0.6931472, %v3931_v6  ;;  %v2858_v62 = vpop.f32.mrf.mxu1 }
 0x4c1   : > { %v2652_v16 = vmul.f32 %v3933_v18, %v5087_v53  ;;  %v3935_v50 = vpop.eup %3934 }
 0x4c2   : > { %v2550_v22 = vsel %vm2549_vm13, %v2547_v1, %v2544_v54  ;;  %v2553_v34 = vmul.f32 0.6931472, %v3935_v50  ;;  %v3937_v20 = vpop.eup %3936 }
 0x4c3   : > { %v2706_v5 = vpack.c.bf16 %v2652_v16, %v2649_v23  ;;  %v2606_v17 = vadd.f32 %v2550_v22, %v2270_v7  ;;  %v2657_v36 = vmul.f32 %v3937_v20, %v5083_v32 }
 0x4c4   : > { %v2559_v53 = vsel %vm2558_vm11, %v2556_v59, %v2553_v34 }
 0x4c5   : > { %3464 = vmatmul.msk.bf16.gmra.mxu0 %vm2147_vm10, %v2706_v5  ;;  %3938 = vtanh.f32 %v2606_v17  ;;  %v2607_v45 = vadd.f32 %v2559_v53, %v2271_v47 }
 0x4c6   : > { %3940 = vtanh.f32 %v2610_v15 }
 0x4c7   : > { %3942 = vtanh.f32 %v2607_v45 }
 0x4c8   : > { %v2861_v1 = vpop.f32.mrf.mxu1 }
 0x4cb   : > { %v3939_v9 = vpop.eup %3938 }
 0x4cc   : > { %v2654_v33 = vmul.f32 %v3939_v9, %v5109_v2  ;;  %v3941_v21 = vpop.eup %3940  ;;  %v5145_v2 = vld [vmem:[%s5268_s18] ss:$0 sm:$0xff] }
 0x4cd   : > { %v3943_v61 = vpop.eup %3942  ;;  %v2658_v3 = vmul.f32 %v3941_v21, %v5092_v49  ;;  %v2852_v32 = vadd.f32 %v5145_v2, %v2851_v8  ;;  %v2857_v48 = vadd.f32 %v5145_v2, %v2856_v51  ;;  %v2859_v44 = vadd.f32 %v5145_v2, %v2858_v62 }
 0x4ce   : > { %v2708_v27 = vpack.c.bf16 %v2657_v36, %v2654_v33  ;;  %v2655_v58 = vmul.f32 %v3943_v61, %v5116_v63  ;;  %v2854_v63 = vadd.f32 %v5145_v2, %v2853_v46  ;;  %v2862_v24 = vadd.f32 %v5145_v2, %v2861_v1 }
 0x4d0   : > { %2894 = vmatmul.bf16.gmra.mxu2 %v2708_v27  ;;  %v2709_v29 = vpack.c.bf16 %v2658_v3, %v2655_v58  ;;  %v2863_v22 = vpop.f32.mrf.mxu1 }
 0x4d1   : > { %v2864_v17 = vadd.f32 %v5145_v2, %v2863_v22 }
 0x4d5   : > { %3465 = vmatmul.msk.bf16.gmra.mxu0 %vm2147_vm10, %v2709_v29  ;;  %vm2991_vm10 = vcmask 490496  }
 0x4d8   : > { %v2866_v45 = vpop.f32.mrf.mxu1 }
 0x4d9   : > { %v2867_v21 = vadd.f32 %v5145_v2, %v2866_v45 }
 0x4e0   : > { %v2868_v29 = vpop.f32.mrf.mxu1 }
 0x4e1   : > { %v2869_v46 = vadd.f32 %v5145_v2, %v2868_v29 }
 0x4eb   : > { %v2880_v39 = vpop.f32.mrf.mxu2 }
 0x4ec   : > { %v2881_v31 = vadd.f32 %v2880_v39, %v2852_v32 }
 0x4f3   : > { %v2882_v0 = vpop.f32.mrf.mxu2 }
 0x4f4   : > { %v2883_v49 = vadd.f32 %v2882_v0, %v2854_v63 }
 0x504   : > { %v2909_v28 = vpop.f32.mrf.mxu0 }
 0x505   : > { %v2910_v26 = vadd.f32 %v2909_v28, %v2881_v31 }
 0x507   : > { %v3139_v56 = vmul.f32 %v2910_v26, %v2910_v26 }
 0x509   : > { %v3147_v41 = vsel %vm2991_vm10, %v3139_v56, 0.0 }
 0x50c   : > { %v2911_v19 = vpop.f32.mrf.mxu0 }
 0x50d   : > { %v2912_v11 = vadd.f32 %v2911_v19, %v2883_v49 }
 0x50f   : > { %v3140_v43 = vmul.f32 %v2912_v11, %v2912_v11  ;;  %v5149_v12 = vpack.c.bf16 %v2912_v11, %v2910_v26 }
 0x511   : > { %v3148_v13 = vsel %vm2991_vm10, %v3140_v43, 0.0  ;;  %2933 = vxpose.xlu0.c.b16.start [1/4] (short) (narrow) %v5149_v12, 64 }
 0x512   : > { %v3149_v57 = vadd.f32 %v3148_v13, %v3147_v41 }
 0x51d   : > { %v2885_v35 = vpop.f32.mrf.mxu2 }
 0x51e   : > { %v2886_v10 = vadd.f32 %v2885_v35, %v2857_v48 }
 0x525   : > { %v2887_v52 = vpop.f32.mrf.mxu2 }
 0x526   : > { %v2888_v30 = vadd.f32 %v2887_v52, %v2859_v44 }
 0x528   : > { %v2914_v25 = vpop.f32.mrf.mxu0 }
 0x529   : > { %v2915_v4 = vadd.f32 %v2914_v25, %v2886_v10 }
 0x52b   : > { %v3141_v42 = vmul.f32 %v2915_v4, %v2915_v4 }
 0x52d   : > { %v3150_v60 = vsel %vm2991_vm10, %v3141_v42, 0.0 }
 0x52e   : > { %v3151_v6 = vadd.f32 %v3150_v60, %v3149_v57 }
 0x530   : > { %v2916_v7 = vpop.f32.mrf.mxu0 }
 0x531   : > { %v2917_v37 = vadd.f32 %v2916_v7, %v2888_v30 }
 0x533   : > { %v3142_v14 = vmul.f32 %v2917_v37, %v2917_v37  ;;  %v2930_v18 = vpack.c.bf16 %v2917_v37, %v2915_v4 }
 0x535   : > { %v3152_v23 = vsel %vm2991_vm10, %v3142_v14, 0.0  ;;  %2934 = vxpose.xlu0.c.b16.cont [2/4] (short) (narrow) %v2930_v18, 64 }
 0x536   : > { %v3153_v54 = vadd.f32 %v3152_v23, %v3151_v6 }
 0x53b   : > { %v2890_v16 = vpop.f32.mrf.mxu2 }
 0x53c   : > { %v2891_v38 = vadd.f32 %v2890_v16, %v2862_v24 }
 0x542   : > { %v2919_v40 = vpop.f32.mrf.mxu0 }
 0x543   : > { %v2920_v55 = vadd.f32 %v2919_v40, %v2891_v38  ;;  %v2892_v5 = vpop.f32.mrf.mxu2 }
 0x544   : > { %v2893_v34 = vadd.f32 %v2892_v5, %v2864_v17  ;;  %v3977_v5 = vmov 0   ;;  %v3168_v17 = vld [vmem:[#allocation3] sm:$0x1] }
 0x545   : > { %v3143_v50 = vmul.f32 %v2920_v55, %v2920_v55  ;;  %3551 = vset.pattern.permute.xlu1 %v3977_v5 }
 0x546   : > { %3171 = vperm.xlu1 %3551, %v3168_v17  }
 0x547   : > { %v3154_v15 = vsel %vm2991_vm10, %v3143_v50, 0.0 }
 0x548   : > { %v3155_v59 = vadd.f32 %v3154_v15, %v3153_v54 }
 0x54a   : > { %v2921_v47 = vpop.f32.mrf.mxu0 }
 0x54b   : > { %v2922_v53 = vadd.f32 %v2921_v47, %v2893_v34 }
 0x54d   : > { %v3144_v20 = vmul.f32 %v2922_v53, %v2922_v53  ;;  %v2931_v9 = vpack.c.bf16 %v2922_v53, %v2920_v55 }
 0x54f   : > { %v3156_v33 = vsel %vm2991_vm10, %v3144_v20, 0.0  ;;  %2935 = vxpose.xlu0.c.b16.cont [3/4] (short) (narrow) %v2931_v9, 64 }
 0x550   : > { %v3157_v36 = vadd.f32 %v3156_v33, %v3155_v59 }
 0x552   : > { %v2924_v27 = vpop.f32.mrf.mxu0 }
 0x553   : > { %v2895_v61 = vpop.f32.mrf.mxu2 }
 0x554   : > { %v2896_v58 = vadd.f32 %v2895_v61, %v2867_v21 }
 0x556   : > { %v2925_v3 = vadd.f32 %v2924_v27, %v2896_v58 }
 0x558   : > { %v3145_v8 = vmul.f32 %v2925_v3, %v2925_v3 }
 0x55a   : > { %v3158_v39 = vsel %vm2991_vm10, %v3145_v8, 0.0  ;;  %v2926_v0 = vpop.f32.mrf.mxu0 }
 0x55b   : > { %v3159_v32 = vadd.f32 %v3158_v39, %v3157_v36  ;;  %v2897_v28 = vpop.f32.mrf.mxu2 }
 0x55c   : > { %v2898_v31 = vadd.f32 %v2897_v28, %v2869_v46 }
 0x55e   : > { %v2927_v63 = vadd.f32 %v2926_v0, %v2898_v31 }
 0x560   : > { %v3146_v26 = vmul.f32 %v2927_v63, %v2927_v63  ;;  %v2932_v49 = vpack.c.bf16 %v2927_v63, %v2925_v3 }
 0x562   : > { %v3160_v19 = vsel %vm2991_vm10, %v3146_v26, 0.0  ;;  %2936 = vxpose.xlu0.c.b16.end [4/4] (short) (narrow) %v2932_v49, 64  ;;  %2966 = vmatpush.bf16.msra.mxu3 %v2932_v49 }
 0x563   : > { %v5166_v56 = vadd.f32 %v3160_v19, %v3159_v32 }
 0x566   : > { %2967 = vmatpush.bf16.msra.mxu3 %v2931_v9 }
 0x56a   : > { %2968 = vmatpush.bf16.msra.mxu3 %v2930_v18 }
 0x56e   : > { %2969 = vmatpush.bf16.msra.mxu3 %v5149_v12 }
 0x5c9   : > { %3552 = vset.pattern.permute.xlu0 %v3977_v5 }
 0x5de   : > { %v2941_v2 = vpop.trf.xlu0 }
 0x5df   : > { %3466 = vmatmul.msk.bf16.vlgmr.msra.gmra.mxu3 %vm2949_vm12, %v2941_v2 }
 0x5ee   : > { %v2942_v11 = vpop.trf.xlu0 }
 0x5ef   : > { %3467 = vmatmul.msk.bf16.gmra.mxu3 %vm2949_vm12, %v2942_v11 }
 0x5fe   : > { %v2943_v43 = vpop.trf.xlu0 }
 0x5ff   : > { %3468 = vmatmul.msk.bf16.gmra.mxu3 %vm2949_vm12, %v2943_v43 }
 0x60e   : > { %v2944_v41 = vpop.trf.xlu0 }
 0x60f   : > { %3469 = vmatmul.msk.bf16.gmra.mxu3 %vm2949_vm12, %v2944_v41 }
 0x662   : > { %v5169_v13 = vpop.f32.mrf.mxu3 }
 0x663   : > { %v2992_v60 = vsel %vm2991_vm10, %v5169_v13, -inf }
 0x66a   : > { %v5171_v57 = vpop.f32.mrf.mxu3 }
 0x66b   : > { %v2993_v25 = vsel %vm2991_vm10, %v5171_v57, -inf }
 0x672   : > { %v5173_v51 = vpop.f32.mrf.mxu3 }
 0x673   : > { %v2994_v30 = vsel %vm2991_vm10, %v5173_v51, -inf }
 0x67a   : > { %v5175_v35 = vpop.f32.mrf.mxu3 }
 0x67b   : > { %v2995_v6 = vsel %vm2991_vm10, %v5175_v35, -inf }
 0x682   : > { %v5177_v48 = vpop.f32.mrf.mxu3 }
 0x683   : > { %v2996_v4 = vsel %vm2991_vm10, %v5177_v48, -inf }
 0x684   : > { %v2997_v37 = vmax.f32 %v2992_v60, %v2996_v4 }
 0x68a   : > { %v5179_v12 = vpop.f32.mrf.mxu3 }
 0x68b   : > { %v2998_v62 = vsel %vm2991_vm10, %v5179_v12, -inf }
 0x68c   : > { %v2999_v44 = vmax.f32 %v2993_v25, %v2998_v62 }
 0x68e   : > { %v3005_v23 = vmax.f32 %v2997_v37, %v2999_v44 }
 0x692   : > { %v5181_v10 = vpop.f32.mrf.mxu3 }
 0x693   : > { %v3000_v52 = vsel %vm2991_vm10, %v5181_v10, -inf }
 0x694   : > { %v3001_v14 = vmax.f32 %v2994_v30, %v3000_v52 }
 0x69a   : > { %v5191_v42 = vpop.f32.mrf.mxu3 }
 0x69b   : > { %v3003_v7 = vsel %vm3002_vm14, %v5191_v42, -inf }
 0x69c   : > { %v3004_v18 = vmax.f32 %v2995_v6, %v3003_v7 }
 0x69e   : > { %v3006_v54 = vmax.f32 %v3001_v14, %v3004_v18 }
 0x6a0   : > { %v3007_v1 = vmax.f32 %v3005_v23, %v3006_v54 }
 0x6a2   : > { %v3008_v16 = vrot.slane %v3007_v1, 4 }
 0x6a4   : > { %v3009_v24 = vmax.f32 %v3007_v1, %v3008_v16 }
 0x6a6   : > { %v3010_v38 = vrot.slane %v3009_v24, 2 }
 0x6a8   : > { %v3011_v22 = vmax.f32 %v3009_v24, %v3010_v38 }
 0x6aa   : > { %v3012_v40 = vrot.slane %v3011_v22, 1 }
 0x6ac   : > { %v3013_v55 = vmax.f32 %v3011_v22, %v3012_v40 }
 0x6ae   : > { %v3014_v50 = vsub.f32 %v3013_v55, %v5169_v13  ;;  %v3015_v15 = vsub.f32 %v3013_v55, %v5171_v57  ;;  %v3016_v34 = vsub.f32 %v3013_v55, %v5173_v51  ;;  %v3017_v59 = vsub.f32 %v3013_v55, %v5175_v35 }
 0x6af   : > { %v3018_v47 = vsub.f32 %v3013_v55, %v5177_v48  ;;  %v3019_v53 = vsub.f32 %v3013_v55, %v5179_v12  ;;  %v3020_v45 = vsub.f32 %v3013_v55, %v5181_v10  ;;  %v3021_v20 = vsub.f32 %v3013_v55, %v5191_v42 }
 0x6b0   : > { %v3022_v9 = vsel %vm2991_vm10, %v3014_v50, -inf  ;;  %v3023_v33 = vsel %vm2991_vm10, %v3015_v15, -inf  ;;  %v3024_v36 = vsel %vm2991_vm10, %v3016_v34, -inf  ;;  %v3025_v21 = vsel %vm2991_vm10, %v3017_v59, -inf }
 0x6b1   : > { %v3026_v27 = vsel %vm2991_vm10, %v3018_v47, -inf  ;;  %v3028_v61 = vsel %vm2991_vm10, %v3019_v53, -inf  ;;  %v3030_v58 = vsel %vm2991_vm10, %v3020_v45, -inf  ;;  %v3032_v3 = vsel %vm3002_vm14, %v3021_v20, -inf }
 0x6b2   : > { %v3027_v29 = vmax.f32 %v3022_v9, %v3026_v27  ;;  %v3029_v8 = vmax.f32 %v3023_v33, %v3028_v61  ;;  %v3031_v46 = vmax.f32 %v3024_v36, %v3030_v58  ;;  %v3033_v39 = vmax.f32 %v3025_v21, %v3032_v3 }
 0x6b4   : > { %v3034_v32 = vmax.f32 %v3027_v29, %v3029_v8  ;;  %v3035_v28 = vmax.f32 %v3031_v46, %v3033_v39 }
 0x6b6   : > { %v3036_v31 = vmax.f32 %v3034_v32, %v3035_v28 }
 0x6b8   : > { %v3037_v0 = vrot.slane %v3036_v31, 4 }
 0x6ba   : > { %v3038_v63 = vmax.f32 %v3036_v31, %v3037_v0 }
 0x6bc   : > { %v3039_v26 = vrot.slane %v3038_v63, 2 }
 0x6be   : > { %v3040_v49 = vmax.f32 %v3038_v63, %v3039_v26 }
 0x6c0   : > { %v3041_v19 = vrot.slane %v3040_v49, 1 }
 0x6c2   : > { %v3042_v2 = vmax.f32 %v3040_v49, %v3041_v19 }
 0x6c4   : > { %v3043_v11 = vsub.f32 %v3014_v50, %v3042_v2  ;;  %v3044_v43 = vsub.f32 %v3015_v15, %v3042_v2  ;;  %v3045_v41 = vsub.f32 %v3016_v34, %v3042_v2  ;;  %v3046_v62 = vsub.f32 %v3017_v59, %v3042_v2 }
 0x6c5   : > { %v3047_v25 = vsub.f32 %v3018_v47, %v3042_v2  ;;  %v3048_v60 = vsub.f32 %v3019_v53, %v3042_v2  ;;  %v3049_v6 = vsub.f32 %v3020_v45, %v3042_v2  ;;  %v3050_v37 = vsub.f32 %v3021_v20, %v3042_v2 }
 0x6c6   : > { %v3051_v4 = vmul.f32 1.442695, %v3043_v11  ;;  %v3053_v52 = vmul.f32 1.442695, %v3044_v43  ;;  %v3055_v44 = vmul.f32 1.442695, %v3045_v41 }
 0x6c7   : > { %v3057_v30 = vmul.f32 1.442695, %v3046_v62  ;;  %v3059_v7 = vmul.f32 1.442695, %v3047_v25  ;;  %v3061_v14 = vmul.f32 1.442695, %v3048_v60 }
 0x6c8   : > { %3944 = vpow2.f32 %v3051_v4  ;;  %v3063_v18 = vmul.f32 1.442695, %v3049_v6  ;;  %v3065_v1 = vmul.f32 1.442695, %v3050_v37 }
 0x6c9   : > { %3946 = vpow2.f32 %v3053_v52 }
 0x6ca   : > { %3948 = vpow2.f32 %v3055_v44 }
 0x6cb   : > { %3950 = vpow2.f32 %v3057_v30 }
 0x6cc   : > { %3952 = vpow2.f32 %v3059_v7 }
 0x6cd   : > { %3954 = vpow2.f32 %v3061_v14 }
 0x6ce   : > { %v3945_v23 = vpop.eup %3944  ;;  %3956 = vpow2.f32 %v3063_v18 }
 0x6cf   : > { %v3947_v54 = vpop.eup %3946  ;;  %v3067_v16 = vsel %vm2991_vm10, %v3945_v23, 0.0  ;;  %3958 = vpow2.f32 %v3065_v1 }
 0x6d0   : > { %v3949_v24 = vpop.eup %3948  ;;  %v3068_v38 = vsel %vm2991_vm10, %v3947_v54, 0.0 }
 0x6d1   : > { %v3951_v22 = vpop.eup %3950  ;;  %v3069_v40 = vadd.f32 %v3068_v38, %v3067_v16  ;;  %v3070_v55 = vsel %vm2991_vm10, %v3949_v24, 0.0 }
 0x6d2   : > { %v3953_v5 = vpop.eup %3952  ;;  %v3072_v50 = vsel %vm2991_vm10, %v3951_v22, 0.0 }
 0x6d3   : > { %v3071_v17 = vadd.f32 %v3070_v55, %v3069_v40  ;;  %v3955_v15 = vpop.eup %3954  ;;  %v3074_v59 = vsel %vm2991_vm10, %v3953_v5, 0.0 }
 0x6d4   : > { %v3957_v47 = vpop.eup %3956  ;;  %v3076_v45 = vsel %vm2991_vm10, %v3955_v15, 0.0 }
 0x6d5   : > { %v3073_v34 = vadd.f32 %v3072_v50, %v3071_v17  ;;  %v3959_v20 = vpop.eup %3958  ;;  %v3078_v33 = vsel %vm2991_vm10, %v3957_v47, 0.0 }
 0x6d6   : > { %v3080_v21 = vsel %vm3002_vm14, %v3959_v20, 0.0 }
 0x6d7   : > { %v3075_v53 = vadd.f32 %v3074_v59, %v3073_v34 }
 0x6d9   : > { %v3077_v9 = vadd.f32 %v3076_v45, %v3075_v53 }
 0x6db   : > { %v3079_v36 = vadd.f32 %v3078_v33, %v3077_v9  ;;  %v3172_v9 = vpop.permute.xlu1 %3171 }
 0x6dc   : > { %v3174_v33 = vperm.slane %v3172_v9, 0 }
 0x6dd   : > { %v3081_v27 = vadd.f32 %v3080_v21, %v3079_v36 }
 0x6df   : > { %v3082_v61 = vrot.slane %v3081_v27, 4 }
 0x6e1   : > { %v3083_v58 = vadd.f32 %v3082_v61, %v3081_v27 }
 0x6e3   : > { %v3084_v3 = vrot.slane %v3083_v58, 2 }
 0x6e5   : > { %v3085_v29 = vadd.f32 %v3084_v3, %v3083_v58 }
 0x6e7   : > { %v3086_v8 = vrot.slane %v3085_v29, 1 }
 0x6e9   : > { %v3087_v46 = vadd.f32 %v3086_v8, %v3085_v29 }
 0x6eb   : > { %3960 = vrcp.f32 %v3087_v46  ;;  %v3099_v31 = vand.u32 2147483648, %v3087_v46  ;;  %v3097_v63 = vand.u32 2147483647, %v3087_v46  ;;  %vm3093_vm0 = vweird.f32 %v3087_v46 }
 0x6ed   : > { %v3100_v49 = vor.u32 1.1754944e-38, %v3099_v31  ;;  %vm3098_vm2 = vcmp.eq.f32.partialorder %v3097_v63, 8.507059e+37 }
 0x6f1   : > { %v3961_v39 = vpop.eup %3960 }
 0x6f2   : > { %v3089_v32 = vmul.f32 %v3961_v39, %v3087_v46  ;;  %vm3094_vm15 = vweird.f32 %v3961_v39 }
 0x6f3   : > { %vm3095_vm1 = vmor %vm3093_vm0, %vm3094_vm15 }
 0x6f4   : > { %v3090_v28 = vsub.f32 1.0, %v3089_v32 }
 0x6f6   : > { %v3091_v0 = vmul.f32 %v3961_v39, %v3090_v28 }
 0x6f8   : > { %v3092_v26 = vadd.f32 %v3961_v39, %v3091_v0 }
 0x6fa   : > { %v3096_v19 = vsel %vm3095_vm1, %v3961_v39, %v3092_v26 }
 0x6fb   : > { %v3101_v2 = vsel %vm3098_vm2, %v3100_v49, %v3096_v19 }
 0x6fc   : > { %v3102_v11 = vmul.f32 %v3945_v23, %v3101_v2  ;;  %v3103_v43 = vmul.f32 %v3947_v54, %v3101_v2  ;;  %v3104_v41 = vmul.f32 %v3949_v24, %v3101_v2  ;;  %v3105_v62 = vmul.f32 %v3951_v22, %v3101_v2 }
 0x6fd   : > { %v3106_v25 = vmul.f32 %v3953_v5, %v3101_v2  ;;  %v3107_v60 = vmul.f32 %v3955_v15, %v3101_v2  ;;  %v3108_v14 = vmul.f32 %v3957_v47, %v3101_v2  ;;  %v3109_v1 = vmul.f32 %v3959_v20, %v3101_v2 }
 0x6fe   : > { %v3110_v4 = vmul.f32 %v3102_v11, %v5169_v13  ;;  %v3111_v52 = vmul.f32 %v3103_v43, %v5171_v57  ;;  %v3112_v44 = vmul.f32 %v3104_v41, %v5173_v51  ;;  %v3113_v30 = vmul.f32 %v3105_v62, %v5175_v35 }
 0x6ff   : > { %v3114_v18 = vmul.f32 %v3106_v25, %v5177_v48  ;;  %v3115_v13 = vmul.f32 %v3107_v60, %v5179_v12  ;;  %v3116_v16 = vmul.f32 %v3108_v14, %v5181_v10  ;;  %v3117_v38 = vmul.f32 %v3109_v1, %v5191_v42 }
 0x700   : > { %v3118_v6 = vsel %vm2991_vm10, %v3110_v4, 0.0  ;;  %v3119_v7 = vsel %vm2991_vm10, %v3111_v52, 0.0  ;;  %v3121_v23 = vsel %vm2991_vm10, %v3112_v44, 0.0  ;;  %v3123_v57 = vsel %vm2991_vm10, %v3113_v30, 0.0 }
 0x701   : > { %v3120_v37 = vadd.f32 %v3119_v7, %v3118_v6  ;;  %v3125_v35 = vsel %vm2991_vm10, %v3114_v18, 0.0  ;;  %v3127_v22 = vsel %vm2991_vm10, %v3115_v13, 0.0  ;;  %v3129_v48 = vsel %vm2991_vm10, %v3116_v16, 0.0 }
 0x702   : > { %v3131_v5 = vsel %vm3002_vm14, %v3117_v38, 0.0  ;;  %v3162_v12 = vrot.slane %v5166_v56, 4 }
 0x703   : > { %v3122_v54 = vadd.f32 %v3121_v23, %v3120_v37 }
 0x704   : > { %v3163_v10 = vadd.f32 %v3162_v12, %v5166_v56 }
 0x705   : > { %v3124_v51 = vadd.f32 %v3123_v57, %v3122_v54 }
 0x706   : > { %v3164_v47 = vrot.slane %v3163_v10, 2 }
 0x707   : > { %v3126_v24 = vadd.f32 %v3125_v35, %v3124_v51 }
 0x708   : > { %v3165_v53 = vadd.f32 %v3164_v47, %v3163_v10 }
 0x709   : > { %v3128_v40 = vadd.f32 %v3127_v22, %v3126_v24 }
 0x70a   : > { %v3166_v20 = vrot.slane %v3165_v53, 1 }
 0x70b   : > { %v3130_v55 = vadd.f32 %v3129_v48, %v3128_v40 }
 0x70c   : > { %v3167_v36 = vadd.f32 %v3166_v20, %v3165_v53 }
 0x70d   : > { %v3132_v17 = vadd.f32 %v3131_v5, %v3130_v55 }
 0x70f   : > { %v3133_v50 = vrot.slane %v3132_v17, 4 }
 0x711   : > { %v3134_v15 = vadd.f32 %v3133_v50, %v3132_v17 }
 0x713   : > { %v3135_v34 = vrot.slane %v3134_v15, 2 }
 0x715   : > { %v3136_v59 = vadd.f32 %v3135_v34, %v3134_v15 }
 0x717   : > { %v3137_v42 = vrot.slane %v3136_v59, 1 }
 0x719   : > { %v3138_v45 = vadd.f32 %v3137_v42, %v3136_v59 }
 0x71b   : > { %v3175_v21 = vmul.f32 %v3174_v33, %v3138_v45 }
 0x71d   : > { %v3176_v27 = vadd.f32 %v3175_v21, %v3167_v36 }
 0x71f   : > { %v3177_v61 = vmul.f32 0.015625, %v3176_v27 }
 0x721   : > { %3179 = vst.msk [vmem:[%s627_s28] sm:$0x1] %vm3178_vm3, %v3177_v61 }
 0x722 PF: > { %s32_s23 = sadd.s32 1, %s3972_s23  }
 0x723   : > { %p29_p4 = scmp.ge.s32.totalorder %s32_s23, 4  }
 0x725   :  { %31 = sbr.rel (!%p29_p4) target bundleno = 6 (0x6), region = 130 }

// kernel: dbda_forward.4
= control target key start
LH: loop header
LB: loop body
LE: loop exit
PB: predicated region body
PF: predicated region fallthrough
CT: control target
= control target key end

     0   :  { %s5243_s29 = smov 0   ;;  %s6546_s0 = inlined_call_operand.vmem [shape: f32[2,8,8,16], index: 0, kind: input, shape index: {}]   ;;  %s6547_s1 = inlined_call_operand.vmem [shape: bf16[16,24], index: 1, kind: input, shape index: {}]   ;;  %s6548_s2 = inlined_call_operand.vmem [shape: f32[1,24], index: 2, kind: input, shape index: {}]   ;;  %s6549_s3 = inlined_call_operand.vmem [shape: f32[1,24], index: 3, kind: input, shape index: {}]   ;;  %s6550_s4 = inlined_call_operand.vmem [shape: f32[1,24], index: 4, kind: input, shape index: {}]   ;;  %s6551_s5 = inlined_call_operand.vmem [shape: bf16[9,24,12], index: 5, kind: input, shape index: {}]   ;;  %s6552_s6 = inlined_call_operand.vmem [shape: f32[1,12], index: 6, kind: input, shape index: {}]   ;;  %s6553_s7 = inlined_call_operand.vmem [shape: f32[1,36], index: 7, kind: input, shape index: {}]   ;;  %s6554_s8 = inlined_call_operand.vmem [shape: f32[1,36], index: 8, kind: input, shape index: {}]   ;;  %s6555_s9 = inlined_call_operand.vmem [shape: bf16[9,36,12], index: 9, kind: input, shape index: {}]   ;;  %s6556_s10 = inlined_call_operand.vmem [shape: f32[1,12], index: 10, kind: input, shape index: {}]   ;;  %s6557_s11 = inlined_call_operand.vmem [shape: f32[1,48], index: 11, kind: input, shape index: {}]   ;;  %s6558_s12 = inlined_call_operand.vmem [shape: f32[1,48], index: 12, kind: input, shape index: {}]   ;;  %s6559_s13 = inlined_call_operand.vmem [shape: bf16[9,48,12], index: 13, kind: input, shape index: {}]   ;;  %s6560_s14 = inlined_call_operand.vmem [shape: f32[1,12], index: 14, kind: input, shape index: {}]   ;;  %s6561_s15 = inlined_call_operand.vmem [shape: bf16[60,8], index: 15, kind: input, shape index: {}]   ;;  %s6562_s16 = inlined_call_operand.vmem [shape: f32[1,8], index: 16, kind: input, shape index: {}]   ;;  %s6563_s17 = inlined_call_operand.vmem [shape: bf16[60,8], index: 17, kind: input, shape index: {}]   ;;  %s6564_s18 = inlined_call_operand.vmem [shape: f32[1,8], index: 18, kind: input, shape index: {}]   ;;  %s6565_s19 = inlined_call_operand.vmem [shape: bf16[60,60], index: 19, kind: input, shape index: {}]   ;;  %s6566_s20 = inlined_call_operand.vmem [shape: f32[1,60], index: 20, kind: input, shape index: {}]   ;;  %s6567_s21 = inlined_call_operand.<no memory space> [shape: f32[1,1], index: 21, kind: input, shape index: {}]   ;;  %s6568_s22 = inlined_call_operand.vmem [shape: f32[2,1,60], index: 22, kind: output, shape index: {}]  }
   0x1   :  { %6570 = sst [smem:[#allocation5_spill]] %s6546_s0  ;;  %v27_v0 = vstv %s6567_s21 }
   0x2   :  { %6571 = sst [smem:[#allocation6_spill]] %s6547_s1  ;;  %28 = vst [vmem:[#allocation4] sm:$0x1] %v27_v0 }
   0x3   :  { %6572 = sst [smem:[#allocation7_spill]] %s6548_s2 }
   0x4   :  { %6573 = sst [smem:[#allocation8_spill]] %s6549_s3 }
   0x5   :  { %6574 = sst [smem:[#allocation9_spill]] %s6550_s4 }
   0x6   :  { %6575 = sst [smem:[#allocation10_spill]] %s6551_s5 }
   0x7   :  { %6576 = sst [smem:[#allocation11_spill]] %s6552_s6 }
   0x8 LB: > { %s4312_s30 = sadd.s32 4294967295, %s5117_s29   ;;  %p4316_p0 = scmp.ge.s32.totalorder %s5117_s29, 1  ;;  %s5117_s29 = sphi %s5243_s29, %s34_s29  }
   0x9   : > { %p614_p1 = scmp.lt.s32.totalorder %s5117_s29, 3 }
   0xb   : > { %p615_p2 = pnand %p4316_p0, %p614_p1 }
   0xc   : > { %s6577_s23 = sld [smem:[#allocation6_spill]] (!%p615_p2)  ;;  %p674_p3 = scmp.lt.s32.totalorder (!%p615_p2), %s4312_s30, 1 }
   0xd   : > { %618 = sbr.rel (%p615_p2) target bundleno = 2292 (0x8f4), region = 108  ;;  %s6578_s24 = sld [smem:[#allocation5_spill]] (!%p615_p2) }
   0xe   : > { %s6579_s2 = sld [smem:[#allocation7_spill]] (!%p615_p2)  ;;  %s5122_s26 = smov (!%p615_p2), 48  }
   0xf   : > { %s6580_s28 = sld [smem:[#allocation8_spill]] (!%p615_p2) }
  0x10   : > { %s6582_s5 = sld [smem:[#allocation10_spill]] (!%p615_p2) }
  0x12   : > { %v4834_v1 = vld [vmem:[%s6577_s23] sm:$0xff]  ;;  %vm683_vm0 = vcmask 392192   ;;  %vm685_vm1 = vcmask 386048   ;;  %v5119_v2 = vmov 0.0   ;;  %s6603_s30 = smov (!%p674_p3, %s4312_s30), 1  ;;  %vm729_vm2 = vcmask 130048  }
  0x13   : > { %687 = vst.msk [vmem:[#allocation3 + $0x10] sm:$0xff] %vm683_vm0, %v5119_v2  ;;  %749 = vmatpush.bf16.msra.mxu0 %v4834_v1  ;;  %4901 = vmatpush.bf16.msra.mxu1 %v4834_v1  ;;  %s4833_s21 = sshll.u32 %s6603_s30, 6  ;;  %vm771_vm3 = vcmask 195584   ;;  %s6581_s23 = sld [smem:[#allocation9_spill]]  ;;  %vm990_vm6 = vcmask 1043456   ;;  %vm1680_vm13 = vcmask 294080  }
  0x14   : > { %688 = vst.msk [vmem:[#allocation3 + $0x18] sm:$0x3] %vm685_vm1, %v5119_v2  ;;  %4902 = vmatpush.bf16.msra.mxu2 %v4834_v1  ;;  %4903 = vmatpush.bf16.msra.mxu3 %v4834_v1  ;;  %s678_s6 = scalar_lea.vmem %s6578_s24, %s4833_s21  ;;  %v4919_v15 = vld [vmem:[%s6579_s2] ss:$0 sm:$0xff]  ;;  %s5120_s21 = smov 24   ;;  %vm1915_vm14 = vcmask 1041408  }
  0x15   : > { %684 = vst.msk [vmem:[#allocation3] sm:$0xff] %vm683_vm0, %v5119_v2  ;;  %v705_v3 = vld [vmem:[%s678_s6] sm:$0xff]  ;;  %v706_v4 = vld [vmem:[%s678_s6 + $0x8] sm:$0xff]  ;;  %v707_v5 = vld [vmem:[%s678_s6 + $0x10] sm:$0xff] }
  0x16   : > { %686 = vst.msk [vmem:[#allocation3 + $0x8] sm:$0x3] %vm685_vm1, %v5119_v2  ;;  %v716_v6 = vpack.c.bf16 %v706_v4, %v705_v3  ;;  %v708_v7 = vld [vmem:[%s678_s6 + $0x18] sm:$0xff]  ;;  %v709_v8 = vld [vmem:[%s678_s6 + $0x20] sm:$0xff]  ;;  %v710_v9 = vld [vmem:[%s678_s6 + $0x28] sm:$0xff] }
  0x17   : > { %689 = vst.msk [vmem:[#allocation3 + $0x20] sm:$0xff] %vm683_vm0, %v5119_v2  ;;  %v717_v10 = vpack.c.bf16 %v708_v7, %v707_v5  ;;  %v718_v11 = vpack.c.bf16 %v710_v9, %v709_v8  ;;  %v711_v12 = vld [vmem:[%s678_s6 + $0x30] sm:$0xff]  ;;  %v712_v13 = vld [vmem:[%s678_s6 + $0x38] sm:$0xff]  ;;  %v4920_v16 = vld [vmem:[%s6580_s28] ss:$0 sm:$0xff]  ;;  %s5121_s28 = smov 36  }
  0x18   : > { %690 = vst.msk [vmem:[#allocation3 + $0x28] sm:$0x3] %vm685_vm1, %v5119_v2  ;;  %4323 = vmatmul.msk.bf16.vlgmr.msra.gmra.mxu0 %vm729_vm2, %v716_v6  ;;  %v719_v14 = vpack.c.bf16 %v712_v13, %v711_v12 }
  0x19   : > { %691 = vst.msk [vmem:[#allocation3 + $0x30] sm:$0xff] %vm683_vm0, %v5119_v2  ;;  %4324 = vmatmul.msk.bf16.vlgmr.msra.gmra.mxu1 %vm729_vm2, %v717_v10  ;;  %4325 = vmatmul.msk.bf16.vlgmr.msra.gmra.mxu2 %vm729_vm2, %v718_v11  ;;  %v5293_v19 = vld [vmem:[%s6581_s23] ss:$0 sm:$0xff]  ;;  %v968_v11 = vld [vmem:[%s6582_s5 + $0x8] sm:$0xf]  ;;  %s6597_s23 = sld [smem:[#allocation11_spill]] }
  0x1a   : > { %692 = vst.msk [vmem:[#allocation3 + $0x38] sm:$0x3] %vm685_vm1, %v5119_v2  ;;  %4326 = vmatmul.msk.bf16.vlgmr.msra.gmra.mxu3 %vm729_vm2, %v719_v14 }
  0x1b   : > { %693 = vst.msk [vmem:[#allocation3 + $0x40] sm:$0xff] %vm683_vm0, %v5119_v2 }
  0x1c   : > { %694 = vst.msk [vmem:[#allocation3 + $0x48] sm:$0x3] %vm685_vm1, %v5119_v2 }
  0x1d   : > { %695 = vst.msk [vmem:[#allocation3 + $0x50] sm:$0xff] %vm683_vm0, %v5119_v2 }
  0x1e   : > { %696 = vst.msk [vmem:[#allocation3 + $0x58] sm:$0x3] %vm685_vm1, %v5119_v2 }
  0x1f   : > { %697 = vst.msk [vmem:[#allocation3 + $0x60] sm:$0xff] %vm683_vm0, %v5119_v2 }
  0x20   : > { %698 = vst.msk [vmem:[#allocation3 + $0x68] sm:$0x3] %vm685_vm1, %v5119_v2 }
  0x21   : > { %699 = vst.msk [vmem:[#allocation3 + $0x70] sm:$0xff] %vm683_vm0, %v5119_v2 }
  0x22   : > { %700 = vst.msk [vmem:[#allocation3 + $0x78] sm:$0x3] %vm685_vm1, %v5119_v2 }
  0x23   : > { %701 = vst.msk [vmem:[#allocation3 + $0x80] sm:$0xff] %vm683_vm0, %v5119_v2 }
  0x24   : > { %702 = vst.msk [vmem:[#allocation3 + $0x88] sm:$0x3] %vm685_vm1, %v5119_v2 }
  0x25   : > { %703 = vst.msk [vmem:[#allocation3 + $0x90] sm:$0xff] %vm683_vm0, %v5119_v2 }
  0x26   : > { %704 = vst.msk [vmem:[#allocation3 + $0x98] sm:$0x3] %vm685_vm1, %v5119_v2 }
  0x95   : > { %v751_v17 = vpop.f32.mrf.mxu0 }
  0x96   : > { %v752_v18 = vadd.f32 %v4919_v15, %v751_v17  ;;  %v756_v20 = vpop.f32.mrf.mxu1 }
  0x97   : > { %v757_v21 = vadd.f32 %v4919_v15, %v756_v20 }
  0x98   : > { %772 = vst.msk [vmem:[#allocation2] sm:$0xff] %vm771_vm3, %v752_v18  ;;  %v785_v22 = vmul.f32 %v4920_v16, %v752_v18 }
  0x99   : > { %774 = vst.msk [vmem:[#allocation2 + $0x10] sm:$0xff] %vm771_vm3, %v757_v21  ;;  %v787_v23 = vmul.f32 %v4920_v16, %v757_v21  ;;  %v974_v21 = vunpack.c.l.b16 %v968_v11 }
  0x9a   : > { %v5298_v24 = vadd.f32 %v5293_v19, %v785_v22 }
  0x9b   : > { %v5301_v25 = vadd.f32 %v5293_v19, %v787_v23 }
  0x9c   : > { %v812_v26 = vand.u32 2147483647, %v5298_v24  ;;  %v761_v27 = vpop.f32.mrf.mxu2  ;;  %v804_v59 = vmax.f32 %v5298_v24, 0.0 }
  0x9d   : > { %v814_v28 = vand.u32 2147483647, %v5301_v25  ;;  %v762_v29 = vadd.f32 %v4919_v15, %v761_v27  ;;  %v766_v30 = vpop.f32.mrf.mxu3  ;;  %v753_v31 = vpop.f32.mrf.mxu0  ;;  %v806_v60 = vmax.f32 %v5301_v25, 0.0 }
  0x9e   : > { %v820_v32 = vsub.f32 0.0, %v812_v26  ;;  %v767_v33 = vadd.f32 %v4919_v15, %v766_v30  ;;  %v754_v34 = vadd.f32 %v4919_v15, %v753_v31  ;;  %v758_v35 = vpop.f32.mrf.mxu1  ;;  %v976_v31 = vpack.c.b16 %v974_v21, %v974_v21 }
  0x9f   : > { %v822_v36 = vsub.f32 0.0, %v814_v28  ;;  %776 = vst.msk [vmem:[#allocation2 + $0x20] sm:$0xff] %vm771_vm3, %v762_v29  ;;  %v789_v37 = vmul.f32 %v4920_v16, %v762_v29  ;;  %v759_v38 = vadd.f32 %v4919_v15, %v758_v35 }
  0xa0   : > { %v828_v39 = vmul.f32 1.442695, %v820_v32  ;;  %778 = vst.msk [vmem:[#allocation2 + $0x30] sm:$0xff] %vm771_vm3, %v767_v33  ;;  %v791_v40 = vmul.f32 %v4920_v16, %v767_v33  ;;  %v786_v41 = vmul.f32 %v4920_v16, %v754_v34  ;;  %v992_v21 = vsel %vm990_vm6, %v976_v31, 0 }
  0xa1   : > { %v832_v42 = vmul.f32 1.442695, %v822_v36  ;;  %v5308_v43 = vadd.f32 %v5293_v19, %v789_v37  ;;  %773 = vst.msk [vmem:[#allocation2 + $0x8] sm:$0xff] %vm771_vm3, %v754_v34  ;;  %v788_v44 = vmul.f32 %v4920_v16, %v759_v38  ;;  %1000 = vmatpush.bf16.msrb.mxu1 %v992_v21 }
  0xa2   : > { %4933 = vpow2.f32 %v828_v39  ;;  %v5312_v45 = vadd.f32 %v5293_v19, %v791_v40  ;;  %v5315_v46 = vadd.f32 %v5293_v19, %v786_v41  ;;  %775 = vst.msk [vmem:[#allocation2 + $0x18] sm:$0xff] %vm771_vm3, %v759_v38 }
  0xa3   : > { %4935 = vpow2.f32 %v832_v42  ;;  %v816_v47 = vand.u32 2147483647, %v5308_v43  ;;  %v5320_v48 = vadd.f32 %v5293_v19, %v788_v44  ;;  %v808_v13 = vmax.f32 %v5308_v43, 0.0 }
  0xa4   : > { %v818_v49 = vand.u32 2147483647, %v5312_v45  ;;  %v813_v50 = vand.u32 2147483647, %v5315_v46  ;;  %v763_v51 = vpop.f32.mrf.mxu2  ;;  %v805_v18 = vmax.f32 %v5315_v46, 0.0 }
  0xa5   : > { %v824_v52 = vsub.f32 0.0, %v816_v47  ;;  %v815_v53 = vand.u32 2147483647, %v5320_v48  ;;  %v764_v54 = vadd.f32 %v4919_v15, %v763_v51  ;;  %v768_v55 = vpop.f32.mrf.mxu3 }
  0xa6   : > { %v826_v56 = vsub.f32 0.0, %v818_v49  ;;  %v821_v57 = vsub.f32 0.0, %v813_v50  ;;  %v769_v58 = vadd.f32 %v4919_v15, %v768_v55 }
  0xa7   : > { %v836_v61 = vmul.f32 1.442695, %v824_v52  ;;  %v823_v62 = vsub.f32 0.0, %v815_v53  ;;  %777 = vst.msk [vmem:[#allocation2 + $0x28] sm:$0xff] %vm771_vm3, %v764_v54  ;;  %v790_v2 = vmul.f32 %v4920_v16, %v764_v54 }
  0xa8   : > { %v4934_v63 = vpop.eup %4933  ;;  %v840_v0 = vmul.f32 1.442695, %v826_v56  ;;  %v830_v1 = vmul.f32 1.442695, %v821_v57  ;;  %779 = vst.msk [vmem:[#allocation2 + $0x38] sm:$0xff] %vm771_vm3, %v769_v58  ;;  %v792_v3 = vmul.f32 %v4920_v16, %v769_v58  ;;  %v810_v16 = vmax.f32 %v5312_v45, 0.0 }
  0xa9   : > { %v4936_v4 = vpop.eup %4935  ;;  %v844_v5 = vadd.f32 1.0, %v4934_v63  ;;  %v847_v6 = vmul.f32 -0.5, %v4934_v63  ;;  %v850_v7 = vand.u32 2147483647, %v4934_v63  ;;  %4937 = vpow2.f32 %v836_v61 }
  0xaa   : > { %v862_v8 = vadd.f32 1.0, %v4936_v4  ;;  %v865_v9 = vmul.f32 -0.5, %v4936_v4  ;;  %v868_v10 = vand.u32 2147483647, %v4936_v4  ;;  %4939 = vpow2.f32 %v840_v0 }
  0xab   : > { %4941 = vlog2.f32 %v844_v5  ;;  %v848_v12 = vadd.f32 1.0, %v847_v6  ;;  %v834_v14 = vmul.f32 1.442695, %v823_v62  ;;  %v5335_v17 = vadd.f32 %v5293_v19, %v790_v2  ;;  %v4337_v2 = vld [vmem:[%s6582_s5 + $0x14] sm:$0xf] }
  0xac   : > { %4943 = vlog2.f32 %v862_v8  ;;  %v866_v15 = vadd.f32 1.0, %v865_v9  ;;  %v5339_v20 = vadd.f32 %v5293_v19, %v792_v3  ;;  %vm5341_vm4 = vcmp.lt.f32.partialorder %v850_v7, 0.0004427343 }
  0xad   : > { %4945 = vpow2.f32 %v830_v1  ;;  %vm5345_vm5 = vcmp.lt.f32.partialorder %v868_v10, 0.0004427343  ;;  %v817_v26 = vand.u32 2147483647, %v5335_v17  ;;  %v849_v28 = vmul.f32 %v4934_v63, %v848_v12 }
  0xae   : > { %4947 = vpow2.f32 %v834_v14  ;;  %v867_v29 = vmul.f32 %v4936_v4, %v866_v15  ;;  %v819_v30 = vand.u32 2147483647, %v5339_v20  ;;  %v4359_v14 = vld [vmem:[%s6582_s5 + $0x2c] sm:$0xf]  ;;  %v1052_v22 = vunpack.c.l.b16 %v4337_v2 }
  0xaf   : > { %v4938_v27 = vpop.eup %4937  ;;  %v825_v39 = vsub.f32 0.0, %v817_v26 }
  0xb0   : > { %v4940_v19 = vpop.eup %4939  ;;  %v880_v32 = vadd.f32 1.0, %v4938_v27  ;;  %v883_v33 = vmul.f32 -0.5, %v4938_v27  ;;  %v886_v34 = vand.u32 2147483647, %v4938_v27  ;;  %v827_v44 = vsub.f32 0.0, %v819_v30 }
  0xb1   : > { %v4942_v35 = vpop.eup %4941  ;;  %v898_v36 = vadd.f32 1.0, %v4940_v19  ;;  %v901_v37 = vmul.f32 -0.5, %v4940_v19  ;;  %v904_v38 = vand.u32 2147483647, %v4940_v19 }
  0xb2   : > { %v4944_v40 = vpop.eup %4943  ;;  %v846_v41 = vmul.f32 0.6931472, %v4942_v35  ;;  %4949 = vlog2.f32 %v880_v32  ;;  %v884_v42 = vadd.f32 1.0, %v883_v33  ;;  %vm5351_vm7 = vcmp.lt.f32.partialorder %v886_v34, 0.0004427343 }
  0xb3   : > { %v4946_v47 = vpop.eup %4945  ;;  %v864_v49 = vmul.f32 0.6931472, %v4944_v40  ;;  %4951 = vlog2.f32 %v898_v36  ;;  %v902_v51 = vadd.f32 1.0, %v901_v37  ;;  %vm5357_vm8 = vcmp.lt.f32.partialorder %v904_v38, 0.0004427343 }
  0xb4   : > { %v4948_v52 = vpop.eup %4947  ;;  %v852_v53 = vsel %vm5341_vm4, %v849_v28, %v846_v41  ;;  %v853_v55 = vadd.f32 1.0, %v4946_v47  ;;  %v856_v56 = vmul.f32 -0.5, %v4946_v47  ;;  %v885_v61 = vmul.f32 %v4938_v27, %v884_v42  ;;  %v4835_v28 = vld [vmem:[%s6582_s5] sm:$0xff] }
  0xb5   : > { %v916_v57 = vadd.f32 %v852_v53, %v804_v59  ;;  %v870_v58 = vsel %vm5345_vm5, %v867_v29, %v864_v49  ;;  %v859_v62 = vand.u32 2147483647, %v4946_v47  ;;  %v871_v1 = vadd.f32 1.0, %v4948_v52  ;;  %v4348_v59 = vld [vmem:[%s6582_s5 + $0x20] sm:$0xf]  ;;  %1001 = vmatpush.bf16.msrb.mxu1 %v4835_v28 }
  0xb6   : > { %v918_v63 = vadd.f32 %v870_v58, %v806_v60  ;;  %4953 = vlog2.f32 %v853_v55  ;;  %v857_v0 = vadd.f32 1.0, %v856_v56  ;;  %v903_v3 = vmul.f32 %v4940_v19, %v902_v51 }
  0xb7   : > { %4955 = vtanh.f32 %v916_v57  ;;  %v874_v4 = vmul.f32 -0.5, %v4948_v52  ;;  %v877_v5 = vand.u32 2147483647, %v4948_v52  ;;  %vm5373_vm9 = vcmp.lt.f32.partialorder %v859_v62, 0.0004427343 }
  0xb8   : > { %v4950_v6 = vpop.eup %4949  ;;  %4957 = vtanh.f32 %v918_v63  ;;  %v838_v60 = vmul.f32 1.442695, %v825_v39  ;;  %v842_v8 = vmul.f32 1.442695, %v827_v44  ;;  %v858_v11 = vmul.f32 %v4946_v47, %v857_v0  ;;  %v4836_v47 = vld [vmem:[%s6582_s5 + $0xc] sm:$0xff] }
  0xb9   : > { %v4952_v9 = vpop.eup %4951  ;;  %v882_v10 = vmul.f32 0.6931472, %v4950_v6  ;;  %4959 = vlog2.f32 %v871_v1  ;;  %v875_v12 = vadd.f32 1.0, %v874_v4  ;;  %vm5383_vm10 = vcmp.lt.f32.partialorder %v877_v5, 0.0004427343  ;;  %v954_v4 = vld [vmem:[#allocation3] sm:$0xff] }
  0xba   : > { %v900_v15 = vmul.f32 0.6931472, %v4952_v9  ;;  %4961 = vpow2.f32 %v838_v60  ;;  %v1129_v27 = vunpack.c.l.b16 %v4348_v59  ;;  %v1054_v19 = vpack.c.b16 %v1052_v22, %v1052_v22  ;;  %v1031_v5 = vld [vmem:[#allocation3 + $0x1] sm:$0xff] }
  0xbb   : > { %v888_v23 = vsel %vm5351_vm7, %v885_v61, %v882_v10  ;;  %4963 = vpow2.f32 %v842_v8  ;;  %v1206_v32 = vunpack.c.l.b16 %v4359_v14  ;;  %v876_v36 = vmul.f32 %v4948_v52, %v875_v12  ;;  %v1108_v59 = vld [vmem:[#allocation3 + $0x2] sm:$0xff] }
  0xbc   : > { %v4954_v29 = vpop.eup %4953  ;;  %v920_v30 = vadd.f32 %v888_v23, %v808_v13  ;;  %v906_v31 = vsel %vm5357_vm8, %v903_v3, %v900_v15  ;;  %v1131_v37 = vpack.c.b16 %v1129_v27, %v1129_v27  ;;  %v1069_v40 = vsel %vm990_vm6, %v1054_v19, 0 }
  0xbd   : > { %v4956_v33 = vpop.eup %4955  ;;  %v922_v34 = vadd.f32 %v906_v31, %v810_v16  ;;  %v855_v35 = vmul.f32 0.6931472, %v4954_v29  ;;  %v1208_v41 = vpack.c.b16 %v1206_v32, %v1206_v32  ;;  %1077 = vmatpush.bf16.msrb.mxu2 %v1069_v40  ;;  %v807_v53 = vmax.f32 %v5320_v48, 0.0 }
  0xbe   : > { %v4958_v38 = vpop.eup %4957  ;;  %v932_v39 = vmul.f32 %v4956_v33, %v5298_v24  ;;  %4965 = vtanh.f32 %v920_v30  ;;  %v1146_v16 = vsel %vm990_vm6, %v1131_v37, 0  ;;  %v811_v27 = vmax.f32 %v5339_v20, 0.0  ;;  %v4370_v30 = vld [vmem:[%s6582_s5 + $0x38] sm:$0xf] }
  0xbf   : > { %v4960_v13 = vpop.eup %4959  ;;  %v934_v42 = vmul.f32 %v4958_v38, %v5301_v25  ;;  %4967 = vtanh.f32 %v922_v34  ;;  %v861_v44 = vsel %vm5373_vm9, %v858_v11, %v855_v35  ;;  %1154 = vmatpush.bf16.msrb.mxu3 %v1146_v16  ;;  %v4837_v25 = vld [vmem:[%s6582_s5 + $0x18] sm:$0xff]  ;;  %v1223_v51 = vsel %vm990_vm6, %v1208_v41, 0 }
  0xc0   : > { %v4962_v24 = vpop.eup %4961  ;;  %941 = vst.msk [vmem:[#allocation3 + $0x11] sm:$0xff] %vm771_vm3, %v932_v39  ;;  %v917_v49 = vadd.f32 %v861_v44, %v805_v18  ;;  %v873_v50 = vmul.f32 0.6931472, %v4960_v13  ;;  %1231 = vmatpush.bf16.msrb.mxu0 %v1223_v51  ;;  %v4838_v18 = vld [vmem:[%s6582_s5 + $0x24] sm:$0xff]  ;;  %v809_v29 = vmax.f32 %v5335_v17, 0.0  ;;  %v1283_v32 = vunpack.c.l.b16 %v4370_v30 }
  0xc1   : > { %v4964_v52 = vpop.eup %4963  ;;  %943 = vst.msk [vmem:[#allocation3 + $0x31] sm:$0xff] %vm771_vm3, %v934_v42  ;;  %v889_v54 = vadd.f32 1.0, %v4962_v24  ;;  %v892_v55 = vmul.f32 -0.5, %v4962_v24  ;;  %1078 = vmatpush.bf16.msrb.mxu2 %v4836_v47  ;;  %v895_v2 = vand.u32 2147483647, %v4962_v24  ;;  %vm2668_vm9 = vcmask 392480  }
  0xc2   : > { %4969 = vtanh.f32 %v917_v49  ;;  %v879_v56 = vsel %vm5383_vm10, %v876_v36, %v873_v50  ;;  %v907_v57 = vadd.f32 1.0, %v4964_v52  ;;  %v910_v58 = vmul.f32 -0.5, %v4964_v52 }
  0xc3   : > { %v919_v61 = vadd.f32 %v879_v56, %v807_v53  ;;  %4971 = vlog2.f32 %v889_v54  ;;  %v893_v63 = vadd.f32 1.0, %v892_v55  ;;  %1155 = vmatpush.bf16.msrb.mxu3 %v4837_v25  ;;  %v913_v7 = vand.u32 2147483647, %v4964_v52  ;;  %v4392_v53 = vld [vmem:[%s6582_s5 + $0x50] sm:$0xf] }
  0xc4   : > { %v4966_v62 = vpop.eup %4965  ;;  %4973 = vlog2.f32 %v907_v57  ;;  %v911_v3 = vadd.f32 1.0, %v910_v58  ;;  %1232 = vmatpush.bf16.msrb.mxu0 %v4838_v18  ;;  %vm5430_vm11 = vcmp.lt.f32.partialorder %v895_v2, 0.0004427343  ;;  %v1285_v36 = vpack.c.b16 %v1283_v32, %v1283_v32  ;;  %v4839_v54 = vld [vmem:[%s6582_s5 + $0x30] sm:$0xff] }
  0xc5   : > { %v4968_v0 = vpop.eup %4967  ;;  %v936_v1 = vmul.f32 %v4966_v62, %v5308_v43  ;;  %4975 = vtanh.f32 %v919_v61  ;;  %v894_v43 = vmul.f32 %v4962_v24, %v893_v63  ;;  %vm914_vm12 = vcmp.lt.f32.partialorder %v913_v7, 0.0004427343 }
  0xc6   : > { %v938_v6 = vmul.f32 %v4968_v0, %v5312_v45  ;;  %v912_v22 = vmul.f32 %v4964_v52, %v911_v3  ;;  %v1300_v37 = vsel %vm990_vm6, %v1285_v36, 0  ;;  %v4381_v52 = vld [vmem:[%s6582_s5 + $0x44] sm:$0xf]  ;;  %v1438_v56 = vunpack.c.l.b16 %v4392_v53 }
  0xc7   : > { %945 = vst.msk [vmem:[#allocation3 + $0x51] sm:$0xff] %vm771_vm3, %v936_v1  ;;  %v955_v60 = vld [vmem:[#allocation3 + $0x10] sm:$0xff]  ;;  %1308 = vmatpush.bf16.msra.mxu1 %v1300_v37  ;;  %v1360_v18 = vunpack.c.l.b16 %v4381_v52  ;;  %v4843_v36 = vld [vmem:[%s6582_s5 + $0x60] sm:$0xff] }
  0xc8   : > { %v5422_v8 = vld [vmem:[#allocation3 + $0x11] sm:$0xff]  ;;  %v4970_v10 = vpop.eup %4969  ;;  %947 = vst.msk [vmem:[#allocation3 + $0x71] sm:$0xff] %vm771_vm3, %v938_v6  ;;  %v962_v11 = vpack.c.bf16 %v955_v60, %v954_v4  ;;  %v1440_v1 = vpack.c.b16 %v1438_v56, %v1438_v56  ;;  %v4841_v6 = vld [vmem:[%s6582_s5 + $0x48] sm:$0xff] }
  0xc9   : > { %v5424_v9 = vld [vmem:[#allocation3 + $0x12] sm:$0xff]  ;;  %v1039_v12 = vpack.c.bf16 %v5422_v8, %v1031_v5  ;;  %v4972_v15 = vpop.eup %4971  ;;  %v933_v45 = vmul.f32 %v4970_v10, %v5315_v46  ;;  %v1362_v0 = vpack.c.b16 %v1360_v18, %v1360_v18  ;;  %v4840_v5 = vld [vmem:[%s6582_s5 + $0x3c] sm:$0xff] }
  0xca   : > { %v1116_v14 = vpack.c.bf16 %v5424_v9, %v1108_v59  ;;  %v4974_v23 = vpop.eup %4973  ;;  %v891_v26 = vmul.f32 0.6931472, %v4972_v15  ;;  %4331 = vmatmul.msk.bf16.vlgmr.msrb.gmra.mxu1 %vm771_vm3, %v962_v11  ;;  %v957_v16 = vld [vmem:[#allocation3 + $0x30] sm:$0xff]  ;;  %v1455_v4 = vsel %vm990_vm6, %v1440_v1, 0  ;;  %v4403_v59 = vld [vmem:[%s6582_s5 + $0x5c] sm:$0xf] }
  0xcb   : > { %4342 = vmatmul.msk.bf16.vlgmr.msrb.gmra.mxu2 %vm771_vm3, %v1039_v12  ;;  %v4976_v28 = vpop.eup %4975  ;;  %942 = vst.msk [vmem:[#allocation3 + $0x21] sm:$0xff] %vm771_vm3, %v933_v45  ;;  %v909_v46 = vmul.f32 0.6931472, %v4974_v23  ;;  %v5455_v47 = vld [vmem:[#allocation3 + $0x31] sm:$0xff]  ;;  %1309 = vmatpush.bf16.msra.mxu1 %v4839_v54  ;;  %v1377_v3 = vsel %vm990_vm6, %v1362_v0, 0  ;;  %v1515_v7 = vunpack.c.l.b16 %v4403_v59 }
  0xcc   : > { %4353 = vmatmul.msk.bf16.vlgmr.msrb.gmra.mxu3 %vm771_vm3, %v1116_v14  ;;  %v935_v31 = vmul.f32 %v4976_v28, %v5320_v48  ;;  %v897_v19 = vsel %vm5430_vm11, %v894_v43, %v891_v26  ;;  %v5464_v50 = vld [vmem:[#allocation3 + $0x32] sm:$0xff]  ;;  %1385 = vmatpush.bf16.msra.mxu2 %v1377_v3 }
  0xcd   : > { %v921_v33 = vadd.f32 %v897_v19, %v809_v29  ;;  %v915_v34 = vsel %vm914_vm12, %v912_v22, %v909_v46  ;;  %1463 = vmatpush.bf16.msra.mxu3 %v1455_v4  ;;  %v4842_v11 = vld [vmem:[%s6582_s5 + $0x54] sm:$0xff] }
  0xce   : > { %944 = vst.msk [vmem:[#allocation3 + $0x41] sm:$0xff] %vm771_vm3, %v935_v31  ;;  %v923_v35 = vadd.f32 %v915_v34, %v811_v27  ;;  %v959_v57 = vld [vmem:[#allocation3 + $0x50] sm:$0xff]  ;;  %v4414_v31 = vld [vmem:[%s6582_s5 + $0x68] sm:$0xf] }
  0xcf   : > { %4977 = vtanh.f32 %v921_v33  ;;  %v5489_v58 = vld [vmem:[#allocation3 + $0x51] sm:$0xff]  ;;  %v1592_v19 = vunpack.c.l.b16 %v4414_v31 }
  0xd0   : > { %4979 = vtanh.f32 %v923_v35  ;;  %v1113_v63 = vld [vmem:[#allocation3 + $0x52] sm:$0xff]  ;;  %1386 = vmatpush.bf16.msra.mxu2 %v4840_v5 }
  0xd1   : > { %1464 = vmatpush.bf16.msra.mxu3 %v4841_v6  ;;  %v961_v14 = vld [vmem:[#allocation3 + $0x70] sm:$0xff]  ;;  %v1594_v32 = vpack.c.b16 %v1592_v19, %v1592_v19 }
  0xd2   : > { %v1186_v38 = vld [vmem:[#allocation3 + $0x20] sm:$0xff]  ;;  %v1038_v45 = vld [vmem:[#allocation3 + $0x71] sm:$0xff] }
  0xd3   : > { %v1193_v39 = vpack.c.bf16 %v1186_v38, %v955_v60  ;;  %v5449_v48 = vld [vmem:[#allocation3 + $0x21] sm:$0xff]  ;;  %v5458_v24 = vpack.c.bf16 %v957_v16, %v1186_v38  ;;  %v1517_v60 = vpack.c.b16 %v1515_v7, %v1515_v7  ;;  %v1115_v22 = vld [vmem:[#allocation3 + $0x72] sm:$0xff]  ;;  %v1609_v33 = vsel %vm990_vm6, %v1594_v32, 0 }
  0xd4   : > { %v5452_v42 = vld [vmem:[#allocation3 + $0x22] sm:$0xff]  ;;  %v5462_v49 = vpack.c.bf16 %v5455_v47, %v5449_v48  ;;  %v1270_v46 = vpack.c.bf16 %v5449_v48, %v5422_v8  ;;  %1617 = vmatpush.bf16.msrb.mxu1 %v1609_v33 }
  0xd5   : > { %v4978_v40 = vpop.eup %4977  ;;  %4364 = vmatmul.msk.bf16.vlgmr.msrb.gmra.mxu0 %vm771_vm3, %v1193_v39  ;;  %v5477_v51 = vld [vmem:[#allocation3 + $0x41] sm:$0xff]  ;;  %v1532_v43 = vsel %vm990_vm6, %v1517_v60, 0  ;;  %v1347_v30 = vpack.c.bf16 %v5452_v42, %v5424_v9  ;;  %v1424_v39 = vld [vmem:[#allocation3 + $0x90] sm:$0xff] }
  0xd6   : > { %v4980_v41 = vpop.eup %4979  ;;  %v937_v13 = vmul.f32 %v4978_v40, %v5335_v17  ;;  %v5469_v17 = vpack.c.bf16 %v5464_v50, %v5452_v42  ;;  %v1112_v55 = vld [vmem:[#allocation3 + $0x42] sm:$0xff]  ;;  %v1041_v62 = vpack.c.bf16 %v5489_v58, %v5477_v51  ;;  %1540 = vmatpush.bf16.msra.mxu0 %v1532_v43  ;;  %v1271_v8 = vpack.c.bf16 %v5477_v51, %v5455_v47 }
  0xd7   : > { %v939_v44 = vmul.f32 %v4980_v41, %v5339_v20  ;;  %v1188_v20 = vld [vmem:[#allocation3 + $0x40] sm:$0xff]  ;;  %v5493_v2 = vpack.c.bf16 %v1113_v63, %v1112_v55  ;;  %v1348_v9 = vpack.c.bf16 %v1112_v55, %v5464_v50  ;;  %v1578_v55 = vld [vmem:[#allocation3 + $0x92] sm:$0xff] }
  0xd8   : > { %946 = vst.msk [vmem:[#allocation3 + $0x61] sm:$0xff] %vm771_vm3, %v937_v13  ;;  %v1194_v25 = vpack.c.bf16 %v1188_v20, %v957_v16  ;;  %v964_v61 = vpack.c.bf16 %v959_v57, %v1188_v20  ;;  %1618 = vmatpush.bf16.msrb.mxu1 %v4843_v36  ;;  %v1501_v13 = vld [vmem:[#allocation3 + $0x91] sm:$0xff] }
  0xd9   : > { %948 = vst.msk [vmem:[#allocation3 + $0x81] sm:$0xff] %vm771_vm3, %v939_v44 }
  0xda   : > { %4332 = vmatmul.msk.bf16.gmra.mxu1 %vm771_vm3, %v5458_v24  ;;  %1541 = vmatpush.bf16.msra.mxu0 %v4842_v11 }
  0xdb   : > { %4343 = vmatmul.msk.bf16.gmra.mxu2 %vm771_vm3, %v5462_v49 }
  0xdc   : > { %4354 = vmatmul.msk.bf16.gmra.mxu3 %vm771_vm3, %v5469_v17 }
  0xdf   : > { %v1190_v10 = vld [vmem:[#allocation3 + $0x60] sm:$0xff] }
  0xe0   : > { %v1195_v12 = vpack.c.bf16 %v1190_v10, %v959_v57  ;;  %v1037_v15 = vld [vmem:[#allocation3 + $0x61] sm:$0xff]  ;;  %v965_v23 = vpack.c.bf16 %v961_v14, %v1190_v10 }
  0xe1   : > { %v1114_v21 = vld [vmem:[#allocation3 + $0x62] sm:$0xff]  ;;  %v1042_v26 = vpack.c.bf16 %v1038_v45, %v1037_v15  ;;  %v1272_v34 = vpack.c.bf16 %v1037_v15, %v5489_v58 }
  0xe2   : > { %v1119_v27 = vpack.c.bf16 %v1115_v22, %v1114_v21  ;;  %v1192_v28 = vld [vmem:[#allocation3 + $0x80] sm:$0xff]  ;;  %v1349_v35 = vpack.c.bf16 %v1114_v21, %v1113_v63 }
  0xe3   : > { %v1196_v29 = vpack.c.bf16 %v1192_v28, %v961_v14  ;;  %v1269_v37 = vld [vmem:[#allocation3 + $0x81] sm:$0xff]  ;;  %v1428_v41 = vpack.c.bf16 %v1424_v39, %v1192_v28  ;;  %v5597_v21 = vld [vmem:[%s6597_s23] ss:$0 sm:$0xff] }
  0xe4   : > { %v1346_v38 = vld [vmem:[#allocation3 + $0x82] sm:$0xff]  ;;  %v1273_v40 = vpack.c.bf16 %v1269_v37, %v1038_v45  ;;  %v1505_v42 = vpack.c.bf16 %v1501_v13, %v1269_v37 }
  0xe5   : > { %4365 = vmatmul.msk.bf16.gmra.mxu0 %vm771_vm3, %v1194_v25  ;;  %v1350_v48 = vpack.c.bf16 %v1346_v38, %v1115_v22  ;;  %v1582_v57 = vpack.c.bf16 %v1578_v55, %v1346_v38 }
  0xea   : > { %4333 = vmatmul.msk.bf16.gmra.mxu1 %vm771_vm3, %v964_v61 }
  0xeb   : > { %4344 = vmatmul.msk.bf16.gmra.mxu2 %vm771_vm3, %v1041_v62 }
  0xec   : > { %4355 = vmatmul.msk.bf16.gmra.mxu3 %vm771_vm3, %v5493_v2 }
  0xf5   : > { %4366 = vmatmul.msk.bf16.gmra.mxu0 %vm771_vm3, %v1195_v12 }
  0xfa   : > { %4334 = vmatmul.msk.bf16.gmra.mxu1 %vm771_vm3, %v965_v23 }
  0xfb   : > { %4345 = vmatmul.msk.bf16.gmra.mxu2 %vm771_vm3, %v1042_v26 }
  0xfc   : > { %4356 = vmatmul.msk.bf16.gmra.mxu3 %vm771_vm3, %v1119_v27 }
 0x105   : > { %4367 = vmatmul.msk.bf16.gmra.mxu0 %vm771_vm3, %v1196_v29 }
 0x10a   : > { %4375 = vmatmul.msk.bf16.vlgmr.msra.gmra.mxu1 %vm771_vm3, %v1270_v46 }
 0x10b   : > { %4386 = vmatmul.msk.bf16.vlgmr.msra.gmra.mxu2 %vm771_vm3, %v1347_v30 }
 0x10c   : > { %4397 = vmatmul.msk.bf16.vlgmr.msra.gmra.mxu3 %vm771_vm3, %v5458_v24 }
 0x115   : > { %4408 = vmatmul.msk.bf16.vlgmr.msra.gmra.mxu0 %vm771_vm3, %v5462_v49 }
 0x11a   : > { %4376 = vmatmul.msk.bf16.gmra.mxu1 %vm771_vm3, %v1271_v8 }
 0x11b   : > { %4387 = vmatmul.msk.bf16.gmra.mxu2 %vm771_vm3, %v1348_v9 }
 0x11c   : > { %4398 = vmatmul.msk.bf16.gmra.mxu3 %vm771_vm3, %v964_v61 }
 0x125   : > { %4409 = vmatmul.msk.bf16.gmra.mxu0 %vm771_vm3, %v1041_v62 }
 0x12a   : > { %4377 = vmatmul.msk.bf16.gmra.mxu1 %vm771_vm3, %v1272_v34 }
 0x12b   : > { %4388 = vmatmul.msk.bf16.gmra.mxu2 %vm771_vm3, %v1349_v35 }
 0x12c   : > { %4399 = vmatmul.msk.bf16.gmra.mxu3 %vm771_vm3, %v965_v23 }
 0x135   : > { %4410 = vmatmul.msk.bf16.gmra.mxu0 %vm771_vm3, %v1042_v26 }
 0x13a   : > { %4378 = vmatmul.msk.bf16.gmra.mxu1 %vm771_vm3, %v1273_v40 }
 0x13b   : > { %4389 = vmatmul.msk.bf16.gmra.mxu2 %vm771_vm3, %v1350_v48 }
 0x13c   : > { %4400 = vmatmul.msk.bf16.gmra.mxu3 %vm771_vm3, %v1428_v41 }
 0x145   : > { %4411 = vmatmul.msk.bf16.gmra.mxu0 %vm771_vm3, %v1505_v42 }
 0x147   : > { %v1003_v44 = vpop.f32.mrf.mxu1 }
 0x14a   : > { %4419 = vmatmul.msk.bf16.vlgmr.msrb.gmra.mxu1 %vm771_vm3, %v5469_v17 }
 0x14e   : > { %v1080_v24 = vpop.f32.mrf.mxu2 }
 0x14f   : > { %v1005_v16 = vpop.f32.mrf.mxu1  ;;  %v1157_v50 = vpop.f32.mrf.mxu3 }
 0x150   : > { %v1024_v32 = vadd.f32 %v5597_v21, %v1005_v16 }
 0x152   : > { %v1234_v20 = vpop.f32.mrf.mxu0 }
 0x156   : > { %v1082_v25 = vpop.f32.mrf.mxu2 }
 0x157   : > { %v1008_v47 = vpop.f32.mrf.mxu1  ;;  %v1159_v52 = vpop.f32.mrf.mxu3  ;;  %v1101_v8 = vadd.f32 %v1082_v25, %v1024_v32 }
 0x158   : > { %v1025_v38 = vadd.f32 %v5597_v21, %v1008_v47 }
 0x159   : > { %v1178_v35 = vadd.f32 %v1159_v52, %v1101_v8 }
 0x15a   : > { %4420 = vmatmul.msk.bf16.gmra.mxu1 %vm771_vm3, %v5493_v2  ;;  %v1236_v54 = vpop.f32.mrf.mxu0 }
 0x15b   : > { %v1255_v48 = vadd.f32 %v1236_v54, %v1178_v35 }
 0x15e   : > { %v1085_v17 = vpop.f32.mrf.mxu2 }
 0x15f   : > { %v5556_v49 = vpop.f32.mrf.mxu1  ;;  %v1162_v18 = vpop.f32.mrf.mxu3  ;;  %v1102_v41 = vadd.f32 %v1085_v17, %v1025_v38 }
 0x160   : > { %v1026_v25 = vadd.f32 %v5597_v21, %v5556_v49 }
 0x162   : > { %v1239_v58 = vpop.f32.mrf.mxu0 }
 0x166   : > { %v1087_v61 = vpop.f32.mrf.mxu2 }
 0x167   : > { %v5558_v51 = vpop.f32.mrf.mxu1  ;;  %v1164_v63 = vpop.f32.mrf.mxu3 }
 0x16a   : > { %4421 = vmatmul.msk.bf16.gmra.mxu1 %vm771_vm3, %v1119_v27  ;;  %v5568_v0 = vpop.f32.mrf.mxu0  ;;  %v1023_v27 = vadd.f32 %v5597_v21, %v1003_v44  ;;  %v1179_v44 = vadd.f32 %v1162_v18, %v1102_v41 }
 0x16c   : > { %v1100_v28 = vadd.f32 %v1080_v24, %v1023_v27  ;;  %v1256_v55 = vadd.f32 %v1239_v58, %v1179_v44 }
 0x16e   : > { %v5570_v1 = vpop.f32.mrf.mxu2  ;;  %v1177_v46 = vadd.f32 %v1157_v50, %v1100_v28  ;;  %v1027_v28 = vadd.f32 %v5597_v21, %v5558_v51 }
 0x16f   : > { %v5561_v53 = vpop.f32.mrf.mxu1  ;;  %v5572_v3 = vpop.f32.mrf.mxu3 }
 0x170   : > { %v1254_v33 = vadd.f32 %v1234_v20, %v1177_v46  ;;  %v1104_v58 = vadd.f32 %v5570_v1, %v1027_v28  ;;  %v1028_v51 = vadd.f32 %v5597_v21, %v5561_v53 }
 0x172   : > { %v5574_v4 = vpop.f32.mrf.mxu0 }
 0x176   : > { %v5576_v5 = vpop.f32.mrf.mxu2 }
 0x177   : > { %v5563_v56 = vpop.f32.mrf.mxu1  ;;  %v5578_v6 = vpop.f32.mrf.mxu3 }
 0x178   : > { %v1029_v53 = vadd.f32 %v5597_v21, %v5563_v56 }
 0x17a   : > { %4422 = vmatmul.msk.bf16.gmra.mxu1 %vm771_vm3, %v1582_v57  ;;  %v5580_v60 = vpop.f32.mrf.mxu0  ;;  %v1103_v57 = vadd.f32 %v1087_v61, %v1026_v25  ;;  %vm1857_vm3 = vcmask 293888  }
 0x17c   : > { %v1180_v17 = vadd.f32 %v1164_v63, %v1103_v57  ;;  %v1181_v63 = vadd.f32 %v5572_v3, %v1104_v58  ;;  %v5654_v58 = vld [vmem:[%s6554_s8] ss:$0 sm:$0xff] }
 0x17e   : > { %v5582_v10 = vpop.f32.mrf.mxu2  ;;  %v1257_v49 = vadd.f32 %v5568_v0, %v1180_v17  ;;  %v1105_v0 = vadd.f32 %v5576_v5, %v1028_v51 }
 0x17f   : > { %v5566_v62 = vpop.f32.mrf.mxu1  ;;  %v5584_v43 = vpop.f32.mrf.mxu3  ;;  %v1106_v5 = vadd.f32 %v5582_v10, %v1029_v53  ;;  %v4439_v53 = vld [vmem:[%s6555_s9 + $0x24] sm:$0x3] }
 0x182   : > { %v5586_v12 = vpop.f32.mrf.mxu0 }
 0x186   : > { %v5588_v14 = vpop.f32.mrf.mxu2 }
 0x187   : > { %v1311_v2 = vpop.f32.mrf.mxu1  ;;  %v5592_v45 = vpop.f32.mrf.mxu3 }
 0x188   : > { %v1331_v9 = vadd.f32 %v1311_v2, %v1254_v33 }
 0x18a   : > { %v5599_v22 = vpop.f32.mrf.mxu0 }
 0x18e   : > { %v1388_v23 = vpop.f32.mrf.mxu2 }
 0x18f   : > { %v1313_v59 = vpop.f32.mrf.mxu1  ;;  %v1466_v29 = vpop.f32.mrf.mxu3  ;;  %v1408_v36 = vadd.f32 %v1388_v23, %v1331_v9 }
 0x190   : > { %v1332_v42 = vadd.f32 %v1313_v59, %v1255_v48 }
 0x191   : > { %v1486_v13 = vadd.f32 %v1466_v29, %v1408_v36  ;;  %v1182_v36 = vadd.f32 %v5578_v6, %v1105_v0  ;;  %v1183_v6 = vadd.f32 %v5584_v43, %v1106_v5 }
 0x192   : > { %v1543_v30 = vpop.f32.mrf.mxu0 }
 0x193   : > { %v1563_v24 = vadd.f32 %v1543_v30, %v1486_v13 }
 0x196   : > { %v1390_v31 = vpop.f32.mrf.mxu2 }
 0x197   : > { %v1316_v7 = vpop.f32.mrf.mxu1  ;;  %v1468_v34 = vpop.f32.mrf.mxu3  ;;  %v1409_v50 = vadd.f32 %v1390_v31, %v1332_v42 }
 0x198   : > { %v1333_v54 = vadd.f32 %v1316_v7, %v1256_v55 }
 0x199   : > { %v1487_v2 = vadd.f32 %v1468_v34, %v1409_v50  ;;  %v1258_v34 = vadd.f32 %v5574_v4, %v1181_v63  ;;  %v1259_v4 = vadd.f32 %v5580_v60, %v1182_v36  ;;  %v1260_v60 = vadd.f32 %v5586_v12, %v1183_v6 }
 0x19a   : > { %v1545_v39 = vpop.f32.mrf.mxu0 }
 0x19b   : > { %v1564_v59 = vadd.f32 %v1545_v39, %v1487_v2 }
 0x19e   : > { %v1393_v40 = vpop.f32.mrf.mxu2 }
 0x19f   : > { %v1318_v11 = vpop.f32.mrf.mxu1  ;;  %v1471_v16 = vpop.f32.mrf.mxu3  ;;  %v1410_v18 = vadd.f32 %v1393_v40, %v1333_v54 }
 0x1a0   : > { %v1334_v30 = vadd.f32 %v1318_v11, %v1257_v49 }
 0x1a1   : > { %v1488_v61 = vadd.f32 %v1471_v16, %v1410_v18  ;;  %v1030_v16 = vadd.f32 %v5597_v21, %v5566_v62 }
 0x1a2   : > { %v1548_v23 = vpop.f32.mrf.mxu0 }
 0x1a3   : > { %v1565_v7 = vadd.f32 %v1548_v23, %v1488_v61  ;;  %v1107_v10 = vadd.f32 %v5588_v14, %v1030_v16 }
 0x1a5   : > { %v1184_v43 = vadd.f32 %v5592_v45, %v1107_v10 }
 0x1a6   : > { %v1395_v47 = vpop.f32.mrf.mxu2 }
 0x1a7   : > { %v5590_v15 = vpop.f32.mrf.mxu1  ;;  %v1473_v46 = vpop.f32.mrf.mxu3  ;;  %v1411_v33 = vadd.f32 %v1395_v47, %v1334_v30  ;;  %v1261_v62 = vadd.f32 %v5599_v22, %v1184_v43 }
 0x1a8   : > { %v1335_v11 = vadd.f32 %v5590_v15, %v1258_v34 }
 0x1a9   : > { %v1489_v1 = vadd.f32 %v1473_v46, %v1411_v33 }
 0x1aa   : > { %v1550_v31 = vpop.f32.mrf.mxu0 }
 0x1ab   : > { %v1566_v3 = vadd.f32 %v1550_v31, %v1489_v1 }
 0x1ae   : > { %v1398_v32 = vpop.f32.mrf.mxu2 }
 0x1af   : > { %v5601_v26 = vpop.f32.mrf.mxu1  ;;  %v1476_v35 = vpop.f32.mrf.mxu3  ;;  %v1412_v38 = vadd.f32 %v1398_v32, %v1335_v11 }
 0x1b0   : > { %v1336_v15 = vadd.f32 %v5601_v26, %v1259_v4 }
 0x1b1   : > { %v1490_v13 = vadd.f32 %v1476_v35, %v1412_v38 }
 0x1b2   : > { %v1553_v39 = vpop.f32.mrf.mxu0 }
 0x1b3   : > { %v1567_v44 = vadd.f32 %v1553_v39, %v1490_v13  ;;  %v1887_v39 = vld [vmem:[%s6555_s9 + $0x10] sm:$0x3] }
 0x1b6   : > { %v1400_v40 = vpop.f32.mrf.mxu2 }
 0x1b7   : > { %v5604_v19 = vpop.f32.mrf.mxu1  ;;  %v1478_v42 = vpop.f32.mrf.mxu3 }
 0x1b8   : > { %v1337_v26 = vadd.f32 %v5604_v19, %v1260_v60 }
 0x1be   : > { %v1403_v25 = vpop.f32.mrf.mxu2 }
 0x1bf   : > { %v5607_v37 = vpop.f32.mrf.mxu1  ;;  %v1414_v57 = vadd.f32 %v1403_v25, %v1337_v26  ;;  %v1481_v2 = vpop.f32.mrf.mxu3 }
 0x1c0   : > { %v1338_v14 = vadd.f32 %v5607_v37, %v1261_v62  ;;  %v5649_v37 = vld [vmem:[%s6553_s7] ss:$0 sm:$0xff] }
 0x1c1   : > { %v1492_v21 = vadd.f32 %v1481_v2, %v1414_v57 }
 0x1c6   : > { %v1405_v54 = vpop.f32.mrf.mxu2 }
 0x1c7   : > { %v1620_v20 = vpop.f32.mrf.mxu1 }
 0x1c8   : > { %v1640_v52 = vadd.f32 %v1620_v20, %v1563_v24  ;;  %v1413_v24 = vadd.f32 %v1400_v40, %v1336_v15  ;;  %v1555_v20 = vpop.f32.mrf.mxu0 }
 0x1ca   : > { %1656 = vrot.lane.b32.xlu0 %v1640_v52, %s5120_s21  ;;  %v1491_v52 = vadd.f32 %v1478_v42, %v1413_v24 }
 0x1cc   : > { %v1568_v55 = vadd.f32 %v1555_v20, %v1491_v52 }
 0x1cf   : > { %v1622_v27 = vpop.f32.mrf.mxu1 }
 0x1d0   : > { %v1641_v29 = vadd.f32 %v1622_v27, %v1564_v59  ;;  %v1558_v12 = vpop.f32.mrf.mxu0  ;;  %v1415_v59 = vadd.f32 %v1405_v54, %v1338_v14  ;;  %v1483_v27 = vpop.f32.mrf.mxu3 }
 0x1d1   : > { %v1569_v17 = vadd.f32 %v1558_v12, %v1492_v21  ;;  %v4473_v21 = vld [vmem:[%s6555_s9 + $0x4c] sm:$0x3] }
 0x1d2   : > { %1658 = vrot.lane.b32.xlu0 %v1641_v29, %s5120_s21  ;;  %v1493_v45 = vadd.f32 %v1483_v27, %v1415_v59  ;;  %v2153_v59 = vunpack.c.l.b16 %v4473_v21 }
 0x1d7   : > { %v1625_v8 = vpop.f32.mrf.mxu1 }
 0x1d8   : > { %v1642_v9 = vadd.f32 %v1625_v8, %v1565_v7  ;;  %v1560_v28 = vpop.f32.mrf.mxu0 }
 0x1d9   : > { %v1570_v29 = vadd.f32 %v1560_v28, %v1493_v45  ;;  %v4847_v28 = vld [vmem:[%s6555_s9 + $0x1c] sm:$0xff] }
 0x1da   : > { %1660 = vrot.lane.b32.xlu1 %v1642_v9, %s5120_s21 }
 0x1df   : > { %v1627_v48 = vpop.f32.mrf.mxu1 }
 0x1e0   : > { %v1643_v41 = vadd.f32 %v1627_v48, %v1566_v3  ;;  %v1897_v48 = vunpack.c.l.b16 %v1887_v39 }
 0x1e2   : > { %1662 = vrot.lane.b32.xlu1 %v1643_v41, %s5120_s21  ;;  %v4456_v41 = vld [vmem:[%s6555_s9 + $0x38] sm:$0x3]  ;;  %v1900_v24 = vpack.c.b16 %v1897_v48, %v1897_v48 }
 0x1e3   : > { %v2068_v25 = vunpack.c.l.b16 %v4456_v41  ;;  %v4851_v41 = vld [vmem:[%s6555_s9 + $0x44] sm:$0xff] }
 0x1e4   : > { %v1917_v52 = vsel %vm1915_vm14, %v1900_v24, 0 }
 0x1e5   : > { %1924 = vmatpush.bf16.msrb.mxu2 %v1917_v52  ;;  %v2071_v2 = vpack.c.b16 %v2068_v25, %v2068_v25 }
 0x1e7   : > { %v1630_v50 = vpop.f32.mrf.mxu1 }
 0x1e8   : > { %v1644_v56 = vadd.f32 %v1630_v50, %v1567_v44  ;;  %v1983_v50 = vunpack.c.l.b16 %v4439_v53 }
 0x1ea   : > { %1664 = vrot.lane.b32.xlu2 %v1644_v56, %s5120_s21  ;;  %v1986_v57 = vpack.c.b16 %v1983_v50, %v1983_v50 }
 0x1ec   : > { %v2002_v14 = vsel %vm1915_vm14, %v1986_v57, 0 }
 0x1ed   : > { %2009 = vmatpush.bf16.msrb.mxu3 %v2002_v14 }
 0x1ef   : > { %v1632_v23 = vpop.f32.mrf.mxu1 }
 0x1f0   : > { %v1645_v47 = vadd.f32 %v1632_v23, %v1568_v55  ;;  %v4845_v23 = vld [vmem:[%s6555_s9 + $0x8] sm:$0xff] }
 0x1f1   : > { %1925 = vmatpush.bf16.msrb.mxu2 %v4845_v23  ;;  %2010 = vmatpush.bf16.msrb.mxu3 %v4847_v28 }
 0x1f2   : > { %1666 = vrot.lane.b32.xlu2 %v1645_v47, %s5120_s21 }
 0x1f7   : > { %v1635_v18 = vpop.f32.mrf.mxu1 }
 0x1f8   : > { %v1646_v19 = vadd.f32 %v1635_v18, %v1569_v17  ;;  %v2087_v17 = vsel %vm1915_vm14, %v2071_v2, 0 }
 0x1f9   : > { %2094 = vmatpush.bf16.msrb.mxu0 %v2087_v17 }
 0x1fa   : > { %1668 = vrot.lane.b32.xlu0 %v1646_v19, %s5120_s21 }
 0x1ff   : > { %v1637_v46 = vpop.f32.mrf.mxu1 }
 0x200   : > { %v1647_v49 = vadd.f32 %v1637_v46, %v1570_v29  ;;  %v4849_v29 = vld [vmem:[%s6555_s9 + $0x30] sm:$0xff] }
 0x201   : > { %2095 = vmatpush.bf16.msrb.mxu0 %v4849_v29 }
 0x202   : > { %1670 = vrot.lane.b32.xlu1 %v1647_v49, %s5120_s21 }
 0x23c   : > { %v1657_v22 = vpop.permute.xlu0 %1656 }
 0x23d   : > { %1681 = vst.msk [vmem:[#allocation2] sm:$0xff] %vm1680_vm13, %v1657_v22 }
 0x244   : > { %v1689_v61 = vld [vmem:[#allocation2] sm:$0xff]  ;;  %v1659_v30 = vpop.permute.xlu0 %1658  ;;  %v1665_v31 = vpop.permute.xlu2 %1664 }
 0x245   : > { %v1702_v32 = vmul.f32 %v5649_v37, %v1689_v61  ;;  %1682 = vst.msk [vmem:[#allocation2 + $0x8] sm:$0xff] %vm1680_vm13, %v1659_v30  ;;  %v4844_v30 = vld [vmem:[%s6555_s9] sm:$0xff] }
 0x246   : > { %1685 = vst.msk [vmem:[#allocation2 + $0x20] sm:$0xff] %vm1680_vm13, %v1665_v31  ;;  %v2156_v31 = vpack.c.b16 %v2153_v59, %v2153_v59  ;;  %1926 = vmatpush.bf16.msrb.mxu2 %v4844_v30 }
 0x247   : > { %v5660_v63 = vadd.f32 %v5654_v58, %v1702_v32 }
 0x249   : > { %v1729_v7 = vand.u32 2147483647, %v5660_v63 }
 0x24b   : > { %v1737_v33 = vsub.f32 0.0, %v1729_v7 }
 0x24c   : > { %v1690_v8 = vld [vmem:[#allocation2 + $0x8] sm:$0xff]  ;;  %v1661_v51 = vpop.permute.xlu1 %1660  ;;  %v1667_v9 = vpop.permute.xlu2 %1666 }
 0x24d   : > { %v1745_v34 = vmul.f32 1.442695, %v1737_v33  ;;  %v1703_v0 = vmul.f32 %v5649_v37, %v1690_v8  ;;  %v1693_v1 = vld [vmem:[#allocation2 + $0x20] sm:$0xff]  ;;  %1683 = vst.msk [vmem:[#allocation2 + $0x10] sm:$0xff] %vm1680_vm13, %v1661_v51  ;;  %v1721_v51 = vmax.f32 %v5660_v63, 0.0 }
 0x24e   : > { %v1706_v35 = vmul.f32 %v5649_v37, %v1693_v1  ;;  %1686 = vst.msk [vmem:[#allocation2 + $0x28] sm:$0xff] %vm1680_vm13, %v1667_v9  ;;  %v4846_v1 = vld [vmem:[%s6555_s9 + $0x14] sm:$0xff] }
 0x24f   : > { %4981 = vpow2.f32 %v1745_v34  ;;  %v5668_v11 = vadd.f32 %v5654_v58, %v1703_v0  ;;  %2011 = vmatpush.bf16.msrb.mxu3 %v4846_v1 }
 0x250   : > { %v5671_v36 = vadd.f32 %v5654_v58, %v1706_v35  ;;  %v4848_v35 = vld [vmem:[%s6555_s9 + $0x28] sm:$0xff] }
 0x251   : > { %v1730_v3 = vand.u32 2147483647, %v5668_v11  ;;  %2096 = vmatpush.bf16.msrb.mxu0 %v4848_v35 }
 0x252   : > { %v1733_v38 = vand.u32 2147483647, %v5671_v36 }
 0x253   : > { %v1738_v40 = vsub.f32 0.0, %v1730_v3 }
 0x254   : > { %v1741_v4 = vsub.f32 0.0, %v1733_v38  ;;  %v1691_v5 = vld [vmem:[#allocation2 + $0x10] sm:$0xff]  ;;  %v1663_v13 = vpop.permute.xlu1 %1662 }
 0x255   : > { %v4982_v15 = vpop.eup %4981  ;;  %v1747_v42 = vmul.f32 1.442695, %v1738_v40  ;;  %v1704_v6 = vmul.f32 %v5649_v37, %v1691_v5  ;;  %v1694_v44 = vld [vmem:[#allocation2 + $0x28] sm:$0xff]  ;;  %1684 = vst.msk [vmem:[#allocation2 + $0x18] sm:$0xff] %vm1680_vm13, %v1663_v13  ;;  %v2172_v40 = vsel %vm1915_vm14, %v2156_v31, 0 }
 0x256   : > { %v1761_v16 = vadd.f32 1.0, %v4982_v15  ;;  %v1764_v56 = vmul.f32 -0.5, %v4982_v15  ;;  %v1753_v20 = vmul.f32 1.442695, %v1741_v4  ;;  %v1707_v10 = vmul.f32 %v5649_v37, %v1694_v44  ;;  %2179 = vmatpush.bf16.msra.mxu1 %v2172_v40 }
 0x257   : > { %4983 = vpow2.f32 %v1747_v42  ;;  %v5687_v60 = vadd.f32 %v5654_v58, %v1704_v6  ;;  %v1767_v12 = vand.u32 2147483647, %v4982_v15  ;;  %v1722_v44 = vmax.f32 %v5668_v11, 0.0 }
 0x258   : > { %4985 = vlog2.f32 %v1761_v16  ;;  %v5693_v43 = vadd.f32 %v5654_v58, %v1707_v10  ;;  %v1765_v55 = vadd.f32 1.0, %v1764_v56  ;;  %v4850_v10 = vld [vmem:[%s6555_s9 + $0x3c] sm:$0xff] }
 0x259   : > { %4987 = vpow2.f32 %v1753_v20  ;;  %v1731_v26 = vand.u32 2147483647, %v5687_v60  ;;  %vm1768_vm15 = vcmp.lt.f32.partialorder %v1767_v12, 0.0004427343  ;;  %v1723_v28 = vmax.f32 %v5687_v60, 0.0 }
 0x25a   : > { %v1734_v62 = vand.u32 2147483647, %v5693_v43  ;;  %v1766_v49 = vmul.f32 %v4982_v15, %v1765_v55  ;;  %2180 = vmatpush.bf16.msra.mxu1 %v4851_v41  ;;  %v1726_v30 = vmax.f32 %v5693_v43, 0.0 }
 0x25b   : > { %v1739_v47 = vsub.f32 0.0, %v1731_v26 }
 0x25c   : > { %v1692_v54 = vld [vmem:[#allocation2 + $0x18] sm:$0xff]  ;;  %v1742_v27 = vsub.f32 0.0, %v1734_v62 }
 0x25d   : > { %v4984_v18 = vpop.eup %4983  ;;  %v1749_v19 = vmul.f32 1.442695, %v1739_v47  ;;  %v1705_v45 = vmul.f32 %v5649_v37, %v1692_v54  ;;  %v1725_v47 = vmax.f32 %v5671_v36, 0.0 }
 0x25e   : > { %v4986_v46 = vpop.eup %4985  ;;  %v1770_v22 = vadd.f32 1.0, %v4984_v18  ;;  %v1773_v61 = vmul.f32 -0.5, %v4984_v18  ;;  %v1755_v33 = vmul.f32 1.442695, %v1742_v27  ;;  %v1776_v48 = vand.u32 2147483647, %v4984_v18  ;;  %2181 = vmatpush.bf16.msra.mxu1 %v4850_v10 }
 0x25f   : > { %v4988_v32 = vpop.eup %4987  ;;  %v1763_v7 = vmul.f32 0.6931472, %v4986_v46  ;;  %4989 = vpow2.f32 %v1749_v19  ;;  %v5715_v8 = vadd.f32 %v5654_v58, %v1705_v45 }
 0x260   : > { %4991 = vlog2.f32 %v1770_v22  ;;  %v1797_v9 = vadd.f32 1.0, %v4988_v32  ;;  %v1800_v0 = vmul.f32 -0.5, %v4988_v32  ;;  %v1774_v38 = vadd.f32 1.0, %v1773_v61 }
 0x261   : > { %v1769_v34 = vsel %vm1768_vm15, %v1766_v49, %v1763_v7  ;;  %4993 = vpow2.f32 %v1755_v33  ;;  %v1732_v39 = vand.u32 2147483647, %v5715_v8  ;;  %v1803_v15 = vand.u32 2147483647, %v4988_v32  ;;  %v1871_v33 = vld [vmem:[#allocation3] sm:$0xff] }
 0x262   : > { %v1833_v3 = vadd.f32 %v1769_v34, %v1721_v51  ;;  %4995 = vlog2.f32 %v1797_v9  ;;  %v1801_v53 = vadd.f32 1.0, %v1800_v0  ;;  %v1775_v50 = vmul.f32 %v4984_v18, %v1774_v38  ;;  %v1956_v51 = vld [vmem:[#allocation3 + $0x1] sm:$0xff] }
 0x263   : > { %v1740_v5 = vsub.f32 0.0, %v1732_v39  ;;  %vm1777_vm1 = vcmp.lt.f32.partialorder %v1776_v48, 0.0004427343  ;;  %vm1804_vm2 = vcmp.lt.f32.partialorder %v1803_v15, 0.0004427343 }
 0x264   : > { %4997 = vtanh.f32 %v1833_v3  ;;  %v1802_v20 = vmul.f32 %v4988_v32, %v1801_v53  ;;  %v2041_v3 = vld [vmem:[#allocation3 + $0x2] sm:$0xff] }
 0x265   : > { %v4990_v4 = vpop.eup %4989  ;;  %v1751_v57 = vmul.f32 1.442695, %v1740_v5 }
 0x266   : > { %v4992_v13 = vpop.eup %4991  ;;  %v1779_v42 = vadd.f32 1.0, %v4990_v4  ;;  %v1782_v16 = vmul.f32 -0.5, %v4990_v4  ;;  %v1785_v14 = vand.u32 2147483647, %v4990_v4 }
 0x267   : > { %v4994_v6 = vpop.eup %4993  ;;  %v1772_v24 = vmul.f32 0.6931472, %v4992_v13 }
 0x268   : > { %v4996_v56 = vpop.eup %4995  ;;  %4999 = vlog2.f32 %v1779_v42  ;;  %v1806_v25 = vadd.f32 1.0, %v4994_v6  ;;  %v1809_v55 = vmul.f32 -0.5, %v4994_v6  ;;  %v1783_v12 = vadd.f32 1.0, %v1782_v16 }
 0x269   : > { %v1778_v52 = vsel %vm1777_vm1, %v1775_v50, %v1772_v24  ;;  %v1799_v26 = vmul.f32 0.6931472, %v4996_v56  ;;  %v1812_v19 = vand.u32 2147483647, %v4994_v6  ;;  %vm1786_vm4 = vcmp.lt.f32.partialorder %v1785_v14, 0.0004427343 }
 0x26a   : > { %v4998_v2 = vpop.eup %4997  ;;  %v1834_v23 = vadd.f32 %v1778_v52, %v1722_v44  ;;  %5001 = vlog2.f32 %v1806_v25  ;;  %v1810_v59 = vadd.f32 1.0, %v1809_v55  ;;  %v1784_v45 = vmul.f32 %v4990_v4, %v1783_v12 }
 0x26b   : > { %v1849_v62 = vmul.f32 %v4998_v2, %v5660_v63  ;;  %v1805_v21 = vsel %vm1804_vm2, %v1802_v20, %v1799_v26  ;;  %vm1813_vm5 = vcmp.lt.f32.partialorder %v1812_v19, 0.0004427343  ;;  %v1724_v2 = vmax.f32 %v5715_v8, 0.0 }
 0x26c   : > { %5003 = vtanh.f32 %v1834_v23  ;;  %v1837_v54 = vadd.f32 %v1805_v21, %v1725_v47  ;;  %v1669_v17 = vpop.permute.xlu0 %1668  ;;  %v1811_v49 = vmul.f32 %v4994_v6, %v1810_v59 }
 0x26d   : > { %5005 = vpow2.f32 %v1751_v57  ;;  %1687 = vst.msk [vmem:[#allocation2 + $0x30] sm:$0xff] %vm1680_vm13, %v1669_v17 }
 0x26e   : > { %v5000_v18 = vpop.eup %4999  ;;  %5007 = vtanh.f32 %v1837_v54  ;;  %1858 = vst.msk [vmem:[#allocation3 + $0x11] sm:$0xff] %vm1857_vm3, %v1849_v62 }
 0x26f   : > { %v1781_v27 = vmul.f32 0.6931472, %v5000_v18 }
 0x270   : > { %v5002_v63 = vpop.eup %5001 }
 0x271   : > { %v1787_v29 = vsel %vm1786_vm4, %v1784_v45, %v1781_v27  ;;  %v1808_v46 = vmul.f32 0.6931472, %v5002_v63  ;;  %v4490_v27 = vld [vmem:[%s6555_s9 + $0x60] sm:$0x3]  ;;  %vm3719_vm4 = vcmask 490496  }
 0x272   : > { %v5004_v22 = vpop.eup %5003  ;;  %v1835_v61 = vadd.f32 %v1787_v29, %v1723_v28  ;;  %v2238_v63 = vunpack.c.l.b16 %v4490_v27  ;;  %v4856_v27 = vld [vmem:[%s6555_s9 + $0x78] sm:$0xff] }
 0x273   : > { %v5006_v31 = vpop.eup %5005  ;;  %v1850_v32 = vmul.f32 %v5004_v22, %v5668_v11  ;;  %v1814_v7 = vsel %vm1813_vm5, %v1811_v49, %v1808_v46  ;;  %v4507_v49 = vld [vmem:[%s6555_s9 + $0x74] sm:$0x3]  ;;  %v4524_v22 = vld [vmem:[%s6555_s9 + $0x88] sm:$0x3]  ;;  %vm3907_vm5 = vcmask 64512  }
 0x274   : > { %v5008_v9 = vpop.eup %5007  ;;  %5009 = vtanh.f32 %v1835_v61  ;;  %v1838_v34 = vadd.f32 %v1814_v7, %v1726_v30  ;;  %v1788_v0 = vadd.f32 1.0, %v5006_v31  ;;  %v1695_v1 = vld [vmem:[#allocation2 + $0x30] sm:$0xff]  ;;  %v1671_v35 = vpop.permute.xlu1 %1670  ;;  %v1791_v53 = vmul.f32 -0.5, %v5006_v31 }
 0x275   : > { %v1853_v38 = vmul.f32 %v5008_v9, %v5671_v36  ;;  %v1708_v39 = vmul.f32 %v5649_v37, %v1695_v1  ;;  %1688 = vst.msk [vmem:[#allocation2 + $0x38] sm:$0xff] %vm1680_vm13, %v1671_v35  ;;  %v1872_v40 = vld [vmem:[#allocation3 + $0x10] sm:$0xff]  ;;  %v1794_v44 = vand.u32 2147483647, %v5006_v31  ;;  %v2241_v29 = vpack.c.b16 %v2238_v63, %v2238_v63 }
 0x276   : > { %v5743_v48 = vld [vmem:[#allocation3 + $0x11] sm:$0xff]  ;;  %5011 = vtanh.f32 %v1838_v34  ;;  %v1879_v41 = vpack.c.bf16 %v1872_v40, %v1871_v33  ;;  %1859 = vst.msk [vmem:[#allocation3 + $0x21] sm:$0xff] %vm1857_vm3, %v1850_v32  ;;  %v1792_v42 = vadd.f32 1.0, %v1791_v53  ;;  %v2408_v7 = vunpack.c.l.b16 %v4524_v22 }
 0x277   : > { %v5745_v11 = vld [vmem:[#allocation3 + $0x12] sm:$0xff]  ;;  %v1964_v4 = vpack.c.bf16 %v5743_v48, %v1956_v51  ;;  %5013 = vlog2.f32 %v1788_v0  ;;  %v5750_v5 = vadd.f32 %v5654_v58, %v1708_v39  ;;  %1862 = vst.msk [vmem:[#allocation3 + $0x51] sm:$0xff] %vm1857_vm3, %v1853_v38  ;;  %vm1795_vm6 = vcmp.lt.f32.partialorder %v1794_v44, 0.0004427343 }
 0x278   : > { %v2049_v36 = vpack.c.bf16 %v5745_v11, %v2041_v3  ;;  %4431 = vmatmul.msk.bf16.vlgmr.msrb.gmra.mxu2 %vm1857_vm3, %v1879_v41  ;;  %v1793_v55 = vmul.f32 %v5006_v31, %v1792_v42  ;;  %v2257_v30 = vsel %vm1915_vm14, %v2241_v29, 0  ;;  %v2323_v31 = vunpack.c.l.b16 %v4507_v49  ;;  %v4853_v33 = vld [vmem:[%s6555_s9 + $0x58] sm:$0xff]  ;;  %v4858_v49 = vld [vmem:[%s6555_s9 + $0x8c] sm:$0xff] }
 0x279   : > { %4448 = vmatmul.msk.bf16.vlgmr.msrb.gmra.mxu3 %vm1857_vm3, %v1964_v4  ;;  %v1735_v13 = vand.u32 2147483647, %v5750_v5  ;;  %2264 = vmatpush.bf16.msra.mxu2 %v2257_v30  ;;  %v2411_v0 = vpack.c.b16 %v2408_v7, %v2408_v7  ;;  %v1727_v53 = vmax.f32 %v5750_v5, 0.0  ;;  %v4859_v29 = vld [vmem:[%s6555_s9 + $0x94] sm:$0xff] }
 0x27a   : > { %4465 = vmatmul.msk.bf16.vlgmr.msrb.gmra.mxu0 %vm1857_vm3, %v2049_v36  ;;  %v5010_v15 = vpop.eup %5009  ;;  %v2326_v9 = vpack.c.b16 %v2323_v31, %v2323_v31 }
 0x27b   : > { %v1851_v6 = vmul.f32 %v5010_v15, %v5687_v60  ;;  %v1743_v24 = vsub.f32 0.0, %v1735_v13 }
 0x27c   : > { %v5012_v50 = vpop.eup %5011  ;;  %v1696_v16 = vld [vmem:[#allocation2 + $0x38] sm:$0xff] }
 0x27d   : > { %v5014_v56 = vpop.eup %5013  ;;  %v1854_v20 = vmul.f32 %v5012_v50, %v5693_v43  ;;  %v1757_v25 = vmul.f32 1.442695, %v1743_v24  ;;  %v1709_v10 = vmul.f32 %v5649_v37, %v1696_v16  ;;  %1860 = vst.msk [vmem:[#allocation3 + $0x31] sm:$0xff] %vm1857_vm3, %v1851_v6  ;;  %v2127_v52 = vld [vmem:[#allocation3 + $0x20] sm:$0xff]  ;;  %2265 = vmatpush.bf16.msra.mxu2 %v4853_v33 }
 0x27e   : > { %v1790_v26 = vmul.f32 0.6931472, %v5014_v56  ;;  %v2134_v57 = vpack.c.bf16 %v2127_v52, %v1872_v40  ;;  %v5769_v62 = vld [vmem:[#allocation3 + $0x21] sm:$0xff]  ;;  %v2427_v40 = vsel %vm1915_vm14, %v2411_v0, 0  ;;  %v1876_v24 = vld [vmem:[#allocation3 + $0x50] sm:$0xff] }
 0x27f   : > { %5015 = vpow2.f32 %v1757_v25  ;;  %v5764_v60 = vadd.f32 %v5654_v58, %v1709_v10  ;;  %1863 = vst.msk [vmem:[#allocation3 + $0x61] sm:$0xff] %vm1857_vm3, %v1854_v20  ;;  %v5771_v21 = vld [vmem:[#allocation3 + $0x22] sm:$0xff]  ;;  %2434 = vmatpush.bf16.msra.mxu0 %v2427_v40  ;;  %v5815_v50 = vld [vmem:[#allocation3 + $0x51] sm:$0xff] }
 0x280   : > { %v1796_v23 = vsel %vm1795_vm6, %v1793_v55, %v1790_v26  ;;  %4482 = vmatmul.msk.bf16.vlgmr.msra.gmra.mxu1 %vm1857_vm3, %v2134_v57  ;;  %v5817_v16 = vld [vmem:[#allocation3 + $0x52] sm:$0xff]  ;;  %vm3961_vm6 = vcmask 523264  }
 0x281   : > { %v1836_v43 = vadd.f32 %v1796_v23, %v1724_v2  ;;  %v1736_v37 = vand.u32 2147483647, %v5764_v60  ;;  %v4855_v10 = vld [vmem:[%s6555_s9 + $0x6c] sm:$0xff]  ;;  %v4541_v23 = vld [vmem:[%s6555_s9 + $0x9c] sm:$0x3] }
 0x282   : > { %v4852_v26 = vld [vmem:[%s6555_s9 + $0x50] sm:$0xff] }
 0x283   : > { %5017 = vtanh.f32 %v1836_v43  ;;  %v1744_v47 = vsub.f32 0.0, %v1736_v37  ;;  %v1728_v43 = vmax.f32 %v5764_v60, 0.0  ;;  %v2493_v37 = vunpack.c.l.b16 %v4541_v23  ;;  %2266 = vmatpush.bf16.msra.mxu2 %v4852_v26  ;;  %v2388_v40 = vld [vmem:[#allocation3 + $0x90] sm:$0xff] }
 0x284   : > { %v1874_v12 = vld [vmem:[#allocation3 + $0x30] sm:$0xff] }
 0x285   : > { %v5773_v54 = vld [vmem:[#allocation3 + $0x31] sm:$0xff]  ;;  %v5016_v58 = vpop.eup %5015  ;;  %v1759_v17 = vmul.f32 1.442695, %v1744_v47  ;;  %v5777_v59 = vpack.c.bf16 %v1874_v12, %v2127_v52  ;;  %v4857_v52 = vld [vmem:[%s6555_s9 + $0x80] sm:$0xff] }
 0x286   : > { %v5775_v14 = vld [vmem:[#allocation3 + $0x32] sm:$0xff]  ;;  %v5781_v18 = vpack.c.bf16 %v5773_v54, %v5769_v62  ;;  %v1815_v45 = vadd.f32 1.0, %v5016_v58  ;;  %v1818_v28 = vmul.f32 -0.5, %v5016_v58  ;;  %v1821_v51 = vand.u32 2147483647, %v5016_v58  ;;  %2435 = vmatpush.bf16.msra.mxu0 %v4857_v52  ;;  %v2047_v30 = vld [vmem:[#allocation3 + $0x62] sm:$0xff] }
 0x287   : > { %v5785_v19 = vpack.c.bf16 %v5775_v14, %v5771_v21  ;;  %5019 = vpow2.f32 %v1759_v17 }
 0x288   : > { %5021 = vlog2.f32 %v1815_v45  ;;  %4432 = vmatmul.msk.bf16.gmra.mxu2 %vm1857_vm3, %v5777_v59  ;;  %v1819_v32 = vadd.f32 1.0, %v1818_v28  ;;  %vm1822_vm7 = vcmp.lt.f32.partialorder %v1821_v51, 0.0004427343  ;;  %v2496_v45 = vpack.c.b16 %v2493_v37, %v2493_v37 }
 0x289   : > { %4449 = vmatmul.msk.bf16.gmra.mxu3 %vm1857_vm3, %v5781_v18  ;;  %v5018_v46 = vpop.eup %5017 }
 0x28a   : > { %4466 = vmatmul.msk.bf16.gmra.mxu0 %vm1857_vm3, %v5785_v19  ;;  %v1852_v61 = vmul.f32 %v5018_v46, %v5715_v8  ;;  %v2342_v8 = vsel %vm1915_vm14, %v2326_v9, 0  ;;  %v1820_v38 = vmul.f32 %v5016_v58, %v1819_v32  ;;  %v2512_v28 = vsel %vm1915_vm14, %v2496_v45, 0  ;;  %v2131_v46 = vld [vmem:[#allocation3 + $0x60] sm:$0xff] }
 0x28b   : > { %2349 = vmatpush.bf16.msra.mxu3 %v2342_v8  ;;  %2519 = vmatpush.bf16.msrb.mxu1 %v2512_v28  ;;  %v2136_v31 = vpack.c.bf16 %v2131_v46, %v1876_v24  ;;  %v4558_v8 = vld [vmem:[%s6555_s9 + $0xb0] sm:$0x3] }
 0x28c   : > { %1861 = vst.msk [vmem:[#allocation3 + $0x41] sm:$0xff] %vm1857_vm3, %v1852_v61  ;;  %2436 = vmatpush.bf16.msra.mxu0 %v4856_v27  ;;  %v1962_v61 = vld [vmem:[#allocation3 + $0x61] sm:$0xff] }
 0x28d   : > { %v5020_v34 = vpop.eup %5019 }
 0x28e   : > { %v5022_v1 = vpop.eup %5021  ;;  %v1824_v35 = vadd.f32 1.0, %v5020_v34  ;;  %v1827_v39 = vmul.f32 -0.5, %v5020_v34  ;;  %v1830_v42 = vand.u32 2147483647, %v5020_v34 }
 0x28f   : > { %v1817_v3 = vmul.f32 0.6931472, %v5022_v1  ;;  %2350 = vmatpush.bf16.msra.mxu3 %v4855_v10  ;;  %2520 = vmatpush.bf16.msrb.mxu1 %v4859_v29  ;;  %v2219_v1 = vpack.c.bf16 %v5769_v62, %v5743_v48  ;;  %v4861_v62 = vld [vmem:[%s6555_s9 + $0xa8] sm:$0xff] }
 0x290   : > { %5023 = vlog2.f32 %v1824_v35  ;;  %v1828_v36 = vadd.f32 1.0, %v1827_v39  ;;  %vm1831_vm8 = vcmp.lt.f32.partialorder %v1830_v42, 0.0004427343  ;;  %v2304_v35 = vpack.c.bf16 %v5771_v21, %v5745_v11 }
 0x291   : > { %v1823_v41 = vsel %vm1822_vm7, %v1820_v38, %v1817_v3  ;;  %v2578_v3 = vunpack.c.l.b16 %v4558_v8  ;;  %v2221_v21 = vpack.c.bf16 %v1962_v61, %v5815_v50 }
 0x292   : > { %v1839_v4 = vadd.f32 %v1823_v41, %v1727_v53  ;;  %v1829_v57 = vmul.f32 %v5020_v34, %v1828_v36  ;;  %v2473_v36 = vld [vmem:[#allocation3 + $0x91] sm:$0xff] }
 0x293   : > { %v2129_v13 = vld [vmem:[#allocation3 + $0x40] sm:$0xff]  ;;  %2521 = vmatpush.bf16.msrb.mxu1 %v4858_v49  ;;  %v2581_v38 = vpack.c.b16 %v2578_v3, %v2578_v3 }
 0x294   : > { %v5811_v15 = vld [vmem:[#allocation3 + $0x41] sm:$0xff]  ;;  %5025 = vtanh.f32 %v1839_v4  ;;  %v2135_v6 = vpack.c.bf16 %v2129_v13, %v1874_v12  ;;  %v5820_v20 = vpack.c.bf16 %v1876_v24, %v2129_v13 }
 0x295   : > { %v5813_v44 = vld [vmem:[#allocation3 + $0x42] sm:$0xff]  ;;  %v5824_v25 = vpack.c.bf16 %v5815_v50, %v5811_v15  ;;  %v2597_v39 = vsel %vm1915_vm14, %v2581_v38, 0  ;;  %v2220_v48 = vpack.c.bf16 %v5811_v15, %v5773_v54  ;;  %v2306_v54 = vpack.c.bf16 %v2047_v30, %v5817_v16 }
 0x296   : > { %v5024_v56 = vpop.eup %5023  ;;  %4483 = vmatmul.msk.bf16.gmra.mxu1 %vm1857_vm3, %v2135_v6  ;;  %v5837_v2 = vpack.c.bf16 %v5817_v16, %v5813_v44  ;;  %v4854_v12 = vld [vmem:[%s6555_s9 + $0x64] sm:$0xff]  ;;  %2604 = vmatpush.bf16.msrb.mxu2 %v2597_v39  ;;  %v2305_v11 = vpack.c.bf16 %v5813_v44, %v5775_v14 }
 0x297   : > { %v1826_v55 = vmul.f32 0.6931472, %v5024_v56  ;;  %2351 = vmatpush.bf16.msra.mxu3 %v4854_v12  ;;  %v4860_v14 = vld [vmem:[%s6555_s9 + $0xa0] sm:$0xff] }
 0x298   : > { %4433 = vmatmul.msk.bf16.gmra.mxu2 %vm1857_vm3, %v5820_v20 }
 0x299   : > { %4450 = vmatmul.msk.bf16.gmra.mxu3 %vm1857_vm3, %v5824_v25  ;;  %v1832_v47 = vsel %vm1831_vm8, %v1829_v57, %v1826_v55 }
 0x29a   : > { %4467 = vmatmul.msk.bf16.gmra.mxu0 %vm1857_vm3, %v5837_v2  ;;  %v5026_v58 = vpop.eup %5025  ;;  %v1840_v17 = vadd.f32 %v1832_v47, %v1728_v43  ;;  %2605 = vmatpush.bf16.msrb.mxu2 %v4861_v62 }
 0x29b   : > { %v1855_v63 = vmul.f32 %v5026_v58, %v5750_v5 }
 0x29c   : > { %5027 = vtanh.f32 %v1840_v17 }
 0x29d   : > { %1864 = vst.msk [vmem:[#allocation3 + $0x71] sm:$0xff] %vm1857_vm3, %v1855_v63 }
 0x29e   : > { %2606 = vmatpush.bf16.msrb.mxu2 %v4860_v14 }
 0x2a2   : > { %v5028_v22 = vpop.eup %5027 }
 0x2a3   : > { %v1856_v5 = vmul.f32 %v5028_v22, %v5764_v60 }
 0x2a4   : > { %v1878_v32 = vld [vmem:[#allocation3 + $0x70] sm:$0xff] }
 0x2a5   : > { %v1963_v7 = vld [vmem:[#allocation3 + $0x71] sm:$0xff]  ;;  %1865 = vst.msk [vmem:[#allocation3 + $0x81] sm:$0xff] %vm1857_vm3, %v1856_v5  ;;  %v1882_v51 = vpack.c.bf16 %v1878_v32, %v2131_v46 }
 0x2a6   : > { %v2048_v33 = vld [vmem:[#allocation3 + $0x72] sm:$0xff]  ;;  %v1967_v9 = vpack.c.bf16 %v1963_v7, %v1962_v61  ;;  %4484 = vmatmul.msk.bf16.gmra.mxu1 %vm1857_vm3, %v2136_v31 }
 0x2a7   : > { %v2052_v34 = vpack.c.bf16 %v2048_v33, %v2047_v30 }
 0x2a8   : > { %4434 = vmatmul.msk.bf16.gmra.mxu2 %vm1857_vm3, %v1882_v51 }
 0x2a9   : > { %4451 = vmatmul.msk.bf16.gmra.mxu3 %vm1857_vm3, %v1967_v9 }
 0x2aa   : > { %4468 = vmatmul.msk.bf16.gmra.mxu0 %vm1857_vm3, %v2052_v34 }
 0x2ac   : > { %v2133_v60 = vld [vmem:[#allocation3 + $0x80] sm:$0xff] }
 0x2ad   : > { %v2137_v0 = vpack.c.bf16 %v2133_v60, %v1878_v32  ;;  %v2392_v4 = vpack.c.bf16 %v2388_v40, %v2133_v60 }
 0x2b6   : > { %4485 = vmatmul.msk.bf16.gmra.mxu1 %vm1857_vm3, %v2137_v0 }
 0x2b8   : > { %4499 = vmatmul.msk.bf16.vlgmr.msra.gmra.mxu2 %vm1857_vm3, %v2219_v1 }
 0x2b9   : > { %4516 = vmatmul.msk.bf16.vlgmr.msra.gmra.mxu3 %vm1857_vm3, %v2304_v35 }
 0x2ba   : > { %4533 = vmatmul.msk.bf16.vlgmr.msra.gmra.mxu0 %vm1857_vm3, %v5777_v59  ;;  %v2218_v59 = vld [vmem:[#allocation3 + $0x81] sm:$0xff] }
 0x2bb   : > { %v2222_v53 = vpack.c.bf16 %v2218_v59, %v1963_v7  ;;  %v2477_v13 = vpack.c.bf16 %v2473_v36, %v2218_v59  ;;  %v5954_v7 = vld [vmem:[%s6556_s10] ss:$0 sm:$0xff] }
 0x2c6   : > { %4550 = vmatmul.msk.bf16.vlgmr.msrb.gmra.mxu1 %vm1857_vm3, %v5781_v18  ;;  %v2303_v18 = vld [vmem:[#allocation3 + $0x82] sm:$0xff] }
 0x2c7   : > { %v2307_v41 = vpack.c.bf16 %v2303_v18, %v2048_v33 }
 0x2c8   : > { %4500 = vmatmul.msk.bf16.gmra.mxu2 %vm1857_vm3, %v2220_v48 }
 0x2c9   : > { %4517 = vmatmul.msk.bf16.gmra.mxu3 %vm1857_vm3, %v2305_v11 }
 0x2ca   : > { %4534 = vmatmul.msk.bf16.gmra.mxu0 %vm1857_vm3, %v5820_v20 }
 0x2d6   : > { %4551 = vmatmul.msk.bf16.gmra.mxu1 %vm1857_vm3, %v5824_v25 }
 0x2d8   : > { %4501 = vmatmul.msk.bf16.gmra.mxu2 %vm1857_vm3, %v2221_v21 }
 0x2d9   : > { %4518 = vmatmul.msk.bf16.gmra.mxu3 %vm1857_vm3, %v2306_v54 }
 0x2da   : > { %4535 = vmatmul.msk.bf16.gmra.mxu0 %vm1857_vm3, %v1882_v51 }
 0x2e6   : > { %4552 = vmatmul.msk.bf16.gmra.mxu1 %vm1857_vm3, %v1967_v9 }
 0x2e8   : > { %4502 = vmatmul.msk.bf16.gmra.mxu2 %vm1857_vm3, %v2222_v53 }
 0x2e9   : > { %4519 = vmatmul.msk.bf16.gmra.mxu3 %vm1857_vm3, %v2307_v41 }
 0x2ea   : > { %4536 = vmatmul.msk.bf16.gmra.mxu0 %vm1857_vm3, %v2392_v4 }
 0x2f6   : > { %4553 = vmatmul.msk.bf16.gmra.mxu1 %vm1857_vm3, %v2477_v13 }
 0x2f7   : > { %v2098_v50 = vpop.f32.mrf.mxu0 }
 0x2f8   : > { %4567 = vmatmul.msk.bf16.vlgmr.msrb.gmra.mxu2 %vm1857_vm3, %v5785_v19  ;;  %v2558_v19 = vld [vmem:[#allocation3 + $0x92] sm:$0xff] }
 0x2f9   : > { %v2562_v26 = vpack.c.bf16 %v2558_v19, %v2303_v18 }
 0x2fb   : > { %v1928_v15 = vpop.f32.mrf.mxu2 }
 0x2fc   : > { %v2013_v44 = vpop.f32.mrf.mxu3  ;;  %v1948_v51 = vadd.f32 %v5954_v7, %v1928_v15 }
 0x2fd   : > { %v2183_v16 = vpop.f32.mrf.mxu1 }
 0x2fe   : > { %v2033_v0 = vadd.f32 %v2013_v44, %v1948_v51 }
 0x2ff   : > { %v2100_v25 = vpop.f32.mrf.mxu0 }
 0x300   : > { %v2118_v35 = vadd.f32 %v2098_v50, %v2033_v0 }
 0x302   : > { %v2203_v39 = vadd.f32 %v2183_v16, %v2118_v35 }
 0x303   : > { %v1930_v42 = vpop.f32.mrf.mxu2 }
 0x304   : > { %v2015_v20 = vpop.f32.mrf.mxu3  ;;  %v1949_v8 = vadd.f32 %v5954_v7, %v1930_v42 }
 0x305   : > { %v2185_v52 = vpop.f32.mrf.mxu1 }
 0x306   : > { %v2034_v48 = vadd.f32 %v2015_v20, %v1949_v8 }
 0x307   : > { %v2103_v57 = vpop.f32.mrf.mxu0 }
 0x308   : > { %4568 = vmatmul.msk.bf16.gmra.mxu2 %vm1857_vm3, %v5837_v2  ;;  %v2119_v21 = vadd.f32 %v2100_v25, %v2034_v48 }
 0x30a   : > { %v2204_v40 = vadd.f32 %v2185_v52, %v2119_v21 }
 0x30b   : > { %v1933_v6 = vpop.f32.mrf.mxu2 }
 0x30c   : > { %v2018_v55 = vpop.f32.mrf.mxu3  ;;  %v1950_v54 = vadd.f32 %v5954_v7, %v1933_v6 }
 0x30e   : > { %v2035_v53 = vadd.f32 %v2018_v55, %v1950_v54 }
 0x30f   : > { %v2105_v47 = vpop.f32.mrf.mxu0 }
 0x310   : > { %v2120_v15 = vadd.f32 %v2103_v57, %v2035_v53 }
 0x313   : > { %v5915_v24 = vpop.f32.mrf.mxu2  ;;  %v2188_v23 = vpop.f32.mrf.mxu1 }
 0x314   : > { %v2020_v43 = vpop.f32.mrf.mxu3  ;;  %v1951_v42 = vadd.f32 %v5954_v7, %v5915_v24  ;;  %v2205_v25 = vadd.f32 %v2188_v23, %v2120_v15 }
 0x316   : > { %v2036_v6 = vadd.f32 %v2020_v43, %v1951_v42 }
 0x317   : > { %v5931_v27 = vpop.f32.mrf.mxu0 }
 0x318   : > { %4569 = vmatmul.msk.bf16.gmra.mxu2 %vm1857_vm3, %v2052_v34  ;;  %v2121_v55 = vadd.f32 %v2105_v47, %v2036_v6 }
 0x31b   : > { %v5918_v56 = vpop.f32.mrf.mxu2  ;;  %v5927_v12 = vpop.f32.mrf.mxu1 }
 0x31c   : > { %v5929_v58 = vpop.f32.mrf.mxu3  ;;  %v1952_v57 = vadd.f32 %v5954_v7, %v5918_v56  ;;  %v2206_v0 = vadd.f32 %v5927_v12, %v2121_v55 }
 0x31e   : > { %v2037_v23 = vadd.f32 %v5929_v58, %v1952_v57 }
 0x31f   : > { %v5937_v29 = vpop.f32.mrf.mxu0 }
 0x320   : > { %v2122_v8 = vadd.f32 %v5931_v27, %v2037_v23 }
 0x323   : > { %v5920_v10 = vpop.f32.mrf.mxu2  ;;  %v5933_v45 = vpop.f32.mrf.mxu1 }
 0x324   : > { %v5935_v28 = vpop.f32.mrf.mxu3  ;;  %v1953_v47 = vadd.f32 %v5954_v7, %v5920_v10  ;;  %v2207_v12 = vadd.f32 %v5933_v45, %v2122_v8 }
 0x326   : > { %v2038_v58 = vadd.f32 %v5935_v28, %v1953_v47 }
 0x327   : > { %v5943_v5 = vpop.f32.mrf.mxu0 }
 0x328   : > { %4570 = vmatmul.msk.bf16.gmra.mxu2 %vm1857_vm3, %v2562_v26  ;;  %v2123_v27 = vadd.f32 %v5937_v29, %v2038_v58  ;;  %v4870_v58 = vld [vmem:[%s6559_s13 + $0x40] sm:$0xff]  ;;  %vm3663_vm3 = vcmask 490880  }
 0x329   : > { %3083 = vmatpush.bf16.msra.mxu1 %v4870_v58 }
 0x32b   : > { %v5923_v2 = vpop.f32.mrf.mxu2  ;;  %v5939_v49 = vpop.f32.mrf.mxu1 }
 0x32c   : > { %v5941_v22 = vpop.f32.mrf.mxu3  ;;  %v1954_v10 = vadd.f32 %v5954_v7, %v5923_v2  ;;  %v2208_v45 = vadd.f32 %v5939_v49, %v2123_v27  ;;  %v4869_v27 = vld [vmem:[%s6559_s13 + $0x38] sm:$0xff] }
 0x32d   : > { %3084 = vmatpush.bf16.msra.mxu1 %v4869_v27  ;;  %v4872_v27 = vld [vmem:[%s6559_s13 + $0x50] sm:$0xff] }
 0x32e   : > { %v2039_v28 = vadd.f32 %v5941_v22, %v1954_v10 }
 0x32f   : > { %v5956_v33 = vpop.f32.mrf.mxu0 }
 0x330   : > { %v2124_v29 = vadd.f32 %v5943_v5, %v2039_v28  ;;  %v4865_v28 = vld [vmem:[%s6559_s13 + $0x18] sm:$0xff] }
 0x333   : > { %v5925_v37 = vpop.f32.mrf.mxu2  ;;  %v5945_v30 = vpop.f32.mrf.mxu1 }
 0x334   : > { %v5947_v31 = vpop.f32.mrf.mxu3  ;;  %v1955_v2 = vadd.f32 %v5954_v7, %v5925_v37  ;;  %v2209_v49 = vadd.f32 %v5945_v30, %v2124_v29 }
 0x336   : > { %v2040_v22 = vadd.f32 %v5947_v31, %v1955_v2 }
 0x337   : > { %v2438_v1 = vpop.f32.mrf.mxu0 }
 0x338   : > { %v2125_v5 = vadd.f32 %v5956_v33, %v2040_v22 }
 0x33b   : > { %v2268_v17 = vpop.f32.mrf.mxu2  ;;  %v5959_v9 = vpop.f32.mrf.mxu1 }
 0x33c   : > { %v2353_v34 = vpop.f32.mrf.mxu3  ;;  %v2288_v62 = vadd.f32 %v2268_v17, %v2203_v39 }
 0x33e   : > { %v2373_v59 = vadd.f32 %v2353_v34, %v2288_v62 }
 0x33f   : > { %v2440_v14 = vpop.f32.mrf.mxu0 }
 0x340   : > { %v2458_v4 = vadd.f32 %v2438_v1, %v2373_v59 }
 0x343   : > { %v2270_v63 = vpop.f32.mrf.mxu2  ;;  %v2523_v3 = vpop.f32.mrf.mxu1 }
 0x344   : > { %v2355_v11 = vpop.f32.mrf.mxu3  ;;  %v2289_v36 = vadd.f32 %v2270_v63, %v2204_v40  ;;  %v2543_v44 = vadd.f32 %v2523_v3, %v2458_v4 }
 0x346   : > { %v2374_v50 = vadd.f32 %v2355_v11, %v2289_v36 }
 0x347   : > { %v2443_v16 = vpop.f32.mrf.mxu0 }
 0x348   : > { %v2459_v26 = vadd.f32 %v2440_v14, %v2374_v50 }
 0x34b   : > { %v2273_v46 = vpop.f32.mrf.mxu2  ;;  %v2525_v41 = vpop.f32.mrf.mxu1 }
 0x34c   : > { %v2358_v13 = vpop.f32.mrf.mxu3  ;;  %v2290_v17 = vadd.f32 %v2273_v46, %v2205_v25  ;;  %v2544_v51 = vadd.f32 %v2525_v41, %v2459_v26  ;;  %v2210_v26 = vadd.f32 %v5959_v9, %v2125_v5 }
 0x34e   : > { %v2375_v24 = vadd.f32 %v2358_v13, %v2290_v17 }
 0x34f   : > { %v2445_v1 = vpop.f32.mrf.mxu0 }
 0x350   : > { %v2460_v35 = vadd.f32 %v2443_v16, %v2375_v24 }
 0x353   : > { %v2275_v61 = vpop.f32.mrf.mxu2  ;;  %v2528_v52 = vpop.f32.mrf.mxu1 }
 0x354   : > { %v2360_v63 = vpop.f32.mrf.mxu3  ;;  %v2291_v46 = vadd.f32 %v2275_v61, %v2206_v0  ;;  %v2545_v3 = vadd.f32 %v2528_v52, %v2460_v35 }
 0x356   : > { %v2376_v39 = vadd.f32 %v2360_v63, %v2291_v46 }
 0x357   : > { %v2448_v54 = vpop.f32.mrf.mxu0 }
 0x358   : > { %v2461_v21 = vadd.f32 %v2445_v1, %v2376_v39  ;;  %v6013_v1 = vld [vmem:[%s6558_s12] ss:$0 sm:$0xff] }
 0x35b   : > { %v5949_v32 = vpop.f32.mrf.mxu2  ;;  %v2530_v56 = vpop.f32.mrf.mxu1 }
 0x35c   : > { %v2363_v48 = vpop.f32.mrf.mxu3  ;;  %v2292_v61 = vadd.f32 %v5949_v32, %v2207_v12  ;;  %v2546_v14 = vadd.f32 %v2530_v56, %v2461_v21  ;;  %v4867_v12 = vld [vmem:[%s6559_s13 + $0x28] sm:$0xff] }
 0x35d   : > { %2997 = vmatpush.bf16.msrb.mxu0 %v4867_v12 }
 0x35e   : > { %v2377_v59 = vadd.f32 %v2363_v48, %v2292_v61  ;;  %v4863_v61 = vld [vmem:[%s6559_s13 + $0x8] sm:$0xff] }
 0x35f   : > { %v2450_v13 = vpop.f32.mrf.mxu0 }
 0x360   : > { %v2462_v36 = vadd.f32 %v2448_v54, %v2377_v59  ;;  %v4866_v54 = vld [vmem:[%s6559_s13 + $0x20] sm:$0xff] }
 0x361   : > { %2998 = vmatpush.bf16.msrb.mxu0 %v4866_v54 }
 0x363   : > { %v5961_v60 = vpop.f32.mrf.mxu2  ;;  %v2533_v40 = vpop.f32.mrf.mxu1 }
 0x364   : > { %v2365_v4 = vpop.f32.mrf.mxu3  ;;  %v2293_v32 = vadd.f32 %v5961_v60, %v2208_v45  ;;  %v2547_v15 = vadd.f32 %v2533_v40, %v2462_v36  ;;  %v4862_v45 = vld [vmem:[%s6559_s13] sm:$0xff] }
 0x365   : > { %2999 = vmatpush.bf16.msrb.mxu0 %v4865_v28 }
 0x366   : > { %v2378_v42 = vadd.f32 %v2365_v4, %v2293_v32 }
 0x367   : > { %v2453_v7 = vpop.f32.mrf.mxu0 }
 0x36b   : > { %v5964_v38 = vpop.f32.mrf.mxu2  ;;  %v2535_v16 = vpop.f32.mrf.mxu1 }
 0x36c   : > { %v2294_v60 = vadd.f32 %v5964_v38, %v2209_v49  ;;  %v2368_v25 = vpop.f32.mrf.mxu3 }
 0x36e   : > { %v2379_v37 = vadd.f32 %v2368_v25, %v2294_v60 }
 0x36f   : > { %v2455_v24 = vpop.f32.mrf.mxu0 }
 0x370   : > { %v2464_v30 = vadd.f32 %v2453_v7, %v2379_v37 }
 0x373   : > { %v5967_v18 = vpop.f32.mrf.mxu2  ;;  %v2538_v52 = vpop.f32.mrf.mxu1 }
 0x374   : > { %v2295_v31 = vadd.f32 %v5967_v18, %v2210_v26  ;;  %v2370_v55 = vpop.f32.mrf.mxu3  ;;  %v2549_v38 = vadd.f32 %v2538_v52, %v2464_v30 }
 0x376   : > { %v2380_v57 = vadd.f32 %v2370_v55, %v2295_v31 }
 0x378   : > { %v2465_v33 = vadd.f32 %v2455_v24, %v2380_v57  ;;  %v2943_v57 = vld [vmem:[#allocation3 + $0x1] sm:$0xff] }
 0x37b   : > { %v2608_v20 = vpop.f32.mrf.mxu2 }
 0x37c   : > { %v2628_v19 = vadd.f32 %v2608_v20, %v2543_v44  ;;  %v2463_v20 = vadd.f32 %v2450_v13, %v2378_v42 }
 0x37e   : > { %2644 = vrot.lane.b32.xlu2 %v2628_v19, %s5121_s28  ;;  %v2548_v6 = vadd.f32 %v2535_v16, %v2463_v20 }
 0x383   : > { %v2610_v34 = vpop.f32.mrf.mxu2 }
 0x384   : > { %v2629_v43 = vadd.f32 %v2610_v34, %v2544_v51  ;;  %v2540_v34 = vpop.f32.mrf.mxu1 }
 0x385   : > { %v2550_v0 = vadd.f32 %v2540_v34, %v2465_v33 }
 0x386   : > { %2646 = vrot.lane.b32.xlu0 %v2629_v43, %s5121_s28  ;;  %v6008_v43 = vld [vmem:[%s6557_s11] ss:$0 sm:$0xff] }
 0x38b   : > { %v2613_v11 = vpop.f32.mrf.mxu2 }
 0x38c   : > { %v2630_v62 = vadd.f32 %v2613_v11, %v2545_v3  ;;  %v4864_v11 = vld [vmem:[%s6559_s13 + $0x10] sm:$0xff] }
 0x38d   : > { %2911 = vmatpush.bf16.msrb.mxu3 %v4864_v11 }
 0x38e   : > { %2648 = vrot.lane.b32.xlu1 %v2630_v62, %s5121_s28 }
 0x391   : > { %2912 = vmatpush.bf16.msrb.mxu3 %v4863_v61 }
 0x393   : > { %v2615_v53 = vpop.f32.mrf.mxu2 }
 0x394   : > { %v2631_v41 = vadd.f32 %v2615_v53, %v2546_v14 }
 0x395   : > { %2913 = vmatpush.bf16.msrb.mxu3 %v4862_v45 }
 0x396   : > { %2650 = vrot.lane.b32.xlu2 %v2631_v41, %s5121_s28  ;;  %v4868_v41 = vld [vmem:[%s6559_s13 + $0x30] sm:$0xff] }
 0x397   : > { %3085 = vmatpush.bf16.msra.mxu1 %v4868_v41 }
 0x39b   : > { %v2618_v44 = vpop.f32.mrf.mxu2 }
 0x39c   : > { %v2632_v50 = vadd.f32 %v2618_v44, %v2547_v15 }
 0x39e   : > { %2652 = vrot.lane.b32.xlu0 %v2632_v50, %s5121_s28 }
 0x3a3   : > { %v2620_v19 = vpop.f32.mrf.mxu2 }
 0x3a4   : > { %v2633_v17 = vadd.f32 %v2620_v19, %v2548_v6 }
 0x3a6   : > { %2654 = vrot.lane.b32.xlu1 %v2633_v17, %s5121_s28 }
 0x3ab   : > { %v2623_v63 = vpop.f32.mrf.mxu2 }
 0x3ac   : > { %v2634_v51 = vadd.f32 %v2623_v63, %v2549_v38  ;;  %v2858_v38 = vld [vmem:[#allocation3] sm:$0xff] }
 0x3ad   : > { %v3029_v63 = vld [vmem:[#allocation3 + $0x2] sm:$0xff] }
 0x3ae   : > { %2656 = vrot.lane.b32.xlu2 %v2634_v51, %s5121_s28 }
 0x3b3   : > { %v2625_v23 = vpop.f32.mrf.mxu2 }
 0x3b4   : > { %v2635_v9 = vadd.f32 %v2625_v23, %v2550_v0 }
 0x3b6   : > { %2658 = vrot.lane.b32.xlu0 %v2635_v9, %s5121_s28 }
 0x3d8   : > { %v2645_v18 = vpop.permute.xlu2 %2644 }
 0x3d9   : > { %2669 = vst.msk [vmem:[#allocation2] sm:$0xff] %vm2668_vm9, %v2645_v18 }
 0x3e0   : > { %v2677_v35 = vld [vmem:[#allocation2] sm:$0xff] }
 0x3e1   : > { %v2690_v46 = vmul.f32 %v6008_v43, %v2677_v35 }
 0x3e3   : > { %v2701_v8 = vadd.f32 %v6013_v1, %v2690_v46 }
 0x3e5   : > { %v2717_v47 = vand.u32 2147483647, %v2701_v8  ;;  %v2709_v2 = vmax.f32 %v2701_v8, 0.0 }
 0x3e7   : > { %v2725_v56 = vsub.f32 0.0, %v2717_v47 }
 0x3e9   : > { %v2733_v3 = vmul.f32 1.442695, %v2725_v56 }
 0x3eb   : > { %5029 = vpow2.f32 %v2733_v3  ;;  %v4873_v3 = vld [vmem:[%s6559_s13 + $0x58] sm:$0xff] }
 0x3ec   : > { %3169 = vmatpush.bf16.msra.mxu2 %v4873_v3 }
 0x3f0   : > { %v2651_v39 = vpop.permute.xlu2 %2650  ;;  %3170 = vmatpush.bf16.msra.mxu2 %v4872_v27 }
 0x3f1   : > { %v5030_v48 = vpop.eup %5029  ;;  %2672 = vst.msk [vmem:[#allocation2 + $0x18] sm:$0xff] %vm2668_vm9, %v2651_v39 }
 0x3f2   : > { %v2749_v62 = vadd.f32 1.0, %v5030_v48  ;;  %v2752_v21 = vmul.f32 -0.5, %v5030_v48  ;;  %v2755_v14 = vand.u32 2147483647, %v5030_v48 }
 0x3f4   : > { %5031 = vlog2.f32 %v2749_v62  ;;  %v2753_v10 = vadd.f32 1.0, %v2752_v21  ;;  %vm2756_vm10 = vcmp.lt.f32.partialorder %v2755_v14, 0.0004427343 }
 0x3f6   : > { %v2754_v32 = vmul.f32 %v5030_v48, %v2753_v10 }
 0x3f8   : > { %v2680_v59 = vld [vmem:[#allocation2 + $0x18] sm:$0xff]  ;;  %v2647_v40 = vpop.permute.xlu0 %2646 }
 0x3f9   : > { %v2693_v53 = vmul.f32 %v6008_v43, %v2680_v59  ;;  %2670 = vst.msk [vmem:[#allocation2 + $0x8] sm:$0xff] %vm2668_vm9, %v2647_v40 }
 0x3fa   : > { %v5032_v4 = vpop.eup %5031 }
 0x3fb   : > { %v2751_v36 = vmul.f32 0.6931472, %v5032_v4  ;;  %v6048_v29 = vadd.f32 %v6013_v1, %v2693_v53 }
 0x3fd   : > { %v2757_v13 = vsel %vm2756_vm10, %v2754_v32, %v2751_v36  ;;  %v2720_v15 = vand.u32 2147483647, %v6048_v29  ;;  %v2712_v21 = vmax.f32 %v6048_v29, 0.0  ;;  %v4871_v36 = vld [vmem:[%s6559_s13 + $0x48] sm:$0xff] }
 0x3fe   : > { %v2821_v42 = vadd.f32 %v2757_v13, %v2709_v2  ;;  %3171 = vmatpush.bf16.msra.mxu2 %v4871_v36 }
 0x3ff   : > { %v2728_v44 = vsub.f32 0.0, %v2720_v15 }
 0x400   : > { %5033 = vtanh.f32 %v2821_v42  ;;  %v2678_v49 = vld [vmem:[#allocation2 + $0x8] sm:$0xff]  ;;  %v2649_v22 = vpop.permute.xlu1 %2648 }
 0x401   : > { %v2739_v50 = vmul.f32 1.442695, %v2728_v44  ;;  %v2691_v16 = vmul.f32 %v6008_v43, %v2678_v49  ;;  %2671 = vst.msk [vmem:[#allocation2 + $0x10] sm:$0xff] %vm2668_vm9, %v2649_v22 }
 0x403   : > { %5035 = vpow2.f32 %v2739_v50  ;;  %v6054_v20 = vadd.f32 %v6013_v1, %v2691_v16 }
 0x405   : > { %v2718_v60 = vand.u32 2147483647, %v6054_v20  ;;  %v2710_v22 = vmax.f32 %v6054_v20, 0.0 }
 0x406   : > { %v5034_v25 = vpop.eup %5033 }
 0x407   : > { %v2837_v5 = vmul.f32 %v5034_v25, %v2701_v8  ;;  %v2726_v6 = vsub.f32 0.0, %v2718_v60 }
 0x408   : > { %v2679_v37 = vld [vmem:[#allocation2 + $0x10] sm:$0xff]  ;;  %v2657_v7 = vpop.permute.xlu2 %2656 }
 0x409   : > { %v5036_v19 = vpop.eup %5035  ;;  %2845 = vst.msk [vmem:[#allocation3 + $0x11] sm:$0xff] %vm683_vm0, %v2837_v5  ;;  %v2735_v26 = vmul.f32 1.442695, %v2726_v6  ;;  %v2692_v17 = vmul.f32 %v6008_v43, %v2679_v37 }
 0x40a   : > { %v2776_v30 = vadd.f32 1.0, %v5036_v19  ;;  %2675 = vst.msk [vmem:[#allocation2 + $0x30] sm:$0xff] %vm2668_vm9, %v2657_v7  ;;  %v2779_v31 = vmul.f32 -0.5, %v5036_v19  ;;  %v2782_v33 = vand.u32 2147483647, %v5036_v19 }
 0x40b   : > { %5037 = vpow2.f32 %v2735_v26  ;;  %v6061_v52 = vadd.f32 %v6013_v1, %v2692_v17 }
 0x40c   : > { %5039 = vlog2.f32 %v2776_v30  ;;  %v2780_v51 = vadd.f32 1.0, %v2779_v31  ;;  %vm2783_vm11 = vcmp.lt.f32.partialorder %v2782_v33, 0.0004427343 }
 0x40d   : > { %v2719_v55 = vand.u32 2147483647, %v6061_v52 }
 0x40e   : > { %v2781_v58 = vmul.f32 %v5036_v19, %v2780_v51 }
 0x40f   : > { %v2727_v24 = vsub.f32 0.0, %v2719_v55 }
 0x410   : > { %v2653_v34 = vpop.permute.xlu0 %2652  ;;  %v6064_v0 = vld [vmem:[#allocation3 + $0x10] sm:$0xff] }
 0x411   : > { %v6066_v23 = vld [vmem:[#allocation3 + $0x11] sm:$0xff]  ;;  %v5038_v18 = vpop.eup %5037  ;;  %v2737_v35 = vmul.f32 1.442695, %v2727_v24  ;;  %2673 = vst.msk [vmem:[#allocation2 + $0x20] sm:$0xff] %vm2668_vm9, %v2653_v34  ;;  %v2866_v8 = vpack.c.bf16 %v6064_v0, %v2858_v38 }
 0x412   : > { %v6068_v9 = vld [vmem:[#allocation3 + $0x12] sm:$0xff]  ;;  %v2951_v47 = vpack.c.bf16 %v6066_v23, %v2943_v57  ;;  %v5040_v39 = vpop.eup %5039  ;;  %v2758_v48 = vadd.f32 1.0, %v5038_v18  ;;  %v2761_v62 = vmul.f32 -0.5, %v5038_v18  ;;  %v2764_v40 = vand.u32 2147483647, %v5038_v18 }
 0x413   : > { %v2683_v46 = vld [vmem:[#allocation2 + $0x30] sm:$0xff]  ;;  %v3037_v56 = vpack.c.bf16 %v6068_v9, %v3029_v63  ;;  %v2778_v12 = vmul.f32 0.6931472, %v5040_v39  ;;  %5041 = vpow2.f32 %v2737_v35  ;;  %4583 = vmatmul.msk.bf16.vlgmr.msrb.gmra.mxu3 %vm683_vm0, %v2866_v8 }
 0x414   : > { %v2696_v11 = vmul.f32 %v6008_v43, %v2683_v46  ;;  %4605 = vmatmul.msk.bf16.vlgmr.msrb.gmra.mxu0 %vm683_vm0, %v2951_v47  ;;  %5043 = vlog2.f32 %v2758_v48  ;;  %v2762_v59 = vadd.f32 1.0, %v2761_v62  ;;  %vm2765_vm12 = vcmp.lt.f32.partialorder %v2764_v40, 0.0004427343 }
 0x415   : > { %4627 = vmatmul.msk.bf16.vlgmr.msra.gmra.mxu1 %vm683_vm0, %v3037_v56  ;;  %v2784_v54 = vsel %vm2783_vm11, %v2781_v58, %v2778_v12 }
 0x416   : > { %v6082_v61 = vadd.f32 %v6013_v1, %v2696_v11  ;;  %v2824_v10 = vadd.f32 %v2784_v54, %v2712_v21  ;;  %v2763_v42 = vmul.f32 %v5038_v18, %v2762_v59 }
 0x418   : > { %v2723_v14 = vand.u32 2147483647, %v6082_v61  ;;  %5045 = vtanh.f32 %v2824_v10  ;;  %v2681_v45 = vld [vmem:[#allocation2 + $0x20] sm:$0xff]  ;;  %v2655_v28 = vpop.permute.xlu1 %2654 }
 0x419   : > { %v5042_v41 = vpop.eup %5041  ;;  %v2694_v4 = vmul.f32 %v6008_v43, %v2681_v45  ;;  %2674 = vst.msk [vmem:[#allocation2 + $0x28] sm:$0xff] %vm2668_vm9, %v2655_v28 }
 0x41a   : > { %v2731_v53 = vsub.f32 0.0, %v2723_v14  ;;  %v5044_v32 = vpop.eup %5043  ;;  %v2767_v2 = vadd.f32 1.0, %v5042_v41  ;;  %v2770_v44 = vmul.f32 -0.5, %v5042_v41  ;;  %v2773_v7 = vand.u32 2147483647, %v5042_v41 }
 0x41b   : > { %v2760_v15 = vmul.f32 0.6931472, %v5044_v32  ;;  %v6095_v49 = vadd.f32 %v6013_v1, %v2694_v4 }
 0x41c   : > { %v2745_v13 = vmul.f32 1.442695, %v2731_v53  ;;  %5047 = vlog2.f32 %v2767_v2  ;;  %v2771_v6 = vadd.f32 1.0, %v2770_v44  ;;  %vm2774_vm13 = vcmp.lt.f32.partialorder %v2773_v7, 0.0004427343 }
 0x41d   : > { %v2766_v50 = vsel %vm2765_vm12, %v2763_v42, %v2760_v15  ;;  %v2721_v16 = vand.u32 2147483647, %v6095_v49 }
 0x41e   : > { %5049 = vpow2.f32 %v2745_v13  ;;  %v5046_v60 = vpop.eup %5045  ;;  %v2822_v25 = vadd.f32 %v2766_v50, %v2710_v22  ;;  %v2772_v38 = vmul.f32 %v5042_v41, %v2771_v6 }
 0x41f   : > { %v2840_v5 = vmul.f32 %v5046_v60, %v6048_v29  ;;  %v2729_v37 = vsub.f32 0.0, %v2721_v16  ;;  %v2711_v29 = vmax.f32 %v6061_v52, 0.0 }
 0x420   : > { %5051 = vtanh.f32 %v2822_v25  ;;  %v2682_v19 = vld [vmem:[#allocation2 + $0x28] sm:$0xff] }
 0x421   : > { %2848 = vst.msk [vmem:[#allocation3 + $0x41] sm:$0xff] %vm683_vm0, %v2840_v5  ;;  %v2741_v26 = vmul.f32 1.442695, %v2729_v37  ;;  %v2695_v17 = vmul.f32 %v6008_v43, %v2682_v19 }
 0x422   : > { %v5048_v30 = vpop.eup %5047 }
 0x423   : > { %v2769_v55 = vmul.f32 0.6931472, %v5048_v30  ;;  %5053 = vpow2.f32 %v2741_v26  ;;  %v6103_v57 = vadd.f32 %v6013_v1, %v2695_v17 }
 0x424   : > { %v5050_v31 = vpop.eup %5049 }
 0x425   : > { %v2803_v63 = vadd.f32 1.0, %v5050_v31  ;;  %v2775_v51 = vsel %vm2774_vm13, %v2772_v38, %v2769_v55  ;;  %v2806_v24 = vmul.f32 -0.5, %v5050_v31  ;;  %v2722_v33 = vand.u32 2147483647, %v6103_v57 }
 0x426   : > { %v5052_v34 = vpop.eup %5051  ;;  %v2823_v18 = vadd.f32 %v2775_v51, %v2711_v29  ;;  %v2809_v39 = vand.u32 2147483647, %v5050_v31  ;;  %v2714_v38 = vmax.f32 %v6103_v57, 0.0  ;;  %v4879_v29 = vld [vmem:[%s6559_s13 + $0x88] sm:$0xff] }
 0x427   : > { %5055 = vlog2.f32 %v2803_v63  ;;  %v2838_v35 = vmul.f32 %v5052_v34, %v6054_v20  ;;  %v2730_v46 = vsub.f32 0.0, %v2722_v33  ;;  %v2807_v56 = vadd.f32 1.0, %v2806_v24  ;;  %v4882_v63 = vld [vmem:[%s6559_s13 + $0xa0] sm:$0xff]  ;;  %v4875_v24 = vld [vmem:[%s6559_s13 + $0x68] sm:$0xff]  ;;  %3341 = vmatpush.bf16.msra.mxu0 %v4879_v29  ;;  %v3380_v29 = vld [vmem:[#allocation3 + $0x90] sm:$0xff] }
 0x428   : > { %5057 = vtanh.f32 %v2823_v18  ;;  %v2659_v8 = vpop.permute.xlu0 %2658  ;;  %v2715_v20 = vmax.f32 %v6082_v61, 0.0  ;;  %vm2810_vm14 = vcmp.lt.f32.partialorder %v2809_v39, 0.0004427343  ;;  %3427 = vmatpush.bf16.msrb.mxu1 %v4882_v63  ;;  %v4881_v39 = vld [vmem:[%s6559_s13 + $0x98] sm:$0xff] }
 0x429   : > { %v5054_v47 = vpop.eup %5053  ;;  %2846 = vst.msk [vmem:[#allocation3 + $0x21] sm:$0xff] %vm683_vm0, %v2838_v35  ;;  %v2743_v3 = vmul.f32 1.442695, %v2730_v46  ;;  %v2808_v62 = vmul.f32 %v5050_v31, %v2807_v56  ;;  %v3118_v35 = vld [vmem:[#allocation3 + $0x40] sm:$0xff] }
 0x42a   : > { %v2785_v48 = vadd.f32 1.0, %v5054_v47  ;;  %2676 = vst.msk [vmem:[#allocation2 + $0x38] sm:$0xff] %vm2668_vm9, %v2659_v8  ;;  %v2788_v11 = vmul.f32 -0.5, %v5054_v47  ;;  %v2791_v59 = vand.u32 2147483647, %v5054_v47 }
 0x42b   : > { %5059 = vpow2.f32 %v2743_v3  ;;  %v4878_v3 = vld [vmem:[%s6559_s13 + $0x80] sm:$0xff] }
 0x42c   : > { %5061 = vlog2.f32 %v2785_v48  ;;  %v2789_v10 = vadd.f32 1.0, %v2788_v11  ;;  %vm2792_vm15 = vcmp.lt.f32.partialorder %v2791_v59, 0.0004427343  ;;  %v4885_v11 = vld [vmem:[%s6559_s13 + $0xb8] sm:$0xff]  ;;  %3342 = vmatpush.bf16.msra.mxu0 %v4878_v3  ;;  %3428 = vmatpush.bf16.msrb.mxu1 %v4881_v39 }
 0x42d   : > { %v5056_v12 = vpop.eup %5055  ;;  %3513 = vmatpush.bf16.msrb.mxu2 %v4885_v11 }
 0x42e   : > { %v2805_v58 = vmul.f32 0.6931472, %v5056_v12  ;;  %v5058_v21 = vpop.eup %5057  ;;  %v2790_v32 = vmul.f32 %v5054_v47, %v2789_v10 }
 0x42f   : > { %v2839_v54 = vmul.f32 %v5058_v21, %v6061_v52  ;;  %v2713_v52 = vmax.f32 %v6095_v49, 0.0  ;;  %v4877_v21 = vld [vmem:[%s6559_s13 + $0x78] sm:$0xff] }
 0x430   : > { %v2811_v27 = vsel %vm2810_vm14, %v2808_v62, %v2805_v58  ;;  %v3116_v40 = vld [vmem:[#allocation3 + $0x20] sm:$0xff]  ;;  %3343 = vmatpush.bf16.msra.mxu0 %v4877_v21 }
 0x431   : > { %v2827_v14 = vadd.f32 %v2811_v27, %v2715_v20  ;;  %v5060_v53 = vpop.eup %5059  ;;  %2847 = vst.msk [vmem:[#allocation3 + $0x31] sm:$0xff] %vm683_vm0, %v2839_v54  ;;  %v2684_v45 = vld [vmem:[#allocation2 + $0x38] sm:$0xff]  ;;  %v3123_v28 = vpack.c.bf16 %v3116_v40, %v6064_v0  ;;  %v6121_v50 = vld [vmem:[#allocation3 + $0x21] sm:$0xff] }
 0x432   : > { %v5062_v41 = vpop.eup %5061  ;;  %v2794_v4 = vadd.f32 1.0, %v5060_v53  ;;  %v2797_v2 = vmul.f32 -0.5, %v5060_v53  ;;  %v2697_v13 = vmul.f32 %v6008_v43, %v2684_v45  ;;  %v2800_v60 = vand.u32 2147483647, %v5060_v53  ;;  %v6134_v19 = vld [vmem:[#allocation3 + $0x22] sm:$0xff] }
 0x433   : > { %5063 = vtanh.f32 %v2827_v14  ;;  %v2787_v36 = vmul.f32 0.6931472, %v5062_v41  ;;  %4649 = vmatmul.msk.bf16.vlgmr.msra.gmra.mxu2 %vm683_vm0, %v3123_v28  ;;  %v6176_v58 = vld [vmem:[#allocation3 + $0x41] sm:$0xff]  ;;  %v4884_v28 = vld [vmem:[%s6559_s13 + $0xb0] sm:$0xff] }
 0x434   : > { %5065 = vlog2.f32 %v2794_v4  ;;  %v6118_v42 = vadd.f32 %v6013_v1, %v2697_v13  ;;  %v2798_v0 = vadd.f32 1.0, %v2797_v2  ;;  %vm2801_vm1 = vcmp.lt.f32.partialorder %v2800_v60, 0.0004427343  ;;  %v6178_v62 = vld [vmem:[#allocation3 + $0x42] sm:$0xff]  ;;  %3514 = vmatpush.bf16.msrb.mxu2 %v4884_v28 }
 0x435   : > { %v2793_v15 = vsel %vm2792_vm15, %v2790_v32, %v2787_v36  ;;  %v4883_v32 = vld [vmem:[%s6559_s13 + $0xa8] sm:$0xff] }
 0x436   : > { %v2825_v44 = vadd.f32 %v2793_v15, %v2713_v52  ;;  %v2724_v22 = vand.u32 2147483647, %v6118_v42  ;;  %v2799_v31 = vmul.f32 %v5060_v53, %v2798_v0  ;;  %v2716_v36 = vmax.f32 %v6118_v42, 0.0 }
 0x438   : > { %5067 = vtanh.f32 %v2825_v44  ;;  %v2861_v43 = vld [vmem:[#allocation3 + $0x30] sm:$0xff]  ;;  %v2732_v37 = vsub.f32 0.0, %v2724_v22  ;;  %3515 = vmatpush.bf16.msrb.mxu2 %v4883_v32 }
 0x439   : > { %v5064_v16 = vpop.eup %5063  ;;  %v6123_v25 = vld [vmem:[#allocation3 + $0x31] sm:$0xff]  ;;  %v6128_v7 = vpack.c.bf16 %v2861_v43, %v3116_v40  ;;  %v3124_v46 = vpack.c.bf16 %v3118_v35, %v2861_v43 }
 0x43a   : > { %v6125_v5 = vld [vmem:[#allocation3 + $0x32] sm:$0xff]  ;;  %v2843_v6 = vmul.f32 %v5064_v16, %v6082_v61  ;;  %v6132_v1 = vpack.c.bf16 %v6123_v25, %v6121_v50  ;;  %v5066_v26 = vpop.eup %5065  ;;  %v2747_v55 = vmul.f32 1.442695, %v2732_v37 }
 0x43b   : > { %v6138_v17 = vpack.c.bf16 %v6125_v5, %v6134_v19  ;;  %v2796_v30 = vmul.f32 0.6931472, %v5066_v26  ;;  %4584 = vmatmul.msk.bf16.gmra.mxu3 %vm683_vm0, %v6128_v7  ;;  %v4876_v61 = vld [vmem:[%s6559_s13 + $0x70] sm:$0xff] }
 0x43c   : > { %2851 = vst.msk [vmem:[#allocation3 + $0x71] sm:$0xff] %vm683_vm0, %v2843_v6  ;;  %4606 = vmatmul.msk.bf16.gmra.mxu0 %vm683_vm0, %v6132_v1  ;;  %5069 = vpow2.f32 %v2747_v55  ;;  %3255 = vmatpush.bf16.msra.mxu3 %v4876_v61  ;;  %v4880_v40 = vld [vmem:[%s6559_s13 + $0x90] sm:$0xff]  ;;  %v3209_v61 = vpack.c.bf16 %v6121_v50, %v6066_v23  ;;  %v3210_v23 = vpack.c.bf16 %v6176_v58, %v6123_v25  ;;  %v4887_v50 = vld [vmem:[%s6559_s13 + $0xc8] sm:$0xff]  ;;  %v4886_v25 = vld [vmem:[%s6559_s13 + $0xc0] sm:$0xff] }
 0x43d   : > { %4628 = vmatmul.msk.bf16.gmra.mxu1 %vm683_vm0, %v6138_v17  ;;  %v2802_v51 = vsel %vm2801_vm1, %v2799_v31, %v2796_v30 }
 0x43e   : > { %v5068_v33 = vpop.eup %5067  ;;  %v2826_v34 = vadd.f32 %v2802_v51, %v2714_v38  ;;  %3429 = vmatpush.bf16.msrb.mxu1 %v4880_v40  ;;  %v4888_v38 = vld [vmem:[%s6559_s13 + $0xd0] sm:$0xff] }
 0x43f   : > { %v2841_v18 = vmul.f32 %v5068_v33, %v6095_v49  ;;  %v4874_v49 = vld [vmem:[%s6559_s13 + $0x60] sm:$0xff]  ;;  %v3466_v33 = vld [vmem:[#allocation3 + $0x91] sm:$0xff] }
 0x440   : > { %5071 = vtanh.f32 %v2826_v34  ;;  %3256 = vmatpush.bf16.msra.mxu3 %v4875_v24 }
 0x441   : > { %2849 = vst.msk [vmem:[#allocation3 + $0x51] sm:$0xff] %vm683_vm0, %v2841_v18 }
 0x442   : > { %v5070_v8 = vpop.eup %5069 }
 0x443   : > { %4650 = vmatmul.msk.bf16.gmra.mxu2 %vm683_vm0, %v3124_v46  ;;  %v2812_v47 = vadd.f32 1.0, %v5070_v8  ;;  %v2815_v56 = vmul.f32 -0.5, %v5070_v8  ;;  %v2818_v53 = vand.u32 2147483647, %v5070_v8  ;;  %v2865_v16 = vld [vmem:[#allocation3 + $0x70] sm:$0xff] }
 0x444   : > { %3257 = vmatpush.bf16.msra.mxu3 %v4874_v49  ;;  %v2950_v60 = vld [vmem:[#allocation3 + $0x71] sm:$0xff] }
 0x445   : > { %5073 = vlog2.f32 %v2812_v47  ;;  %vm2819_vm2 = vcmp.lt.f32.partialorder %v2818_v53, 0.0004427343  ;;  %v3036_v26 = vld [vmem:[#allocation3 + $0x72] sm:$0xff] }
 0x446   : > { %v5072_v48 = vpop.eup %5071 }
 0x447   : > { %v2842_v12 = vmul.f32 %v5072_v48, %v6103_v57  ;;  %v2816_v57 = vadd.f32 1.0, %v2815_v56 }
 0x448   : > { %v2863_v20 = vld [vmem:[#allocation3 + $0x50] sm:$0xff]  ;;  %3599 = vmatpush.bf16.msrb.mxu3 %v4888_v38 }
 0x449   : > { %v6183_v54 = vld [vmem:[#allocation3 + $0x51] sm:$0xff]  ;;  %2850 = vst.msk [vmem:[#allocation3 + $0x61] sm:$0xff] %vm683_vm0, %v2842_v12  ;;  %v2868_v10 = vpack.c.bf16 %v2863_v20, %v3118_v35  ;;  %v2817_v4 = vmul.f32 %v5070_v8, %v2816_v57 }
 0x44a   : > { %v6185_v27 = vld [vmem:[#allocation3 + $0x52] sm:$0xff]  ;;  %v2953_v14 = vpack.c.bf16 %v6183_v54, %v6176_v58 }
 0x44b   : > { %v6192_v59 = vpack.c.bf16 %v6185_v27, %v6178_v62  ;;  %4585 = vmatmul.msk.bf16.gmra.mxu3 %vm683_vm0, %v2868_v10  ;;  %v5074_v45 = vpop.eup %5073 }
 0x44c   : > { %4607 = vmatmul.msk.bf16.gmra.mxu0 %vm683_vm0, %v2953_v14  ;;  %v2814_v41 = vmul.f32 0.6931472, %v5074_v45  ;;  %3600 = vmatpush.bf16.msrb.mxu3 %v4887_v50 }
 0x44d   : > { %4629 = vmatmul.msk.bf16.gmra.mxu1 %vm683_vm0, %v6192_v59 }
 0x44e   : > { %v2820_v2 = vsel %vm2819_vm2, %v2817_v4, %v2814_v41 }
 0x44f   : > { %v2828_v13 = vadd.f32 %v2820_v2, %v2716_v36 }
 0x450   : > { %v3120_v52 = vld [vmem:[#allocation3 + $0x60] sm:$0xff]  ;;  %3601 = vmatpush.bf16.msrb.mxu3 %v4886_v25 }
 0x451   : > { %v3125_v15 = vpack.c.bf16 %v3120_v52, %v2863_v20  ;;  %5075 = vtanh.f32 %v2828_v13  ;;  %v2949_v44 = vld [vmem:[#allocation3 + $0x61] sm:$0xff]  ;;  %v2869_v6 = vpack.c.bf16 %v2865_v16, %v3120_v52 }
 0x452   : > { %v3035_v0 = vld [vmem:[#allocation3 + $0x62] sm:$0xff]  ;;  %v2954_v37 = vpack.c.bf16 %v2950_v60, %v2949_v44 }
 0x453   : > { %4651 = vmatmul.msk.bf16.gmra.mxu2 %vm683_vm0, %v3125_v15  ;;  %v3040_v30 = vpack.c.bf16 %v3036_v26, %v3035_v0 }
 0x457   : > { %v5076_v22 = vpop.eup %5075 }
 0x458   : > { %v2844_v43 = vmul.f32 %v5076_v22, %v6118_v42  ;;  %v3295_v42 = vpack.c.bf16 %v6134_v19, %v6068_v9  ;;  %v3296_v9 = vpack.c.bf16 %v6178_v62, %v6125_v5  ;;  %v3211_v5 = vpack.c.bf16 %v2949_v44, %v6183_v54 }
 0x45a   : > { %2852 = vst.msk [vmem:[#allocation3 + $0x81] sm:$0xff] %vm683_vm0, %v2844_v43 }
 0x45b   : > { %4586 = vmatmul.msk.bf16.gmra.mxu3 %vm683_vm0, %v2869_v6 }
 0x45c   : > { %4608 = vmatmul.msk.bf16.gmra.mxu0 %vm683_vm0, %v2954_v37 }
 0x45d   : > { %4630 = vmatmul.msk.bf16.gmra.mxu1 %vm683_vm0, %v3040_v30 }
 0x461   : > { %v3122_v31 = vld [vmem:[#allocation3 + $0x80] sm:$0xff] }
 0x462   : > { %v3126_v55 = vpack.c.bf16 %v3122_v31, %v2865_v16  ;;  %v3294_v19 = vld [vmem:[#allocation3 + $0x82] sm:$0xff]  ;;  %v3384_v24 = vpack.c.bf16 %v3380_v29, %v3122_v31 }
 0x463   : > { %v3298_v51 = vpack.c.bf16 %v3294_v19, %v3036_v26 }
 0x464   : > { %4652 = vmatmul.msk.bf16.gmra.mxu2 %vm683_vm0, %v3126_v55 }
 0x46b   : > { %4671 = vmatmul.msk.bf16.vlgmr.msra.gmra.mxu3 %vm683_vm0, %v3209_v61 }
 0x46c   : > { %4693 = vmatmul.msk.bf16.vlgmr.msra.gmra.mxu0 %vm683_vm0, %v3295_v42 }
 0x46d   : > { %4715 = vmatmul.msk.bf16.vlgmr.msrb.gmra.mxu1 %vm683_vm0, %v6128_v7  ;;  %v3297_v7 = vpack.c.bf16 %v3035_v0, %v6185_v27 }
 0x474   : > { %4737 = vmatmul.msk.bf16.vlgmr.msrb.gmra.mxu2 %vm683_vm0, %v6132_v1  ;;  %v3208_v1 = vld [vmem:[#allocation3 + $0x81] sm:$0xff] }
 0x475   : > { %v3212_v63 = vpack.c.bf16 %v3208_v1, %v2950_v60  ;;  %v3470_v34 = vpack.c.bf16 %v3466_v33, %v3208_v1  ;;  %v6299_v60 = vld [vmem:[%s6560_s14] ss:$0 sm:$0xff] }
 0x47b   : > { %4672 = vmatmul.msk.bf16.gmra.mxu3 %vm683_vm0, %v3210_v23 }
 0x47c   : > { %4694 = vmatmul.msk.bf16.gmra.mxu0 %vm683_vm0, %v3296_v9 }
 0x47d   : > { %4716 = vmatmul.msk.bf16.gmra.mxu1 %vm683_vm0, %v2868_v10 }
 0x484   : > { %4738 = vmatmul.msk.bf16.gmra.mxu2 %vm683_vm0, %v2953_v14 }
 0x48b   : > { %4673 = vmatmul.msk.bf16.gmra.mxu3 %vm683_vm0, %v3211_v5 }
 0x48c   : > { %4695 = vmatmul.msk.bf16.gmra.mxu0 %vm683_vm0, %v3297_v7 }
 0x48d   : > { %4717 = vmatmul.msk.bf16.gmra.mxu1 %vm683_vm0, %v2869_v6 }
 0x491   : > { %v3001_v47 = vpop.f32.mrf.mxu0 }
 0x492   : > { %v3087_v3 = vpop.f32.mrf.mxu1 }
 0x494   : > { %4739 = vmatmul.msk.bf16.gmra.mxu2 %vm683_vm0, %v2954_v37 }
 0x496   : > { %v2915_v18 = vpop.f32.mrf.mxu3 }
 0x497   : > { %v2935_v6 = vadd.f32 %v6299_v60, %v2915_v18 }
 0x499   : > { %v3003_v49 = vpop.f32.mrf.mxu0  ;;  %v3021_v26 = vadd.f32 %v3001_v47, %v2935_v6 }
 0x49a   : > { %v3089_v12 = vpop.f32.mrf.mxu1 }
 0x49b   : > { %4674 = vmatmul.msk.bf16.gmra.mxu3 %vm683_vm0, %v3212_v63  ;;  %v3107_v42 = vadd.f32 %v3087_v3, %v3021_v26 }
 0x49c   : > { %4696 = vmatmul.msk.bf16.gmra.mxu0 %vm683_vm0, %v3298_v51 }
 0x49d   : > { %4718 = vmatmul.msk.bf16.gmra.mxu1 %vm683_vm0, %v3384_v24 }
 0x49e   : > { %v2917_v35 = vpop.f32.mrf.mxu3 }
 0x49f   : > { %v2936_v61 = vadd.f32 %v6299_v60, %v2917_v35 }
 0x4a1   : > { %v3022_v9 = vadd.f32 %v3003_v49, %v2936_v61 }
 0x4a4   : > { %4740 = vmatmul.msk.bf16.gmra.mxu2 %vm683_vm0, %v3470_v34 }
 0x4ab   : > { %4759 = vmatmul.msk.bf16.vlgmr.msrb.gmra.mxu3 %vm683_vm0, %v6138_v17  ;;  %v3552_v17 = vld [vmem:[#allocation3 + $0x92] sm:$0xff] }
 0x4ac   : > { %v3556_v58 = vpack.c.bf16 %v3552_v17, %v3294_v19  ;;  %v3108_v19 = vadd.f32 %v3089_v12, %v3022_v9 }
 0x4b6   : > { %v3173_v56 = vpop.f32.mrf.mxu2 }
 0x4b7   : > { %v3193_v38 = vadd.f32 %v3173_v56, %v3107_v42 }
 0x4b9   : > { %v3006_v62 = vpop.f32.mrf.mxu0 }
 0x4ba   : > { %v3092_v20 = vpop.f32.mrf.mxu1 }
 0x4bb   : > { %4760 = vmatmul.msk.bf16.gmra.mxu3 %vm683_vm0, %v6192_v59 }
 0x4be   : > { %v2920_v46 = vpop.f32.mrf.mxu3  ;;  %v3175_v48 = vpop.f32.mrf.mxu2 }
 0x4bf   : > { %v2937_v1 = vadd.f32 %v6299_v60, %v2920_v46  ;;  %v3194_v63 = vadd.f32 %v3175_v48, %v3108_v19 }
 0x4c1   : > { %v3008_v27 = vpop.f32.mrf.mxu0  ;;  %v3023_v51 = vadd.f32 %v3006_v62, %v2937_v1 }
 0x4c2   : > { %v3094_v10 = vpop.f32.mrf.mxu1 }
 0x4c3   : > { %v3109_v56 = vadd.f32 %v3092_v20, %v3023_v51 }
 0x4c6   : > { %v6256_v8 = vpop.f32.mrf.mxu3  ;;  %v3178_v54 = vpop.f32.mrf.mxu2 }
 0x4c7   : > { %v2938_v47 = vadd.f32 %v6299_v60, %v6256_v8 }
 0x4c9   : > { %v6270_v40 = vpop.f32.mrf.mxu0  ;;  %v3024_v46 = vadd.f32 %v3008_v27, %v2938_v47 }
 0x4ca   : > { %v6272_v53 = vpop.f32.mrf.mxu1 }
 0x4cb   : > { %4761 = vmatmul.msk.bf16.gmra.mxu3 %vm683_vm0, %v3040_v30  ;;  %v3110_v26 = vadd.f32 %v3094_v10, %v3024_v46 }
 0x4ce   : > { %v6259_v39 = vpop.f32.mrf.mxu3  ;;  %v6268_v14 = vpop.f32.mrf.mxu2 }
 0x4d1   : > { %v6276_v41 = vpop.f32.mrf.mxu0 }
 0x4d2   : > { %v6278_v4 = vpop.f32.mrf.mxu1 }
 0x4d6   : > { %v6261_v11 = vpop.f32.mrf.mxu3  ;;  %v6274_v45 = vpop.f32.mrf.mxu2 }
 0x4d9   : > { %v6282_v2 = vpop.f32.mrf.mxu0 }
 0x4da   : > { %v6284_v52 = vpop.f32.mrf.mxu1 }
 0x4db   : > { %4762 = vmatmul.msk.bf16.gmra.mxu3 %vm683_vm0, %v3556_v58  ;;  %vm3732_vm0 = vcmask 1045504  }
 0x4de   : > { %v6264_v21 = vpop.f32.mrf.mxu3  ;;  %v6280_v36 = vpop.f32.mrf.mxu2 }
 0x4e1   : > { %v6288_v44 = vpop.f32.mrf.mxu0 }
 0x4e2   : > { %v6292_v22 = vpop.f32.mrf.mxu1 }
 0x4e6   : > { %v6266_v57 = vpop.f32.mrf.mxu3 }
 0x4e7   : > { %v6286_v15 = vpop.f32.mrf.mxu2 }
 0x4e9   : > { %v3345_v37 = vpop.f32.mrf.mxu0 }
 0x4ea   : > { %v3431_v30 = vpop.f32.mrf.mxu1 }
 0x4ee   : > { %v3259_v59 = vpop.f32.mrf.mxu3 }
 0x4ef   : > { %v6294_v16 = vpop.f32.mrf.mxu2  ;;  %v3279_v50 = vadd.f32 %v3259_v59, %v3193_v38  ;;  %v3195_v59 = vadd.f32 %v3178_v54, %v3109_v56 }
 0x4f1   : > { %v3347_v23 = vpop.f32.mrf.mxu0  ;;  %v3365_v29 = vadd.f32 %v3345_v37, %v3279_v50  ;;  %v2939_v37 = vadd.f32 %v6299_v60, %v6259_v39 }
 0x4f2   : > { %v3433_v25 = vpop.f32.mrf.mxu1 }
 0x4f3   : > { %v3451_v33 = vadd.f32 %v3431_v30, %v3365_v29  ;;  %v3196_v30 = vadd.f32 %v6268_v14, %v3110_v26  ;;  %v3025_v61 = vadd.f32 %v6270_v40, %v2939_v37 }
 0x4f5   : > { %v3111_v39 = vadd.f32 %v6272_v53, %v3025_v61  ;;  %v4777_v61 = vld [vmem:[%s6561_s15 + $0x18] sm:$0xf] }
 0x4f6   : > { %v3261_v28 = vpop.f32.mrf.mxu3 }
 0x4f7   : > { %v3517_v31 = vpop.f32.mrf.mxu2  ;;  %v3280_v24 = vadd.f32 %v3261_v28, %v3194_v63  ;;  %v3197_v14 = vadd.f32 %v6274_v45, %v3111_v39 }
 0x4f8   : > { %v3537_v18 = vadd.f32 %v3517_v31, %v3451_v33 }
 0x4f9   : > { %v3350_v34 = vpop.f32.mrf.mxu0  ;;  %v3366_v3 = vadd.f32 %v3347_v23, %v3280_v24  ;;  %v2940_v23 = vadd.f32 %v6299_v60, %v6261_v11  ;;  %v2941_v11 = vadd.f32 %v6299_v60, %v6264_v21  ;;  %v2942_v21 = vadd.f32 %v6299_v60, %v6266_v57 }
 0x4fa   : > { %v3436_v49 = vpop.f32.mrf.mxu1 }
 0x4fb   : > { %v3452_v12 = vadd.f32 %v3433_v25, %v3366_v3  ;;  %v3026_v25 = vadd.f32 %v6276_v41, %v2940_v23  ;;  %v3027_v41 = vadd.f32 %v6282_v2, %v2941_v11  ;;  %v3028_v2 = vadd.f32 %v6288_v44, %v2942_v21 }
 0x4fd   : > { %v3112_v53 = vadd.f32 %v6278_v4, %v3026_v25  ;;  %v3113_v4 = vadd.f32 %v6284_v52, %v3027_v41  ;;  %v3114_v46 = vadd.f32 %v6292_v22, %v3028_v2  ;;  %v4899_v25 = vld [vmem:[%s6565_s19 + $0x10] sm:$0xff] }
 0x4fe   : > { %v3264_v32 = vpop.f32.mrf.mxu3 }
 0x4ff   : > { %v3519_v5 = vpop.f32.mrf.mxu2  ;;  %v3281_v48 = vadd.f32 %v3264_v32, %v3195_v59  ;;  %v3198_v45 = vadd.f32 %v6280_v36, %v3112_v53  ;;  %v3199_v36 = vadd.f32 %v6286_v15, %v3113_v4 }
 0x500   : > { %v3538_v62 = vadd.f32 %v3519_v5, %v3452_v12  ;;  %v3200_v12 = vadd.f32 %v6294_v16, %v3114_v46  ;;  %v4797_v16 = vld [vmem:[%s6563_s17 + $0x18] sm:$0xf] }
 0x501   : > { %v3352_v28 = vpop.f32.mrf.mxu0  ;;  %v3367_v8 = vadd.f32 %v3350_v34, %v3281_v48 }
 0x502   : > { %v3438_v31 = vpop.f32.mrf.mxu1 }
 0x503   : > { %v3453_v32 = vadd.f32 %v3436_v49, %v3367_v8 }
 0x506   : > { %v3266_v13 = vpop.f32.mrf.mxu3 }
 0x507   : > { %v3522_v58 = vpop.f32.mrf.mxu2  ;;  %v3282_v27 = vadd.f32 %v3266_v13, %v3196_v30 }
 0x508   : > { %v3539_v42 = vadd.f32 %v3522_v58, %v3453_v32  ;;  %v4817_v32 = vld [vmem:[%s6565_s19 + $0x18] sm:$0xf] }
 0x509   : > { %v3368_v10 = vadd.f32 %v3352_v28, %v3282_v27  ;;  %v3355_v50 = vpop.f32.mrf.mxu0  ;;  %v4892_v27 = vld [vmem:[%s6561_s15 + $0x18] sm:$0x30] }
 0x50a   : > { %v3441_v5 = vpop.f32.mrf.mxu1 }
 0x50b   : > { %v3454_v13 = vadd.f32 %v3438_v31, %v3368_v10 }
 0x50e   : > { %v6290_v0 = vpop.f32.mrf.mxu3 }
 0x50f   : > { %v3524_v54 = vpop.f32.mrf.mxu2  ;;  %v3283_v40 = vadd.f32 %v6290_v0, %v3197_v14  ;;  %v4891_v14 = vld [vmem:[%s6561_s15 + $0x10] sm:$0xff] }
 0x510   : > { %v3540_v19 = vadd.f32 %v3524_v54, %v3454_v13  ;;  %v4898_v13 = vld [vmem:[%s6565_s19 + $0x8] sm:$0xff] }
 0x511   : > { %v3369_v63 = vadd.f32 %v3355_v50, %v3283_v40  ;;  %v3357_v24 = vpop.f32.mrf.mxu0  ;;  %v4894_v40 = vld [vmem:[%s6563_s17 + $0x8] sm:$0xff] }
 0x512   : > { %v3443_v34 = vpop.f32.mrf.mxu1 }
 0x513   : > { %v3455_v33 = vadd.f32 %v3441_v5, %v3369_v63  ;;  %v4890_v5 = vld [vmem:[%s6561_s15 + $0x8] sm:$0xff] }
 0x516   : > { %v6301_v43 = vpop.f32.mrf.mxu3 }
 0x517   : > { %v3527_v1 = vpop.f32.mrf.mxu2  ;;  %v3284_v0 = vadd.f32 %v6301_v43, %v3198_v45 }
 0x519   : > { %v3370_v56 = vadd.f32 %v3357_v24, %v3284_v0 }
 0x51a   : > { %v3446_v60 = vpop.f32.mrf.mxu1 }
 0x51b   : > { %v3456_v49 = vadd.f32 %v3443_v34, %v3370_v56 }
 0x51e   : > { %v6304_v55 = vpop.f32.mrf.mxu3 }
 0x51f   : > { %v3285_v43 = vadd.f32 %v6304_v55, %v3199_v36 }
 0x522   : > { %v3448_v26 = vpop.f32.mrf.mxu1 }
 0x526   : > { %v6307_v7 = vpop.f32.mrf.mxu3 }
 0x527   : > { %v3286_v15 = vadd.f32 %v6307_v7, %v3200_v12  ;;  %v4896_v7 = vld [vmem:[%s6563_s17 + $0x18] sm:$0x30] }
 0x528   : > { %v4798_v54 = vor.u32 %v4896_v7, %v4797_v16  ;;  %v4931_v7 = vld [vmem:[%s6566_s20] ss:$0 sm:$0xff] }
 0x52a   : > { %v3801_v23 = vsel %vm3732_vm0, %v4798_v54, 0 }
 0x52b   : > { %3807 = vmatpush.bf16.msra.mxu1 %v3801_v23 }
 0x52e   : > { %v3603_v35 = vpop.f32.mrf.mxu3 }
 0x52f   : > { %v3623_v17 = vadd.f32 %v3603_v35, %v3537_v18  ;;  %v3541_v18 = vadd.f32 %v3527_v1, %v3455_v33  ;;  %v3529_v35 = vpop.f32.mrf.mxu2  ;;  %v4889_v1 = vld [vmem:[%s6561_s15] sm:$0xff] }
 0x530   : > { %v3542_v58 = vadd.f32 %v3529_v35, %v3456_v49 }
 0x531   : > { %3639 = vrot.lane.b32.xlu1 %v3623_v17, %s5122_s26  ;;  %v3360_v17 = vpop.f32.mrf.mxu0 }
 0x532   : > { %v3371_v48 = vadd.f32 %v3360_v17, %v3285_v43  ;;  %v4930_v17 = vld [vmem:[%s6564_s18] ss:$0 sm:$0xff] }
 0x536   : > { %v3605_v6 = vpop.f32.mrf.mxu3 }
 0x537   : > { %v3624_v20 = vadd.f32 %v3605_v6, %v3538_v62  ;;  %v3532_v52 = vpop.f32.mrf.mxu2  ;;  %v3457_v62 = vadd.f32 %v3446_v60, %v3371_v48 }
 0x539   : > { %3641 = vrot.lane.b32.xlu2 %v3624_v20, %s5122_s26  ;;  %v3543_v44 = vadd.f32 %v3532_v52, %v3457_v62  ;;  %v3362_v28 = vpop.f32.mrf.mxu0 }
 0x53a   : > { %v3372_v6 = vadd.f32 %v3362_v28, %v3286_v15 }
 0x53c   : > { %v3458_v8 = vadd.f32 %v3448_v26, %v3372_v6 }
 0x53e   : > { %v3608_v38 = vpop.f32.mrf.mxu3 }
 0x53f   : > { %v3625_v9 = vadd.f32 %v3608_v38, %v3539_v42  ;;  %v3534_v22 = vpop.f32.mrf.mxu2  ;;  %v4778_v42 = vor.u32 %v4892_v27, %v4777_v61  ;;  %v4900_v38 = vld [vmem:[%s6565_s19 + $0x18] sm:$0x30] }
 0x540   : > { %v3544_v20 = vadd.f32 %v3534_v22, %v3458_v8  ;;  %v4818_v39 = vor.u32 %v4900_v38, %v4817_v32 }
 0x541   : > { %3643 = vrot.lane.b32.xlu0 %v3625_v9, %s5122_s26  ;;  %v3734_v10 = vsel %vm3732_vm0, %v4778_v42, 0  ;;  %v4895_v9 = vld [vmem:[%s6563_s17 + $0x10] sm:$0xff] }
 0x542   : > { %3740 = vmatpush.bf16.msrb.mxu0 %v3734_v10  ;;  %v3868_v50 = vsel %vm3732_vm0, %v4818_v39, 0  ;;  %3808 = vmatpush.bf16.msra.mxu1 %v4895_v9 }
 0x543   : > { %3874 = vmatpush.bf16.msra.mxu2 %v3868_v50 }
 0x546   : > { %v3610_v29 = vpop.f32.mrf.mxu3  ;;  %3741 = vmatpush.bf16.msrb.mxu0 %v4891_v14  ;;  %3809 = vmatpush.bf16.msra.mxu1 %v4894_v40 }
 0x547   : > { %v3626_v51 = vadd.f32 %v3610_v29, %v3540_v19  ;;  %3875 = vmatpush.bf16.msra.mxu2 %v4899_v25  ;;  %v4893_v19 = vld [vmem:[%s6563_s17] sm:$0xff] }
 0x548   : > { %v4897_v29 = vld [vmem:[%s6565_s19] sm:$0xff] }
 0x549   : > { %3645 = vrot.lane.b32.xlu1 %v3626_v51, %s5122_s26 }
 0x54a   : > { %3742 = vmatpush.bf16.msrb.mxu0 %v4890_v5  ;;  %3810 = vmatpush.bf16.msra.mxu1 %v4893_v19 }
 0x54b   : > { %3876 = vmatpush.bf16.msra.mxu2 %v4898_v13 }
 0x54e   : > { %v3613_v47 = vpop.f32.mrf.mxu3  ;;  %3743 = vmatpush.bf16.msrb.mxu0 %v4889_v1 }
 0x54f   : > { %v3627_v3 = vadd.f32 %v3613_v47, %v3541_v18  ;;  %3877 = vmatpush.bf16.msra.mxu2 %v4897_v29 }
 0x551   : > { %3647 = vrot.lane.b32.xlu2 %v3627_v3, %s5122_s26 }
 0x556   : > { %v3615_v59 = vpop.f32.mrf.mxu3 }
 0x557   : > { %v3628_v57 = vadd.f32 %v3615_v59, %v3542_v58 }
 0x559   : > { %3649 = vrot.lane.b32.xlu0 %v3628_v57, %s5122_s26 }
 0x55e   : > { %v3618_v55 = vpop.f32.mrf.mxu3 }
 0x55f   : > { %v3629_v37 = vadd.f32 %v3618_v55, %v3543_v44 }
 0x561   : > { %3651 = vrot.lane.b32.xlu1 %v3629_v37, %s5122_s26 }
 0x566   : > { %v3620_v30 = vpop.f32.mrf.mxu3 }
 0x567   : > { %v3630_v31 = vadd.f32 %v3620_v30, %v3544_v20 }
 0x569   : > { %3653 = vrot.lane.b32.xlu2 %v3630_v31, %s5122_s26  ;;  %s681_s26 = scalar_lea.vmem %s6568_s22, %s6603_s30 }
 0x593   : > { %v3642_v11 = vpop.permute.xlu2 %3641 }
 0x594   : > { %3665 = vst.msk [vmem:[#allocation2 + $0x8] sm:$0xff] %vm3663_vm3, %v3642_v11 }
 0x59b   : > { %v6394_v45 = vld [vmem:[#allocation2 + $0x8] sm:$0xff] }
 0x5a3   : > { %v3640_v53 = vpop.permute.xlu1 %3639 }
 0x5a4   : > { %3664 = vst.msk [vmem:[#allocation2] sm:$0xff] %vm3663_vm3, %v3640_v53 }
 0x5ab   : > { %v3648_v63 = vpop.permute.xlu2 %3647  ;;  %v6392_v51 = vld [vmem:[#allocation2] sm:$0xff] }
 0x5ac   : > { %3668 = vst.msk [vmem:[#allocation2 + $0x20] sm:$0xff] %vm3663_vm3, %v3648_v63  ;;  %v3680_v24 = vpack.c.bf16 %v6394_v45, %v6392_v51 }
 0x5ae   : > { %4779 = vmatmul.msk.bf16.vlgmr.msrb.gmra.mxu0 %vm3719_vm4, %v3680_v24  ;;  %4799 = vmatmul.msk.bf16.vlgmr.msra.gmra.mxu1 %vm3719_vm4, %v3680_v24 }
 0x5af   : > { %4819 = vmatmul.msk.bf16.vlgmr.msra.gmra.mxu2 %vm3719_vm4, %v3680_v24 }
 0x5b3   : > { %v3644_v41 = vpop.permute.xlu0 %3643  ;;  %v6415_v4 = vld [vmem:[#allocation2 + $0x20] sm:$0xff] }
 0x5b4   : > { %3666 = vst.msk [vmem:[#allocation2 + $0x10] sm:$0xff] %vm3663_vm3, %v3644_v41  ;;  %v4929_v41 = vld [vmem:[%s6562_s16] ss:$0 sm:$0xff] }
 0x5bb   : > { %v3646_v0 = vpop.permute.xlu1 %3645  ;;  %v6404_v34 = vld [vmem:[#allocation2 + $0x10] sm:$0xff] }
 0x5bc   : > { %3667 = vst.msk [vmem:[#allocation2 + $0x18] sm:$0xff] %vm3663_vm3, %v3646_v0 }
 0x5c3   : > { %v3654_v33 = vpop.permute.xlu2 %3653  ;;  %v6406_v18 = vld [vmem:[#allocation2 + $0x18] sm:$0xff] }
 0x5c4   : > { %3671 = vst.msk [vmem:[#allocation2 + $0x38] sm:$0xff] %vm3663_vm3, %v3654_v33  ;;  %v3681_v35 = vpack.c.bf16 %v6406_v18, %v6404_v34 }
 0x5c6   : > { %4780 = vmatmul.msk.bf16.gmra.mxu0 %vm3719_vm4, %v3681_v35  ;;  %4800 = vmatmul.msk.bf16.gmra.mxu1 %vm3719_vm4, %v3681_v35 }
 0x5c7   : > { %4820 = vmatmul.msk.bf16.gmra.mxu2 %vm3719_vm4, %v3681_v35 }
 0x5cb   : > { %v3650_v47 = vpop.permute.xlu0 %3649  ;;  %v6427_v2 = vld [vmem:[#allocation2 + $0x38] sm:$0xff] }
 0x5cc   : > { %3669 = vst.msk [vmem:[#allocation2 + $0x28] sm:$0xff] %vm3663_vm3, %v3650_v47 }
 0x5d3   : > { %v3652_v21 = vpop.permute.xlu1 %3651  ;;  %v6417_v56 = vld [vmem:[#allocation2 + $0x28] sm:$0xff] }
 0x5d4   : > { %3670 = vst.msk [vmem:[#allocation2 + $0x30] sm:$0xff] %vm3663_vm3, %v3652_v21  ;;  %v3682_v3 = vpack.c.bf16 %v6417_v56, %v6415_v4 }
 0x5d6   : > { %4781 = vmatmul.msk.bf16.gmra.mxu0 %vm3719_vm4, %v3682_v3  ;;  %4801 = vmatmul.msk.bf16.gmra.mxu1 %vm3719_vm4, %v3682_v3 }
 0x5d7   : > { %4821 = vmatmul.msk.bf16.gmra.mxu2 %vm3719_vm4, %v3682_v3 }
 0x5db   : > { %v6425_v36 = vld [vmem:[#allocation2 + $0x30] sm:$0xff] }
 0x5dc   : > { %v3683_v43 = vpack.c.bf16 %v6427_v2, %v6425_v36 }
 0x5e6   : > { %4782 = vmatmul.msk.bf16.gmra.mxu0 %vm3719_vm4, %v3683_v43  ;;  %4802 = vmatmul.msk.bf16.gmra.mxu1 %vm3719_vm4, %v3683_v43 }
 0x5e7   : > { %4822 = vmatmul.msk.bf16.gmra.mxu2 %vm3719_vm4, %v3683_v43 }
 0x62b   : > { %v3812_v49 = vpop.f32.mrf.mxu1  ;;  %v3745_v27 = vpop.f32.mrf.mxu0 }
 0x62c   : > { %v3813_v59 = vadd.f32 %v4930_v17, %v3812_v49  ;;  %v3746_v35 = vadd.f32 %v4929_v41, %v3745_v27 }
 0x632   : > { %v3879_v57 = vpop.f32.mrf.mxu2 }
 0x633   : > { %v3814_v58 = vpop.f32.mrf.mxu1  ;;  %v3747_v1 = vpop.f32.mrf.mxu0  ;;  %v3880_v11 = vadd.f32 %v4931_v7, %v3879_v57 }
 0x634   : > { %v3815_v46 = vadd.f32 %v4930_v17, %v3814_v58  ;;  %v3748_v33 = vadd.f32 %v4929_v41, %v3747_v1 }
 0x636   : > { %v3903_v48 = vpack.c.bf16 %v3815_v46, %v3813_v59  ;;  %v3899_v47 = vpack.c.bf16 %v3748_v33, %v3746_v35 }
 0x638   : > { %v3921_v0 = vsel %vm3907_vm5, %v3903_v48, 0 }
 0x63a   : > { %v3881_v60 = vpop.f32.mrf.mxu2 }
 0x63b   : > { %v3882_v19 = vadd.f32 %v4931_v7, %v3881_v60 }
 0x63d   : > { %v4158_v63 = vpack.c.bf16 %v3882_v19, %v3880_v11 }
 0x643   : > { %v3817_v52 = vpop.f32.mrf.mxu1  ;;  %v3750_v24 = vpop.f32.mrf.mxu0 }
 0x644   : > { %v3818_v5 = vadd.f32 %v4930_v17, %v3817_v52  ;;  %v3751_v49 = vadd.f32 %v4929_v41, %v3750_v24 }
 0x64a   : > { %v3884_v12 = vpop.f32.mrf.mxu2 }
 0x64b   : > { %v3819_v15 = vpop.f32.mrf.mxu1  ;;  %v3885_v40 = vadd.f32 %v4931_v7, %v3884_v12  ;;  %v3752_v21 = vpop.f32.mrf.mxu0 }
 0x64c   : > { %v3820_v9 = vadd.f32 %v4930_v17, %v3819_v15  ;;  %v3753_v43 = vadd.f32 %v4929_v41, %v3752_v21 }
 0x64e   : > { %v3904_v13 = vpack.c.bf16 %v3820_v9, %v3818_v5 }
 0x650   : > { %v3924_v53 = vsel %vm3907_vm5, %v3904_v13, 0 }
 0x652   : > { %v3886_v62 = vpop.f32.mrf.mxu2 }
 0x653   : > { %v3822_v44 = vpop.f32.mrf.mxu1  ;;  %v3887_v14 = vadd.f32 %v4931_v7, %v3886_v62  ;;  %v3755_v3 = vpop.f32.mrf.mxu0 }
 0x654   : > { %v3823_v54 = vadd.f32 %v4930_v17, %v3822_v44  ;;  %v3756_v46 = vadd.f32 %v4929_v41, %v3755_v3 }
 0x655   : > { %v4159_v29 = vpack.c.bf16 %v3887_v14, %v3885_v40 }
 0x65a   : > { %v3889_v28 = vpop.f32.mrf.mxu2 }
 0x65b   : > { %v3824_v55 = vpop.f32.mrf.mxu1  ;;  %v3890_v10 = vadd.f32 %v4931_v7, %v3889_v28  ;;  %v3757_v58 = vpop.f32.mrf.mxu0 }
 0x65c   : > { %v3825_v31 = vadd.f32 %v4930_v17, %v3824_v55  ;;  %v3758_v59 = vadd.f32 %v4929_v41, %v3757_v58 }
 0x65e   : > { %v3905_v38 = vpack.c.bf16 %v3825_v31, %v3823_v54  ;;  %v3901_v60 = vpack.c.bf16 %v3758_v59, %v3756_v46 }
 0x660   : > { %v3927_v50 = vsel %vm3907_vm5, %v3905_v38, 0 }
 0x662   : > { %v3891_v6 = vpop.f32.mrf.mxu2 }
 0x663   : > { %v3827_v37 = vpop.f32.mrf.mxu1  ;;  %v3892_v23 = vadd.f32 %v4931_v7, %v3891_v6  ;;  %v3760_v57 = vpop.f32.mrf.mxu0 }
 0x664   : > { %v3828_v8 = vadd.f32 %v4930_v17, %v3827_v37  ;;  %v3761_v12 = vadd.f32 %v4929_v41, %v3760_v57 }
 0x665   : > { %v4160_v25 = vpack.c.bf16 %v3892_v23, %v3890_v10 }
 0x66a   : > { %v3894_v26 = vpop.f32.mrf.mxu2 }
 0x66b   : > { %v3829_v22 = vpop.f32.mrf.mxu1  ;;  %v3895_v32 = vadd.f32 %v4931_v7, %v3894_v26  ;;  %v3762_v48 = vpop.f32.mrf.mxu0 }
 0x66c   : > { %v3830_v20 = vadd.f32 %v4930_v17, %v3829_v22  ;;  %v3900_v17 = vpack.c.bf16 %v3753_v43, %v3751_v49  ;;  %v3763_v52 = vadd.f32 %v4929_v41, %v3762_v48 }
 0x66e   : > { %v3906_v30 = vpack.c.bf16 %v3830_v20, %v3828_v8  ;;  %v3902_v15 = vpack.c.bf16 %v3763_v52, %v3761_v12 }
 0x670   : > { %v3930_v16 = vsel %vm3907_vm5, %v3906_v30, 0 }
 0x671   : > { %3936 = vmatpush.bf16.xpose.msra.mxu3 %v3930_v16 }
 0x672   : > { %v3896_v61 = vpop.f32.mrf.mxu2 }
 0x673   : > { %v3897_v42 = vadd.f32 %v4931_v7, %v3896_v61 }
 0x675   : > { %v4161_v39 = vpack.c.bf16 %v3897_v42, %v3895_v32 }
 0x677   : > { %4178 = vmatpush.bf16.msra.mxu0 %v4161_v39 }
 0x679   : > { %3937 = vmatpush.bf16.xpose.msra.mxu3 %v3927_v50 }
 0x67b   : > { %4179 = vmatpush.bf16.msra.mxu0 %v4160_v25 }
 0x67f   : > { %4180 = vmatpush.bf16.msra.mxu0 %v4159_v29 }
 0x681   : > { %3938 = vmatpush.bf16.xpose.msra.mxu3 %v3924_v53 }
 0x683   : > { %4181 = vmatpush.bf16.msra.mxu0 %v4158_v63 }
 0x689   : > { %3939 = vmatpush.bf16.xpose.msra.mxu3 %v3921_v0 }
 0x690   : > { %4823 = vmatmul.msk.bf16.vlgmr.msra.gmra.mxu3 %vm3907_vm5, %v3899_v47 }
 0x6a0   : > { %4824 = vmatmul.msk.bf16.gmra.mxu3 %vm3907_vm5, %v3900_v17 }
 0x6b0   : > { %4825 = vmatmul.msk.bf16.gmra.mxu3 %vm3907_vm5, %v3901_v60 }
 0x6c0   : > { %4826 = vmatmul.msk.bf16.gmra.mxu3 %vm3907_vm5, %v3902_v15 }
 0x713   : > { %v3941_v62 = vpop.f32.mrf.mxu3 }
 0x714   : > { %v3962_v44 = vsel %vm3961_vm6, %v3941_v62, -inf }
 0x715   : > { %3963 = vmax.xlane.f32.xlu0 %v3962_v44 }
 0x71b   : > { %v3943_v28 = vpop.f32.mrf.mxu3 }
 0x71c   : > { %v3965_v55 = vsel %vm3961_vm6, %v3943_v28, -inf }
 0x71d   : > { %3966 = vmax.xlane.f32.xlu1 %v3965_v55 }
 0x723   : > { %v3946_v6 = vpop.f32.mrf.mxu3 }
 0x724   : > { %v3968_v37 = vsel %vm3961_vm6, %v3946_v6, -inf }
 0x725   : > { %3969 = vmax.xlane.f32.xlu2 %v3968_v37 }
 0x72b   : > { %v3948_v26 = vpop.f32.mrf.mxu3 }
 0x72c   : > { %v3971_v22 = vsel %vm3961_vm6, %v3948_v26, -inf }
 0x72d   : > { %3972 = vmax.xlane.f32.xlu2 %v3971_v22 }
 0x733   : > { %v3951_v8 = vpop.f32.mrf.mxu3 }
 0x734   : > { %v3974_v20 = vsel %vm3961_vm6, %v3951_v8, -inf }
 0x735   : > { %3975 = vmax.xlane.f32.xlu0 %v3974_v20 }
 0x73b   : > { %v3953_v30 = vpop.f32.mrf.mxu3 }
 0x73c   : > { %v3977_v31 = vsel %vm3961_vm6, %v3953_v30, -inf }
 0x73d   : > { %3978 = vmax.xlane.f32.xlu1 %v3977_v31  ;;  %v5123_v31 = vmov 0  }
 0x73e   : > { %4918 = vset.pattern.permute.xlu0 %v5123_v31 }
 0x743   : > { %v3956_v16 = vpop.f32.mrf.mxu3 }
 0x744   : > { %v3980_v7 = vsel %vm3961_vm6, %v3956_v16, -inf }
 0x745   : > { %3981 = vmax.xlane.f32.xlu2 %v3980_v7 }
 0x74b   : > { %v3958_v54 = vpop.f32.mrf.mxu3 }
 0x74c   : > { %v3983_v61 = vsel %vm3961_vm6, %v3958_v54, -inf }
 0x74d   : > { %3984 = vmax.xlane.f32.xlu0 %v3983_v61 }
 0x788   : > { %v3964_v27 = vpop.xlane.xlu0 %3963 }
 0x789   : > { %v3986_v32 = vsub.f32 %v3941_v62, %v3964_v27 }
 0x78b   : > { %v3994_v42 = vmul.f32 1.442695, %v3986_v32 }
 0x78d   : > { %5077 = vpow2.f32 %v3994_v42 }
 0x790   : > { %v3967_v38 = vpop.xlane.xlu1 %3966 }
 0x791   : > { %v3987_v23 = vsub.f32 %v3943_v28, %v3967_v38 }
 0x793   : > { %v6459_v39 = vpop.eup %5077  ;;  %v3996_v10 = vmul.f32 1.442695, %v3987_v23 }
 0x794   : > { %v4010_v9 = vsel %vm3961_vm6, %v6459_v39, 0.0 }
 0x795   : > { %5079 = vpow2.f32 %v3996_v10  ;;  %4011 = vadd.xlane.f32.xlu1 %v4010_v9 }
 0x798   : > { %v3970_v50 = vpop.xlane.xlu2 %3969 }
 0x799   : > { %v3988_v14 = vsub.f32 %v3946_v6, %v3970_v50 }
 0x79b   : > { %v6463_v25 = vpop.eup %5079  ;;  %v3998_v5 = vmul.f32 1.442695, %v3988_v14 }
 0x79c   : > { %v4013_v40 = vsel %vm3961_vm6, %v6463_v25, 0.0 }
 0x79d   : > { %5081 = vpow2.f32 %v3998_v5  ;;  %4014 = vadd.xlane.f32.xlu2 %v4013_v40 }
 0x7a0   : > { %v3973_v13 = vpop.xlane.xlu2 %3972 }
 0x7a1   : > { %v3989_v1 = vsub.f32 %v3948_v26, %v3973_v13 }
 0x7a3   : > { %v6467_v19 = vpop.eup %5081  ;;  %v4000_v29 = vmul.f32 1.442695, %v3989_v1 }
 0x7a4   : > { %v4016_v11 = vsel %vm3961_vm6, %v6467_v19, 0.0 }
 0x7a5   : > { %5083 = vpow2.f32 %v4000_v29  ;;  %4017 = vadd.xlane.f32.xlu0 %v4016_v11 }
 0x7a8   : > { %v3976_v53 = vpop.xlane.xlu0 %3975 }
 0x7a9   : > { %v3990_v63 = vsub.f32 %v3951_v8, %v3976_v53 }
 0x7ab   : > { %v6471_v24 = vpop.eup %5083  ;;  %v4002_v41 = vmul.f32 1.442695, %v3990_v63 }
 0x7ac   : > { %v4019_v0 = vsel %vm3961_vm6, %v6471_v24, 0.0 }
 0x7ad   : > { %5085 = vpow2.f32 %v4002_v41  ;;  %4020 = vadd.xlane.f32.xlu1 %v4019_v0 }
 0x7b0   : > { %v3979_v33 = vpop.xlane.xlu1 %3978 }
 0x7b1   : > { %v3991_v35 = vsub.f32 %v3953_v30, %v3979_v33 }
 0x7b3   : > { %v6475_v47 = vpop.eup %5085  ;;  %v4004_v21 = vmul.f32 1.442695, %v3991_v35 }
 0x7b4   : > { %v4022_v3 = vsel %vm3961_vm6, %v6475_v47, 0.0 }
 0x7b5   : > { %5087 = vpow2.f32 %v4004_v21  ;;  %4023 = vadd.xlane.f32.xlu2 %v4022_v3 }
 0x7b8   : > { %v3982_v43 = vpop.xlane.xlu2 %3981 }
 0x7b9   : > { %v3992_v49 = vsub.f32 %v3956_v16, %v3982_v43 }
 0x7bb   : > { %v6479_v17 = vpop.eup %5087  ;;  %v4006_v58 = vmul.f32 1.442695, %v3992_v49 }
 0x7bc   : > { %v4025_v59 = vsel %vm3961_vm6, %v6479_v17, 0.0 }
 0x7bd   : > { %5089 = vpow2.f32 %v4006_v58  ;;  %4026 = vadd.xlane.f32.xlu0 %v4025_v59 }
 0x7c0   : > { %v3985_v46 = vpop.xlane.xlu0 %3984 }
 0x7c1   : > { %v3993_v57 = vsub.f32 %v3958_v54, %v3985_v46  ;;  %v4932_v54 = vld [vmem:[#allocation4] ss:$0 sm:$0xff] }
 0x7c3   : > { %v6483_v60 = vpop.eup %5089  ;;  %v4008_v48 = vmul.f32 1.442695, %v3993_v57 }
 0x7c4   : > { %v4028_v52 = vsel %vm3961_vm6, %v6483_v60, 0.0 }
 0x7c5   : > { %5091 = vpow2.f32 %v4008_v48  ;;  %4029 = vadd.xlane.f32.xlu1 %v4028_v52 }
 0x7cb   : > { %v6487_v12 = vpop.eup %5091 }
 0x7cc   : > { %v4031_v15 = vsel %vm3961_vm6, %v6487_v12, 0.0 }
 0x7cd   : > { %4032 = vadd.xlane.f32.xlu2 %v4031_v15 }
 0x7d1   : > { %4207 = vperm.xlu0 %4918, %v4932_v54  }
 0x808   : > { %v4012_v62 = vpop.xlane.xlu1 %4011 }
 0x809   : > { %5093 = vrcp.f32 %v4012_v62  ;;  %v4045_v30 = vand.u32 2147483648, %v4012_v62  ;;  %vm4039_vm8 = vweird.f32 %v4012_v62  ;;  %v4043_v16 = vand.u32 2147483647, %v4012_v62 }
 0x80b   : > { %v4046_v38 = vor.u32 1.1754944e-38, %v4045_v30  ;;  %vm4044_vm11 = vcmp.eq.f32.partialorder %v4043_v16, 8.507059e+37 }
 0x80f   : > { %v5094_v44 = vpop.eup %5093 }
 0x810   : > { %v4035_v28 = vmul.f32 %v5094_v44, %v4012_v62  ;;  %v4015_v55 = vpop.xlane.xlu2 %4014  ;;  %vm4040_vm7 = vweird.f32 %v5094_v44 }
 0x811   : > { %5095 = vrcp.f32 %v4015_v55  ;;  %vm4041_vm9 = vmor %vm4039_vm8, %vm4040_vm7  ;;  %v4060_v61 = vand.u32 2147483648, %v4015_v55  ;;  %v4058_v42 = vand.u32 2147483647, %v4015_v55  ;;  %vm4054_vm12 = vweird.f32 %v4015_v55 }
 0x812   : > { %v4036_v6 = vsub.f32 1.0, %v4035_v28 }
 0x813   : > { %v4061_v50 = vor.u32 1.1754944e-38, %v4060_v61  ;;  %vm4059_vm14 = vcmp.eq.f32.partialorder %v4058_v42, 8.507059e+37 }
 0x814   : > { %v4037_v37 = vmul.f32 %v5094_v44, %v4036_v6 }
 0x816   : > { %v4038_v22 = vadd.f32 %v5094_v44, %v4037_v37 }
 0x817   : > { %v5096_v26 = vpop.eup %5095 }
 0x818   : > { %v4050_v8 = vmul.f32 %v5096_v26, %v4015_v55  ;;  %v4018_v20 = vpop.xlane.xlu0 %4017  ;;  %v4042_v27 = vsel %vm4041_vm9, %v5094_v44, %v4038_v22  ;;  %vm4055_vm10 = vweird.f32 %v5096_v26 }
 0x819   : > { %5097 = vrcp.f32 %v4018_v20  ;;  %v4047_v9 = vsel %vm4044_vm11, %v4046_v38, %v4042_v27  ;;  %vm4056_vm13 = vmor %vm4054_vm12, %vm4055_vm10  ;;  %v4075_v21 = vand.u32 2147483648, %v4018_v20  ;;  %vm4069_vm1 = vweird.f32 %v4018_v20 }
 0x81a   : > { %v4051_v7 = vsub.f32 1.0, %v4050_v8  ;;  %v4048_v1 = vmul.f32 %v6459_v39, %v4047_v9  ;;  %v4073_v43 = vand.u32 2147483647, %v4018_v20 }
 0x81b   : > { %v4076_v46 = vor.u32 1.1754944e-38, %v4075_v21 }
 0x81c   : > { %v4052_v32 = vmul.f32 %v5096_v26, %v4051_v7  ;;  %vm4074_vm5 = vcmp.eq.f32.partialorder %v4073_v43, 8.507059e+37 }
 0x81e   : > { %v4053_v23 = vadd.f32 %v5096_v26, %v4052_v32 }
 0x81f   : > { %v5098_v10 = vpop.eup %5097 }
 0x820   : > { %v4057_v14 = vsel %vm4056_vm13, %v5096_v26, %v4053_v23  ;;  %v4065_v5 = vmul.f32 %v5098_v10, %v4018_v20  ;;  %v4021_v40 = vpop.xlane.xlu1 %4020  ;;  %vm4070_vm15 = vweird.f32 %v5098_v10 }
 0x821   : > { %v4062_v13 = vsel %vm4059_vm14, %v4061_v50, %v4057_v14  ;;  %5099 = vrcp.f32 %v4021_v40  ;;  %vm6494_vm2 = vmor %vm4069_vm1, %vm4070_vm15  ;;  %v4088_v59 = vand.u32 2147483647, %v4021_v40  ;;  %vm4084_vm3 = vweird.f32 %v4021_v40 }
 0x822   : > { %v4063_v29 = vmul.f32 %v6463_v25, %v4062_v13  ;;  %v4066_v11 = vsub.f32 1.0, %v4065_v5  ;;  %v4090_v25 = vand.u32 2147483648, %v4021_v40 }
 0x823   : > { %vm4089_vm8 = vcmp.eq.f32.partialorder %v4088_v59, 8.507059e+37 }
 0x824   : > { %v4154_v53 = vpack.c.bf16 %v4063_v29, %v4048_v1  ;;  %v4067_v63 = vmul.f32 %v5098_v10, %v4066_v11  ;;  %v4091_v15 = vor.u32 1.1754944e-38, %v4090_v25 }
 0x826   : > { %4827 = vmatmul.msk.bf16.vlgmr.msra.gmra.mxu0 %vm3961_vm6, %v4154_v53  ;;  %v4068_v35 = vadd.f32 %v5098_v10, %v4067_v63 }
 0x827   : > { %v5100_v41 = vpop.eup %5099 }
 0x828   : > { %v4080_v0 = vmul.f32 %v5100_v41, %v4021_v40  ;;  %v4024_v33 = vpop.xlane.xlu2 %4023  ;;  %vm4085_vm0 = vweird.f32 %v5100_v41  ;;  %v4072_v58 = vsel %vm6494_vm2, %v5098_v10, %v4068_v35 }
 0x829   : > { %5101 = vrcp.f32 %v4024_v33  ;;  %vm4086_vm7 = vmor %vm4084_vm3, %vm4085_vm0  ;;  %v4077_v28 = vsel %vm4074_vm5, %v4076_v46, %v4072_v58  ;;  %v4105_v7 = vand.u32 2147483648, %v4024_v33  ;;  %vm4099_vm10 = vweird.f32 %v4024_v33 }
 0x82a   : > { %v4081_v3 = vsub.f32 1.0, %v4080_v0  ;;  %v4078_v37 = vmul.f32 %v6467_v19, %v4077_v28  ;;  %v4103_v61 = vand.u32 2147483647, %v4024_v33 }
 0x82b   : > { %v4106_v38 = vor.u32 1.1754944e-38, %v4105_v7 }
 0x82c   : > { %v4082_v39 = vmul.f32 %v5100_v41, %v4081_v3  ;;  %vm4104_vm14 = vcmp.eq.f32.partialorder %v4103_v61, 8.507059e+37 }
 0x82e   : > { %v4083_v57 = vadd.f32 %v5100_v41, %v4082_v39 }
 0x82f   : > { %v5102_v48 = vpop.eup %5101 }
 0x830   : > { %v4087_v52 = vsel %vm4086_vm7, %v5100_v41, %v4083_v57  ;;  %v4095_v62 = vmul.f32 %v5102_v48, %v4024_v33  ;;  %v4027_v44 = vpop.xlane.xlu0 %4026  ;;  %vm4100_vm9 = vweird.f32 %v5102_v48 }
 0x831   : > { %5103 = vrcp.f32 %v4027_v44  ;;  %v4092_v6 = vsel %vm4089_vm8, %v4091_v15, %v4087_v52  ;;  %vm6503_vm11 = vmor %vm4099_vm10, %vm4100_vm9  ;;  %v4118_v42 = vand.u32 2147483647, %v4027_v44  ;;  %vm4114_vm13 = vweird.f32 %v4027_v44 }
 0x832   : > { %v4096_v55 = vsub.f32 1.0, %v4095_v62  ;;  %v4093_v26 = vmul.f32 %v6471_v24, %v4092_v6  ;;  %v4120_v24 = vand.u32 2147483648, %v4027_v44 }
 0x833   : > { %vm4119_vm1 = vcmp.eq.f32.partialorder %v4118_v42, 8.507059e+37 }
 0x834   : > { %v4097_v22 = vmul.f32 %v5102_v48, %v4096_v55  ;;  %v4155_v8 = vpack.c.bf16 %v4093_v26, %v4078_v37  ;;  %v4121_v50 = vor.u32 1.1754944e-38, %v4120_v24 }
 0x836   : > { %4828 = vmatmul.msk.bf16.gmra.mxu0 %vm3961_vm6, %v4155_v8  ;;  %v4098_v16 = vadd.f32 %v5102_v48, %v4097_v22 }
 0x837   : > { %v5104_v20 = vpop.eup %5103 }
 0x838   : > { %v4110_v30 = vmul.f32 %v5104_v20, %v4027_v44  ;;  %v4030_v31 = vpop.xlane.xlu1 %4029  ;;  %vm4115_vm12 = vweird.f32 %v5104_v20  ;;  %v4102_v32 = vsel %vm6503_vm11, %v5102_v48, %v4098_v16  ;;  %vm4263_vm11 = vcmask 483328  }
 0x839   : > { %5105 = vrcp.f32 %v4030_v31  ;;  %vm4116_vm15 = vmor %vm4114_vm13, %vm4115_vm12  ;;  %v4107_v40 = vsel %vm4104_vm14, %v4106_v38, %v4102_v32  ;;  %v4135_v35 = vand.u32 2147483648, %v4030_v31  ;;  %vm4129_vm0 = vweird.f32 %v4030_v31 }
 0x83a   : > { %v4111_v54 = vsub.f32 1.0, %v4110_v30  ;;  %v4108_v29 = vmul.f32 %v6475_v47, %v4107_v40  ;;  %v4133_v21 = vand.u32 2147483647, %v4030_v31 }
 0x83b   : > { %v4136_v25 = vor.u32 1.1754944e-38, %v4135_v35 }
 0x83c   : > { %v4112_v19 = vmul.f32 %v5104_v20, %v4111_v54  ;;  %vm4134_vm7 = vcmp.eq.f32.partialorder %v4133_v21, 8.507059e+37 }
 0x83e   : > { %v4113_v23 = vadd.f32 %v5104_v20, %v4112_v19 }
 0x83f   : > { %v5106_v10 = vpop.eup %5105 }
 0x840   : > { %v4117_v9 = vsel %vm4116_vm15, %v5104_v20, %v4113_v23  ;;  %v4125_v14 = vmul.f32 %v5106_v10, %v4030_v31  ;;  %v4033_v5 = vpop.xlane.xlu2 %4032  ;;  %vm4130_vm2 = vweird.f32 %v5106_v10 }
 0x841   : > { %5107 = vrcp.f32 %v4033_v5  ;;  %v4122_v1 = vsel %vm4119_vm1, %v4121_v50, %v4117_v9  ;;  %vm4131_vm3 = vmor %vm4129_vm0, %vm4130_vm2  ;;  %v4150_v43 = vand.u32 2147483648, %v4033_v5  ;;  %v4148_v47 = vand.u32 2147483647, %v4033_v5 }
 0x842   : > { %v4126_v13 = vsub.f32 1.0, %v4125_v14  ;;  %v4123_v11 = vmul.f32 %v6479_v17, %v4122_v1  ;;  %vm4144_vm8 = vweird.f32 %v4033_v5  ;;  %v5124_v9 = vmov 64.0  }
 0x843   : > { %v4151_v59 = vor.u32 1.1754944e-38, %v4150_v43  ;;  %vm4149_vm10 = vcmp.eq.f32.partialorder %v4148_v47, 8.507059e+37  ;;  %v4208_v37 = vpop.permute.xlu0 %4207  ;;  %5109 = vrcp.f32 %v5124_v9 }
 0x844   : > { %v4127_v53 = vmul.f32 %v5106_v10, %v4126_v13  ;;  %v4156_v63 = vpack.c.bf16 %v4123_v11, %v4108_v29 }
 0x846   : > { %4829 = vmatmul.msk.bf16.gmra.mxu0 %vm3961_vm6, %v4156_v63  ;;  %v4128_v0 = vadd.f32 %v5106_v10, %v4127_v53 }
 0x847   : > { %v5108_v41 = vpop.eup %5107 }
 0x848   : > { %v4140_v33 = vmul.f32 %v5108_v41, %v4033_v5  ;;  %v4132_v49 = vsel %vm4131_vm3, %v5106_v10, %v4128_v0  ;;  %vm4145_vm5 = vweird.f32 %v5108_v41 }
 0x849   : > { %v4137_v58 = vsel %vm4134_vm7, %v4136_v25, %v4132_v49  ;;  %vm4146_vm9 = vmor %vm4144_vm8, %vm4145_vm5  ;;  %v5110_v29 = vpop.eup %5109 }
 0x84a   : > { %v4141_v3 = vsub.f32 1.0, %v4140_v33  ;;  %v4138_v48 = vmul.f32 %v6483_v60, %v4137_v58  ;;  %v4256_v35 = vmul.f32 64.0, %v5110_v29 }
 0x84c   : > { %v4142_v39 = vmul.f32 %v5108_v41, %v4141_v3 }
 0x84e   : > { %v4143_v17 = vadd.f32 %v5108_v41, %v4142_v39 }
 0x850   : > { %v4147_v46 = vsel %vm4146_vm9, %v5108_v41, %v4143_v17 }
 0x851   : > { %v4152_v57 = vsel %vm4149_vm10, %v4151_v59, %v4147_v46 }
 0x852   : > { %v4153_v52 = vmul.f32 %v6487_v12, %v4152_v57 }
 0x854   : > { %v4157_v15 = vpack.c.bf16 %v4153_v52, %v4138_v48 }
 0x856   : > { %4830 = vmatmul.msk.bf16.gmra.mxu0 %vm3961_vm6, %v4157_v15  ;;  %vm4260_vm6 = vweird.f32 %v5110_v29 }
 0x8a3   : > { %v4183_v62 = vpop.f32.mrf.mxu0 }
 0x8a4   : > { %v4210_v22 = vmul.f32 %v4208_v37, %v4183_v62 }
 0x8a6   : > { %v4218_v60 = vadd.f32 %v4210_v22, %v6392_v51 }
 0x8a8   : > { %v4226_v27 = vmul.f32 %v4218_v60, %v6392_v51 }
 0x8ab   : > { %v4185_v44 = vpop.f32.mrf.mxu0 }
 0x8ac   : > { %v4211_v26 = vmul.f32 %v4208_v37, %v4185_v44 }
 0x8ae   : > { %v4219_v30 = vadd.f32 %v4211_v26, %v6394_v45 }
 0x8b0   : > { %v4227_v7 = vmul.f32 %v4219_v30, %v6394_v45  ;;  %v4234_v45 = vsel %vm3719_vm4, %v4226_v27, 0.0 }
 0x8b2   : > { %v4235_v42 = vsel %vm3719_vm4, %v4227_v7, 0.0 }
 0x8b3   : > { %v4188_v28 = vpop.f32.mrf.mxu0  ;;  %v4236_v14 = vadd.f32 %v4235_v42, %v4234_v45 }
 0x8b4   : > { %v4212_v8 = vmul.f32 %v4208_v37, %v4188_v28 }
 0x8b6   : > { %v4220_v12 = vadd.f32 %v4212_v8, %v6404_v34 }
 0x8b8   : > { %v4228_v19 = vmul.f32 %v4220_v12, %v6404_v34 }
 0x8ba   : > { %v4237_v50 = vsel %vm3719_vm4, %v4228_v19, 0.0 }
 0x8bb   : > { %v4190_v55 = vpop.f32.mrf.mxu0  ;;  %v4238_v13 = vadd.f32 %v4237_v50, %v4236_v14 }
 0x8bc   : > { %v4213_v31 = vmul.f32 %v4208_v37, %v4190_v55 }
 0x8be   : > { %v4221_v54 = vadd.f32 %v4213_v31, %v6406_v18 }
 0x8c0   : > { %v4229_v38 = vmul.f32 %v4221_v54, %v6406_v18 }
 0x8c2   : > { %v4239_v5 = vsel %vm3719_vm4, %v4229_v38, 0.0 }
 0x8c3   : > { %v4193_v6 = vpop.f32.mrf.mxu0  ;;  %v4240_v11 = vadd.f32 %v4239_v5, %v4238_v13 }
 0x8c4   : > { %v4214_v16 = vmul.f32 %v4208_v37, %v4193_v6 }
 0x8c6   : > { %v4222_v24 = vadd.f32 %v4214_v16, %v6415_v4 }
 0x8c8   : > { %v4230_v51 = vmul.f32 %v4222_v24, %v6415_v4 }
 0x8ca   : > { %v4241_v18 = vsel %vm3719_vm4, %v4230_v51, 0.0 }
 0x8cb   : > { %v4195_v20 = vpop.f32.mrf.mxu0  ;;  %v4242_v0 = vadd.f32 %v4241_v18, %v4240_v11 }
 0x8cc   : > { %v4215_v61 = vmul.f32 %v4208_v37, %v4195_v20 }
 0x8ce   : > { %v4223_v23 = vadd.f32 %v4215_v61, %v6417_v56 }
 0x8d0   : > { %v4231_v40 = vmul.f32 %v4223_v23, %v6417_v56 }
 0x8d2   : > { %v4243_v63 = vsel %vm3719_vm4, %v4231_v40, 0.0 }
 0x8d3   : > { %v4198_v32 = vpop.f32.mrf.mxu0  ;;  %v4244_v21 = vadd.f32 %v4243_v63, %v4242_v0 }
 0x8d4   : > { %v4216_v10 = vmul.f32 %v4208_v37, %v4198_v32 }
 0x8d6   : > { %v4224_v34 = vadd.f32 %v4216_v10, %v6425_v36 }
 0x8d8   : > { %v4232_v1 = vmul.f32 %v4224_v34, %v6425_v36  ;;  %v4257_v36 = vsub.f32 1.0, %v4256_v35 }
 0x8da   : > { %v4245_v4 = vsel %vm3719_vm4, %v4232_v1, 0.0  ;;  %v4258_v47 = vmul.f32 %v5110_v29, %v4257_v36 }
 0x8db   : > { %v4200_v53 = vpop.f32.mrf.mxu0  ;;  %v4246_v3 = vadd.f32 %v4245_v4, %v4244_v21 }
 0x8dc   : > { %v4217_v41 = vmul.f32 %v4208_v37, %v4200_v53  ;;  %v4259_v58 = vadd.f32 %v5110_v29, %v4258_v47 }
 0x8de   : > { %v4225_v33 = vadd.f32 %v4217_v41, %v6427_v2  ;;  %v4261_v57 = vsel %vm4260_vm6, %v5110_v29, %v4259_v58 }
 0x8e0   : > { %v4233_v56 = vmul.f32 %v4225_v33, %v6427_v2 }
 0x8e2   : > { %v4247_v43 = vsel %vm3719_vm4, %v4233_v56, 0.0 }
 0x8e3   : > { %v4248_v49 = vadd.f32 %v4247_v43, %v4246_v3 }
 0x8e5   : > { %v4249_v39 = vrot.slane %v4248_v49, 4 }
 0x8e7   : > { %v4250_v25 = vadd.f32 %v4249_v39, %v4248_v49 }
 0x8e9   : > { %v4251_v17 = vrot.slane %v4250_v25, 2 }
 0x8eb   : > { %v4252_v59 = vadd.f32 %v4251_v17, %v4250_v25 }
 0x8ed   : > { %v4253_v46 = vrot.slane %v4252_v59, 1 }
 0x8ef   : > { %v4254_v48 = vadd.f32 %v4253_v46, %v4252_v59 }
 0x8f1   : > { %v4262_v2 = vmul.f32 %v4261_v57, %v4254_v48 }
 0x8f3   : > { %4264 = vst.msk [vmem:[%s681_s26] sm:$0x1] %vm4263_vm11, %v4262_v2 }
 0x8f4 PF: > { %s34_s29 = sadd.s32 1, %s5117_s29  }
 0x8f5   : > { %p31_p4 = scmp.ge.s32.totalorder %s34_s29, 4  }
 0x8f7   :  { %33 = sbr.rel (!%p31_p4) target bundleno = 8 (0x8), region = 164 }

</bundles_post_ra>
